<compile_context>
chip_gen: v5e
topology: v5e:2x2
jax: 0.10.0
libtpu: 0.0.40
codegen_flags: <defaults>
</compile_context>

<pallas_src>
import functools

import jax
import jax.numpy as jnp
from jax import lax
from jax.experimental import pallas as pl
from jax.experimental.pallas import tpu as pltpu

_MASK_BIG = 1e30
_VMEM_LIMIT = 48 * 1024 * 1024  # safe on v5e/v6e (128 MiB) and v7x (64 MiB)


def _round_up(n, m):
    return ((n + m - 1) // m) * m


def _pick_block(n, candidates):
    for c in candidates:
        if n % c == 0:
            return c
    return n


# ---------------------------------------------------------------------------
# Kernel 1: fused projection  x @ [Wq|Wk|Wv|Wskip] + b
#           -> q [H,N,d] bf16, k^T [H,d,N] bf16 (lane-dense), v [H,N,d] bf16,
#              skip [N,H*d] f32
# ---------------------------------------------------------------------------

def _proj_kernel(x_ref, w_ref, b_ref, q_ref, kt_ref, v_ref, s_ref, *, heads, d):
    out_dim = heads * d
    # One wide MXU matmul (bf16 in, f32 accumulation).
    proj = jnp.dot(x_ref[...], w_ref[...], preferred_element_type=jnp.float32)
    proj = proj + b_ref[...]
    for h in range(heads):                     # heads is small & static
        q_ref[h] = proj[:, h * d:(h + 1) * d].astype(jnp.bfloat16)
        # Pre-transpose K so the attention kernel sees a lane-dense [d, bk] RHS.
        kt_ref[h] = proj[:, out_dim + h * d:out_dim + (h + 1) * d].T.astype(
            jnp.bfloat16)
        v_ref[h] = proj[:, 2 * out_dim + h * d:2 * out_dim + (h + 1) * d].astype(
            jnp.bfloat16)
    s_ref[...] = proj[:, 3 * out_dim:4 * out_dim]


def _fused_projection(x_bf16, w_bf16, b_f32, *, heads, d, block_rows):
    n, fin = x_bf16.shape
    out_dim = heads * d
    kernel = functools.partial(_proj_kernel, heads=heads, d=d)
    return pl.pallas_call(
        kernel,
        out_shape=(
            jax.ShapeDtypeStruct((heads, n, d), jnp.bfloat16),   # q
            jax.ShapeDtypeStruct((heads, d, n), jnp.bfloat16),   # k^T
            jax.ShapeDtypeStruct((heads, n, d), jnp.bfloat16),   # v
            jax.ShapeDtypeStruct((n, out_dim), jnp.float32),     # skip
        ),
        grid=(n // block_rows,),
        in_specs=[
            pl.BlockSpec((block_rows, fin), lambda i: (i, 0)),
            pl.BlockSpec((fin, 4 * out_dim), lambda i: (0, 0)),  # VMEM-resident
            pl.BlockSpec((1, 4 * out_dim), lambda i: (0, 0)),    # VMEM-resident
        ],
        out_specs=(
            pl.BlockSpec((heads, block_rows, d), lambda i: (0, i, 0)),
            pl.BlockSpec((heads, d, block_rows), lambda i: (0, 0, i)),
            pl.BlockSpec((heads, block_rows, d), lambda i: (0, i, 0)),
            pl.BlockSpec((block_rows, out_dim), lambda i: (i, 0)),
        ),
        compiler_params=pltpu.CompilerParams(
            dimension_semantics=("parallel",),
            vmem_limit_bytes=_VMEM_LIMIT,
        ),
    )(x_bf16, w_bf16, b_f32)


# ---------------------------------------------------------------------------
# Kernel 2: masked multi-head attention (online softmax) + skip + LN + ReLU
# ---------------------------------------------------------------------------

def _attn_ln_kernel(q_ref, kt_ref, v_ref, skip_ref, bias_ref, g_ref, b_ref,
                    o_ref, m_sc, l_sc, acc_sc, *, eps):
    kv = pl.program_id(1)

    @pl.when(kv == 0)
    def _():
        # Large finite negative (NOT -inf): masked lanes then underflow to an
        # exact 0 in exp() with no explicit `* adj` multiply in the hot loop.
        m_sc[...] = jnp.full_like(m_sc, -0.5 * _MASK_BIG)
        l_sc[...] = jnp.zeros_like(l_sc)
        acc_sc[...] = jnp.zeros_like(acc_sc)

    # Precomputed additive mask bias (0 / -1e30), streamed as bf16.
    bias = bias_ref[...].astype(jnp.float32)               # [bq, bk]

    # Per-head scores as one batched MXU matmul against lane-dense K^T.
    s = jnp.einsum("hqd,hdk->hqk", q_ref[...], kt_ref[...],
                   preferred_element_type=jnp.float32)
    s = s + bias[None, :, :]

    m_prev = m_sc[...]
    m_new = jnp.maximum(m_prev, jnp.max(s, axis=-1, keepdims=True))
    alpha = jnp.exp(m_prev - m_new)
    p = jnp.exp(s - m_new)                                  # masked lanes -> 0
    l_sc[...] = alpha * l_sc[...] + jnp.sum(p, axis=-1, keepdims=True)
    acc_sc[...] = alpha * acc_sc[...] + jnp.einsum(
        "hqk,hkd->hqd", p.astype(v_ref.dtype), v_ref[...],
        preferred_element_type=jnp.float32)
    m_sc[...] = m_new

    @pl.when(kv == pl.num_programs(1) - 1)
    def _():
        heads = acc_sc.shape[0]
        # Softmax normalization after the matmul: O(N*d) EUP reciprocal
        # instead of an O(N^2) VPU divide.  Clamp keeps isolated/padded rows 0.
        inv = pl.reciprocal(jnp.maximum(l_sc[...], 1e-20), approx=True)
        acc = acc_sc[...] * inv                             # [H, bq, d]
        # Head merge once per query block (epilogue, not the hot loop).
        agg = jnp.concatenate([acc[h] for h in range(heads)], axis=-1)
        y = agg + skip_ref[...]                             # [bq, H*d]
        # Fused LayerNorm + ReLU epilogue (f32 stats).
        mu = jnp.mean(y, axis=-1, keepdims=True)
        var = jnp.mean((y - mu) * (y - mu), axis=-1, keepdims=True)
        y = (y - mu) * lax.rsqrt(var + eps)
        y = y * g_ref[...] + b_ref[...]
        o_ref[...] = jnp.maximum(y, 0.0).astype(o_ref.dtype)


def transformer_conv_ln(x, adj_bias, conv_p, ln_p, *, heads, eps=1e-5,
                        out_dtype=jnp.float32):
    """TransformerConv (multi-head masked attention + skip) fused with LN+ReLU.

    x:        [Np, Fin]  (Np a multiple of 128; padded rows masked via adj_bias)
    adj_bias: [Np, Np]   bf16 additive bias (0 where edge j->i, -1e30 elsewhere)
    """
    n = x.shape[0]
    out_dim = conv_p["wq"].shape[1]                  # heads * dhead
    d = out_dim // heads
    scale = 1.0 / (float(d) ** 0.5)

    # Fuse the four projections into one wide matmul; fold 1/sqrt(d) into Wq/bq.
    w = jnp.concatenate(
        [conv_p["wq"] * scale, conv_p["wk"], conv_p["wv"], conv_p["ws"]],
        axis=1).astype(jnp.bfloat16)
    b = jnp.concatenate(
        [conv_p["bq"] * scale, conv_p["bk"], conv_p["bv"], conv_p["bs"]], axis=1)

    # Projection is a pure streaming GEMM: large row tiles, bf16 activations.
    br = _pick_block(n, (512, 256, 128))
    q, kt, v, skip = _fused_projection(x.astype(jnp.bfloat16), w, b,
                                       heads=heads, d=d, block_rows=br)

    bq = 128
    bk = _pick_block(n, (256, 128))

    kernel = functools.partial(_attn_ln_kernel, eps=eps)
    return pl.pallas_call(
        kernel,
        out_shape=jax.ShapeDtypeStruct((n, out_dim), out_dtype),
        grid=(n // bq, n // bk),
        in_specs=[
            pl.BlockSpec((heads, bq, d), lambda i, j: (0, i, 0)),   # q
            pl.BlockSpec((heads, d, bk), lambda i, j: (0, 0, j)),   # k^T
            pl.BlockSpec((heads, bk, d), lambda i, j: (0, j, 0)),   # v
            pl.BlockSpec((bq, out_dim), lambda i, j: (i, 0)),       # skip
            pl.BlockSpec((bq, bk), lambda i, j: (i, j)),            # mask bias
            pl.BlockSpec((1, out_dim), lambda i, j: (0, 0)),        # ln gamma
            pl.BlockSpec((1, out_dim), lambda i, j: (0, 0)),        # ln beta
        ],
        out_specs=pl.BlockSpec((bq, out_dim), lambda i, j: (i, 0)),
        scratch_shapes=[
            pltpu.VMEM((heads, bq, 1), jnp.float32),   # running max
            pltpu.VMEM((heads, bq, 1), jnp.float32),   # running denom
            pltpu.VMEM((heads, bq, d), jnp.float32),   # running weighted sum
        ],
        compiler_params=pltpu.CompilerParams(
            dimension_semantics=("parallel", "arbitrary"),
            vmem_limit_bytes=_VMEM_LIMIT,
        ),
    )(q, kt, v, skip, adj_bias, ln_p["gamma"], ln_p["beta"])


# ---------------------------------------------------------------------------
# Parameter construction (deterministic, synthetic)
# ---------------------------------------------------------------------------

def _linear_params(key, fan_in, fan_out, scale=0.1):
    kw, kb = jax.random.split(key)
    w = scale * jax.random.normal(kw, (fan_in, fan_out), dtype=jnp.float32)
    b = scale * jax.random.normal(kb, (1, fan_out), dtype=jnp.float32)
    return w, b


def init_gtn_params(key, in_channels, hidden_channels, out_channels, heads):
    keys = jax.random.split(key, 8)
    h1 = hidden_channels * heads

    wq1, bq1 = _linear_params(keys[0], in_channels, h1)
    wk1, bk1 = _linear_params(keys[1], in_channels, h1)
    wv1, bv1 = _linear_params(keys[2], in_channels, h1)
    ws1, bs1 = _linear_params(keys[3], in_channels, h1)

    wq2, bq2 = _linear_params(keys[4], h1, out_channels)
    wk2, bk2 = _linear_params(keys[5], h1, out_channels)
    wv2, bv2 = _linear_params(keys[6], h1, out_channels)
    ws2, bs2 = _linear_params(keys[7], h1, out_channels)

    return {
        "conv1": {"wq": wq1, "bq": bq1, "wk": wk1, "bk": bk1,
                  "wv": wv1, "bv": bv1, "ws": ws1, "bs": bs1},
        "ln1": {"gamma": jnp.ones((1, h1), jnp.float32),
                "beta": jnp.zeros((1, h1), jnp.float32)},
        "conv2": {"wq": wq2, "bq": bq2, "wk": wk2, "bk": bk2,
                  "wv": wv2, "bv": bv2, "ws": ws2, "bs": bs2},
        "ln2": {"gamma": jnp.ones((1, out_channels), jnp.float32),
                "beta": jnp.zeros((1, out_channels), jnp.float32)},
    }


# ---------------------------------------------------------------------------
# Full forward: pad N to a multiple of 128 once, build the bf16 mask bias once
# (shared by both layers), run the two fused layers, slice the padding off.
# ---------------------------------------------------------------------------

def gtn_forward(x, adj, params, *, heads):
    n, fin = x.shape
    n_pad = _round_up(n, 128)

    x_p = jnp.zeros((n_pad, fin), jnp.float32).at[:n, :].set(x)
    adj_bias = jnp.full((n_pad, n_pad), -_MASK_BIG, jnp.float32)
    adj_bias = adj_bias.at[:n, :n].set(jnp.where(adj > 0, 0.0, -_MASK_BIG))
    adj_bias = adj_bias.astype(jnp.bfloat16)

    # Layer-1 output in bf16 so it feeds layer-2's projection directly.
    h = transformer_conv_ln(x_p, adj_bias, params["conv1"], params["ln1"],
                            heads=heads, out_dtype=jnp.bfloat16)
    out = transformer_conv_ln(h, adj_bias, params["conv2"], params["ln2"],
                              heads=1, out_dtype=jnp.float32)
    return out[:n]


# ---------------------------------------------------------------------------
# Example run (tiny smoke-test shapes; real perf shows up at N >= a few 1000)
# ---------------------------------------------------------------------------

if __name__ == "__main__":
    N = 16                 # nodes
    IN_CH = 8
    HIDDEN_CH = 8
    OUT_CH = 16
    HEADS = 4

    key = jax.random.PRNGKey(0)
    k_x, k_p = jax.random.split(key)

    # Node features [N, in_channels]
    x = jax.random.normal(k_x, (N, IN_CH), dtype=jnp.float32)

    # Bidirectional ring graph; adj[i, j] = 1 iff edge j -> i.
    src = jnp.concatenate([jnp.arange(N), jnp.arange(N)])
    dst = jnp.concatenate([(jnp.arange(N) + 1) % N, (jnp.arange(N) - 1) % N])
    adj = jnp.zeros((N, N), jnp.float32).at[dst, src].set(1.0)

    params = init_gtn_params(k_p, IN_CH, HIDDEN_CH, OUT_CH, HEADS)

    fwd = jax.jit(gtn_forward, static_argnames=("heads",))
    out = fwd(x, adj, params, heads=HEADS)
    out = jax.block_until_ready(out)

    assert out.shape == (N, OUT_CH), out.shape
    assert bool(jnp.all(jnp.isfinite(out)))
    assert bool(jnp.all(out >= 0.0))   # post-ReLU
    print("KERNEL_OK")
</pallas_src>

<mosaic_0001>
module attributes {stable_mosaic.version = 11 : i64} {
  func.func @_proj_kernel(%arg0: i32, %arg1: memref<128x32xbf16, #tpu.memory_space<vmem>>, %arg2: memref<32x64xbf16, #tpu.memory_space<vmem>>, %arg3: memref<1x64xf32, #tpu.memory_space<vmem>>, %arg4: memref<1x128x16xbf16, #tpu.memory_space<vmem>>, %arg5: memref<1x16x128xbf16, #tpu.memory_space<vmem>>, %arg6: memref<1x128x16xbf16, #tpu.memory_space<vmem>>, %arg7: memref<128x16xf32, #tpu.memory_space<vmem>>) attributes {dimension_semantics = [#tpu.dimension_semantics<parallel>], iteration_bounds = array<i64: 1>, scalar_prefetch = 0 : i64, scratch_operands = 0 : i64, tpu.core_type = #tpu.core_type<tc>, window_params = [{transform_indices = @transform_0, window_bounds = array<i64: 128, 32>}, {pipeline_mode = #tpu.pipeline_mode<synchronous>, transform_indices = @transform_1, window_bounds = array<i64: 32, 64>}, {pipeline_mode = #tpu.pipeline_mode<synchronous>, transform_indices = @transform_2, window_bounds = array<i64: 1, 64>}, {transform_indices = @transform_3, window_bounds = array<i64: 1, 128, 16>}, {transform_indices = @transform_4, window_bounds = array<i64: 1, 16, 128>}, {transform_indices = @transform_5, window_bounds = array<i64: 1, 128, 16>}, {transform_indices = @transform_6, window_bounds = array<i64: 128, 16>}]} {
    %c0 = arith.constant 0 : index
    %c0_0 = arith.constant 0 : index
    %0 = vector.load %arg1[%c0, %c0_0] : memref<128x32xbf16, #tpu.memory_space<vmem>>, vector<128x32xbf16>
    %c0_1 = arith.constant 0 : index
    %c0_2 = arith.constant 0 : index
    %1 = vector.load %arg2[%c0_1, %c0_2] : memref<32x64xbf16, #tpu.memory_space<vmem>>, vector<32x64xbf16>
    %cst = arith.constant dense<0.000000e+00> : vector<128x64xf32>
    %2 = tpu.matmul %0, %1, %cst {dimension_numbers = #tpu.dot_dimension_numbers<[1], [0], [0], [1], [0, 0, 1, 1], [], []>} : vector<128x32xbf16>, vector<32x64xbf16>, vector<128x64xf32> -> vector<128x64xf32>
    %c0_3 = arith.constant 0 : index
    %c0_4 = arith.constant 0 : index
    %3 = vector.load %arg3[%c0_3, %c0_4] : memref<1x64xf32, #tpu.memory_space<vmem>>, vector<1x64xf32>
    %4 = vector.broadcast %3 : vector<1x64xf32> to vector<128x64xf32>
    %5 = arith.addf %2, %4 : vector<128x64xf32>
    %6 = vector.extract_strided_slice %5 {offsets = [0, 0], sizes = [128, 16], strides = [1, 1]} : vector<128x64xf32> to vector<128x16xf32>
    %7 = arith.truncf %6 : vector<128x16xf32> to vector<128x16xbf16>
    %c0_5 = arith.constant 0 : index
    %c0_6 = arith.constant 0 : index
    %c0_7 = arith.constant 0 : index
    %8 = vector.load %arg4[%c0_5, %c0_6, %c0_7] : memref<1x128x16xbf16, #tpu.memory_space<vmem>>, vector<1x128x16xbf16>
    %9 = vector.shape_cast %8 : vector<1x128x16xbf16> to vector<128x16xbf16>
    %10 = vector.shape_cast %7 : vector<128x16xbf16> to vector<1x128x16xbf16>
    tpu.vector_store %arg4[%c0_5, %c0_6, %c0_7], %10 {strides = array<i32>} : memref<1x128x16xbf16, #tpu.memory_space<vmem>>, vector<1x128x16xbf16>,
    %11 = vector.extract_strided_slice %5 {offsets = [0, 16], sizes = [128, 16], strides = [1, 1]} : vector<128x64xf32> to vector<128x16xf32>
    %12 = tpu.transpose %11, [1, 0] : vector<128x16xf32> -> vector<16x128xf32>
    %13 = arith.truncf %12 : vector<16x128xf32> to vector<16x128xbf16>
    %c0_8 = arith.constant 0 : index
    %c0_9 = arith.constant 0 : index
    %c0_10 = arith.constant 0 : index
    %14 = vector.load %arg5[%c0_8, %c0_9, %c0_10] : memref<1x16x128xbf16, #tpu.memory_space<vmem>>, vector<1x16x128xbf16>
    %15 = vector.shape_cast %14 : vector<1x16x128xbf16> to vector<16x128xbf16>
    %16 = vector.shape_cast %13 : vector<16x128xbf16> to vector<1x16x128xbf16>
    tpu.vector_store %arg5[%c0_8, %c0_9, %c0_10], %16 {strides = array<i32>} : memref<1x16x128xbf16, #tpu.memory_space<vmem>>, vector<1x16x128xbf16>,
    %17 = vector.extract_strided_slice %5 {offsets = [0, 32], sizes = [128, 16], strides = [1, 1]} : vector<128x64xf32> to vector<128x16xf32>
    %18 = arith.truncf %17 : vector<128x16xf32> to vector<128x16xbf16>
    %c0_11 = arith.constant 0 : index
    %c0_12 = arith.constant 0 : index
    %c0_13 = arith.constant 0 : index
    %19 = vector.load %arg6[%c0_11, %c0_12, %c0_13] : memref<1x128x16xbf16, #tpu.memory_space<vmem>>, vector<1x128x16xbf16>
    %20 = vector.shape_cast %19 : vector<1x128x16xbf16> to vector<128x16xbf16>
    %21 = vector.shape_cast %18 : vector<128x16xbf16> to vector<1x128x16xbf16>
    tpu.vector_store %arg6[%c0_11, %c0_12, %c0_13], %21 {strides = array<i32>} : memref<1x128x16xbf16, #tpu.memory_space<vmem>>, vector<1x128x16xbf16>,
    %22 = vector.extract_strided_slice %5 {offsets = [0, 48], sizes = [128, 16], strides = [1, 1]} : vector<128x64xf32> to vector<128x16xf32>
    %c0_14 = arith.constant 0 : index
    %c0_15 = arith.constant 0 : index
    %23 = vector.load %arg7[%c0_14, %c0_15] : memref<128x16xf32, #tpu.memory_space<vmem>>, vector<128x16xf32>
    tpu.vector_store %arg7[%c0_14, %c0_15], %22 {strides = array<i32>} : memref<128x16xf32, #tpu.memory_space<vmem>>, vector<128x16xf32>,
    return
  }
  func.func @transform_0(%arg0: i32) -> (i32, i32) {
    %c0_i32 = arith.constant 0 : i32
    %c0_i32_0 = arith.constant 0 : i32
    return %arg0, %c0_i32 : i32, i32
  }
  func.func @transform_1(%arg0: i32) -> (i32, i32) {
    %c0_i32 = arith.constant 0 : i32
    %c0_i32_0 = arith.constant 0 : i32
    %c0_i32_1 = arith.constant 0 : i32
    return %c0_i32, %c0_i32_0 : i32, i32
  }
  func.func @transform_2(%arg0: i32) -> (i32, i32) {
    %c0_i32 = arith.constant 0 : i32
    %c0_i32_0 = arith.constant 0 : i32
    %c0_i32_1 = arith.constant 0 : i32
    return %c0_i32, %c0_i32_0 : i32, i32
  }
  func.func @transform_3(%arg0: i32) -> (i32, i32, i32) {
    %c0_i32 = arith.constant 0 : i32
    %c0_i32_0 = arith.constant 0 : i32
    %c0_i32_1 = arith.constant 0 : i32
    return %c0_i32, %arg0, %c0_i32_0 : i32, i32, i32
  }
  func.func @transform_4(%arg0: i32) -> (i32, i32, i32) {
    %c0_i32 = arith.constant 0 : i32
    %c0_i32_0 = arith.constant 0 : i32
    %c0_i32_1 = arith.constant 0 : i32
    return %c0_i32, %c0_i32_0, %arg0 : i32, i32, i32
  }
  func.func @transform_5(%arg0: i32) -> (i32, i32, i32) {
    %c0_i32 = arith.constant 0 : i32
    %c0_i32_0 = arith.constant 0 : i32
    %c0_i32_1 = arith.constant 0 : i32
    return %c0_i32, %arg0, %c0_i32_0 : i32, i32, i32
  }
  func.func @transform_6(%arg0: i32) -> (i32, i32) {
    %c0_i32 = arith.constant 0 : i32
    %c0_i32_0 = arith.constant 0 : i32
    return %arg0, %c0_i32 : i32, i32
  }
}

module attributes {stable_mosaic.version = 11 : i64} {
  func.func @_proj_kernel(%arg0: i32, %arg1: memref<128x8xbf16, #tpu.memory_space<vmem>>, %arg2: memref<8x128xbf16, #tpu.memory_space<vmem>>, %arg3: memref<1x128xf32, #tpu.memory_space<vmem>>, %arg4: memref<4x128x8xbf16, #tpu.memory_space<vmem>>, %arg5: memref<4x8x128xbf16, #tpu.memory_space<vmem>>, %arg6: memref<4x128x8xbf16, #tpu.memory_space<vmem>>, %arg7: memref<128x32xf32, #tpu.memory_space<vmem>>) attributes {dimension_semantics = [#tpu.dimension_semantics<parallel>], iteration_bounds = array<i64: 1>, scalar_prefetch = 0 : i64, scratch_operands = 0 : i64, tpu.core_type = #tpu.core_type<tc>, window_params = [{transform_indices = @transform_0, window_bounds = array<i64: 128, 8>}, {pipeline_mode = #tpu.pipeline_mode<synchronous>, transform_indices = @transform_1, window_bounds = array<i64: 8, 128>}, {pipeline_mode = #tpu.pipeline_mode<synchronous>, transform_indices = @transform_2, window_bounds = array<i64: 1, 128>}, {transform_indices = @transform_3, window_bounds = array<i64: 4, 128, 8>}, {transform_indices = @transform_4, window_bounds = array<i64: 4, 8, 128>}, {transform_indices = @transform_5, window_bounds = array<i64: 4, 128, 8>}, {transform_indices = @transform_6, window_bounds = array<i64: 128, 32>}]} {
    %c0 = arith.constant 0 : index
    %c0_0 = arith.constant 0 : index
    %0 = vector.load %arg1[%c0, %c0_0] : memref<128x8xbf16, #tpu.memory_space<vmem>>, vector<128x8xbf16>
    %c0_1 = arith.constant 0 : index
    %c0_2 = arith.constant 0 : index
    %1 = vector.load %arg2[%c0_1, %c0_2] : memref<8x128xbf16, #tpu.memory_space<vmem>>, vector<8x128xbf16>
    %cst = arith.constant dense<0.000000e+00> : vector<128x128xf32>
    %2 = tpu.matmul %0, %1, %cst {dimension_numbers = #tpu.dot_dimension_numbers<[1], [0], [0], [1], [0, 0, 1, 1], [], []>} : vector<128x8xbf16>, vector<8x128xbf16>, vector<128x128xf32> -> vector<128x128xf32>
    %c0_3 = arith.constant 0 : index
    %c0_4 = arith.constant 0 : index
    %3 = vector.load %arg3[%c0_3, %c0_4] : memref<1x128xf32, #tpu.memory_space<vmem>>, vector<1x128xf32>
    %4 = vector.broadcast %3 : vector<1x128xf32> to vector<128x128xf32>
    %5 = arith.addf %2, %4 : vector<128x128xf32>
    %6 = vector.extract_strided_slice %5 {offsets = [0, 0], sizes = [128, 8], strides = [1, 1]} : vector<128x128xf32> to vector<128x8xf32>
    %7 = arith.truncf %6 : vector<128x8xf32> to vector<128x8xbf16>
    %c0_5 = arith.constant 0 : index
    %c0_6 = arith.constant 0 : index
    %c0_7 = arith.constant 0 : index
    %8 = vector.load %arg4[%c0_5, %c0_6, %c0_7] : memref<4x128x8xbf16, #tpu.memory_space<vmem>>, vector<1x128x8xbf16>
    %9 = vector.shape_cast %8 : vector<1x128x8xbf16> to vector<128x8xbf16>
    %10 = vector.shape_cast %7 : vector<128x8xbf16> to vector<1x128x8xbf16>
    tpu.vector_store %arg4[%c0_5, %c0_6, %c0_7], %10 {strides = array<i32>} : memref<4x128x8xbf16, #tpu.memory_space<vmem>>, vector<1x128x8xbf16>,
    %11 = vector.extract_strided_slice %5 {offsets = [0, 32], sizes = [128, 8], strides = [1, 1]} : vector<128x128xf32> to vector<128x8xf32>
    %12 = tpu.transpose %11, [1, 0] : vector<128x8xf32> -> vector<8x128xf32>
    %13 = arith.truncf %12 : vector<8x128xf32> to vector<8x128xbf16>
    %c0_8 = arith.constant 0 : index
    %c0_9 = arith.constant 0 : index
    %c0_10 = arith.constant 0 : index
    %14 = vector.load %arg5[%c0_8, %c0_9, %c0_10] : memref<4x8x128xbf16, #tpu.memory_space<vmem>>, vector<1x8x128xbf16>
    %15 = vector.shape_cast %14 : vector<1x8x128xbf16> to vector<8x128xbf16>
    %16 = vector.shape_cast %13 : vector<8x128xbf16> to vector<1x8x128xbf16>
    tpu.vector_store %arg5[%c0_8, %c0_9, %c0_10], %16 {strides = array<i32>} : memref<4x8x128xbf16, #tpu.memory_space<vmem>>, vector<1x8x128xbf16>,
    %17 = vector.extract_strided_slice %5 {offsets = [0, 64], sizes = [128, 8], strides = [1, 1]} : vector<128x128xf32> to vector<128x8xf32>
    %18 = arith.truncf %17 : vector<128x8xf32> to vector<128x8xbf16>
    %c0_11 = arith.constant 0 : index
    %c0_12 = arith.constant 0 : index
    %c0_13 = arith.constant 0 : index
    %19 = vector.load %arg6[%c0_11, %c0_12, %c0_13] : memref<4x128x8xbf16, #tpu.memory_space<vmem>>, vector<1x128x8xbf16>
    %20 = vector.shape_cast %19 : vector<1x128x8xbf16> to vector<128x8xbf16>
    %21 = vector.shape_cast %18 : vector<128x8xbf16> to vector<1x128x8xbf16>
    tpu.vector_store %arg6[%c0_11, %c0_12, %c0_13], %21 {strides = array<i32>} : memref<4x128x8xbf16, #tpu.memory_space<vmem>>, vector<1x128x8xbf16>,
    %22 = vector.extract_strided_slice %5 {offsets = [0, 8], sizes = [128, 8], strides = [1, 1]} : vector<128x128xf32> to vector<128x8xf32>
    %23 = arith.truncf %22 : vector<128x8xf32> to vector<128x8xbf16>
    %c1 = arith.constant 1 : index
    %c0_14 = arith.constant 0 : index
    %c0_15 = arith.constant 0 : index
    %24 = vector.load %arg4[%c1, %c0_14, %c0_15] : memref<4x128x8xbf16, #tpu.memory_space<vmem>>, vector<1x128x8xbf16>
    %25 = vector.shape_cast %24 : vector<1x128x8xbf16> to vector<128x8xbf16>
    %26 = vector.shape_cast %23 : vector<128x8xbf16> to vector<1x128x8xbf16>
    tpu.vector_store %arg4[%c1, %c0_14, %c0_15], %26 {strides = array<i32>} : memref<4x128x8xbf16, #tpu.memory_space<vmem>>, vector<1x128x8xbf16>,
    %27 = vector.extract_strided_slice %5 {offsets = [0, 40], sizes = [128, 8], strides = [1, 1]} : vector<128x128xf32> to vector<128x8xf32>
    %28 = tpu.transpose %27, [1, 0] : vector<128x8xf32> -> vector<8x128xf32>
    %29 = arith.truncf %28 : vector<8x128xf32> to vector<8x128xbf16>
    %c1_16 = arith.constant 1 : index
    %c0_17 = arith.constant 0 : index
    %c0_18 = arith.constant 0 : index
    %30 = vector.load %arg5[%c1_16, %c0_17, %c0_18] : memref<4x8x128xbf16, #tpu.memory_space<vmem>>, vector<1x8x128xbf16>
    %31 = vector.shape_cast %30 : vector<1x8x128xbf16> to vector<8x128xbf16>
    %32 = vector.shape_cast %29 : vector<8x128xbf16> to vector<1x8x128xbf16>
    tpu.vector_store %arg5[%c1_16, %c0_17, %c0_18], %32 {strides = array<i32>} : memref<4x8x128xbf16, #tpu.memory_space<vmem>>, vector<1x8x128xbf16>,
    %33 = vector.extract_strided_slice %5 {offsets = [0, 72], sizes = [128, 8], strides = [1, 1]} : vector<128x128xf32> to vector<128x8xf32>
    %34 = arith.truncf %33 : vector<128x8xf32> to vector<128x8xbf16>
    %c1_19 = arith.constant 1 : index
    %c0_20 = arith.constant 0 : index
    %c0_21 = arith.constant 0 : index
    %35 = vector.load %arg6[%c1_19, %c0_20, %c0_21] : memref<4x128x8xbf16, #tpu.memory_space<vmem>>, vector<1x128x8xbf16>
    %36 = vector.shape_cast %35 : vector<1x128x8xbf16> to vector<128x8xbf16>
    %37 = vector.shape_cast %34 : vector<128x8xbf16> to vector<1x128x8xbf16>
    tpu.vector_store %arg6[%c1_19, %c0_20, %c0_21], %37 {strides = array<i32>} : memref<4x128x8xbf16, #tpu.memory_space<vmem>>, vector<1x128x8xbf16>,
    %38 = vector.extract_strided_slice %5 {offsets = [0, 16], sizes = [128, 8], strides = [1, 1]} : vector<128x128xf32> to vector<128x8xf32>
    %39 = arith.truncf %38 : vector<128x8xf32> to vector<128x8xbf16>
    %c2 = arith.constant 2 : index
    %c0_22 = arith.constant 0 : index
    %c0_23 = arith.constant 0 : index
    %40 = vector.load %arg4[%c2, %c0_22, %c0_23] : memref<4x128x8xbf16, #tpu.memory_space<vmem>>, vector<1x128x8xbf16>
    %41 = vector.shape_cast %40 : vector<1x128x8xbf16> to vector<128x8xbf16>
    %42 = vector.shape_cast %39 : vector<128x8xbf16> to vector<1x128x8xbf16>
    tpu.vector_store %arg4[%c2, %c0_22, %c0_23], %42 {strides = array<i32>} : memref<4x128x8xbf16, #tpu.memory_space<vmem>>, vector<1x128x8xbf16>,
    %43 = vector.extract_strided_slice %5 {offsets = [0, 48], sizes = [128, 8], strides = [1, 1]} : vector<128x128xf32> to vector<128x8xf32>
    %44 = tpu.transpose %43, [1, 0] : vector<128x8xf32> -> vector<8x128xf32>
    %45 = arith.truncf %44 : vector<8x128xf32> to vector<8x128xbf16>
    %c2_24 = arith.constant 2 : index
    %c0_25 = arith.constant 0 : index
    %c0_26 = arith.constant 0 : index
    %46 = vector.load %arg5[%c2_24, %c0_25, %c0_26] : memref<4x8x128xbf16, #tpu.memory_space<vmem>>, vector<1x8x128xbf16>
    %47 = vector.shape_cast %46 : vector<1x8x128xbf16> to vector<8x128xbf16>
    %48 = vector.shape_cast %45 : vector<8x128xbf16> to vector<1x8x128xbf16>
    tpu.vector_store %arg5[%c2_24, %c0_25, %c0_26], %48 {strides = array<i32>} : memref<4x8x128xbf16, #tpu.memory_space<vmem>>, vector<1x8x128xbf16>,
    %49 = vector.extract_strided_slice %5 {offsets = [0, 80], sizes = [128, 8], strides = [1, 1]} : vector<128x128xf32> to vector<128x8xf32>
    %50 = arith.truncf %49 : vector<128x8xf32> to vector<128x8xbf16>
    %c2_27 = arith.constant 2 : index
    %c0_28 = arith.constant 0 : index
    %c0_29 = arith.constant 0 : index
    %51 = vector.load %arg6[%c2_27, %c0_28, %c0_29] : memref<4x128x8xbf16, #tpu.memory_space<vmem>>, vector<1x128x8xbf16>
    %52 = vector.shape_cast %51 : vector<1x128x8xbf16> to vector<128x8xbf16>
    %53 = vector.shape_cast %50 : vector<128x8xbf16> to vector<1x128x8xbf16>
    tpu.vector_store %arg6[%c2_27, %c0_28, %c0_29], %53 {strides = array<i32>} : memref<4x128x8xbf16, #tpu.memory_space<vmem>>, vector<1x128x8xbf16>,
    %54 = vector.extract_strided_slice %5 {offsets = [0, 24], sizes = [128, 8], strides = [1, 1]} : vector<128x128xf32> to vector<128x8xf32>
    %55 = arith.truncf %54 : vector<128x8xf32> to vector<128x8xbf16>
    %c3 = arith.constant 3 : index
    %c0_30 = arith.constant 0 : index
    %c0_31 = arith.constant 0 : index
    %56 = vector.load %arg4[%c3, %c0_30, %c0_31] : memref<4x128x8xbf16, #tpu.memory_space<vmem>>, vector<1x128x8xbf16>
    %57 = vector.shape_cast %56 : vector<1x128x8xbf16> to vector<128x8xbf16>
    %58 = vector.shape_cast %55 : vector<128x8xbf16> to vector<1x128x8xbf16>
    tpu.vector_store %arg4[%c3, %c0_30, %c0_31], %58 {strides = array<i32>} : memref<4x128x8xbf16, #tpu.memory_space<vmem>>, vector<1x128x8xbf16>,
    %59 = vector.extract_strided_slice %5 {offsets = [0, 56], sizes = [128, 8], strides = [1, 1]} : vector<128x128xf32> to vector<128x8xf32>
    %60 = tpu.transpose %59, [1, 0] : vector<128x8xf32> -> vector<8x128xf32>
    %61 = arith.truncf %60 : vector<8x128xf32> to vector<8x128xbf16>
    %c3_32 = arith.constant 3 : index
    %c0_33 = arith.constant 0 : index
    %c0_34 = arith.constant 0 : index
    %62 = vector.load %arg5[%c3_32, %c0_33, %c0_34] : memref<4x8x128xbf16, #tpu.memory_space<vmem>>, vector<1x8x128xbf16>
    %63 = vector.shape_cast %62 : vector<1x8x128xbf16> to vector<8x128xbf16>
    %64 = vector.shape_cast %61 : vector<8x128xbf16> to vector<1x8x128xbf16>
    tpu.vector_store %arg5[%c3_32, %c0_33, %c0_34], %64 {strides = array<i32>} : memref<4x8x128xbf16, #tpu.memory_space<vmem>>, vector<1x8x128xbf16>,
    %65 = vector.extract_strided_slice %5 {offsets = [0, 88], sizes = [128, 8], strides = [1, 1]} : vector<128x128xf32> to vector<128x8xf32>
    %66 = arith.truncf %65 : vector<128x8xf32> to vector<128x8xbf16>
    %c3_35 = arith.constant 3 : index
    %c0_36 = arith.constant 0 : index
    %c0_37 = arith.constant 0 : index
    %67 = vector.load %arg6[%c3_35, %c0_36, %c0_37] : memref<4x128x8xbf16, #tpu.memory_space<vmem>>, vector<1x128x8xbf16>
    %68 = vector.shape_cast %67 : vector<1x128x8xbf16> to vector<128x8xbf16>
    %69 = vector.shape_cast %66 : vector<128x8xbf16> to vector<1x128x8xbf16>
    tpu.vector_store %arg6[%c3_35, %c0_36, %c0_37], %69 {strides = array<i32>} : memref<4x128x8xbf16, #tpu.memory_space<vmem>>, vector<1x128x8xbf16>,
    %70 = vector.extract_strided_slice %5 {offsets = [0, 96], sizes = [128, 32], strides = [1, 1]} : vector<128x128xf32> to vector<128x32xf32>
    %c0_38 = arith.constant 0 : index
    %c0_39 = arith.constant 0 : index
    %71 = vector.load %arg7[%c0_38, %c0_39] : memref<128x32xf32, #tpu.memory_space<vmem>>, vector<128x32xf32>
    tpu.vector_store %arg7[%c0_38, %c0_39], %70 {strides = array<i32>} : memref<128x32xf32, #tpu.memory_space<vmem>>, vector<128x32xf32>,
    return
  }
  func.func @transform_0(%arg0: i32) -> (i32, i32) {
    %c0_i32 = arith.constant 0 : i32
    %c0_i32_0 = arith.constant 0 : i32
    return %arg0, %c0_i32 : i32, i32
  }
  func.func @transform_1(%arg0: i32) -> (i32, i32) {
    %c0_i32 = arith.constant 0 : i32
    %c0_i32_0 = arith.constant 0 : i32
    %c0_i32_1 = arith.constant 0 : i32
    return %c0_i32, %c0_i32_0 : i32, i32
  }
  func.func @transform_2(%arg0: i32) -> (i32, i32) {
    %c0_i32 = arith.constant 0 : i32
    %c0_i32_0 = arith.constant 0 : i32
    %c0_i32_1 = arith.constant 0 : i32
    return %c0_i32, %c0_i32_0 : i32, i32
  }
  func.func @transform_3(%arg0: i32) -> (i32, i32, i32) {
    %c0_i32 = arith.constant 0 : i32
    %c0_i32_0 = arith.constant 0 : i32
    %c0_i32_1 = arith.constant 0 : i32
    return %c0_i32, %arg0, %c0_i32_0 : i32, i32, i32
  }
  func.func @transform_4(%arg0: i32) -> (i32, i32, i32) {
    %c0_i32 = arith.constant 0 : i32
    %c0_i32_0 = arith.constant 0 : i32
    %c0_i32_1 = arith.constant 0 : i32
    return %c0_i32, %c0_i32_0, %arg0 : i32, i32, i32
  }
  func.func @transform_5(%arg0: i32) -> (i32, i32, i32) {
    %c0_i32 = arith.constant 0 : i32
    %c0_i32_0 = arith.constant 0 : i32
    %c0_i32_1 = arith.constant 0 : i32
    return %c0_i32, %arg0, %c0_i32_0 : i32, i32, i32
  }
  func.func @transform_6(%arg0: i32) -> (i32, i32) {
    %c0_i32 = arith.constant 0 : i32
    %c0_i32_0 = arith.constant 0 : i32
    return %arg0, %c0_i32 : i32, i32
  }
}

module attributes {stable_mosaic.version = 11 : i64} {
  func.func @_attn_ln_kernel(%arg0: i32, %arg1: i32, %arg2: memref<4x128x8xbf16, #tpu.memory_space<vmem>>, %arg3: memref<4x8x128xbf16, #tpu.memory_space<vmem>>, %arg4: memref<4x128x8xbf16, #tpu.memory_space<vmem>>, %arg5: memref<128x32xf32, #tpu.memory_space<vmem>>, %arg6: memref<128x128xbf16, #tpu.memory_space<vmem>>, %arg7: memref<1x32xf32, #tpu.memory_space<vmem>>, %arg8: memref<1x32xf32, #tpu.memory_space<vmem>>, %arg9: memref<128x32xbf16, #tpu.memory_space<vmem>>, %arg10: memref<4x128x1xf32, #tpu.memory_space<vmem>>, %arg11: memref<4x128x1xf32, #tpu.memory_space<vmem>>, %arg12: memref<4x128x8xf32, #tpu.memory_space<vmem>>) attributes {dimension_semantics = [#tpu.dimension_semantics<parallel>, #tpu.dimension_semantics<arbitrary>], iteration_bounds = array<i64: 1, 1>, scalar_prefetch = 0 : i64, scratch_operands = 3 : i64, tpu.core_type = #tpu.core_type<tc>, window_params = [{transform_indices = @transform_0, window_bounds = array<i64: 4, 128, 8>}, {transform_indices = @transform_1, window_bounds = array<i64: 4, 8, 128>}, {transform_indices = @transform_2, window_bounds = array<i64: 4, 128, 8>}, {transform_indices = @transform_3, window_bounds = array<i64: 128, 32>}, {transform_indices = @transform_4, window_bounds = array<i64: 128, 128>}, {pipeline_mode = #tpu.pipeline_mode<synchronous>, transform_indices = @transform_5, window_bounds = array<i64: 1, 32>}, {pipeline_mode = #tpu.pipeline_mode<synchronous>, transform_indices = @transform_6, window_bounds = array<i64: 1, 32>}, {transform_indices = @transform_7, window_bounds = array<i64: 128, 32>}]} {
    %c0_i32 = arith.constant 0 : i32
    %0 = arith.cmpi eq, %arg1, %c0_i32 : i32
    %1 = arith.extui %0 : i1 to i32
    %c0_i32_0 = arith.constant 0 : i32
    %2 = arith.cmpi ne, %1, %c0_i32_0 : i32
    scf.if %2 {
      %cst_34 = arith.constant -5.000000e+29 : f32
      %38 = vector.broadcast %cst_34 : f32 to vector<4x128x1xf32>
      %c0_35 = arith.constant 0 : index
      %c0_36 = arith.constant 0 : index
      %c0_37 = arith.constant 0 : index
      %39 = vector.load %arg10[%c0_35, %c0_36, %c0_37] : memref<4x128x1xf32, #tpu.memory_space<vmem>>, vector<4x128x1xf32>
      tpu.vector_store %arg10[%c0_35, %c0_36, %c0_37], %38 {strides = array<i32>} : memref<4x128x1xf32, #tpu.memory_space<vmem>>, vector<4x128x1xf32>,
      %cst_38 = arith.constant 0.000000e+00 : f32
      %40 = vector.broadcast %cst_38 : f32 to vector<4x128x1xf32>
      %c0_39 = arith.constant 0 : index
      %c0_40 = arith.constant 0 : index
      %c0_41 = arith.constant 0 : index
      %41 = vector.load %arg11[%c0_39, %c0_40, %c0_41] : memref<4x128x1xf32, #tpu.memory_space<vmem>>, vector<4x128x1xf32>
      tpu.vector_store %arg11[%c0_39, %c0_40, %c0_41], %40 {strides = array<i32>} : memref<4x128x1xf32, #tpu.memory_space<vmem>>, vector<4x128x1xf32>,
      %cst_42 = arith.constant 0.000000e+00 : f32
      %42 = vector.broadcast %cst_42 : f32 to vector<4x128x8xf32>
      %c0_43 = arith.constant 0 : index
      %c0_44 = arith.constant 0 : index
      %c0_45 = arith.constant 0 : index
      %43 = vector.load %arg12[%c0_43, %c0_44, %c0_45] : memref<4x128x8xf32, #tpu.memory_space<vmem>>, vector<4x128x8xf32>
      tpu.vector_store %arg12[%c0_43, %c0_44, %c0_45], %42 {strides = array<i32>} : memref<4x128x8xf32, #tpu.memory_space<vmem>>, vector<4x128x8xf32>,
    } else {
    }
    %c0 = arith.constant 0 : index
    %c0_1 = arith.constant 0 : index
    %3 = vector.load %arg6[%c0, %c0_1] : memref<128x128xbf16, #tpu.memory_space<vmem>>, vector<128x128xbf16>
    %4 = arith.extf %3 : vector<128x128xbf16> to vector<128x128xf32>
    %c0_2 = arith.constant 0 : index
    %c0_3 = arith.constant 0 : index
    %c0_4 = arith.constant 0 : index
    %5 = vector.load %arg2[%c0_2, %c0_3, %c0_4] : memref<4x128x8xbf16, #tpu.memory_space<vmem>>, vector<4x128x8xbf16>
    %c0_5 = arith.constant 0 : index
    %c0_6 = arith.constant 0 : index
    %c0_7 = arith.constant 0 : index
    %6 = vector.load %arg3[%c0_5, %c0_6, %c0_7] : memref<4x8x128xbf16, #tpu.memory_space<vmem>>, vector<4x8x128xbf16>
    "tpu.trace_start"() <{level = 10 : i32, message = "hqd,hdk->hqk"}> : () -> ()
    %cst = arith.constant dense<0.000000e+00> : vector<4x128x128xf32>
    %7 = tpu.matmul %5, %6, %cst {dimension_numbers = #tpu.dot_dimension_numbers<[2], [1], [1], [2], [0, 0, 0, 1, 1, 2], [0], [0]>} : vector<4x128x8xbf16>, vector<4x8x128xbf16>, vector<4x128x128xf32> -> vector<4x128x128xf32>
    "tpu.trace_stop"() : () -> ()
    %8 = vector.shape_cast %4 : vector<128x128xf32> to vector<1x128x128xf32>
    %9 = vector.broadcast %8 : vector<1x128x128xf32> to vector<4x128x128xf32>
    %10 = arith.addf %7, %9 : vector<4x128x128xf32>
    %c0_8 = arith.constant 0 : index
    %c0_9 = arith.constant 0 : index
    %c0_10 = arith.constant 0 : index
    %11 = vector.load %arg10[%c0_8, %c0_9, %c0_10] : memref<4x128x1xf32, #tpu.memory_space<vmem>>, vector<4x128x1xf32>
    %cst_11 = arith.constant dense<0xFF800000> : vector<4x128xf32>
    %12 = vector.multi_reduction <maximumf>, %10, %cst_11 [2] : vector<4x128x128xf32> to vector<4x128xf32>
    %13 = vector.shape_cast %12 : vector<4x128xf32> to vector<4x128x1xf32>
    %14 = arith.maximumf %11, %13 : vector<4x128x1xf32>
    %15 = arith.subf %11, %14 : vector<4x128x1xf32>
    %16 = math.exp %15 : vector<4x128x1xf32>
    %17 = vector.broadcast %14 : vector<4x128x1xf32> to vector<4x128x128xf32>
    %18 = arith.subf %10, %17 : vector<4x128x128xf32>
    %19 = math.exp %18 : vector<4x128x128xf32>
    %c0_12 = arith.constant 0 : index
    %c0_13 = arith.constant 0 : index
    %c0_14 = arith.constant 0 : index
    %20 = vector.load %arg11[%c0_12, %c0_13, %c0_14] : memref<4x128x1xf32, #tpu.memory_space<vmem>>, vector<4x128x1xf32>
    %21 = arith.mulf %16, %20 : vector<4x128x1xf32>
    %cst_15 = arith.constant dense<0.000000e+00> : vector<4x128xf32>
    %22 = vector.multi_reduction <add>, %19, %cst_15 [2] : vector<4x128x128xf32> to vector<4x128xf32>
    %23 = vector.shape_cast %22 : vector<4x128xf32> to vector<4x128x1xf32>
    %24 = arith.addf %21, %23 : vector<4x128x1xf32>
    %c0_16 = arith.constant 0 : index
    %c0_17 = arith.constant 0 : index
    %c0_18 = arith.constant 0 : index
    %25 = vector.load %arg11[%c0_16, %c0_17, %c0_18] : memref<4x128x1xf32, #tpu.memory_space<vmem>>, vector<4x128x1xf32>
    tpu.vector_store %arg11[%c0_16, %c0_17, %c0_18], %24 {strides = array<i32>} : memref<4x128x1xf32, #tpu.memory_space<vmem>>, vector<4x128x1xf32>,
    %c0_19 = arith.constant 0 : index
    %c0_20 = arith.constant 0 : index
    %c0_21 = arith.constant 0 : index
    %26 = vector.load %arg12[%c0_19, %c0_20, %c0_21] : memref<4x128x8xf32, #tpu.memory_space<vmem>>, vector<4x128x8xf32>
    %27 = vector.broadcast %16 : vector<4x128x1xf32> to vector<4x128x8xf32>
    %28 = arith.mulf %27, %26 : vector<4x128x8xf32>
    %29 = arith.truncf %19 : vector<4x128x128xf32> to vector<4x128x128xbf16>
    %c0_22 = arith.constant 0 : index
    %c0_23 = arith.constant 0 : index
    %c0_24 = arith.constant 0 : index
    %30 = vector.load %arg4[%c0_22, %c0_23, %c0_24] : memref<4x128x8xbf16, #tpu.memory_space<vmem>>, vector<4x128x8xbf16>
    "tpu.trace_start"() <{level = 10 : i32, message = "hqk,hkd->hqd"}> : () -> ()
    %cst_25 = arith.constant dense<0.000000e+00> : vector<4x128x8xf32>
    %31 = tpu.matmul %29, %30, %cst_25 {dimension_numbers = #tpu.dot_dimension_numbers<[2], [1], [1], [2], [0, 0, 0, 1, 1, 2], [0], [0]>} : vector<4x128x128xbf16>, vector<4x128x8xbf16>, vector<4x128x8xf32> -> vector<4x128x8xf32>
    "tpu.trace_stop"() : () -> ()
    %32 = arith.addf %28, %31 : vector<4x128x8xf32>
    %c0_26 = arith.constant 0 : index
    %c0_27 = arith.constant 0 : index
    %c0_28 = arith.constant 0 : index
    %33 = vector.load %arg12[%c0_26, %c0_27, %c0_28] : memref<4x128x8xf32, #tpu.memory_space<vmem>>, vector<4x128x8xf32>
    tpu.vector_store %arg12[%c0_26, %c0_27, %c0_28], %32 {strides = array<i32>} : memref<4x128x8xf32, #tpu.memory_space<vmem>>, vector<4x128x8xf32>,
    %c0_29 = arith.constant 0 : index
    %c0_30 = arith.constant 0 : index
    %c0_31 = arith.constant 0 : index
    %34 = vector.load %arg10[%c0_29, %c0_30, %c0_31] : memref<4x128x1xf32, #tpu.memory_space<vmem>>, vector<4x128x1xf32>
    tpu.vector_store %arg10[%c0_29, %c0_30, %c0_31], %14 {strides = array<i32>} : memref<4x128x1xf32, #tpu.memory_space<vmem>>, vector<4x128x1xf32>,
    %c0_i32_32 = arith.constant 0 : i32
    %35 = arith.cmpi eq, %arg1, %c0_i32_32 : i32
    %36 = arith.extui %35 : i1 to i32
    %c0_i32_33 = arith.constant 0 : i32
    %37 = arith.cmpi ne, %36, %c0_i32_33 : i32
    scf.if %37 {
      %c0_34 = arith.constant 0 : index
      %c0_35 = arith.constant 0 : index
      %c0_36 = arith.constant 0 : index
      %38 = vector.load %arg11[%c0_34, %c0_35, %c0_36] : memref<4x128x1xf32, #tpu.memory_space<vmem>>, vector<4x128x1xf32>
      %cst_37 = arith.constant 9.99999968E-21 : f32
      %39 = vector.broadcast %cst_37 : f32 to vector<4x128x1xf32>
      %40 = arith.maximumf %38, %39 : vector<4x128x1xf32>
      %41 = tpu.reciprocal %40 {approx = true} : vector<4x128x1xf32> -> vector<4x128x1xf32>
      %c0_38 = arith.constant 0 : index
      %c0_39 = arith.constant 0 : index
      %c0_40 = arith.constant 0 : index
      %42 = vector.load %arg12[%c0_38, %c0_39, %c0_40] : memref<4x128x8xf32, #tpu.memory_space<vmem>>, vector<4x128x8xf32>
      %43 = vector.broadcast %41 : vector<4x128x1xf32> to vector<4x128x8xf32>
      %44 = arith.mulf %42, %43 : vector<4x128x8xf32>
      %45 = vector.extract_strided_slice %44 {offsets = [0, 0, 0], sizes = [1, 128, 8], strides = [1, 1, 1]} : vector<4x128x8xf32> to vector<1x128x8xf32>
      %46 = vector.shape_cast %45 : vector<1x128x8xf32> to vector<128x8xf32>
      %47 = vector.extract_strided_slice %44 {offsets = [1, 0, 0], sizes = [1, 128, 8], strides = [1, 1, 1]} : vector<4x128x8xf32> to vector<1x128x8xf32>
      %48 = vector.shape_cast %47 : vector<1x128x8xf32> to vector<128x8xf32>
      %49 = vector.extract_strided_slice %44 {offsets = [2, 0, 0], sizes = [1, 128, 8], strides = [1, 1, 1]} : vector<4x128x8xf32> to vector<1x128x8xf32>
      %50 = vector.shape_cast %49 : vector<1x128x8xf32> to vector<128x8xf32>
      %51 = vector.extract_strided_slice %44 {offsets = [3, 0, 0], sizes = [1, 128, 8], strides = [1, 1, 1]} : vector<4x128x8xf32> to vector<1x128x8xf32>
      %52 = vector.shape_cast %51 : vector<1x128x8xf32> to vector<128x8xf32>
      %53 = tpu.concatenate %46, %48, %50, %52 in 1 : vector<128x8xf32>, vector<128x8xf32>, vector<128x8xf32>, vector<128x8xf32> -> vector<128x32xf32>
      %c0_41 = arith.constant 0 : index
      %c0_42 = arith.constant 0 : index
      %54 = vector.load %arg5[%c0_41, %c0_42] : memref<128x32xf32, #tpu.memory_space<vmem>>, vector<128x32xf32>
      %55 = arith.addf %53, %54 : vector<128x32xf32>
      %cst_43 = arith.constant dense<0.000000e+00> : vector<128xf32>
      %56 = vector.multi_reduction <add>, %55, %cst_43 [1] : vector<128x32xf32> to vector<128xf32>
      %57 = vector.shape_cast %56 : vector<128xf32> to vector<128x1xf32>
      %cst_44 = arith.constant 3.200000e+01 : f32
      %58 = vector.broadcast %cst_44 : f32 to vector<128x1xf32>
      %59 = arith.divf %57, %58 : vector<128x1xf32>
      %60 = vector.broadcast %59 : vector<128x1xf32> to vector<128x32xf32>
      %61 = arith.subf %55, %60 : vector<128x32xf32>
      %62 = vector.broadcast %59 : vector<128x1xf32> to vector<128x32xf32>
      %63 = arith.subf %55, %62 : vector<128x32xf32>
      %64 = arith.mulf %61, %63 : vector<128x32xf32>
      %cst_45 = arith.constant dense<0.000000e+00> : vector<128xf32>
      %65 = vector.multi_reduction <add>, %64, %cst_45 [1] : vector<128x32xf32> to vector<128xf32>
      %66 = vector.shape_cast %65 : vector<128xf32> to vector<128x1xf32>
      %cst_46 = arith.constant 3.200000e+01 : f32
      %67 = vector.broadcast %cst_46 : f32 to vector<128x1xf32>
      %68 = arith.divf %66, %67 : vector<128x1xf32>
      %69 = vector.broadcast %59 : vector<128x1xf32> to vector<128x32xf32>
      %70 = arith.subf %55, %69 : vector<128x32xf32>
      %cst_47 = arith.constant 9.99999974E-6 : f32
      %71 = vector.broadcast %cst_47 : f32 to vector<128x1xf32>
      %72 = arith.addf %68, %71 : vector<128x1xf32>
      %73 = math.rsqrt %72 : vector<128x1xf32>
      %74 = vector.broadcast %73 : vector<128x1xf32> to vector<128x32xf32>
      %75 = arith.mulf %70, %74 : vector<128x32xf32>
      %c0_48 = arith.constant 0 : index
      %c0_49 = arith.constant 0 : index
      %76 = vector.load %arg7[%c0_48, %c0_49] : memref<1x32xf32, #tpu.memory_space<vmem>>, vector<1x32xf32>
      %77 = vector.broadcast %76 : vector<1x32xf32> to vector<128x32xf32>
      %78 = arith.mulf %75, %77 : vector<128x32xf32>
      %c0_50 = arith.constant 0 : index
      %c0_51 = arith.constant 0 : index
      %79 = vector.load %arg8[%c0_50, %c0_51] : memref<1x32xf32, #tpu.memory_space<vmem>>, vector<1x32xf32>
      %80 = vector.broadcast %79 : vector<1x32xf32> to vector<128x32xf32>
      %81 = arith.addf %78, %80 : vector<128x32xf32>
      %cst_52 = arith.constant 0.000000e+00 : f32
      %82 = vector.broadcast %cst_52 : f32 to vector<128x32xf32>
      %83 = arith.maximumf %81, %82 : vector<128x32xf32>
      %84 = arith.truncf %83 : vector<128x32xf32> to vector<128x32xbf16>
      %c0_53 = arith.constant 0 : index
      %c0_54 = arith.constant 0 : index
      %85 = vector.load %arg9[%c0_53, %c0_54] : memref<128x32xbf16, #tpu.memory_space<vmem>>, vector<128x32xbf16>
      tpu.vector_store %arg9[%c0_53, %c0_54], %84 {strides = array<i32>} : memref<128x32xbf16, #tpu.memory_space<vmem>>, vector<128x32xbf16>,
    } else {
    }
    return
  }
  func.func @transform_0(%arg0: i32, %arg1: i32) -> (i32, i32, i32) {
    %c0_i32 = arith.constant 0 : i32
    %c0_i32_0 = arith.constant 0 : i32
    %c0_i32_1 = arith.constant 0 : i32
    return %c0_i32, %arg0, %c0_i32_0 : i32, i32, i32
  }
  func.func @transform_1(%arg0: i32, %arg1: i32) -> (i32, i32, i32) {
    %c0_i32 = arith.constant 0 : i32
    %c0_i32_0 = arith.constant 0 : i32
    %c0_i32_1 = arith.constant 0 : i32
    return %c0_i32, %c0_i32_0, %arg1 : i32, i32, i32
  }
  func.func @transform_2(%arg0: i32, %arg1: i32) -> (i32, i32, i32) {
    %c0_i32 = arith.constant 0 : i32
    %c0_i32_0 = arith.constant 0 : i32
    %c0_i32_1 = arith.constant 0 : i32
    return %c0_i32, %arg1, %c0_i32_0 : i32, i32, i32
  }
  func.func @transform_3(%arg0: i32, %arg1: i32) -> (i32, i32) {
    %c0_i32 = arith.constant 0 : i32
    %c0_i32_0 = arith.constant 0 : i32
    return %arg0, %c0_i32 : i32, i32
  }
  func.func @transform_4(%arg0: i32, %arg1: i32) -> (i32, i32) {
    %c0_i32 = arith.constant 0 : i32
    return %arg0, %arg1 : i32, i32
  }
  func.func @transform_5(%arg0: i32, %arg1: i32) -> (i32, i32) {
    %c0_i32 = arith.constant 0 : i32
    %c0_i32_0 = arith.constant 0 : i32
    %c0_i32_1 = arith.constant 0 : i32
    return %c0_i32, %c0_i32_0 : i32, i32
  }
  func.func @transform_6(%arg0: i32, %arg1: i32) -> (i32, i32) {
    %c0_i32 = arith.constant 0 : i32
    %c0_i32_0 = arith.constant 0 : i32
    %c0_i32_1 = arith.constant 0 : i32
    return %c0_i32, %c0_i32_0 : i32, i32
  }
  func.func @transform_7(%arg0: i32, %arg1: i32) -> (i32, i32) {
    %c0_i32 = arith.constant 0 : i32
    %c0_i32_0 = arith.constant 0 : i32
    return %arg0, %c0_i32 : i32, i32
  }
}

module attributes {stable_mosaic.version = 11 : i64} {
  func.func @_attn_ln_kernel(%arg0: i32, %arg1: i32, %arg2: memref<1x128x16xbf16, #tpu.memory_space<vmem>>, %arg3: memref<1x16x128xbf16, #tpu.memory_space<vmem>>, %arg4: memref<1x128x16xbf16, #tpu.memory_space<vmem>>, %arg5: memref<128x16xf32, #tpu.memory_space<vmem>>, %arg6: memref<128x128xbf16, #tpu.memory_space<vmem>>, %arg7: memref<1x16xf32, #tpu.memory_space<vmem>>, %arg8: memref<1x16xf32, #tpu.memory_space<vmem>>, %arg9: memref<128x16xf32, #tpu.memory_space<vmem>>, %arg10: memref<1x128x1xf32, #tpu.memory_space<vmem>>, %arg11: memref<1x128x1xf32, #tpu.memory_space<vmem>>, %arg12: memref<1x128x16xf32, #tpu.memory_space<vmem>>) attributes {dimension_semantics = [#tpu.dimension_semantics<parallel>, #tpu.dimension_semantics<arbitrary>], iteration_bounds = array<i64: 1, 1>, scalar_prefetch = 0 : i64, scratch_operands = 3 : i64, tpu.core_type = #tpu.core_type<tc>, window_params = [{transform_indices = @transform_0, window_bounds = array<i64: 1, 128, 16>}, {transform_indices = @transform_1, window_bounds = array<i64: 1, 16, 128>}, {transform_indices = @transform_2, window_bounds = array<i64: 1, 128, 16>}, {transform_indices = @transform_3, window_bounds = array<i64: 128, 16>}, {transform_indices = @transform_4, window_bounds = array<i64: 128, 128>}, {pipeline_mode = #tpu.pipeline_mode<synchronous>, transform_indices = @transform_5, window_bounds = array<i64: 1, 16>}, {pipeline_mode = #tpu.pipeline_mode<synchronous>, transform_indices = @transform_6, window_bounds = array<i64: 1, 16>}, {transform_indices = @transform_7, window_bounds = array<i64: 128, 16>}]} {
    %c0_i32 = arith.constant 0 : i32
    %0 = arith.cmpi eq, %arg1, %c0_i32 : i32
    %1 = arith.extui %0 : i1 to i32
    %c0_i32_0 = arith.constant 0 : i32
    %2 = arith.cmpi ne, %1, %c0_i32_0 : i32
    scf.if %2 {
      %cst_34 = arith.constant -5.000000e+29 : f32
      %37 = vector.broadcast %cst_34 : f32 to vector<1x128x1xf32>
      %c0_35 = arith.constant 0 : index
      %c0_36 = arith.constant 0 : index
      %c0_37 = arith.constant 0 : index
      %38 = vector.load %arg10[%c0_35, %c0_36, %c0_37] : memref<1x128x1xf32, #tpu.memory_space<vmem>>, vector<1x128x1xf32>
      tpu.vector_store %arg10[%c0_35, %c0_36, %c0_37], %37 {strides = array<i32>} : memref<1x128x1xf32, #tpu.memory_space<vmem>>, vector<1x128x1xf32>,
      %cst_38 = arith.constant 0.000000e+00 : f32
      %39 = vector.broadcast %cst_38 : f32 to vector<1x128x1xf32>
      %c0_39 = arith.constant 0 : index
      %c0_40 = arith.constant 0 : index
      %c0_41 = arith.constant 0 : index
      %40 = vector.load %arg11[%c0_39, %c0_40, %c0_41] : memref<1x128x1xf32, #tpu.memory_space<vmem>>, vector<1x128x1xf32>
      tpu.vector_store %arg11[%c0_39, %c0_40, %c0_41], %39 {strides = array<i32>} : memref<1x128x1xf32, #tpu.memory_space<vmem>>, vector<1x128x1xf32>,
      %cst_42 = arith.constant 0.000000e+00 : f32
      %41 = vector.broadcast %cst_42 : f32 to vector<1x128x16xf32>
      %c0_43 = arith.constant 0 : index
      %c0_44 = arith.constant 0 : index
      %c0_45 = arith.constant 0 : index
      %42 = vector.load %arg12[%c0_43, %c0_44, %c0_45] : memref<1x128x16xf32, #tpu.memory_space<vmem>>, vector<1x128x16xf32>
      tpu.vector_store %arg12[%c0_43, %c0_44, %c0_45], %41 {strides = array<i32>} : memref<1x128x16xf32, #tpu.memory_space<vmem>>, vector<1x128x16xf32>,
    } else {
    }
    %c0 = arith.constant 0 : index
    %c0_1 = arith.constant 0 : index
    %3 = vector.load %arg6[%c0, %c0_1] : memref<128x128xbf16, #tpu.memory_space<vmem>>, vector<128x128xbf16>
    %4 = arith.extf %3 : vector<128x128xbf16> to vector<128x128xf32>
    %c0_2 = arith.constant 0 : index
    %c0_3 = arith.constant 0 : index
    %c0_4 = arith.constant 0 : index
    %5 = vector.load %arg2[%c0_2, %c0_3, %c0_4] : memref<1x128x16xbf16, #tpu.memory_space<vmem>>, vector<1x128x16xbf16>
    %c0_5 = arith.constant 0 : index
    %c0_6 = arith.constant 0 : index
    %c0_7 = arith.constant 0 : index
    %6 = vector.load %arg3[%c0_5, %c0_6, %c0_7] : memref<1x16x128xbf16, #tpu.memory_space<vmem>>, vector<1x16x128xbf16>
    "tpu.trace_start"() <{level = 10 : i32, message = "hqd,hdk->hqk"}> : () -> ()
    %cst = arith.constant dense<0.000000e+00> : vector<1x128x128xf32>
    %7 = tpu.matmul %5, %6, %cst {dimension_numbers = #tpu.dot_dimension_numbers<[2], [1], [1], [2], [0, 0, 0, 1, 1, 2], [0], [0]>} : vector<1x128x16xbf16>, vector<1x16x128xbf16>, vector<1x128x128xf32> -> vector<1x128x128xf32>
    "tpu.trace_stop"() : () -> ()
    %8 = vector.shape_cast %4 : vector<128x128xf32> to vector<1x128x128xf32>
    %9 = arith.addf %7, %8 : vector<1x128x128xf32>
    %c0_8 = arith.constant 0 : index
    %c0_9 = arith.constant 0 : index
    %c0_10 = arith.constant 0 : index
    %10 = vector.load %arg10[%c0_8, %c0_9, %c0_10] : memref<1x128x1xf32, #tpu.memory_space<vmem>>, vector<1x128x1xf32>
    %cst_11 = arith.constant dense<0xFF800000> : vector<1x128xf32>
    %11 = vector.multi_reduction <maximumf>, %9, %cst_11 [2] : vector<1x128x128xf32> to vector<1x128xf32>
    %12 = vector.shape_cast %11 : vector<1x128xf32> to vector<1x128x1xf32>
    %13 = arith.maximumf %10, %12 : vector<1x128x1xf32>
    %14 = arith.subf %10, %13 : vector<1x128x1xf32>
    %15 = math.exp %14 : vector<1x128x1xf32>
    %16 = vector.broadcast %13 : vector<1x128x1xf32> to vector<1x128x128xf32>
    %17 = arith.subf %9, %16 : vector<1x128x128xf32>
    %18 = math.exp %17 : vector<1x128x128xf32>
    %c0_12 = arith.constant 0 : index
    %c0_13 = arith.constant 0 : index
    %c0_14 = arith.constant 0 : index
    %19 = vector.load %arg11[%c0_12, %c0_13, %c0_14] : memref<1x128x1xf32, #tpu.memory_space<vmem>>, vector<1x128x1xf32>
    %20 = arith.mulf %15, %19 : vector<1x128x1xf32>
    %cst_15 = arith.constant dense<0.000000e+00> : vector<1x128xf32>
    %21 = vector.multi_reduction <add>, %18, %cst_15 [2] : vector<1x128x128xf32> to vector<1x128xf32>
    %22 = vector.shape_cast %21 : vector<1x128xf32> to vector<1x128x1xf32>
    %23 = arith.addf %20, %22 : vector<1x128x1xf32>
    %c0_16 = arith.constant 0 : index
    %c0_17 = arith.constant 0 : index
    %c0_18 = arith.constant 0 : index
    %24 = vector.load %arg11[%c0_16, %c0_17, %c0_18] : memref<1x128x1xf32, #tpu.memory_space<vmem>>, vector<1x128x1xf32>
    tpu.vector_store %arg11[%c0_16, %c0_17, %c0_18], %23 {strides = array<i32>} : memref<1x128x1xf32, #tpu.memory_space<vmem>>, vector<1x128x1xf32>,
    %c0_19 = arith.constant 0 : index
    %c0_20 = arith.constant 0 : index
    %c0_21 = arith.constant 0 : index
    %25 = vector.load %arg12[%c0_19, %c0_20, %c0_21] : memref<1x128x16xf32, #tpu.memory_space<vmem>>, vector<1x128x16xf32>
    %26 = vector.broadcast %15 : vector<1x128x1xf32> to vector<1x128x16xf32>
    %27 = arith.mulf %26, %25 : vector<1x128x16xf32>
    %28 = arith.truncf %18 : vector<1x128x128xf32> to vector<1x128x128xbf16>
    %c0_22 = arith.constant 0 : index
    %c0_23 = arith.constant 0 : index
    %c0_24 = arith.constant 0 : index
    %29 = vector.load %arg4[%c0_22, %c0_23, %c0_24] : memref<1x128x16xbf16, #tpu.memory_space<vmem>>, vector<1x128x16xbf16>
    "tpu.trace_start"() <{level = 10 : i32, message = "hqk,hkd->hqd"}> : () -> ()
    %cst_25 = arith.constant dense<0.000000e+00> : vector<1x128x16xf32>
    %30 = tpu.matmul %28, %29, %cst_25 {dimension_numbers = #tpu.dot_dimension_numbers<[2], [1], [1], [2], [0, 0, 0, 1, 1, 2], [0], [0]>} : vector<1x128x128xbf16>, vector<1x128x16xbf16>, vector<1x128x16xf32> -> vector<1x128x16xf32>
    "tpu.trace_stop"() : () -> ()
    %31 = arith.addf %27, %30 : vector<1x128x16xf32>
    %c0_26 = arith.constant 0 : index
    %c0_27 = arith.constant 0 : index
    %c0_28 = arith.constant 0 : index
    %32 = vector.load %arg12[%c0_26, %c0_27, %c0_28] : memref<1x128x16xf32, #tpu.memory_space<vmem>>, vector<1x128x16xf32>
    tpu.vector_store %arg12[%c0_26, %c0_27, %c0_28], %31 {strides = array<i32>} : memref<1x128x16xf32, #tpu.memory_space<vmem>>, vector<1x128x16xf32>,
    %c0_29 = arith.constant 0 : index
    %c0_30 = arith.constant 0 : index
    %c0_31 = arith.constant 0 : index
    %33 = vector.load %arg10[%c0_29, %c0_30, %c0_31] : memref<1x128x1xf32, #tpu.memory_space<vmem>>, vector<1x128x1xf32>
    tpu.vector_store %arg10[%c0_29, %c0_30, %c0_31], %13 {strides = array<i32>} : memref<1x128x1xf32, #tpu.memory_space<vmem>>, vector<1x128x1xf32>,
    %c0_i32_32 = arith.constant 0 : i32
    %34 = arith.cmpi eq, %arg1, %c0_i32_32 : i32
    %35 = arith.extui %34 : i1 to i32
    %c0_i32_33 = arith.constant 0 : i32
    %36 = arith.cmpi ne, %35, %c0_i32_33 : i32
    scf.if %36 {
      %c0_34 = arith.constant 0 : index
      %c0_35 = arith.constant 0 : index
      %c0_36 = arith.constant 0 : index
      %37 = vector.load %arg11[%c0_34, %c0_35, %c0_36] : memref<1x128x1xf32, #tpu.memory_space<vmem>>, vector<1x128x1xf32>
      %cst_37 = arith.constant 9.99999968E-21 : f32
      %38 = vector.broadcast %cst_37 : f32 to vector<1x128x1xf32>
      %39 = arith.maximumf %37, %38 : vector<1x128x1xf32>
      %40 = tpu.reciprocal %39 {approx = true} : vector<1x128x1xf32> -> vector<1x128x1xf32>
      %c0_38 = arith.constant 0 : index
      %c0_39 = arith.constant 0 : index
      %c0_40 = arith.constant 0 : index
      %41 = vector.load %arg12[%c0_38, %c0_39, %c0_40] : memref<1x128x16xf32, #tpu.memory_space<vmem>>, vector<1x128x16xf32>
      %42 = vector.broadcast %40 : vector<1x128x1xf32> to vector<1x128x16xf32>
      %43 = arith.mulf %41, %42 : vector<1x128x16xf32>
      %44 = vector.shape_cast %43 : vector<1x128x16xf32> to vector<128x16xf32>
      %c0_41 = arith.constant 0 : index
      %c0_42 = arith.constant 0 : index
      %45 = vector.load %arg5[%c0_41, %c0_42] : memref<128x16xf32, #tpu.memory_space<vmem>>, vector<128x16xf32>
      %46 = arith.addf %44, %45 : vector<128x16xf32>
      %cst_43 = arith.constant dense<0.000000e+00> : vector<128xf32>
      %47 = vector.multi_reduction <add>, %46, %cst_43 [1] : vector<128x16xf32> to vector<128xf32>
      %48 = vector.shape_cast %47 : vector<128xf32> to vector<128x1xf32>
      %cst_44 = arith.constant 1.600000e+01 : f32
      %49 = vector.broadcast %cst_44 : f32 to vector<128x1xf32>
      %50 = arith.divf %48, %49 : vector<128x1xf32>
      %51 = vector.broadcast %50 : vector<128x1xf32> to vector<128x16xf32>
      %52 = arith.subf %46, %51 : vector<128x16xf32>
      %53 = vector.broadcast %50 : vector<128x1xf32> to vector<128x16xf32>
      %54 = arith.subf %46, %53 : vector<128x16xf32>
      %55 = arith.mulf %52, %54 : vector<128x16xf32>
      %cst_45 = arith.constant dense<0.000000e+00> : vector<128xf32>
      %56 = vector.multi_reduction <add>, %55, %cst_45 [1] : vector<128x16xf32> to vector<128xf32>
      %57 = vector.shape_cast %56 : vector<128xf32> to vector<128x1xf32>
      %cst_46 = arith.constant 1.600000e+01 : f32
      %58 = vector.broadcast %cst_46 : f32 to vector<128x1xf32>
      %59 = arith.divf %57, %58 : vector<128x1xf32>
      %60 = vector.broadcast %50 : vector<128x1xf32> to vector<128x16xf32>
      %61 = arith.subf %46, %60 : vector<128x16xf32>
      %cst_47 = arith.constant 9.99999974E-6 : f32
      %62 = vector.broadcast %cst_47 : f32 to vector<128x1xf32>
      %63 = arith.addf %59, %62 : vector<128x1xf32>
      %64 = math.rsqrt %63 : vector<128x1xf32>
      %65 = vector.broadcast %64 : vector<128x1xf32> to vector<128x16xf32>
      %66 = arith.mulf %61, %65 : vector<128x16xf32>
      %c0_48 = arith.constant 0 : index
      %c0_49 = arith.constant 0 : index
      %67 = vector.load %arg7[%c0_48, %c0_49] : memref<1x16xf32, #tpu.memory_space<vmem>>, vector<1x16xf32>
      %68 = vector.broadcast %67 : vector<1x16xf32> to vector<128x16xf32>
      %69 = arith.mulf %66, %68 : vector<128x16xf32>
      %c0_50 = arith.constant 0 : index
      %c0_51 = arith.constant 0 : index
      %70 = vector.load %arg8[%c0_50, %c0_51] : memref<1x16xf32, #tpu.memory_space<vmem>>, vector<1x16xf32>
      %71 = vector.broadcast %70 : vector<1x16xf32> to vector<128x16xf32>
      %72 = arith.addf %69, %71 : vector<128x16xf32>
      %cst_52 = arith.constant 0.000000e+00 : f32
      %73 = vector.broadcast %cst_52 : f32 to vector<128x16xf32>
      %74 = arith.maximumf %72, %73 : vector<128x16xf32>
      %c0_53 = arith.constant 0 : index
      %c0_54 = arith.constant 0 : index
      %75 = vector.load %arg9[%c0_53, %c0_54] : memref<128x16xf32, #tpu.memory_space<vmem>>, vector<128x16xf32>
      tpu.vector_store %arg9[%c0_53, %c0_54], %74 {strides = array<i32>} : memref<128x16xf32, #tpu.memory_space<vmem>>, vector<128x16xf32>,
    } else {
    }
    return
  }
  func.func @transform_0(%arg0: i32, %arg1: i32) -> (i32, i32, i32) {
    %c0_i32 = arith.constant 0 : i32
    %c0_i32_0 = arith.constant 0 : i32
    %c0_i32_1 = arith.constant 0 : i32
    return %c0_i32, %arg0, %c0_i32_0 : i32, i32, i32
  }
  func.func @transform_1(%arg0: i32, %arg1: i32) -> (i32, i32, i32) {
    %c0_i32 = arith.constant 0 : i32
    %c0_i32_0 = arith.constant 0 : i32
    %c0_i32_1 = arith.constant 0 : i32
    return %c0_i32, %c0_i32_0, %arg1 : i32, i32, i32
  }
  func.func @transform_2(%arg0: i32, %arg1: i32) -> (i32, i32, i32) {
    %c0_i32 = arith.constant 0 : i32
    %c0_i32_0 = arith.constant 0 : i32
    %c0_i32_1 = arith.constant 0 : i32
    return %c0_i32, %arg1, %c0_i32_0 : i32, i32, i32
  }
  func.func @transform_3(%arg0: i32, %arg1: i32) -> (i32, i32) {
    %c0_i32 = arith.constant 0 : i32
    %c0_i32_0 = arith.constant 0 : i32
    return %arg0, %c0_i32 : i32, i32
  }
  func.func @transform_4(%arg0: i32, %arg1: i32) -> (i32, i32) {
    %c0_i32 = arith.constant 0 : i32
    return %arg0, %arg1 : i32, i32
  }
  func.func @transform_5(%arg0: i32, %arg1: i32) -> (i32, i32) {
    %c0_i32 = arith.constant 0 : i32
    %c0_i32_0 = arith.constant 0 : i32
    %c0_i32_1 = arith.constant 0 : i32
    return %c0_i32, %c0_i32_0 : i32, i32
  }
  func.func @transform_6(%arg0: i32, %arg1: i32) -> (i32, i32) {
    %c0_i32 = arith.constant 0 : i32
    %c0_i32_0 = arith.constant 0 : i32
    %c0_i32_1 = arith.constant 0 : i32
    return %c0_i32, %c0_i32_0 : i32, i32
  }
  func.func @transform_7(%arg0: i32, %arg1: i32) -> (i32, i32) {
    %c0_i32 = arith.constant 0 : i32
    %c0_i32_0 = arith.constant 0 : i32
    return %arg0, %c0_i32 : i32, i32
  }
}

</mosaic_0001>

<bundles_post_ra>
// kernel: gtn_forward.6
= control target key start
LH: loop header
LB: loop body
LE: loop exit
PB: predicated region body
PF: predicated region fallthrough
CT: control target
= control target key end

     0   :  { %vm95_vm0 = vcmask 261120   ;;  %vm185_vm1 = vcmask 125952   ;;  %s577_s21 = smov 96   ;;  %s578_s24 = smov 112   ;;  %vm430_vm2 = vcmask 130048   ;;  %s934_s1 = inlined_call_operand.vmem [shape: bf16[32,64], index: 1, kind: input, shape index: {}]   ;;  %s935_s0 = inlined_call_operand.vmem [shape: bf16[128,32], index: 0, kind: input, shape index: {}]   ;;  %s936_s2 = inlined_call_operand.vmem [shape: f32[1,64], index: 2, kind: input, shape index: {}]   ;;  %s937_s3 = inlined_call_operand.vmem [shape: bf16[1,128,16], index: 3, kind: output, shape index: {0}]   ;;  %s938_s6 = inlined_call_operand.vmem [shape: f32[128,16], index: 6, kind: output, shape index: {3}]   ;;  %s939_s5 = inlined_call_operand.vmem [shape: bf16[1,128,16], index: 5, kind: output, shape index: {2}]   ;;  %s940_s4 = inlined_call_operand.vmem [shape: bf16[1,16,128], index: 4, kind: output, shape index: {1}]  }
   0x1   :  { %v520_v0 = vld [vmem:[%s934_s1 + $0x8] sm:$0xff]  ;;  %v519_v1 = vld [vmem:[%s934_s1] sm:$0xff]  ;;  %v513_v3 = vld [vmem:[%s935_s0 + $0x10] sm:$0xff] }
   0x2   :  { %126 = vmatpush.bf16.msra.mxu0 %v520_v0  ;;  %526 = vmatpush.bf16.msra.mxu1 %v520_v0  ;;  %v511_v2 = vld [vmem:[%s935_s0] sm:$0xff]  ;;  %v517_v5 = vld [vmem:[%s935_s0 + $0x30] sm:$0xff]  ;;  %v512_v6 = vld [vmem:[%s935_s0 + $0x8] sm:$0xff] }
   0x3   :  { %527 = vmatpush.bf16.msra.mxu2 %v520_v0  ;;  %528 = vmatpush.bf16.msra.mxu3 %v520_v0  ;;  %v515_v4 = vld [vmem:[%s935_s0 + $0x20] sm:$0xff]  ;;  %v514_v7 = vld [vmem:[%s935_s0 + $0x18] sm:$0xff]  ;;  %v516_v8 = vld [vmem:[%s935_s0 + $0x28] sm:$0xff] }
   0x4   :  { %v518_v9 = vld [vmem:[%s935_s0 + $0x38] sm:$0xff]  ;;  %v655_v10 = vld [vmem:[%s936_s2] ss:$0 sm:$0xff]  ;;  %s576_s0 = smov 80  }
   0x6   :  { %127 = vmatpush.bf16.msra.mxu0 %v519_v1  ;;  %529 = vmatpush.bf16.msra.mxu1 %v519_v1 }
   0x7   :  { %530 = vmatpush.bf16.msra.mxu2 %v519_v1  ;;  %531 = vmatpush.bf16.msra.mxu3 %v519_v1 }
   0x9   :  { %503 = vmatmul.msk.bf16.vlgmr.msra.gmra.mxu0 %vm95_vm0, %v511_v2  ;;  %505 = vmatmul.msk.bf16.vlgmr.msra.gmra.mxu1 %vm95_vm0, %v513_v3 }
   0xa   :  { %507 = vmatmul.msk.bf16.vlgmr.msra.gmra.mxu2 %vm95_vm0, %v515_v4  ;;  %509 = vmatmul.msk.bf16.vlgmr.msra.gmra.mxu3 %vm95_vm0, %v517_v5 }
  0x19   :  { %504 = vmatmul.msk.bf16.gmra.mxu0 %vm95_vm0, %v512_v6  ;;  %506 = vmatmul.msk.bf16.gmra.mxu1 %vm95_vm0, %v514_v7 }
  0x1a   :  { %508 = vmatmul.msk.bf16.gmra.mxu2 %vm95_vm0, %v516_v8  ;;  %510 = vmatmul.msk.bf16.gmra.mxu3 %vm95_vm0, %v518_v9 }
  0x86   :  { %v129_v11 = vpop.f32.mrf.mxu0  ;;  %v139_v12 = vpop.f32.mrf.mxu1 }
  0x87   :  { %v130_v13 = vadd.f32 %v655_v10, %v129_v11  ;;  %v659_v14 = vadd.f32 %v655_v10, %v139_v12 }
  0x89   :  { %382 = vrot.lane.b32.xlu0 %v130_v13, %s576_s0  ;;  %v169_v15 = vpack.c.bf16 %v130_v13, %v130_v13  ;;  %v173_v16 = vpack.c.bf16 %v659_v14, %v659_v14 }
  0x8b   :  { %186 = vst.msk [vmem:[%s937_s3] sm:$0xf] %vm185_vm1, %v169_v15 }
  0x8c   :  { %190 = vst.msk [vmem:[%s937_s3 + $0x10] sm:$0xf] %vm185_vm1, %v173_v16 }
  0x8d   :  { %v149_v17 = vpop.f32.mrf.mxu2  ;;  %v159_v18 = vpop.f32.mrf.mxu3 }
  0x8e   :  { %v131_v19 = vpop.f32.mrf.mxu0  ;;  %v141_v20 = vpop.f32.mrf.mxu1  ;;  %v673_v21 = vadd.f32 %v655_v10, %v149_v17  ;;  %v676_v22 = vadd.f32 %v655_v10, %v159_v18 }
  0x8f   :  { %v132_v23 = vadd.f32 %v655_v10, %v131_v19  ;;  %v142_v24 = vadd.f32 %v655_v10, %v141_v20 }
  0x90   :  { %v177_v25 = vpack.c.bf16 %v673_v21, %v673_v21  ;;  %v181_v29 = vpack.c.bf16 %v676_v22, %v676_v22 }
  0x91   :  { %318 = vrot.lane.b32.xlu0 %v169_v15, %s577_s21  ;;  %v540_v26 = vpack.i.bf16 %v142_v24, %v659_v14  ;;  %v170_v27 = vpack.c.bf16 %v132_v23, %v132_v23  ;;  %v174_v28 = vpack.c.bf16 %v142_v24, %v142_v24  ;;  %v535_v40 = vpack.i.bf16 %v132_v23, %v130_v13 }
  0x92   :  { %194 = vst.msk [vmem:[%s937_s3 + $0x20] sm:$0xf] %vm185_vm1, %v177_v25 }
  0x93   :  { %541 = vrot.lane.b32.xlu1 %v540_v26, %s578_s24  ;;  %187 = vst.msk [vmem:[%s937_s3 + $0x4] sm:$0xf] %vm185_vm1, %v170_v27 }
  0x94   :  { %191 = vst.msk [vmem:[%s937_s3 + $0x14] sm:$0xf] %vm185_vm1, %v174_v28 }
  0x95   :  { %v151_v30 = vpop.f32.mrf.mxu2  ;;  %v161_v31 = vpop.f32.mrf.mxu3  ;;  %198 = vst.msk [vmem:[%s937_s3 + $0x30] sm:$0xf] %vm185_vm1, %v181_v29 }
  0x96   :  { %v152_v32 = vadd.f32 %v655_v10, %v151_v30  ;;  %v162_v33 = vadd.f32 %v655_v10, %v161_v31  ;;  %v134_v34 = vpop.f32.mrf.mxu0  ;;  %v144_v44 = vpop.f32.mrf.mxu1 }
  0x97   :  { %v135_v38 = vadd.f32 %v655_v10, %v134_v34  ;;  %v145_v45 = vadd.f32 %v655_v10, %v144_v44 }
  0x98   :  { %v545_v35 = vpack.i.bf16 %v152_v32, %v673_v21  ;;  %v178_v36 = vpack.c.bf16 %v152_v32, %v152_v32  ;;  %v182_v37 = vpack.c.bf16 %v162_v33, %v162_v33  ;;  %v550_v50 = vpack.i.bf16 %v162_v33, %v676_v22 }
  0x99   :  { %326 = vrot.lane.b32.xlu0 %v173_v16, %s577_s21  ;;  %v171_v42 = vpack.c.bf16 %v135_v38, %v135_v38  ;;  %v175_v47 = vpack.c.bf16 %v145_v45, %v145_v45 }
  0x9a   :  { %546 = vrot.lane.b32.xlu2 %v545_v35, %s578_s24  ;;  %195 = vst.msk [vmem:[%s937_s3 + $0x24] sm:$0xf] %vm185_vm1, %v178_v36 }
  0x9b   :  { %384 = vrot.lane.b32.xlu1 %v132_v23, %s576_s0  ;;  %199 = vst.msk [vmem:[%s937_s3 + $0x34] sm:$0xf] %vm185_vm1, %v182_v37 }
  0x9c   :  { %188 = vst.msk [vmem:[%s937_s3 + $0x8] sm:$0xf] %vm185_vm1, %v171_v42 }
  0x9d   :  { %192 = vst.msk [vmem:[%s937_s3 + $0x18] sm:$0xf] %vm185_vm1, %v175_v47  ;;  %v154_v51 = vpop.f32.mrf.mxu2  ;;  %v164_v58 = vpop.f32.mrf.mxu3 }
  0x9e   :  { %v136_v39 = vpop.f32.mrf.mxu0  ;;  %v146_v46 = vpop.f32.mrf.mxu1  ;;  %v155_v52 = vadd.f32 %v655_v10, %v154_v51  ;;  %v165_v62 = vadd.f32 %v655_v10, %v164_v58 }
  0x9f   :  { %v137_v41 = vadd.f32 %v655_v10, %v136_v39  ;;  %v147_v48 = vadd.f32 %v655_v10, %v146_v46 }
  0xa0   :  { %v179_v59 = vpack.c.bf16 %v155_v52, %v155_v52  ;;  %v183_v5 = vpack.c.bf16 %v165_v62, %v165_v62 }
  0xa1   :  { %536 = vrot.lane.b32.xlu0 %v535_v40, %s578_s24  ;;  %v172_v43 = vpack.c.bf16 %v137_v41, %v137_v41  ;;  %v176_v49 = vpack.c.bf16 %v147_v48, %v147_v48  ;;  %v555_v56 = vpack.i.bf16 %v137_v41, %v135_v38  ;;  %v560_v57 = vpack.i.bf16 %v147_v48, %v145_v45 }
  0xa2   :  { %196 = vst.msk [vmem:[%s937_s3 + $0x28] sm:$0xf] %vm185_vm1, %v179_v59 }
  0xa3   :  { %320 = vrot.lane.b32.xlu1 %v170_v27, %s577_s21  ;;  %189 = vst.msk [vmem:[%s937_s3 + $0xc] sm:$0xf] %vm185_vm1, %v172_v43 }
  0xa4   :  { %193 = vst.msk [vmem:[%s937_s3 + $0x1c] sm:$0xf] %vm185_vm1, %v176_v49 }
  0xa5   :  { %v156_v53 = vpop.f32.mrf.mxu2  ;;  %v166_v61 = vpop.f32.mrf.mxu3  ;;  %200 = vst.msk [vmem:[%s937_s3 + $0x38] sm:$0xf] %vm185_vm1, %v183_v5 }
  0xa6   :  { %v157_v54 = vadd.f32 %v655_v10, %v156_v53  ;;  %v167_v0 = vadd.f32 %v655_v10, %v166_v61 }
  0xa8   :  { %v565_v55 = vpack.i.bf16 %v157_v54, %v155_v52  ;;  %v180_v60 = vpack.c.bf16 %v157_v54, %v157_v54  ;;  %v570_v1 = vpack.i.bf16 %v167_v0, %v165_v62  ;;  %v184_v4 = vpack.c.bf16 %v167_v0, %v167_v0 }
  0xa9   :  { %334 = vrot.lane.b32.xlu0 %v177_v25, %s577_s21 }
  0xaa   :  { %566 = vrot.lane.b32.xlu2 %v565_v55, %s578_s24  ;;  %197 = vst.msk [vmem:[%s937_s3 + $0x2c] sm:$0xf] %vm185_vm1, %v180_v60 }
  0xab   :  { %328 = vrot.lane.b32.xlu1 %v174_v28, %s577_s21  ;;  %201 = vst.msk [vmem:[%s937_s3 + $0x3c] sm:$0xf] %vm185_vm1, %v184_v4 }
  0xb1   :  { %342 = vrot.lane.b32.xlu0 %v181_v29, %s577_s21 }
  0xb3   :  { %336 = vrot.lane.b32.xlu1 %v178_v36, %s577_s21 }
  0xb9   :  { %551 = vrot.lane.b32.xlu0 %v550_v50, %s578_s24 }
  0xbb   :  { %344 = vrot.lane.b32.xlu1 %v182_v37, %s577_s21 }
  0xc1   :  { %386 = vrot.lane.b32.xlu0 %v135_v38, %s576_s0 }
  0xc3   :  { %392 = vrot.lane.b32.xlu1 %v142_v24, %s576_s0 }
  0xc9   :  { %322 = vrot.lane.b32.xlu0 %v171_v42, %s577_s21 }
  0xcb   :  { %400 = vrot.lane.b32.xlu1 %v152_v32, %s576_s0 }
  0xd1   :  { %330 = vrot.lane.b32.xlu0 %v175_v47, %s577_s21 }
  0xd3   :  { %408 = vrot.lane.b32.xlu1 %v162_v33, %s576_s0 }
  0xd9   :  { %556 = vrot.lane.b32.xlu0 %v555_v56, %s578_s24 }
  0xdb   :  { %561 = vrot.lane.b32.xlu1 %v560_v57, %s578_s24 }
  0xe1   :  { %390 = vrot.lane.b32.xlu0 %v659_v14, %s576_s0 }
  0xe3   :  { %388 = vrot.lane.b32.xlu1 %v137_v41, %s576_s0 }
  0xe9   :  { %394 = vrot.lane.b32.xlu0 %v145_v45, %s576_s0 }
  0xeb   :  { %396 = vrot.lane.b32.xlu1 %v147_v48, %s576_s0 }
  0xf1   :  { %398 = vrot.lane.b32.xlu0 %v673_v21, %s576_s0 }
  0xf3   :  { %324 = vrot.lane.b32.xlu1 %v172_v43, %s577_s21 }
  0xf4   :  { %v547_v42 = vpop.permute.xlu2 %546 }
  0xf5   :  { %v548_v44 = vunpack.i.l.bf16 %v547_v42  ;;  %v549_v47 = vunpack.i.h.bf16 %v547_v42 }
  0xf9   :  { %402 = vrot.lane.b32.xlu0 %v155_v52, %s576_s0 }
  0xfb   :  { %332 = vrot.lane.b32.xlu1 %v176_v49, %s577_s21  ;;  %v383_v63 = vpop.permute.xlu0 %382 }
  0xfc   :  { %431 = vst.msk [vmem:[%s938_s6] sm:$0xff] %vm430_vm2, %v383_v63 }
 0x101   :  { %406 = vrot.lane.b32.xlu0 %v676_v22, %s576_s0 }
 0x103   :  { %571 = vrot.lane.b32.xlu1 %v570_v1, %s578_s24  ;;  %v319_v2 = vpop.permute.xlu0 %318 }
 0x104   :  { %366 = vst.msk [vmem:[%s939_s5] sm:$0xf] %vm185_vm1, %v319_v2  ;;  %v567_v49 = vpop.permute.xlu2 %566 }
 0x105   :  { %v788_v3 = vpop.permute.xlu1 %541  ;;  %v568_v51 = vunpack.i.l.bf16 %v567_v49  ;;  %v569_v53 = vunpack.i.h.bf16 %v567_v49 }
 0x106   :  { %v543_v31 = vunpack.i.l.bf16 %v788_v3  ;;  %v544_v34 = vunpack.i.h.bf16 %v788_v3 }
 0x109   :  { %338 = vrot.lane.b32.xlu0 %v179_v59, %s577_s21 }
 0x10b   :  { %404 = vrot.lane.b32.xlu1 %v157_v54, %s576_s0  ;;  %v327_v6 = vpop.permute.xlu0 %326 }
 0x10c   :  { %370 = vst.msk [vmem:[%s939_s5 + $0x10] sm:$0xf] %vm185_vm1, %v327_v6 }
 0x10d   :  { %v385_v7 = vpop.permute.xlu1 %384 }
 0x10e   :  { %432 = vst.msk [vmem:[%s938_s6 + $0x8] sm:$0xff] %vm430_vm2, %v385_v7 }
 0x111   :  { %346 = vrot.lane.b32.xlu0 %v183_v5, %s577_s21 }
 0x113   :  { %340 = vrot.lane.b32.xlu1 %v180_v60, %s577_s21  ;;  %v537_v8 = vpop.permute.xlu0 %536 }
 0x114   :  { %v538_v9 = vunpack.i.l.bf16 %v537_v8  ;;  %v539_v12 = vunpack.i.h.bf16 %v537_v8 }
 0x115   :  { %v321_v10 = vpop.permute.xlu1 %320 }
 0x116   :  { %367 = vst.msk [vmem:[%s939_s5 + $0x4] sm:$0xf] %vm185_vm1, %v321_v10  ;;  %266 = vxpose.xlu2.b32.start [1/16] (narrow) %v538_v9, 16 }
 0x119   :  { %410 = vrot.lane.b32.xlu0 %v165_v62, %s576_s0 }
 0x11b   :  { %v335_v11 = vpop.permute.xlu0 %334  ;;  %348 = vrot.lane.b32.xlu1 %v184_v4, %s577_s21 }
 0x11c   :  { %374 = vst.msk [vmem:[%s939_s5 + $0x20] sm:$0xf] %vm185_vm1, %v335_v11 }
 0x11d   :  { %v329_v13 = vpop.permute.xlu1 %328 }
 0x11e   :  { %371 = vst.msk [vmem:[%s939_s5 + $0x14] sm:$0xf] %vm185_vm1, %v329_v13  ;;  %267 = vxpose.xlu2.b32.cont [2/16] (narrow) %v539_v12, 16 }
 0x123   :  { %v343_v14 = vpop.permute.xlu0 %342  ;;  %412 = vrot.lane.b32.xlu1 %v167_v0, %s576_s0 }
 0x124   :  { %378 = vst.msk [vmem:[%s939_s5 + $0x30] sm:$0xf] %vm185_vm1, %v343_v14 }
 0x125   :  { %v337_v15 = vpop.permute.xlu1 %336 }
 0x126   :  { %375 = vst.msk [vmem:[%s939_s5 + $0x24] sm:$0xf] %vm185_vm1, %v337_v15 }
 0x12b   :  { %v833_v16 = vpop.permute.xlu0 %551 }
 0x12c   :  { %v553_v55 = vunpack.i.l.bf16 %v833_v16  ;;  %v554_v56 = vunpack.i.h.bf16 %v833_v16 }
 0x12d   :  { %v345_v17 = vpop.permute.xlu1 %344 }
 0x12e   :  { %379 = vst.msk [vmem:[%s939_s5 + $0x34] sm:$0xf] %vm185_vm1, %v345_v17 }
 0x133   :  { %v387_v18 = vpop.permute.xlu0 %386 }
 0x134   :  { %433 = vst.msk [vmem:[%s938_s6 + $0x10] sm:$0xff] %vm430_vm2, %v387_v18 }
 0x135   :  { %v393_v19 = vpop.permute.xlu1 %392 }
 0x136   :  { %436 = vst.msk [vmem:[%s938_s6 + $0x28] sm:$0xff] %vm430_vm2, %v393_v19 }
 0x13b   :  { %v323_v20 = vpop.permute.xlu0 %322 }
 0x13c   :  { %368 = vst.msk [vmem:[%s939_s5 + $0x8] sm:$0xf] %vm185_vm1, %v323_v20 }
 0x13d   :  { %v401_v21 = vpop.permute.xlu1 %400 }
 0x13e   :  { %440 = vst.msk [vmem:[%s938_s6 + $0x48] sm:$0xff] %vm430_vm2, %v401_v21 }
 0x143   :  { %v331_v22 = vpop.permute.xlu0 %330 }
 0x144   :  { %372 = vst.msk [vmem:[%s939_s5 + $0x18] sm:$0xf] %vm185_vm1, %v331_v22 }
 0x145   :  { %v409_v23 = vpop.permute.xlu1 %408 }
 0x146   :  { %444 = vst.msk [vmem:[%s938_s6 + $0x68] sm:$0xff] %vm430_vm2, %v409_v23 }
 0x14b   :  { %v557_v24 = vpop.permute.xlu0 %556 }
 0x14c   :  { %v558_v25 = vunpack.i.l.bf16 %v557_v24  ;;  %v559_v28 = vunpack.i.h.bf16 %v557_v24 }
 0x14d   :  { %v562_v26 = vpop.permute.xlu1 %561 }
 0x14e   :  { %268 = vxpose.xlu2.b32.cont [3/16] (narrow) %v558_v25, 16  ;;  %v563_v37 = vunpack.i.l.bf16 %v562_v26  ;;  %v564_v40 = vunpack.i.h.bf16 %v562_v26 }
 0x153   :  { %v391_v27 = vpop.permute.xlu0 %390 }
 0x154   :  { %435 = vst.msk [vmem:[%s938_s6 + $0x20] sm:$0xff] %vm430_vm2, %v391_v27 }
 0x155   :  { %v389_v29 = vpop.permute.xlu1 %388 }
 0x156   :  { %434 = vst.msk [vmem:[%s938_s6 + $0x18] sm:$0xff] %vm430_vm2, %v389_v29  ;;  %269 = vxpose.xlu2.b32.cont [4/16] (narrow) %v559_v28, 16 }
 0x15b   :  { %v395_v30 = vpop.permute.xlu0 %394 }
 0x15c   :  { %437 = vst.msk [vmem:[%s938_s6 + $0x30] sm:$0xff] %vm430_vm2, %v395_v30 }
 0x15d   :  { %v397_v32 = vpop.permute.xlu1 %396 }
 0x15e   :  { %438 = vst.msk [vmem:[%s938_s6 + $0x38] sm:$0xff] %vm430_vm2, %v397_v32  ;;  %270 = vxpose.xlu2.b32.cont [5/16] (narrow) %v543_v31, 16 }
 0x163   :  { %v399_v33 = vpop.permute.xlu0 %398 }
 0x164   :  { %439 = vst.msk [vmem:[%s938_s6 + $0x40] sm:$0xff] %vm430_vm2, %v399_v33 }
 0x165   :  { %v325_v35 = vpop.permute.xlu1 %324 }
 0x166   :  { %369 = vst.msk [vmem:[%s939_s5 + $0xc] sm:$0xf] %vm185_vm1, %v325_v35  ;;  %271 = vxpose.xlu2.b32.cont [6/16] (narrow) %v544_v34, 16 }
 0x16b   :  { %v403_v36 = vpop.permute.xlu0 %402 }
 0x16c   :  { %441 = vst.msk [vmem:[%s938_s6 + $0x50] sm:$0xff] %vm430_vm2, %v403_v36 }
 0x16d   :  { %v333_v38 = vpop.permute.xlu1 %332 }
 0x16e   :  { %373 = vst.msk [vmem:[%s939_s5 + $0x1c] sm:$0xf] %vm185_vm1, %v333_v38  ;;  %272 = vxpose.xlu2.b32.cont [7/16] (narrow) %v563_v37, 16 }
 0x173   :  { %v407_v39 = vpop.permute.xlu0 %406 }
 0x174   :  { %443 = vst.msk [vmem:[%s938_s6 + $0x60] sm:$0xff] %vm430_vm2, %v407_v39 }
 0x175   :  { %v572_v41 = vpop.permute.xlu1 %571 }
 0x176   :  { %273 = vxpose.xlu2.b32.cont [8/16] (narrow) %v564_v40, 16  ;;  %v573_v57 = vunpack.i.l.bf16 %v572_v41  ;;  %v574_v58 = vunpack.i.h.bf16 %v572_v41 }
 0x17b   :  { %v339_v43 = vpop.permute.xlu0 %338 }
 0x17c   :  { %376 = vst.msk [vmem:[%s939_s5 + $0x28] sm:$0xf] %vm185_vm1, %v339_v43 }
 0x17d   :  { %v405_v45 = vpop.permute.xlu1 %404 }
 0x17e   :  { %442 = vst.msk [vmem:[%s938_s6 + $0x58] sm:$0xff] %vm430_vm2, %v405_v45  ;;  %274 = vxpose.xlu2.b32.cont [9/16] (narrow) %v548_v44, 16 }
 0x183   :  { %v347_v46 = vpop.permute.xlu0 %346 }
 0x184   :  { %380 = vst.msk [vmem:[%s939_s5 + $0x38] sm:$0xf] %vm185_vm1, %v347_v46 }
 0x185   :  { %v341_v48 = vpop.permute.xlu1 %340 }
 0x186   :  { %377 = vst.msk [vmem:[%s939_s5 + $0x2c] sm:$0xf] %vm185_vm1, %v341_v48  ;;  %275 = vxpose.xlu2.b32.cont [10/16] (narrow) %v549_v47, 16 }
 0x18b   :  { %v411_v50 = vpop.permute.xlu0 %410 }
 0x18c   :  { %445 = vst.msk [vmem:[%s938_s6 + $0x70] sm:$0xff] %vm430_vm2, %v411_v50 }
 0x18d   :  { %v349_v52 = vpop.permute.xlu1 %348 }
 0x18e   :  { %276 = vxpose.xlu2.b32.cont [11/16] (narrow) %v568_v51, 16  ;;  %381 = vst.msk [vmem:[%s939_s5 + $0x3c] sm:$0xf] %vm185_vm1, %v349_v52 }
 0x195   :  { %v413_v54 = vpop.permute.xlu1 %412 }
 0x196   :  { %277 = vxpose.xlu2.b32.cont [12/16] (narrow) %v569_v53, 16  ;;  %446 = vst.msk [vmem:[%s938_s6 + $0x78] sm:$0xff] %vm430_vm2, %v413_v54 }
 0x19e   :  { %278 = vxpose.xlu2.b32.cont [13/16] (narrow) %v553_v55, 16 }
 0x1a6   :  { %279 = vxpose.xlu2.b32.cont [14/16] (narrow) %v554_v56, 16 }
 0x1ae   :  { %280 = vxpose.xlu2.b32.cont [15/16] (narrow) %v573_v57, 16 }
 0x1b6   :  { %281 = vxpose.xlu2.b32.end [16/16] (narrow) %v574_v58, 16 }
 0x1d7   :  { %v282_v59 = vpop.trf.xlu2 }
 0x1df   :  { %v283_v60 = vpop.trf.xlu2 }
 0x1e0   :  { %v524_v61 = vpack.c.bf16 %v283_v60, %v282_v59 }
 0x1e2   :  { %525 = vst [vmem:[%s940_s4] sm:$0xff] %v524_v61  }

// kernel: gtn_forward.4
= control target key start
LH: loop header
LB: loop body
LE: loop exit
PB: predicated region body
PF: predicated region fallthrough
CT: control target
= control target key end

     0   :  { %vm105_vm0 = vcmask 1043456   ;;  %vm80_vm1 = vcmask 64512   ;;  %vm174_vm2 = vcmask 60416   ;;  %s1412_s16 = smov 64   ;;  %s1413_s23 = smov 96   ;;  %vm1056_vm3 = vcmask 261120   ;;  %s2643_s1 = inlined_call_operand.vmem [shape: bf16[8,128], index: 1, kind: input, shape index: {}]   ;;  %s2644_s0 = inlined_call_operand.vmem [shape: bf16[128,8], index: 0, kind: input, shape index: {}]   ;;  %s2645_s2 = inlined_call_operand.vmem [shape: f32[1,128], index: 2, kind: input, shape index: {}]   ;;  %s2646_s3 = inlined_call_operand.vmem [shape: bf16[4,128,8], index: 3, kind: output, shape index: {0}]   ;;  %s2647_s5 = inlined_call_operand.vmem [shape: bf16[4,128,8], index: 5, kind: output, shape index: {2}]   ;;  %s2648_s4 = inlined_call_operand.vmem [shape: bf16[4,8,128], index: 4, kind: output, shape index: {1}]   ;;  %s2649_s6 = inlined_call_operand.vmem [shape: f32[128,32], index: 6, kind: output, shape index: {3}]  }
   0x1   :  { %v35_v0 = vld [vmem:[%s2643_s1] sm:$0xf]  ;;  %v1230_v3 = vld [vmem:[%s2644_s0 + $0x10] sm:$0xff]  ;;  %v1229_v6 = vld [vmem:[%s2644_s0 + $0x8] sm:$0xff]  ;;  %s1414_s30 = smov 120   ;;  %s1415_s17 = smov 88  }
   0x2   :  { %v107_v1 = vsel %vm105_vm0, %v35_v0, 0  ;;  %v1228_v2 = vld [vmem:[%s2644_s0] sm:$0xff]  ;;  %v1234_v5 = vld [vmem:[%s2644_s0 + $0x30] sm:$0xff]  ;;  %v1231_v7 = vld [vmem:[%s2644_s0 + $0x18] sm:$0xff]  ;;  %s1416_s20 = smov 56   ;;  %s1417_s24 = smov 112  }
   0x3   :  { %116 = vmatpush.bf16.msra.mxu0 %v107_v1  ;;  %1236 = vmatpush.bf16.msra.mxu1 %v107_v1  ;;  %v1232_v4 = vld [vmem:[%s2644_s0 + $0x20] sm:$0xff]  ;;  %v1233_v8 = vld [vmem:[%s2644_s0 + $0x28] sm:$0xff]  ;;  %v1235_v9 = vld [vmem:[%s2644_s0 + $0x38] sm:$0xff]  ;;  %s1418_s7 = smov 80   ;;  %s1420_s1 = smov 104  }
   0x4   :  { %1237 = vmatpush.bf16.msra.mxu2 %v107_v1  ;;  %1238 = vmatpush.bf16.msra.mxu3 %v107_v1  ;;  %v1497_v10 = vld [vmem:[%s2645_s2] ss:$0 sm:$0xff]  ;;  %s1423_s13 = smov 32  }
   0x6   :  { %1121 = vmatmul.msk.bf16.vlgmr.msra.gmra.mxu0 %vm80_vm1, %v1228_v2  ;;  %1123 = vmatmul.msk.bf16.vlgmr.msra.gmra.mxu1 %vm80_vm1, %v1230_v3 }
   0x7   :  { %1125 = vmatmul.msk.bf16.vlgmr.msra.gmra.mxu2 %vm80_vm1, %v1232_v4  ;;  %1127 = vmatmul.msk.bf16.vlgmr.msra.gmra.mxu3 %vm80_vm1, %v1234_v5 }
  0x16   :  { %1122 = vmatmul.msk.bf16.gmra.mxu0 %vm80_vm1, %v1229_v6  ;;  %1124 = vmatmul.msk.bf16.gmra.mxu1 %vm80_vm1, %v1231_v7 }
  0x17   :  { %1126 = vmatmul.msk.bf16.gmra.mxu2 %vm80_vm1, %v1233_v8  ;;  %1128 = vmatmul.msk.bf16.gmra.mxu3 %vm80_vm1, %v1235_v9 }
  0x83   :  { %v118_v11 = vpop.f32.mrf.mxu0  ;;  %v128_v12 = vpop.f32.mrf.mxu1 }
  0x84   :  { %v1500_v13 = vadd.f32 %v1497_v10, %v118_v11  ;;  %v1503_v14 = vadd.f32 %v1497_v10, %v128_v12 }
  0x86   :  { %v1507_v15 = vpack.c.bf16 %v1500_v13, %v1500_v13  ;;  %v1511_v16 = vpack.c.bf16 %v1503_v14, %v1503_v14 }
  0x88   :  { %175 = vst.msk [vmem:[%s2646_s3] sm:$0xf] %vm174_vm2, %v1507_v15  ;;  %305 = vrot.lane.b32.xlu0 %v1507_v15, %s1412_s16 }
  0x89   :  { %179 = vst.msk [vmem:[%s2646_s3 + $0x10] sm:$0xf] %vm174_vm2, %v1511_v16 }
  0x8a   :  { %v138_v17 = vpop.f32.mrf.mxu2  ;;  %v148_v18 = vpop.f32.mrf.mxu3 }
  0x8b   :  { %v1526_v19 = vadd.f32 %v1497_v10, %v138_v17  ;;  %v120_v20 = vpop.f32.mrf.mxu0  ;;  %v130_v21 = vpop.f32.mrf.mxu1  ;;  %v1551_v28 = vadd.f32 %v1497_v10, %v148_v18 }
  0x8c   :  { %v1529_v22 = vadd.f32 %v1497_v10, %v120_v20  ;;  %v1532_v23 = vadd.f32 %v1497_v10, %v130_v21 }
  0x8d   :  { %v1536_v24 = vpack.c.bf16 %v1526_v19, %v1526_v19  ;;  %v1569_v29 = vpack.c.bf16 %v1551_v28, %v1551_v28 }
  0x8e   :  { %v1540_v25 = vpack.c.bf16 %v1529_v22, %v1529_v22  ;;  %v1544_v26 = vpack.c.bf16 %v1532_v23, %v1532_v23  ;;  %v1548_v27 = vpack.i.bf16 %v1532_v23, %v1503_v14  ;;  %v1656_v47 = vpack.i.bf16 %v1529_v22, %v1500_v13 }
  0x8f   :  { %183 = vst.msk [vmem:[%s2646_s3 + $0x20] sm:$0xf] %vm174_vm2, %v1536_v24 }
  0x90   :  { %176 = vst.msk [vmem:[%s2646_s3 + $0x4] sm:$0xf] %vm174_vm2, %v1540_v25  ;;  %1257 = vrot.lane.b32.xlu1 %v1548_v27, %s1413_s23  ;;  %313 = vrot.lane.b32.xlu0 %v1511_v16, %s1412_s16 }
  0x91   :  { %180 = vst.msk [vmem:[%s2646_s3 + $0x14] sm:$0xf] %vm174_vm2, %v1544_v26 }
  0x92   :  { %v140_v30 = vpop.f32.mrf.mxu2  ;;  %187 = vst.msk [vmem:[%s2646_s3 + $0x30] sm:$0xf] %vm174_vm2, %v1569_v29  ;;  %v150_v31 = vpop.f32.mrf.mxu3 }
  0x93   :  { %v1582_v32 = vadd.f32 %v1497_v10, %v140_v30  ;;  %v1585_v33 = vadd.f32 %v1497_v10, %v150_v31  ;;  %v123_v48 = vpop.f32.mrf.mxu0  ;;  %v133_v49 = vpop.f32.mrf.mxu1 }
  0x94   :  { %v1670_v50 = vadd.f32 %v1497_v10, %v123_v48  ;;  %v1673_v51 = vadd.f32 %v1497_v10, %v133_v49 }
  0x95   :  { %v1589_v34 = vpack.c.bf16 %v1582_v32, %v1582_v32  ;;  %v1593_v35 = vpack.i.bf16 %v1582_v32, %v1526_v19  ;;  %v1597_v36 = vpack.c.bf16 %v1585_v33, %v1585_v33  ;;  %v1677_v52 = vpack.i.bf16 %v1585_v33, %v1551_v28 }
  0x96   :  { %v1681_v53 = vpack.c.bf16 %v1670_v50, %v1670_v50  ;;  %v1685_v54 = vpack.c.bf16 %v1673_v51, %v1673_v51 }
  0x97   :  { %184 = vst.msk [vmem:[%s2646_s3 + $0x24] sm:$0xf] %vm174_vm2, %v1589_v34  ;;  %1267 = vrot.lane.b32.xlu2 %v1593_v35, %s1413_s23 }
  0x98   :  { %307 = vrot.lane.b32.xlu1 %v1540_v25, %s1412_s16  ;;  %369 = vrot.lane.b32.xlu0 %v1507_v15, %s1414_s30  ;;  %188 = vst.msk [vmem:[%s2646_s3 + $0x34] sm:$0xf] %vm174_vm2, %v1597_v36 }
  0x99   :  { %177 = vst.msk [vmem:[%s2646_s3 + $0x8] sm:$0xf] %vm174_vm2, %v1681_v53 }
  0x9a   :  { %v143_v37 = vpop.f32.mrf.mxu2  ;;  %v153_v38 = vpop.f32.mrf.mxu3  ;;  %181 = vst.msk [vmem:[%s2646_s3 + $0x18] sm:$0xf] %vm174_vm2, %v1685_v54 }
  0x9b   :  { %v1616_v39 = vadd.f32 %v1497_v10, %v143_v37  ;;  %v1619_v40 = vadd.f32 %v1497_v10, %v153_v38  ;;  %v135_v55 = vpop.f32.mrf.mxu1  ;;  %v125_v58 = vpop.f32.mrf.mxu0 }
  0x9c   :  { %v1704_v56 = vadd.f32 %v1497_v10, %v135_v55  ;;  %v1722_v59 = vadd.f32 %v1497_v10, %v125_v58 }
  0x9d   :  { %v1623_v41 = vpack.c.bf16 %v1616_v39, %v1616_v39  ;;  %v1627_v42 = vpack.c.bf16 %v1619_v40, %v1619_v40 }
  0x9e   :  { %v1708_v57 = vpack.c.bf16 %v1704_v56, %v1704_v56  ;;  %v1726_v60 = vpack.c.bf16 %v1722_v59, %v1722_v59  ;;  %v1753_v61 = vpack.i.bf16 %v1704_v56, %v1673_v51  ;;  %v1770_v1 = vpack.i.bf16 %v1722_v59, %v1670_v50 }
  0x9f   :  { %185 = vst.msk [vmem:[%s2646_s3 + $0x28] sm:$0xf] %vm174_vm2, %v1623_v41 }
  0xa0   :  { %315 = vrot.lane.b32.xlu1 %v1544_v26, %s1412_s16  ;;  %377 = vrot.lane.b32.xlu0 %v1511_v16, %s1414_s30  ;;  %189 = vst.msk [vmem:[%s2646_s3 + $0x38] sm:$0xf] %vm174_vm2, %v1627_v42 }
  0xa1   :  { %182 = vst.msk [vmem:[%s2646_s3 + $0x1c] sm:$0xf] %vm174_vm2, %v1708_v57 }
  0xa2   :  { %v145_v43 = vpop.f32.mrf.mxu2  ;;  %178 = vst.msk [vmem:[%s2646_s3 + $0xc] sm:$0xf] %vm174_vm2, %v1726_v60  ;;  %v155_v62 = vpop.f32.mrf.mxu3 }
  0xa3   :  { %v1644_v44 = vadd.f32 %v1497_v10, %v145_v43  ;;  %v1762_v63 = vadd.f32 %v1497_v10, %v155_v62 }
  0xa5   :  { %v1648_v45 = vpack.c.bf16 %v1644_v44, %v1644_v44  ;;  %v1652_v46 = vpack.i.bf16 %v1644_v44, %v1616_v39  ;;  %v1766_v0 = vpack.c.bf16 %v1762_v63, %v1762_v63  ;;  %v1839_v10 = vpack.i.bf16 %v1762_v63, %v1619_v40 }
  0xa7   :  { %186 = vst.msk [vmem:[%s2646_s3 + $0x2c] sm:$0xf] %vm174_vm2, %v1648_v45  ;;  %1307 = vrot.lane.b32.xlu2 %v1652_v46, %s1413_s23 }
  0xa8   :  { %371 = vrot.lane.b32.xlu1 %v1540_v25, %s1414_s30  ;;  %1252 = vrot.lane.b32.xlu0 %v1656_v47, %s1413_s23  ;;  %190 = vst.msk [vmem:[%s2646_s3 + $0x3c] sm:$0xf] %vm174_vm2, %v1766_v0 }
  0xaf   :  { %1322 = vrot.lane.b32.xlu2 %v1677_v52, %s1415_s17 }
  0xb0   :  { %379 = vrot.lane.b32.xlu1 %v1544_v26, %s1414_s30  ;;  %321 = vrot.lane.b32.xlu0 %v1536_v24, %s1412_s16 }
  0xb7   :  { %541 = vrot.lane.b32.xlu2 %v1569_v29, %s1416_s20 }
  0xb8   :  { %323 = vrot.lane.b32.xlu1 %v1589_v34, %s1412_s16  ;;  %329 = vrot.lane.b32.xlu0 %v1569_v29, %s1412_s16 }
  0xbf   :  { %545 = vrot.lane.b32.xlu2 %v1627_v42, %s1416_s20 }
  0xc0   :  { %331 = vrot.lane.b32.xlu1 %v1597_v36, %s1412_s16  ;;  %385 = vrot.lane.b32.xlu0 %v1536_v24, %s1414_s30 }
  0xc7   :  { %582 = vrot.lane.b32.xlu2 %v1507_v15, %s1417_s24 }
  0xc8   :  { %387 = vrot.lane.b32.xlu1 %v1589_v34, %s1414_s30  ;;  %393 = vrot.lane.b32.xlu0 %v1569_v29, %s1414_s30 }
  0xcf   :  { %586 = vrot.lane.b32.xlu2 %v1681_v53, %s1417_s24 }
  0xd0   :  { %395 = vrot.lane.b32.xlu1 %v1597_v36, %s1414_s30  ;;  %1262 = vrot.lane.b32.xlu0 %v1656_v47, %s1415_s17 }
  0xd7   :  { %590 = vrot.lane.b32.xlu2 %v1511_v16, %s1417_s24 }
  0xd8   :  { %1282 = vrot.lane.b32.xlu1 %v1753_v61, %s1413_s23  ;;  %1272 = vrot.lane.b32.xlu0 %v1677_v52, %s1413_s23 }
  0xdf   :  { %594 = vrot.lane.b32.xlu2 %v1685_v54, %s1417_s24 }
  0xe0   :  { %1297 = vrot.lane.b32.xlu1 %v1770_v1, %s1415_s17  ;;  %309 = vrot.lane.b32.xlu0 %v1681_v53, %s1412_s16 }
  0xe7   :  { %598 = vrot.lane.b32.xlu2 %v1536_v24, %s1417_s24 }
  0xe8   :  { %1302 = vrot.lane.b32.xlu1 %v1753_v61, %s1415_s17  ;;  %317 = vrot.lane.b32.xlu0 %v1685_v54, %s1412_s16 }
  0xef   :  { %602 = vrot.lane.b32.xlu2 %v1623_v41, %s1417_s24 }
  0xf0   :  { %311 = vrot.lane.b32.xlu1 %v1726_v60, %s1412_s16  ;;  %373 = vrot.lane.b32.xlu0 %v1681_v53, %s1414_s30 }
  0xf1   :  { %v1797_v2 = vpop.permute.xlu2 %1267 }
  0xf7   :  { %606 = vrot.lane.b32.xlu2 %v1569_v29, %s1417_s24 }
  0xf8   :  { %319 = vrot.lane.b32.xlu1 %v1708_v57, %s1412_s16  ;;  %381 = vrot.lane.b32.xlu0 %v1685_v54, %s1414_s30 }
  0xfa   :  { %v306_v3 = vpop.permute.xlu0 %305 }
  0xfb   :  { %353 = vst.msk [vmem:[%s2647_s5] sm:$0xf] %vm174_vm2, %v306_v3 }
  0xff   :  { %612 = vrot.lane.b32.xlu2 %v1766_v0, %s1417_s24 }
 0x100   :  { %375 = vrot.lane.b32.xlu1 %v1726_v60, %s1414_s30  ;;  %1277 = vrot.lane.b32.xlu0 %v1770_v1, %s1413_s23 }
 0x101   :  { %v1813_v4 = vpop.permute.xlu2 %1307 }
 0x102   :  { %v1815_v5 = vpop.permute.xlu1 %1257  ;;  %v314_v6 = vpop.permute.xlu0 %313 }
 0x103   :  { %357 = vst.msk [vmem:[%s2647_s5 + $0x10] sm:$0xf] %vm174_vm2, %v314_v6 }
 0x107   :  { %1337 = vrot.lane.b32.xlu2 %v1770_v1, %s1418_s7 }
 0x108   :  { %383 = vrot.lane.b32.xlu1 %v1708_v57, %s1414_s30  ;;  %325 = vrot.lane.b32.xlu0 %v1623_v41, %s1412_s16 }
 0x109   :  { %v1827_v7 = vpop.permute.xlu2 %1322 }
 0x10a   :  { %v308_v8 = vpop.permute.xlu1 %307  ;;  %v370_v9 = vpop.permute.xlu0 %369 }
 0x10b   :  { %354 = vst.msk [vmem:[%s2647_s5 + $0x4] sm:$0xf] %vm174_vm2, %v308_v8 }
 0x10c   :  { %1129 = vst.msk [vmem:[%s2646_s3 + $0x40] sm:$0xf] %vm174_vm2, %v370_v9 }
 0x10f   :  { %1347 = vrot.lane.b32.xlu2 %v1753_v61, %s1418_s7 }
 0x110   :  { %1312 = vrot.lane.b32.xlu1 %v1839_v10, %s1413_s23  ;;  %333 = vrot.lane.b32.xlu0 %v1627_v42, %s1412_s16  ;;  %s1422_s23 = smov 40  }
 0x111   :  { %v542_v11 = vpop.permute.xlu2 %541 }
 0x112   :  { %1158 = vst.msk [vmem:[%s2647_s5 + $0x70] sm:$0xf] %vm174_vm2, %v542_v11  ;;  %v316_v12 = vpop.permute.xlu1 %315  ;;  %v378_v17 = vpop.permute.xlu0 %377 }
 0x113   :  { %358 = vst.msk [vmem:[%s2647_s5 + $0x14] sm:$0xf] %vm174_vm2, %v316_v12 }
 0x114   :  { %1133 = vst.msk [vmem:[%s2646_s3 + $0x50] sm:$0xf] %vm174_vm2, %v378_v17 }
 0x117   :  { %1357 = vrot.lane.b32.xlu2 %v1652_v46, %s1418_s7 }
 0x118   :  { %327 = vrot.lane.b32.xlu1 %v1648_v45, %s1412_s16  ;;  %389 = vrot.lane.b32.xlu0 %v1623_v41, %s1414_s30 }
 0x119   :  { %v546_v18 = vpop.permute.xlu2 %545 }
 0x11a   :  { %1160 = vst.msk [vmem:[%s2647_s5 + $0x78] sm:$0xf] %vm174_vm2, %v546_v18  ;;  %v372_v20 = vpop.permute.xlu1 %371  ;;  %v1869_v21 = vpop.permute.xlu0 %1252 }
 0x11b   :  { %1130 = vst.msk [vmem:[%s2646_s3 + $0x44] sm:$0xf] %vm174_vm2, %v372_v20 }
 0x11f   :  { %1367 = vrot.lane.b32.xlu2 %v1839_v10, %s1418_s7 }
 0x120   :  { %335 = vrot.lane.b32.xlu1 %v1766_v0, %s1412_s16  ;;  %397 = vrot.lane.b32.xlu0 %v1627_v42, %s1414_s30  ;;  %s1419_s16 = smov 48  }
 0x121   :  { %v583_v30 = vpop.permute.xlu2 %582 }
 0x122   :  { %1162 = vst.msk [vmem:[%s2646_s3 + $0x80] sm:$0xf] %vm174_vm2, %v583_v30  ;;  %v380_v31 = vpop.permute.xlu1 %379  ;;  %v322_v37 = vpop.permute.xlu0 %321 }
 0x123   :  { %1134 = vst.msk [vmem:[%s2646_s3 + $0x54] sm:$0xf] %vm174_vm2, %v380_v31 }
 0x124   :  { %361 = vst.msk [vmem:[%s2647_s5 + $0x20] sm:$0xf] %vm174_vm2, %v322_v37 }
 0x127   :  { %730 = vrot.lane.b32.xlu2 %v1507_v15, %s1419_s16 }
 0x128   :  { %391 = vrot.lane.b32.xlu1 %v1648_v45, %s1414_s30  ;;  %1287 = vrot.lane.b32.xlu0 %v1548_v27, %s1415_s17 }
 0x129   :  { %v587_v38 = vpop.permute.xlu2 %586 }
 0x12a   :  { %1164 = vst.msk [vmem:[%s2646_s3 + $0x88] sm:$0xf] %vm174_vm2, %v587_v38  ;;  %v324_v43 = vpop.permute.xlu1 %323  ;;  %v330_v48 = vpop.permute.xlu0 %329 }
 0x12b   :  { %362 = vst.msk [vmem:[%s2647_s5 + $0x24] sm:$0xf] %vm174_vm2, %v324_v43 }
 0x12c   :  { %365 = vst.msk [vmem:[%s2647_s5 + $0x30] sm:$0xf] %vm174_vm2, %v330_v48 }
 0x12f   :  { %732 = vrot.lane.b32.xlu2 %v1540_v25, %s1419_s16 }
 0x130   :  { %399 = vrot.lane.b32.xlu1 %v1766_v0, %s1414_s30  ;;  %1292 = vrot.lane.b32.xlu0 %v1593_v35, %s1415_s17  ;;  %s1421_s30 = smov 72  }
 0x131   :  { %v591_v49 = vpop.permute.xlu2 %590 }
 0x132   :  { %1166 = vst.msk [vmem:[%s2646_s3 + $0x90] sm:$0xf] %vm174_vm2, %v591_v49  ;;  %v332_v55 = vpop.permute.xlu1 %331  ;;  %v386_v58 = vpop.permute.xlu0 %385 }
 0x133   :  { %366 = vst.msk [vmem:[%s2647_s5 + $0x34] sm:$0xf] %vm174_vm2, %v332_v55 }
 0x134   :  { %1137 = vst.msk [vmem:[%s2646_s3 + $0x60] sm:$0xf] %vm174_vm2, %v386_v58 }
 0x137   :  { %734 = vrot.lane.b32.xlu2 %v1681_v53, %s1419_s16 }
 0x138   :  { %1317 = vrot.lane.b32.xlu1 %v1652_v46, %s1415_s17  ;;  %1327 = vrot.lane.b32.xlu0 %v1839_v10, %s1415_s17 }
 0x139   :  { %v595_v62 = vpop.permute.xlu2 %594 }
 0x13a   :  { %1168 = vst.msk [vmem:[%s2646_s3 + $0x98] sm:$0xf] %vm174_vm2, %v595_v62  ;;  %v388_v3 = vpop.permute.xlu1 %387  ;;  %v394_v6 = vpop.permute.xlu0 %393 }
 0x13b   :  { %1138 = vst.msk [vmem:[%s2646_s3 + $0x64] sm:$0xf] %vm174_vm2, %v388_v3 }
 0x13c   :  { %1141 = vst.msk [vmem:[%s2646_s3 + $0x70] sm:$0xf] %vm174_vm2, %v394_v6 }
 0x13f   :  { %736 = vrot.lane.b32.xlu2 %v1726_v60, %s1419_s16 }
 0x140   :  { %517 = vrot.lane.b32.xlu0 %v1507_v15, %s1416_s20 }
 0x141   :  { %v599_v8 = vpop.permute.xlu2 %598 }
 0x142   :  { %1170 = vst.msk [vmem:[%s2646_s3 + $0xa0] sm:$0xf] %vm174_vm2, %v599_v8  ;;  %v396_v9 = vpop.permute.xlu1 %395  ;;  %v1263_v11 = vpop.permute.xlu0 %1262 }
 0x143   :  { %1142 = vst.msk [vmem:[%s2646_s3 + $0x74] sm:$0xf] %vm174_vm2, %v396_v9  ;;  %v1264_v6 = vunpack.i.l.bf16 %v1263_v11 }
 0x147   :  { %738 = vrot.lane.b32.xlu2 %v1511_v16, %s1419_s16 }
 0x148   :  { %519 = vrot.lane.b32.xlu0 %v1540_v25, %s1416_s20 }
 0x149   :  { %v603_v12 = vpop.permute.xlu2 %602 }
 0x14a   :  { %1172 = vst.msk [vmem:[%s2646_s3 + $0xa8] sm:$0xf] %vm174_vm2, %v603_v12  ;;  %v1967_v17 = vpop.permute.xlu1 %1282  ;;  %v1969_v18 = vpop.permute.xlu0 %1272 }
 0x14f   :  { %740 = vrot.lane.b32.xlu2 %v1544_v26, %s1419_s16 }
 0x150   :  { %521 = vrot.lane.b32.xlu0 %v1681_v53, %s1416_s20 }
 0x151   :  { %v607_v20 = vpop.permute.xlu2 %606 }
 0x152   :  { %1174 = vst.msk [vmem:[%s2646_s3 + $0xb0] sm:$0xf] %vm174_vm2, %v607_v20  ;;  %v1298_v30 = vpop.permute.xlu1 %1297  ;;  %v310_v31 = vpop.permute.xlu0 %309  ;;  %v1265_v20 = vunpack.i.h.bf16 %v1263_v11 }
 0x153   :  { %355 = vst.msk [vmem:[%s2647_s5 + $0x8] sm:$0xf] %vm174_vm2, %v310_v31 }
 0x157   :  { %744 = vrot.lane.b32.xlu2 %v1708_v57, %s1419_s16 }
 0x158   :  { %523 = vrot.lane.b32.xlu0 %v1726_v60, %s1416_s20 }
 0x159   :  { %v613_v37 = vpop.permute.xlu2 %612 }
 0x15a   :  { %1177 = vst.msk [vmem:[%s2646_s3 + $0xbc] sm:$0xf] %vm174_vm2, %v613_v37  ;;  %v1991_v38 = vpop.permute.xlu1 %1302  ;;  %v318_v43 = vpop.permute.xlu0 %317 }
 0x15b   :  { %359 = vst.msk [vmem:[%s2647_s5 + $0x18] sm:$0xf] %vm174_vm2, %v318_v43 }
 0x15f   :  { %748 = vrot.lane.b32.xlu2 %v1589_v34, %s1419_s16 }
 0x160   :  { %525 = vrot.lane.b32.xlu0 %v1511_v16, %s1416_s20 }
 0x161   :  { %v2001_v48 = vpop.permute.xlu2 %1337 }
 0x162   :  { %v312_v49 = vpop.permute.xlu1 %311  ;;  %v374_v55 = vpop.permute.xlu0 %373 }
 0x163   :  { %356 = vst.msk [vmem:[%s2647_s5 + $0xc] sm:$0xf] %vm174_vm2, %v312_v49  ;;  %v1299_v49 = vunpack.i.l.bf16 %v1298_v30 }
 0x164   :  { %1131 = vst.msk [vmem:[%s2646_s3 + $0x48] sm:$0xf] %vm174_vm2, %v374_v55 }
 0x167   :  { %752 = vrot.lane.b32.xlu2 %v1648_v45, %s1419_s16 }
 0x168   :  { %527 = vrot.lane.b32.xlu0 %v1544_v26, %s1416_s20 }
 0x169   :  { %v2015_v58 = vpop.permute.xlu2 %1347 }
 0x16a   :  { %v320_v62 = vpop.permute.xlu1 %319  ;;  %v382_v3 = vpop.permute.xlu0 %381 }
 0x16b   :  { %360 = vst.msk [vmem:[%s2647_s5 + $0x1c] sm:$0xf] %vm174_vm2, %v320_v62 }
 0x16c   :  { %1135 = vst.msk [vmem:[%s2646_s3 + $0x58] sm:$0xf] %vm174_vm2, %v382_v3  ;;  %v1300_v3 = vunpack.i.h.bf16 %v1298_v30 }
 0x16d   :  { %482 = vxpose.xlu1.b32.start [1/16] (narrow) %v1264_v6, 8 }
 0x16f   :  { %756 = vrot.lane.b32.xlu2 %v1597_v36, %s1419_s16 }
 0x170   :  { %529 = vrot.lane.b32.xlu0 %v1685_v54, %s1416_s20 }
 0x171   :  { %v2029_v8 = vpop.permute.xlu2 %1357 }
 0x172   :  { %v376_v9 = vpop.permute.xlu1 %375  ;;  %v2031_v12 = vpop.permute.xlu0 %1277 }
 0x173   :  { %1132 = vst.msk [vmem:[%s2646_s3 + $0x4c] sm:$0xf] %vm174_vm2, %v376_v9 }
 0x175   :  { %483 = vxpose.xlu1.b32.cont [2/16] (narrow) %v1265_v20, 8 }
 0x177   :  { %760 = vrot.lane.b32.xlu2 %v1766_v0, %s1419_s16 }
 0x178   :  { %531 = vrot.lane.b32.xlu0 %v1708_v57, %s1416_s20 }
 0x179   :  { %v2041_v31 = vpop.permute.xlu2 %1367 }
 0x17a   :  { %v384_v37 = vpop.permute.xlu1 %383  ;;  %v326_v43 = vpop.permute.xlu0 %325 }
 0x17b   :  { %1136 = vst.msk [vmem:[%s2646_s3 + $0x5c] sm:$0xf] %vm174_vm2, %v384_v37 }
 0x17c   :  { %363 = vst.msk [vmem:[%s2647_s5 + $0x28] sm:$0xf] %vm174_vm2, %v326_v43 }
 0x17d   :  { %484 = vxpose.xlu1.b32.cont [3/16] (narrow) %v1299_v49, 8 }
 0x17f   :  { %797 = vrot.lane.b32.xlu2 %v1540_v25, %s1420_s1 }
 0x180   :  { %533 = vrot.lane.b32.xlu0 %v1536_v24, %s1416_s20 }
 0x181   :  { %v731_v11 = vpop.permute.xlu2 %730 }
 0x182   :  { %1179 = vst.msk [vmem:[%s2647_s5 + $0x80] sm:$0xf] %vm174_vm2, %v731_v11  ;;  %v2059_v55 = vpop.permute.xlu1 %1312  ;;  %v334_v62 = vpop.permute.xlu0 %333 }
 0x183   :  { %367 = vst.msk [vmem:[%s2647_s5 + $0x38] sm:$0xf] %vm174_vm2, %v334_v62 }
 0x185   :  { %485 = vxpose.xlu1.b32.cont [4/16] (narrow) %v1300_v3, 8 }
 0x187   :  { %801 = vrot.lane.b32.xlu2 %v1726_v60, %s1420_s1 }
 0x188   :  { %535 = vrot.lane.b32.xlu0 %v1589_v34, %s1416_s20 }
 0x189   :  { %v733_v6 = vpop.permute.xlu2 %732 }
 0x18a   :  { %1180 = vst.msk [vmem:[%s2647_s5 + $0x84] sm:$0xf] %vm174_vm2, %v733_v6  ;;  %v328_v9 = vpop.permute.xlu1 %327  ;;  %v390_v30 = vpop.permute.xlu0 %389 }
 0x18b   :  { %364 = vst.msk [vmem:[%s2647_s5 + $0x2c] sm:$0xf] %vm174_vm2, %v328_v9 }
 0x18c   :  { %1139 = vst.msk [vmem:[%s2646_s3 + $0x68] sm:$0xf] %vm174_vm2, %v390_v30 }
 0x18f   :  { %805 = vrot.lane.b32.xlu2 %v1544_v26, %s1420_s1 }
 0x190   :  { %537 = vrot.lane.b32.xlu0 %v1623_v41, %s1416_s20 }
 0x191   :  { %v735_v20 = vpop.permute.xlu2 %734 }
 0x192   :  { %1181 = vst.msk [vmem:[%s2647_s5 + $0x88] sm:$0xf] %vm174_vm2, %v735_v20  ;;  %v336_v37 = vpop.permute.xlu1 %335  ;;  %v398_v43 = vpop.permute.xlu0 %397 }
 0x193   :  { %368 = vst.msk [vmem:[%s2647_s5 + $0x3c] sm:$0xf] %vm174_vm2, %v336_v37 }
 0x194   :  { %1143 = vst.msk [vmem:[%s2646_s3 + $0x78] sm:$0xf] %vm174_vm2, %v398_v43 }
 0x197   :  { %809 = vrot.lane.b32.xlu2 %v1708_v57, %s1420_s1 }
 0x198   :  { %539 = vrot.lane.b32.xlu0 %v1648_v45, %s1416_s20 }
 0x199   :  { %v737_v49 = vpop.permute.xlu2 %736 }
 0x19a   :  { %1182 = vst.msk [vmem:[%s2647_s5 + $0x8c] sm:$0xf] %vm174_vm2, %v737_v49  ;;  %v392_v11 = vpop.permute.xlu1 %391  ;;  %v1288_v62 = vpop.permute.xlu0 %1287  ;;  %v1304_v49 = vunpack.i.l.bf16 %v1991_v38 }
 0x19b   :  { %1140 = vst.msk [vmem:[%s2646_s3 + $0x6c] sm:$0xf] %vm174_vm2, %v392_v11  ;;  %v1289_v3 = vunpack.i.l.bf16 %v1288_v62  ;;  %v1290_v20 = vunpack.i.h.bf16 %v1288_v62 }
 0x19d   :  { %486 = vxpose.xlu1.b32.cont [5/16] (narrow) %v1289_v3, 8  ;;  %v1305_v3 = vunpack.i.h.bf16 %v1991_v38 }
 0x19f   :  { %813 = vrot.lane.b32.xlu2 %v1589_v34, %s1420_s1 }
 0x1a0   :  { %543 = vrot.lane.b32.xlu0 %v1597_v36, %s1416_s20 }
 0x1a1   :  { %v739_v6 = vpop.permute.xlu2 %738 }
 0x1a2   :  { %1183 = vst.msk [vmem:[%s2647_s5 + $0x90] sm:$0xf] %vm174_vm2, %v739_v6  ;;  %v400_v9 = vpop.permute.xlu1 %399  ;;  %v1293_v30 = vpop.permute.xlu0 %1292 }
 0x1a3   :  { %1144 = vst.msk [vmem:[%s2646_s3 + $0x7c] sm:$0xf] %vm174_vm2, %v400_v9  ;;  %v1294_v38 = vunpack.i.l.bf16 %v1293_v30 }
 0x1a5   :  { %487 = vxpose.xlu1.b32.cont [6/16] (narrow) %v1290_v20, 8 }
 0x1a7   :  { %817 = vrot.lane.b32.xlu2 %v1648_v45, %s1420_s1 }
 0x1a8   :  { %547 = vrot.lane.b32.xlu0 %v1766_v0, %s1416_s20 }
 0x1a9   :  { %v741_v37 = vpop.permute.xlu2 %740 }
 0x1aa   :  { %1184 = vst.msk [vmem:[%s2647_s5 + $0x94] sm:$0xf] %vm174_vm2, %v741_v37  ;;  %v2129_v43 = vpop.permute.xlu0 %1327 }
 0x1ad   :  { %488 = vxpose.xlu1.b32.cont [7/16] (narrow) %v1304_v49, 8  ;;  %v1295_v49 = vunpack.i.h.bf16 %v1293_v30 }
 0x1af   :  { %821 = vrot.lane.b32.xlu2 %v1597_v36, %s1420_s1 }
 0x1b0   :  { %584 = vrot.lane.b32.xlu0 %v1540_v25, %s1417_s24 }
 0x1b1   :  { %v745_v11 = vpop.permute.xlu2 %744 }
 0x1b2   :  { %1186 = vst.msk [vmem:[%s2647_s5 + $0x9c] sm:$0xf] %vm174_vm2, %v745_v11  ;;  %v518_v62 = vpop.permute.xlu0 %517  ;;  %v1318_v11 = vpop.permute.xlu1 %1317 }
 0x1b3   :  { %1146 = vst.msk [vmem:[%s2647_s5 + $0x40] sm:$0xf] %vm174_vm2, %v518_v62 }
 0x1b5   :  { %489 = vxpose.xlu1.b32.cont [8/16] (narrow) %v1305_v3, 8  ;;  %v1319_v3 = vunpack.i.l.bf16 %v1318_v11 }
 0x1b7   :  { %825 = vrot.lane.b32.xlu2 %v1766_v0, %s1420_s1 }
 0x1b8   :  { %588 = vrot.lane.b32.xlu0 %v1726_v60, %s1417_s24 }
 0x1b9   :  { %v749_v6 = vpop.permute.xlu2 %748 }
 0x1ba   :  { %1188 = vst.msk [vmem:[%s2647_s5 + $0xa4] sm:$0xf] %vm174_vm2, %v749_v6  ;;  %v520_v9 = vpop.permute.xlu0 %519 }
 0x1bb   :  { %1147 = vst.msk [vmem:[%s2647_s5 + $0x44] sm:$0xf] %vm174_vm2, %v520_v9 }
 0x1bd   :  { %490 = vxpose.xlu1.b32.cont [9/16] (narrow) %v1294_v38, 8  ;;  %v1320_v38 = vunpack.i.h.bf16 %v1318_v11 }
 0x1bf   :  { %1382 = vrot.lane.b32.xlu2 %v1548_v27, %s1421_s30 }
 0x1c0   :  { %592 = vrot.lane.b32.xlu0 %v1544_v26, %s1417_s24 }
 0x1c1   :  { %v753_v20 = vpop.permute.xlu2 %752 }
 0x1c2   :  { %1190 = vst.msk [vmem:[%s2647_s5 + $0xac] sm:$0xf] %vm174_vm2, %v753_v20  ;;  %v522_v37 = vpop.permute.xlu0 %521 }
 0x1c3   :  { %1148 = vst.msk [vmem:[%s2647_s5 + $0x48] sm:$0xf] %vm174_vm2, %v522_v37 }
 0x1c5   :  { %491 = vxpose.xlu1.b32.cont [10/16] (narrow) %v1295_v49, 8  ;;  %v1324_v49 = vunpack.i.l.bf16 %v1827_v7 }
 0x1c7   :  { %1392 = vrot.lane.b32.xlu2 %v1593_v35, %s1421_s30 }
 0x1c8   :  { %596 = vrot.lane.b32.xlu0 %v1708_v57, %s1417_s24 }
 0x1c9   :  { %v757_v62 = vpop.permute.xlu2 %756 }
 0x1ca   :  { %1192 = vst.msk [vmem:[%s2647_s5 + $0xb4] sm:$0xf] %vm174_vm2, %v757_v62  ;;  %v524_v30 = vpop.permute.xlu0 %523 }
 0x1cb   :  { %1149 = vst.msk [vmem:[%s2647_s5 + $0x4c] sm:$0xf] %vm174_vm2, %v524_v30  ;;  %v1325_v30 = vunpack.i.h.bf16 %v1827_v7 }
 0x1cd   :  { %492 = vxpose.xlu1.b32.cont [11/16] (narrow) %v1319_v3, 8 }
 0x1cf   :  { %1402 = vrot.lane.b32.xlu2 %v1677_v52, %s1421_s30 }
 0x1d0   :  { %600 = vrot.lane.b32.xlu0 %v1589_v34, %s1417_s24 }
 0x1d1   :  { %v761_v6 = vpop.permute.xlu2 %760 }
 0x1d2   :  { %1194 = vst.msk [vmem:[%s2647_s5 + $0xbc] sm:$0xf] %vm174_vm2, %v761_v6  ;;  %v526_v9 = vpop.permute.xlu0 %525 }
 0x1d3   :  { %1150 = vst.msk [vmem:[%s2647_s5 + $0x50] sm:$0xf] %vm174_vm2, %v526_v9  ;;  %v1329_v9 = vunpack.i.l.bf16 %v2129_v43 }
 0x1d5   :  { %493 = vxpose.xlu1.b32.cont [12/16] (narrow) %v1320_v38, 8 }
 0x1d8   :  { %604 = vrot.lane.b32.xlu0 %v1648_v45, %s1417_s24 }
 0x1d9   :  { %v798_v20 = vpop.permute.xlu2 %797 }
 0x1da   :  { %1196 = vst.msk [vmem:[%s2646_s3 + $0xc4] sm:$0xf] %vm174_vm2, %v798_v20  ;;  %v528_v37 = vpop.permute.xlu0 %527  ;;  %v1330_v20 = vunpack.i.h.bf16 %v2129_v43  ;;  %v1255_v43 = vunpack.i.h.bf16 %v1869_v21 }
 0x1db   :  { %1151 = vst.msk [vmem:[%s2647_s5 + $0x54] sm:$0xf] %vm174_vm2, %v528_v37  ;;  %v1254_v37 = vunpack.i.l.bf16 %v1869_v21 }
 0x1dd   :  { %494 = vxpose.xlu1.b32.cont [13/16] (narrow) %v1324_v49, 8 }
 0x1e0   :  { %608 = vrot.lane.b32.xlu0 %v1597_v36, %s1417_s24 }
 0x1e1   :  { %v802_v11 = vpop.permute.xlu2 %801 }
 0x1e2   :  { %1198 = vst.msk [vmem:[%s2646_s3 + $0xcc] sm:$0xf] %vm174_vm2, %v802_v11  ;;  %v530_v62 = vpop.permute.xlu0 %529 }
 0x1e3   :  { %1152 = vst.msk [vmem:[%s2647_s5 + $0x58] sm:$0xf] %vm174_vm2, %v530_v62  ;;  %v1279_v62 = vunpack.i.l.bf16 %v2031_v12 }
 0x1e5   :  { %495 = vxpose.xlu1.b32.cont [14/16] (narrow) %v1325_v30, 8  ;;  %v1280_v30 = vunpack.i.h.bf16 %v2031_v12 }
 0x1e8   :  { %1332 = vrot.lane.b32.xlu0 %v1656_v47, %s1418_s7 }
 0x1e9   :  { %v806_v3 = vpop.permute.xlu2 %805 }
 0x1ea   :  { %1200 = vst.msk [vmem:[%s2646_s3 + $0xd4] sm:$0xf] %vm174_vm2, %v806_v3  ;;  %v532_v6 = vpop.permute.xlu0 %531 }
 0x1eb   :  { %1153 = vst.msk [vmem:[%s2647_s5 + $0x5c] sm:$0xf] %vm174_vm2, %v532_v6 }
 0x1ed   :  { %496 = vxpose.xlu1.b32.cont [15/16] (narrow) %v1329_v9, 8  ;;  %v1259_v9 = vunpack.i.l.bf16 %v1815_v5 }
 0x1f0   :  { %1342 = vrot.lane.b32.xlu0 %v1548_v27, %s1418_s7 }
 0x1f1   :  { %v810_v7 = vpop.permute.xlu2 %809 }
 0x1f2   :  { %1202 = vst.msk [vmem:[%s2646_s3 + $0xdc] sm:$0xf] %vm174_vm2, %v810_v7  ;;  %v534_v38 = vpop.permute.xlu0 %533  ;;  %v1260_v7 = vunpack.i.h.bf16 %v1815_v5 }
 0x1f3   :  { %1154 = vst.msk [vmem:[%s2647_s5 + $0x60] sm:$0xf] %vm174_vm2, %v534_v38 }
 0x1f5   :  { %255 = vxpose.xlu2.b32.start [1/16] (narrow) %v1254_v37, 8  ;;  %497 = vxpose.xlu1.b32.end [16/16] (narrow) %v1330_v20, 8  ;;  %v1284_v20 = vunpack.i.l.bf16 %v1967_v17 }
 0x1f8   :  { %1352 = vrot.lane.b32.xlu0 %v1593_v35, %s1418_s7 }
 0x1f9   :  { %v814_v27 = vpop.permute.xlu2 %813 }
 0x1fa   :  { %1204 = vst.msk [vmem:[%s2646_s3 + $0xe4] sm:$0xf] %vm174_vm2, %v814_v27  ;;  %v536_v49 = vpop.permute.xlu0 %535  ;;  %v1285_v27 = vunpack.i.h.bf16 %v1967_v17 }
 0x1fb   :  { %1155 = vst.msk [vmem:[%s2647_s5 + $0x64] sm:$0xf] %vm174_vm2, %v536_v49  ;;  %v1269_v49 = vunpack.i.l.bf16 %v1797_v2 }
 0x1fd   :  { %256 = vxpose.xlu2.b32.cont [2/16] (narrow) %v1255_v43, 8 }
 0x200   :  { %1362 = vrot.lane.b32.xlu0 %v1677_v52, %s1418_s7 }
 0x201   :  { %v818_v11 = vpop.permute.xlu2 %817 }
 0x202   :  { %1206 = vst.msk [vmem:[%s2646_s3 + $0xec] sm:$0xf] %vm174_vm2, %v818_v11  ;;  %v538_v35 = vpop.permute.xlu0 %537  ;;  %v1270_v11 = vunpack.i.h.bf16 %v1797_v2 }
 0x203   :  { %1156 = vst.msk [vmem:[%s2647_s5 + $0x68] sm:$0xf] %vm174_vm2, %v538_v35  ;;  %v1309_v35 = vunpack.i.l.bf16 %v1813_v4 }
 0x205   :  { %257 = vxpose.xlu2.b32.cont [3/16] (narrow) %v1279_v62, 8 }
 0x209   :  { %v822_v21 = vpop.permute.xlu2 %821 }
 0x20a   :  { %1208 = vst.msk [vmem:[%s2646_s3 + $0xf4] sm:$0xf] %vm174_vm2, %v822_v21  ;;  %v540_v52 = vpop.permute.xlu0 %539  ;;  %v1310_v21 = vunpack.i.h.bf16 %v1813_v4 }
 0x20b   :  { %1157 = vst.msk [vmem:[%s2647_s5 + $0x6c] sm:$0xf] %vm174_vm2, %v540_v52  ;;  %v1274_v52 = vunpack.i.l.bf16 %v1969_v18 }
 0x20d   :  { %258 = vxpose.xlu2.b32.cont [4/16] (narrow) %v1280_v30, 8  ;;  %v1275_v30 = vunpack.i.h.bf16 %v1969_v18  ;;  %v1340_v18 = vunpack.i.h.bf16 %v2001_v48 }
 0x211   :  { %v826_v3 = vpop.permute.xlu2 %825 }
 0x212   :  { %1210 = vst.msk [vmem:[%s2646_s3 + $0xfc] sm:$0xf] %vm174_vm2, %v826_v3  ;;  %v544_v6 = vpop.permute.xlu0 %543 }
 0x213   :  { %1159 = vst.msk [vmem:[%s2647_s5 + $0x74] sm:$0xf] %vm174_vm2, %v544_v6  ;;  %v1314_v6 = vunpack.i.l.bf16 %v2059_v55 }
 0x215   :  { %259 = vxpose.xlu2.b32.cont [5/16] (narrow) %v1259_v9, 8 }
 0x21a   :  { %v548_v12 = vpop.permute.xlu0 %547 }
 0x21b   :  { %1161 = vst.msk [vmem:[%s2647_s5 + $0x7c] sm:$0xf] %vm174_vm2, %v548_v12  ;;  %v1339_v12 = vunpack.i.l.bf16 %v2001_v48  ;;  %v1350_v48 = vunpack.i.h.bf16 %v2015_v58 }
 0x21d   :  { %260 = vxpose.xlu2.b32.cont [6/16] (narrow) %v1260_v7, 8  ;;  %v1315_v7 = vunpack.i.h.bf16 %v2059_v55  ;;  %v1349_v55 = vunpack.i.l.bf16 %v2015_v58  ;;  %v1359_v58 = vunpack.i.l.bf16 %v2029_v8 }
 0x222   :  { %v585_v38 = vpop.permute.xlu0 %584 }
 0x223   :  { %1163 = vst.msk [vmem:[%s2646_s3 + $0x84] sm:$0xf] %vm174_vm2, %v585_v38 }
 0x225   :  { %261 = vxpose.xlu2.b32.cont [7/16] (narrow) %v1284_v20, 8 }
 0x22a   :  { %v589_v37 = vpop.permute.xlu0 %588 }
 0x22b   :  { %1165 = vst.msk [vmem:[%s2646_s3 + $0x8c] sm:$0xf] %vm174_vm2, %v589_v37 }
 0x22d   :  { %262 = vxpose.xlu2.b32.cont [8/16] (narrow) %v1285_v27, 8  ;;  %v498_v27 = vpop.trf.xlu1 }
 0x232   :  { %v593_v5 = vpop.permute.xlu0 %592 }
 0x233   :  { %1167 = vst.msk [vmem:[%s2646_s3 + $0x94] sm:$0xf] %vm174_vm2, %v593_v5 }
 0x235   :  { %263 = vxpose.xlu2.b32.cont [9/16] (narrow) %v1269_v49, 8  ;;  %v514_v49 = vpack.c.bf16 %v498_v27, %v498_v27 }
 0x237   :  { %1145 = vst [vmem:[%s2648_s4 + $0x4] sm:$0xf] %v514_v49 }
 0x23a   :  { %v597_v43 = vpop.permute.xlu0 %596 }
 0x23b   :  { %1169 = vst.msk [vmem:[%s2646_s3 + $0x9c] sm:$0xf] %vm174_vm2, %v597_v43 }
 0x23d   :  { %264 = vxpose.xlu2.b32.cont [10/16] (narrow) %v1270_v11, 8 }
 0x242   :  { %v601_v17 = vpop.permute.xlu0 %600 }
 0x243   :  { %1171 = vst.msk [vmem:[%s2646_s3 + $0xa4] sm:$0xf] %vm174_vm2, %v601_v17  ;;  %v1360_v17 = vunpack.i.h.bf16 %v2029_v8 }
 0x245   :  { %265 = vxpose.xlu2.b32.cont [11/16] (narrow) %v1309_v35, 8 }
 0x24a   :  { %v605_v62 = vpop.permute.xlu0 %604 }
 0x24b   :  { %1173 = vst.msk [vmem:[%s2646_s3 + $0xac] sm:$0xf] %vm174_vm2, %v605_v62 }
 0x24d   :  { %266 = vxpose.xlu2.b32.cont [12/16] (narrow) %v1310_v21, 8 }
 0x24f   :  { %610 = vrot.lane.b32.xlu1 %v1627_v42, %s1417_s24 }
 0x252   :  { %v609_v2 = vpop.permute.xlu0 %608 }
 0x253   :  { %1175 = vst.msk [vmem:[%s2646_s3 + $0xb4] sm:$0xf] %vm174_vm2, %v609_v2 }
 0x255   :  { %267 = vxpose.xlu2.b32.cont [13/16] (narrow) %v1274_v52, 8  ;;  %v1369_v52 = vunpack.i.l.bf16 %v2041_v31 }
 0x257   :  { %742 = vrot.lane.b32.xlu1 %v1685_v54, %s1419_s16 }
 0x25a   :  { %v1333_v4 = vpop.permute.xlu0 %1332 }
 0x25b   :  { %v1334_v3 = vunpack.i.l.bf16 %v1333_v4  ;;  %v1335_v9 = vunpack.i.h.bf16 %v1333_v4 }
 0x25d   :  { %268 = vxpose.xlu2.b32.cont [14/16] (narrow) %v1275_v30, 8  ;;  %695 = vxpose.xlu0.b32.start [1/16] (narrow) %v1334_v3, 8 }
 0x25f   :  { %746 = vrot.lane.b32.xlu1 %v1536_v24, %s1419_s16 }
 0x262   :  { %v1343_v38 = vpop.permute.xlu0 %1342 }
 0x263   :  { %v1344_v20 = vunpack.i.l.bf16 %v1343_v38  ;;  %v1345_v37 = vunpack.i.h.bf16 %v1343_v38 }
 0x265   :  { %269 = vxpose.xlu2.b32.cont [15/16] (narrow) %v1314_v6, 8  ;;  %696 = vxpose.xlu0.b32.cont [2/16] (narrow) %v1335_v9, 8 }
 0x267   :  { %750 = vrot.lane.b32.xlu1 %v1623_v41, %s1419_s16 }
 0x26a   :  { %v1353_v5 = vpop.permute.xlu0 %1352 }
 0x26b   :  { %v1354_v43 = vunpack.i.l.bf16 %v1353_v5  ;;  %v1355_v11 = vunpack.i.h.bf16 %v1353_v5 }
 0x26d   :  { %270 = vxpose.xlu2.b32.end [16/16] (narrow) %v1315_v7, 8  ;;  %697 = vxpose.xlu0.b32.cont [3/16] (narrow) %v1339_v12, 8 }
 0x26f   :  { %754 = vrot.lane.b32.xlu1 %v1569_v29, %s1419_s16 }
 0x272   :  { %v1363_v35 = vpop.permute.xlu0 %1362 }
 0x273   :  { %v1364_v62 = vunpack.i.l.bf16 %v1363_v35  ;;  %v1365_v2 = vunpack.i.h.bf16 %v1363_v35 }
 0x275   :  { %698 = vxpose.xlu0.b32.cont [4/16] (narrow) %v1340_v18, 8  ;;  %v1383_v18 = vpop.permute.xlu2 %1382 }
 0x277   :  { %758 = vrot.lane.b32.xlu1 %v1627_v42, %s1419_s16 }
 0x27d   :  { %699 = vxpose.xlu0.b32.cont [5/16] (narrow) %v1344_v20, 8  ;;  %v1384_v20 = vunpack.i.l.bf16 %v1383_v18 }
 0x27f   :  { %795 = vrot.lane.b32.xlu1 %v1507_v15, %s1420_s1 }
 0x285   :  { %700 = vxpose.xlu0.b32.cont [6/16] (narrow) %v1345_v37, 8 }
 0x287   :  { %799 = vrot.lane.b32.xlu1 %v1681_v53, %s1420_s1 }
 0x28d   :  { %701 = vxpose.xlu0.b32.cont [7/16] (narrow) %v1349_v55, 8 }
 0x28f   :  { %803 = vrot.lane.b32.xlu1 %v1511_v16, %s1420_s1 }
 0x295   :  { %702 = vxpose.xlu0.b32.cont [8/16] (narrow) %v1350_v48, 8  ;;  %v1385_v48 = vunpack.i.h.bf16 %v1383_v18 }
 0x297   :  { %807 = vrot.lane.b32.xlu1 %v1685_v54, %s1420_s1 }
 0x29d   :  { %703 = vxpose.xlu0.b32.cont [9/16] (narrow) %v1354_v43, 8 }
 0x29f   :  { %811 = vrot.lane.b32.xlu1 %v1536_v24, %s1420_s1 }
 0x2a5   :  { %704 = vxpose.xlu0.b32.cont [10/16] (narrow) %v1355_v11, 8 }
 0x2a7   :  { %815 = vrot.lane.b32.xlu1 %v1623_v41, %s1420_s1 }
 0x2ad   :  { %705 = vxpose.xlu0.b32.cont [11/16] (narrow) %v1359_v58, 8 }
 0x2af   :  { %819 = vrot.lane.b32.xlu1 %v1569_v29, %s1420_s1 }
 0x2b5   :  { %706 = vxpose.xlu0.b32.cont [12/16] (narrow) %v1360_v17, 8  ;;  %v1393_v17 = vpop.permute.xlu2 %1392 }
 0x2b7   :  { %823 = vrot.lane.b32.xlu1 %v1627_v42, %s1420_s1 }
 0x2bd   :  { %707 = vxpose.xlu0.b32.cont [13/16] (narrow) %v1364_v62, 8  ;;  %v1394_v62 = vunpack.i.l.bf16 %v1393_v17 }
 0x2bf   :  { %1377 = vrot.lane.b32.xlu1 %v1770_v1, %s1421_s30 }
 0x2c1   :  { %v611_v21 = vpop.permute.xlu1 %610 }
 0x2c2   :  { %1176 = vst.msk [vmem:[%s2646_s3 + $0xb8] sm:$0xf] %vm174_vm2, %v611_v21 }
 0x2c5   :  { %708 = vxpose.xlu0.b32.cont [14/16] (narrow) %v1365_v2, 8  ;;  %v1395_v2 = vunpack.i.h.bf16 %v1393_v17 }
 0x2c7   :  { %1387 = vrot.lane.b32.xlu1 %v1753_v61, %s1421_s30  ;;  %v1370_v61 = vunpack.i.h.bf16 %v2041_v31 }
 0x2c9   :  { %v743_v8 = vpop.permute.xlu1 %742 }
 0x2ca   :  { %1185 = vst.msk [vmem:[%s2647_s5 + $0x98] sm:$0xf] %vm174_vm2, %v743_v8 }
 0x2cd   :  { %709 = vxpose.xlu0.b32.cont [15/16] (narrow) %v1369_v52, 8 }
 0x2cf   :  { %1397 = vrot.lane.b32.xlu1 %v1652_v46, %s1421_s30 }
 0x2d1   :  { %v747_v1 = vpop.permute.xlu1 %746 }
 0x2d2   :  { %1187 = vst.msk [vmem:[%s2647_s5 + $0xa0] sm:$0xf] %vm174_vm2, %v747_v1 }
 0x2d5   :  { %710 = vxpose.xlu0.b32.end [16/16] (narrow) %v1370_v61, 8 }
 0x2d7   :  { %1407 = vrot.lane.b32.xlu1 %v1839_v10, %s1421_s30 }
 0x2d9   :  { %v751_v4 = vpop.permute.xlu1 %750 }
 0x2da   :  { %1189 = vst.msk [vmem:[%s2647_s5 + $0xa8] sm:$0xf] %vm174_vm2, %v751_v4  ;;  %v1403_v4 = vpop.permute.xlu2 %1402 }
 0x2df   :  { %943 = vrot.lane.b32.xlu1 %v1507_v15, %s1422_s23 }
 0x2e1   :  { %v755_v46 = vpop.permute.xlu1 %754 }
 0x2e2   :  { %1191 = vst.msk [vmem:[%s2647_s5 + $0xb0] sm:$0xf] %vm174_vm2, %v755_v46  ;;  %v1404_v46 = vunpack.i.l.bf16 %v1403_v4 }
 0x2e7   :  { %945 = vrot.lane.b32.xlu1 %v1540_v25, %s1422_s23 }
 0x2e9   :  { %v759_v10 = vpop.permute.xlu1 %758 }
 0x2ea   :  { %1193 = vst.msk [vmem:[%s2647_s5 + $0xb8] sm:$0xf] %vm174_vm2, %v759_v10  ;;  %v1405_v10 = vunpack.i.h.bf16 %v1403_v4 }
 0x2ef   :  { %947 = vrot.lane.b32.xlu1 %v1681_v53, %s1422_s23 }
 0x2f1   :  { %v796_v31 = vpop.permute.xlu1 %795 }
 0x2f2   :  { %1195 = vst.msk [vmem:[%s2646_s3 + $0xc0] sm:$0xf] %vm174_vm2, %v796_v31 }
 0x2f7   :  { %949 = vrot.lane.b32.xlu1 %v1726_v60, %s1422_s23 }
 0x2f9   :  { %v800_v15 = vpop.permute.xlu1 %799 }
 0x2fa   :  { %1197 = vst.msk [vmem:[%s2646_s3 + $0xc8] sm:$0xf] %vm174_vm2, %v800_v15 }
 0x2ff   :  { %951 = vrot.lane.b32.xlu1 %v1511_v16, %s1422_s23 }
 0x301   :  { %v804_v25 = vpop.permute.xlu1 %803 }
 0x302   :  { %1199 = vst.msk [vmem:[%s2646_s3 + $0xd0] sm:$0xf] %vm174_vm2, %v804_v25  ;;  %v271_v25 = vpop.trf.xlu2 }
 0x307   :  { %953 = vrot.lane.b32.xlu1 %v1544_v26, %s1422_s23 }
 0x309   :  { %v808_v53 = vpop.permute.xlu1 %807 }
 0x30a   :  { %1201 = vst.msk [vmem:[%s2646_s3 + $0xd8] sm:$0xf] %vm174_vm2, %v808_v53  ;;  %v287_v53 = vpack.c.bf16 %v271_v25, %v271_v25 }
 0x30c   :  { %288 = vst [vmem:[%s2648_s4] sm:$0xf] %v287_v53 }
 0x30f   :  { %955 = vrot.lane.b32.xlu1 %v1685_v54, %s1422_s23 }
 0x311   :  { %v812_v60 = vpop.permute.xlu1 %811 }
 0x312   :  { %1203 = vst.msk [vmem:[%s2646_s3 + $0xe0] sm:$0xf] %vm174_vm2, %v812_v60 }
 0x317   :  { %957 = vrot.lane.b32.xlu1 %v1708_v57, %s1422_s23 }
 0x319   :  { %v816_v16 = vpop.permute.xlu1 %815 }
 0x31a   :  { %1205 = vst.msk [vmem:[%s2646_s3 + $0xe8] sm:$0xf] %vm174_vm2, %v816_v16 }
 0x31f   :  { %959 = vrot.lane.b32.xlu1 %v1536_v24, %s1422_s23 }
 0x321   :  { %v820_v26 = vpop.permute.xlu1 %819 }
 0x322   :  { %1207 = vst.msk [vmem:[%s2646_s3 + $0xf0] sm:$0xf] %vm174_vm2, %v820_v26 }
 0x327   :  { %961 = vrot.lane.b32.xlu1 %v1589_v34, %s1422_s23 }
 0x329   :  { %v824_v54 = vpop.permute.xlu1 %823 }
 0x32a   :  { %1209 = vst.msk [vmem:[%s2646_s3 + $0xf8] sm:$0xf] %vm174_vm2, %v824_v54 }
 0x32f   :  { %965 = vrot.lane.b32.xlu1 %v1648_v45, %s1422_s23 }
 0x331   :  { %v2446_v57 = vpop.permute.xlu1 %1377 }
 0x332   :  { %v1379_v3 = vunpack.i.l.bf16 %v2446_v57  ;;  %v1380_v12 = vunpack.i.h.bf16 %v2446_v57 }
 0x337   :  { %969 = vrot.lane.b32.xlu1 %v1597_v36, %s1422_s23 }
 0x339   :  { %v2450_v24 = vpop.permute.xlu1 %1387 }
 0x33a   :  { %v1389_v49 = vunpack.i.l.bf16 %v2450_v24  ;;  %v1390_v58 = vunpack.i.h.bf16 %v2450_v24 }
 0x33f   :  { %973 = vrot.lane.b32.xlu1 %v1766_v0, %s1422_s23 }
 0x341   :  { %v2454_v34 = vpop.permute.xlu1 %1397 }
 0x342   :  { %v1399_v52 = vunpack.i.l.bf16 %v2454_v34  ;;  %v1400_v61 = vunpack.i.h.bf16 %v2454_v34 }
 0x343   :  { %1372 = vrot.lane.b32.xlu0 %v1656_v47, %s1421_s30 }
 0x347   :  { %1010 = vrot.lane.b32.xlu1 %v1529_v22, %s1423_s13 }
 0x349   :  { %v2460_v45 = vpop.permute.xlu1 %1407 }
 0x34a   :  { %v1409_v31 = vunpack.i.l.bf16 %v2460_v45  ;;  %v1410_v15 = vunpack.i.h.bf16 %v2460_v45 }
 0x34b   :  { %963 = vrot.lane.b32.xlu0 %v1623_v41, %s1422_s23 }
 0x34f   :  { %1014 = vrot.lane.b32.xlu1 %v1722_v59, %s1423_s13 }
 0x351   :  { %v944_v36 = vpop.permute.xlu1 %943 }
 0x352   :  { %1212 = vst.msk [vmem:[%s2647_s5 + $0xc0] sm:$0xf] %vm174_vm2, %v944_v36 }
 0x353   :  { %967 = vrot.lane.b32.xlu0 %v1569_v29, %s1422_s23 }
 0x357   :  { %1018 = vrot.lane.b32.xlu1 %v1532_v23, %s1423_s13 }
 0x359   :  { %v946_v22 = vpop.permute.xlu1 %945 }
 0x35a   :  { %1213 = vst.msk [vmem:[%s2647_s5 + $0xc4] sm:$0xf] %vm174_vm2, %v946_v22 }
 0x35b   :  { %971 = vrot.lane.b32.xlu0 %v1627_v42, %s1422_s23 }
 0x35f   :  { %1022 = vrot.lane.b32.xlu1 %v1704_v56, %s1423_s13 }
 0x361   :  { %v948_v41 = vpop.permute.xlu1 %947 }
 0x362   :  { %1214 = vst.msk [vmem:[%s2647_s5 + $0xc8] sm:$0xf] %vm174_vm2, %v948_v41 }
 0x363   :  { %1008 = vrot.lane.b32.xlu0 %v1500_v13, %s1423_s13 }
 0x367   :  { %1026 = vrot.lane.b32.xlu1 %v1582_v32, %s1423_s13 }
 0x369   :  { %v950_v23 = vpop.permute.xlu1 %949 }
 0x36a   :  { %1215 = vst.msk [vmem:[%s2647_s5 + $0xcc] sm:$0xf] %vm174_vm2, %v950_v23 }
 0x36b   :  { %1012 = vrot.lane.b32.xlu0 %v1670_v50, %s1423_s13 }
 0x36f   :  { %1030 = vrot.lane.b32.xlu1 %v1644_v44, %s1423_s13 }
 0x371   :  { %v952_v29 = vpop.permute.xlu1 %951 }
 0x372   :  { %1216 = vst.msk [vmem:[%s2647_s5 + $0xd0] sm:$0xf] %vm174_vm2, %v952_v29 }
 0x373   :  { %1016 = vrot.lane.b32.xlu0 %v1503_v14, %s1423_s13 }
 0x377   :  { %1036 = vrot.lane.b32.xlu1 %v1619_v40, %s1423_s13  ;;  %v711_v40 = vpop.trf.xlu0 }
 0x378   :  { %v727_v42 = vpack.c.bf16 %v711_v40, %v711_v40 }
 0x379   :  { %v954_v13 = vpop.permute.xlu1 %953 }
 0x37a   :  { %1217 = vst.msk [vmem:[%s2647_s5 + $0xd4] sm:$0xf] %vm174_vm2, %v954_v13 }
 0x37b   :  { %1020 = vrot.lane.b32.xlu0 %v1673_v51, %s1423_s13  ;;  %1178 = vst [vmem:[%s2648_s4 + $0x8] sm:$0xf] %v727_v42 }
 0x381   :  { %v956_v32 = vpop.permute.xlu1 %955 }
 0x382   :  { %1218 = vst.msk [vmem:[%s2647_s5 + $0xd8] sm:$0xf] %vm174_vm2, %v956_v32 }
 0x383   :  { %1024 = vrot.lane.b32.xlu0 %v1526_v19, %s1423_s13 }
 0x389   :  { %v958_v14 = vpop.permute.xlu1 %957 }
 0x38a   :  { %1219 = vst.msk [vmem:[%s2647_s5 + $0xdc] sm:$0xf] %vm174_vm2, %v958_v14 }
 0x38b   :  { %1028 = vrot.lane.b32.xlu0 %v1616_v39, %s1423_s13 }
 0x391   :  { %v960_v44 = vpop.permute.xlu1 %959 }
 0x392   :  { %1220 = vst.msk [vmem:[%s2647_s5 + $0xe0] sm:$0xf] %vm174_vm2, %v960_v44 }
 0x393   :  { %1032 = vrot.lane.b32.xlu0 %v1551_v28, %s1423_s13 }
 0x399   :  { %v962_v19 = vpop.permute.xlu1 %961 }
 0x39a   :  { %1221 = vst.msk [vmem:[%s2647_s5 + $0xe4] sm:$0xf] %vm174_vm2, %v962_v19 }
 0x39b   :  { %1038 = vrot.lane.b32.xlu0 %v1762_v63, %s1423_s13 }
 0x3a1   :  { %v966_v39 = vpop.permute.xlu1 %965 }
 0x3a2   :  { %1223 = vst.msk [vmem:[%s2647_s5 + $0xec] sm:$0xf] %vm174_vm2, %v966_v39 }
 0x3a9   :  { %v970_v47 = vpop.permute.xlu1 %969 }
 0x3aa   :  { %1225 = vst.msk [vmem:[%s2647_s5 + $0xf4] sm:$0xf] %vm174_vm2, %v970_v47 }
 0x3b1   :  { %v974_v28 = vpop.permute.xlu1 %973 }
 0x3b2   :  { %1227 = vst.msk [vmem:[%s2647_s5 + $0xfc] sm:$0xf] %vm174_vm2, %v974_v28 }
 0x3b5   :  { %v1373_v50 = vpop.permute.xlu0 %1372 }
 0x3b6   :  { %v1374_v51 = vunpack.i.l.bf16 %v1373_v50  ;;  %v1375_v63 = vunpack.i.h.bf16 %v1373_v50 }
 0x3b8   :  { %908 = vxpose.xlu2.b32.start [1/16] (narrow) %v1374_v51, 8 }
 0x3b9   :  { %v1011_v56 = vpop.permute.xlu1 %1010 }
 0x3ba   :  { %1058 = vst.msk [vmem:[%s2649_s6 + $0x8] sm:$0xff] %vm1056_vm3, %v1011_v56 }
 0x3bd   :  { %v964_v59 = vpop.permute.xlu0 %963 }
 0x3be   :  { %1222 = vst.msk [vmem:[%s2647_s5 + $0xe8] sm:$0xf] %vm174_vm2, %v964_v59 }
 0x3c0   :  { %909 = vxpose.xlu2.b32.cont [2/16] (narrow) %v1375_v63, 8 }
 0x3c1   :  { %v1015_v0 = vpop.permute.xlu1 %1014 }
 0x3c2   :  { %1060 = vst.msk [vmem:[%s2649_s6 + $0x18] sm:$0xff] %vm1056_vm3, %v1015_v0 }
 0x3c5   :  { %v968_v30 = vpop.permute.xlu0 %967 }
 0x3c6   :  { %1224 = vst.msk [vmem:[%s2647_s5 + $0xf0] sm:$0xf] %vm174_vm2, %v968_v30 }
 0x3c8   :  { %910 = vxpose.xlu2.b32.cont [3/16] (narrow) %v1379_v3, 8 }
 0x3c9   :  { %v1019_v6 = vpop.permute.xlu1 %1018 }
 0x3ca   :  { %1062 = vst.msk [vmem:[%s2649_s6 + $0x28] sm:$0xff] %vm1056_vm3, %v1019_v6 }
 0x3cd   :  { %v972_v9 = vpop.permute.xlu0 %971 }
 0x3ce   :  { %1226 = vst.msk [vmem:[%s2647_s5 + $0xf8] sm:$0xf] %vm174_vm2, %v972_v9 }
 0x3d0   :  { %911 = vxpose.xlu2.b32.cont [4/16] (narrow) %v1380_v12, 8 }
 0x3d1   :  { %v1023_v7 = vpop.permute.xlu1 %1022 }
 0x3d2   :  { %1064 = vst.msk [vmem:[%s2649_s6 + $0x38] sm:$0xff] %vm1056_vm3, %v1023_v7 }
 0x3d5   :  { %v1009_v38 = vpop.permute.xlu0 %1008 }
 0x3d6   :  { %1057 = vst.msk [vmem:[%s2649_s6] sm:$0xff] %vm1056_vm3, %v1009_v38 }
 0x3d8   :  { %912 = vxpose.xlu2.b32.cont [5/16] (narrow) %v1384_v20, 8 }
 0x3d9   :  { %v1027_v37 = vpop.permute.xlu1 %1026 }
 0x3da   :  { %1066 = vst.msk [vmem:[%s2649_s6 + $0x48] sm:$0xff] %vm1056_vm3, %v1027_v37 }
 0x3dd   :  { %v1013_v55 = vpop.permute.xlu0 %1012 }
 0x3de   :  { %1059 = vst.msk [vmem:[%s2649_s6 + $0x10] sm:$0xff] %vm1056_vm3, %v1013_v55 }
 0x3e0   :  { %913 = vxpose.xlu2.b32.cont [6/16] (narrow) %v1385_v48, 8 }
 0x3e1   :  { %v1031_v27 = vpop.permute.xlu1 %1030 }
 0x3e2   :  { %1068 = vst.msk [vmem:[%s2649_s6 + $0x58] sm:$0xff] %vm1056_vm3, %v1031_v27 }
 0x3e5   :  { %v1017_v5 = vpop.permute.xlu0 %1016 }
 0x3e6   :  { %1061 = vst.msk [vmem:[%s2649_s6 + $0x20] sm:$0xff] %vm1056_vm3, %v1017_v5 }
 0x3e8   :  { %914 = vxpose.xlu2.b32.cont [7/16] (narrow) %v1389_v49, 8 }
 0x3e9   :  { %v1037_v43 = vpop.permute.xlu1 %1036 }
 0x3ea   :  { %1071 = vst.msk [vmem:[%s2649_s6 + $0x70] sm:$0xff] %vm1056_vm3, %v1037_v43 }
 0x3ed   :  { %v1021_v11 = vpop.permute.xlu0 %1020 }
 0x3ee   :  { %1063 = vst.msk [vmem:[%s2649_s6 + $0x30] sm:$0xff] %vm1056_vm3, %v1021_v11 }
 0x3f0   :  { %915 = vxpose.xlu2.b32.cont [8/16] (narrow) %v1390_v58, 8 }
 0x3f5   :  { %v1025_v35 = vpop.permute.xlu0 %1024 }
 0x3f6   :  { %1065 = vst.msk [vmem:[%s2649_s6 + $0x40] sm:$0xff] %vm1056_vm3, %v1025_v35 }
 0x3f8   :  { %916 = vxpose.xlu2.b32.cont [9/16] (narrow) %v1394_v62, 8 }
 0x3fd   :  { %v1029_v21 = vpop.permute.xlu0 %1028 }
 0x3fe   :  { %1067 = vst.msk [vmem:[%s2649_s6 + $0x50] sm:$0xff] %vm1056_vm3, %v1029_v21 }
 0x400   :  { %917 = vxpose.xlu2.b32.cont [10/16] (narrow) %v1395_v2, 8 }
 0x405   :  { %v1033_v8 = vpop.permute.xlu0 %1032 }
 0x406   :  { %1069 = vst.msk [vmem:[%s2649_s6 + $0x60] sm:$0xff] %vm1056_vm3, %v1033_v8 }
 0x408   :  { %918 = vxpose.xlu2.b32.cont [11/16] (narrow) %v1399_v52, 8 }
 0x40d   :  { %v1039_v1 = vpop.permute.xlu0 %1038 }
 0x40e   :  { %1072 = vst.msk [vmem:[%s2649_s6 + $0x78] sm:$0xff] %vm1056_vm3, %v1039_v1 }
 0x410   :  { %919 = vxpose.xlu2.b32.cont [12/16] (narrow) %v1400_v61, 8 }
 0x418   :  { %920 = vxpose.xlu2.b32.cont [13/16] (narrow) %v1404_v46, 8 }
 0x420   :  { %921 = vxpose.xlu2.b32.cont [14/16] (narrow) %v1405_v10, 8 }
 0x428   :  { %922 = vxpose.xlu2.b32.cont [15/16] (narrow) %v1409_v31, 8 }
 0x430   :  { %923 = vxpose.xlu2.b32.end [16/16] (narrow) %v1410_v15, 8 }
 0x451   :  { %v924_v60 = vpop.trf.xlu2 }
 0x452   :  { %v940_v16 = vpack.c.bf16 %v924_v60, %v924_v60 }
 0x454   :  { %1211 = vst [vmem:[%s2648_s4 + $0xc] sm:$0xf] %v940_v16 }
 0x499   :  { %1034 = vrot.lane.b32.xlu2 %v1585_v33, %s1423_s13 }
 0x4f3   :  { %v1035_v26 = vpop.permute.xlu2 %1034 }
 0x4f4   :  { %1070 = vst.msk [vmem:[%s2649_s6 + $0x68] sm:$0xff] %vm1056_vm3, %v1035_v26 }

// kernel: gtn_forward.7
= control target key start
LH: loop header
LB: loop body
LE: loop exit
PB: predicated region body
PF: predicated region fallthrough
CT: control target
= control target key end

     0   :  { %vm64_vm0 = vcmask 130048   ;;  %vm31_vm1 = vcmask 7168   ;;  %v1835_v47 = vmov -5e+29   ;;  %s2769_s1 = inlined_call_operand.vmem [shape: bf16[1,16,128], index: 1, kind: input, shape index: {}]   ;;  %s2770_s0 = inlined_call_operand.vmem [shape: bf16[1,128,16], index: 0, kind: input, shape index: {}]   ;;  %s2771_s4 = inlined_call_operand.vmem [shape: bf16[128,128], index: 4, kind: input, shape index: {}]   ;;  %s2772_s2 = inlined_call_operand.vmem [shape: bf16[1,128,16], index: 2, kind: input, shape index: {}]   ;;  %s2773_s3 = inlined_call_operand.vmem [shape: f32[128,16], index: 3, kind: input, shape index: {}]   ;;  %s2774_s5 = inlined_call_operand.vmem [shape: f32[1,16], index: 5, kind: input, shape index: {}]   ;;  %s2775_s6 = inlined_call_operand.vmem [shape: f32[1,16], index: 6, kind: input, shape index: {}]   ;;  %s2776_s7 = inlined_call_operand.vmem [shape: f32[128,16], index: 7, kind: output, shape index: {}]  }
   0x1   :  { %v1639_v0 = vld [vmem:[%s2769_s1] sm:$0xff]  ;;  %v1636_v2 = vld [vmem:[%s2770_s0 + $0x28] sm:$0xff]  ;;  %v1637_v4 = vld [vmem:[%s2770_s0 + $0x30] sm:$0xff]  ;;  %32 = vst.msk [vmem:[#allocation2] sm:$0xff] %vm31_vm1, %v1835_v47 }
   0x2   :  { %v1631_v1 = vld [vmem:[%s2770_s0] sm:$0xff]  ;;  %209 = vmatpush.bf16.msra.mxu0 %v1639_v0  ;;  %1687 = vmatpush.bf16.msra.mxu3 %v1639_v0  ;;  %v1632_v3 = vld [vmem:[%s2770_s0 + $0x8] sm:$0xff]  ;;  %v1633_v5 = vld [vmem:[%s2770_s0 + $0x10] sm:$0xff]  ;;  %33 = vst.msk [vmem:[#allocation2 + $0x8] sm:$0xff] %vm31_vm1, %v1835_v47 }
   0x3   :  { %v1638_v6 = vld [vmem:[%s2770_s0 + $0x38] sm:$0xff]  ;;  %v1635_v8 = vld [vmem:[%s2770_s0 + $0x20] sm:$0xff]  ;;  %v1684_v12 = vld [vmem:[%s2771_s4 + $0x28] sm:$0xff]   ;;  %34 = vst.msk [vmem:[#allocation2 + $0x10] sm:$0xff] %vm31_vm1, %v1835_v47 }
   0x4   :  { %v1634_v7 = vld [vmem:[%s2770_s0 + $0x18] sm:$0xff]  ;;  %v1649_v9 = vld [vmem:[%s2771_s4] sm:$0xff]   ;;  %v1670_v14 = vunpack.c.l.bf16 %v1684_v12  ;;  %v1680_v20 = vld [vmem:[%s2771_s4 + $0x8] sm:$0xff]   ;;  %v1671_v21 = vunpack.c.h.bf16 %v1684_v12  ;;  %35 = vst.msk [vmem:[#allocation2 + $0x18] sm:$0xff] %vm31_vm1, %v1835_v47 }
   0x5   :  { %1591 = vmatmul.msk.bf16.vlgmr.msra.gmra.mxu0 %vm64_vm0, %v1631_v1  ;;  %1596 = vmatmul.msk.bf16.vlgmr.msra.gmra.mxu3 %vm64_vm0, %v1636_v2  ;;  %v1650_v10 = vunpack.c.l.bf16 %v1649_v9  ;;  %v1651_v15 = vunpack.c.h.bf16 %v1649_v9  ;;  %v1654_v22 = vunpack.c.l.bf16 %v1680_v20  ;;  %v1685_v26 = vld [vmem:[%s2771_s4 + $0x30] sm:$0xff]   ;;  %v1655_v29 = vunpack.c.h.bf16 %v1680_v20  ;;  %v1686_v40 = vld [vmem:[%s2771_s4 + $0x38] sm:$0xff]   ;;  %36 = vst.msk [vmem:[#allocation2 + $0x20] sm:$0xff] %vm31_vm1, %v1835_v47  ;;  %v1683_v59 = vld [vmem:[%s2771_s4 + $0x20] sm:$0xff]  }
   0x6   :  { %v1674_v28 = vunpack.c.l.bf16 %v1685_v26  ;;  %v1681_v34 = vld [vmem:[%s2771_s4 + $0x10] sm:$0xff]   ;;  %v1675_v35 = vunpack.c.h.bf16 %v1685_v26  ;;  %v1678_v42 = vunpack.c.l.bf16 %v1686_v40  ;;  %v1679_v46 = vunpack.c.h.bf16 %v1686_v40  ;;  %v1682_v51 = vld [vmem:[%s2771_s4 + $0x18] sm:$0xff]   ;;  %37 = vst.msk [vmem:[#allocation2 + $0x28] sm:$0xff] %vm31_vm1, %v1835_v47 }
   0x7   :  { %v1658_v36 = vunpack.c.l.bf16 %v1681_v34  ;;  %v1659_v48 = vunpack.c.h.bf16 %v1681_v34  ;;  %38 = vst.msk [vmem:[#allocation2 + $0x30] sm:$0xff] %vm31_vm1, %v1835_v47  ;;  %v1662_v54 = vunpack.c.l.bf16 %v1682_v51  ;;  %v1663_v55 = vunpack.c.h.bf16 %v1682_v51 }
   0x8   :  { %39 = vst.msk [vmem:[#allocation2 + $0x38] sm:$0xff] %vm31_vm1, %v1835_v47  ;;  %v1666_v60 = vunpack.c.l.bf16 %v1683_v59  ;;  %v1667_v63 = vunpack.c.h.bf16 %v1683_v59  ;;  %v1836_v2 = vmov 0  }
   0x9   :  { %40 = vst.msk [vmem:[#allocation2 + $0x40] sm:$0xff] %vm31_vm1, %v1835_v47  ;;  %1700 = vset.pattern.permute.xlu1 %v1836_v2  ;;  %1701 = vset.pattern.permute.xlu2 %v1836_v2 }
   0xa   :  { %41 = vst.msk [vmem:[#allocation2 + $0x48] sm:$0xff] %vm31_vm1, %v1835_v47  ;;  %1702 = vset.pattern.permute.xlu0 %v1836_v2  ;;  %v2063_v20 = vld [vmem:[#allocation2 + $0x10] sm:$0xff] }
   0xb   :  { %42 = vst.msk [vmem:[#allocation2 + $0x50] sm:$0xff] %vm31_vm1, %v1835_v47 }
   0xc   :  { %43 = vst.msk [vmem:[#allocation2 + $0x58] sm:$0xff] %vm31_vm1, %v1835_v47 }
   0xd   :  { %44 = vst.msk [vmem:[#allocation2 + $0x60] sm:$0xff] %vm31_vm1, %v1835_v47 }
   0xe   :  { %45 = vst.msk [vmem:[#allocation2 + $0x68] sm:$0xff] %vm31_vm1, %v1835_v47 }
   0xf   :  { %46 = vst.msk [vmem:[#allocation2 + $0x70] sm:$0xff] %vm31_vm1, %v1835_v47 }
  0x10   :  { %47 = vst.msk [vmem:[#allocation2 + $0x78] sm:$0xff] %vm31_vm1, %v1835_v47 }
  0x15   :  { %1592 = vmatmul.msk.bf16.gmra.mxu0 %vm64_vm0, %v1632_v3  ;;  %1597 = vmatmul.msk.bf16.gmra.mxu3 %vm64_vm0, %v1637_v4  ;;  %v1837_v3 = vmov 0.0   ;;  %v2025_v4 = vld [vmem:[#allocation2] sm:$0xff] }
  0x16   :  { %66 = vst.msk [vmem:[#allocation4 + $0x8] sm:$0xff] %vm64_vm0, %v1837_v3  ;;  %v2114_v47 = vld [vmem:[#allocation2 + $0x70] sm:$0xff] }
  0x17   :  { %48 = vst.msk [vmem:[#allocation3] sm:$0xff] %vm31_vm1, %v1837_v3  ;;  %v2121_v51 = vld [vmem:[#allocation2 + $0x78] sm:$0xff] }
  0x18   :  { %49 = vst.msk [vmem:[#allocation3 + $0x8] sm:$0xff] %vm31_vm1, %v1837_v3 }
  0x19   :  { %50 = vst.msk [vmem:[#allocation3 + $0x10] sm:$0xff] %vm31_vm1, %v1837_v3 }
  0x1a   :  { %51 = vst.msk [vmem:[#allocation3 + $0x18] sm:$0xff] %vm31_vm1, %v1837_v3 }
  0x1b   :  { %52 = vst.msk [vmem:[#allocation3 + $0x20] sm:$0xff] %vm31_vm1, %v1837_v3 }
  0x1c   :  { %53 = vst.msk [vmem:[#allocation3 + $0x28] sm:$0xff] %vm31_vm1, %v1837_v3 }
  0x1d   :  { %54 = vst.msk [vmem:[#allocation3 + $0x30] sm:$0xff] %vm31_vm1, %v1837_v3 }
  0x1e   :  { %55 = vst.msk [vmem:[#allocation3 + $0x38] sm:$0xff] %vm31_vm1, %v1837_v3 }
  0x1f   :  { %56 = vst.msk [vmem:[#allocation3 + $0x40] sm:$0xff] %vm31_vm1, %v1837_v3 }
  0x20   :  { %57 = vst.msk [vmem:[#allocation3 + $0x48] sm:$0xff] %vm31_vm1, %v1837_v3 }
  0x21   :  { %58 = vst.msk [vmem:[#allocation3 + $0x50] sm:$0xff] %vm31_vm1, %v1837_v3 }
  0x22   :  { %59 = vst.msk [vmem:[#allocation3 + $0x58] sm:$0xff] %vm31_vm1, %v1837_v3 }
  0x23   :  { %60 = vst.msk [vmem:[#allocation3 + $0x60] sm:$0xff] %vm31_vm1, %v1837_v3 }
  0x24   :  { %61 = vst.msk [vmem:[#allocation3 + $0x68] sm:$0xff] %vm31_vm1, %v1837_v3 }
  0x25   :  { %1593 = vmatmul.msk.bf16.gmra.mxu0 %vm64_vm0, %v1633_v5  ;;  %1598 = vmatmul.msk.bf16.gmra.mxu3 %vm64_vm0, %v1638_v6  ;;  %62 = vst.msk [vmem:[#allocation3 + $0x70] sm:$0xff] %vm31_vm1, %v1837_v3 }
  0x26   :  { %63 = vst.msk [vmem:[#allocation3 + $0x78] sm:$0xff] %vm31_vm1, %v1837_v3 }
  0x27   :  { %65 = vst.msk [vmem:[#allocation4] sm:$0xff] %vm64_vm0, %v1837_v3 }
  0x28   :  { %67 = vst.msk [vmem:[#allocation4 + $0x10] sm:$0xff] %vm64_vm0, %v1837_v3 }
  0x29   :  { %68 = vst.msk [vmem:[#allocation4 + $0x18] sm:$0xff] %vm64_vm0, %v1837_v3 }
  0x2a   :  { %69 = vst.msk [vmem:[#allocation4 + $0x20] sm:$0xff] %vm64_vm0, %v1837_v3 }
  0x2b   :  { %70 = vst.msk [vmem:[#allocation4 + $0x28] sm:$0xff] %vm64_vm0, %v1837_v3 }
  0x2c   :  { %71 = vst.msk [vmem:[#allocation4 + $0x30] sm:$0xff] %vm64_vm0, %v1837_v3 }
  0x2d   :  { %72 = vst.msk [vmem:[#allocation4 + $0x38] sm:$0xff] %vm64_vm0, %v1837_v3 }
  0x2e   :  { %73 = vst.msk [vmem:[#allocation4 + $0x40] sm:$0xff] %vm64_vm0, %v1837_v3 }
  0x2f   :  { %74 = vst.msk [vmem:[#allocation4 + $0x48] sm:$0xff] %vm64_vm0, %v1837_v3 }
  0x30   :  { %75 = vst.msk [vmem:[#allocation4 + $0x50] sm:$0xff] %vm64_vm0, %v1837_v3 }
  0x31   :  { %76 = vst.msk [vmem:[#allocation4 + $0x58] sm:$0xff] %vm64_vm0, %v1837_v3 }
  0x32   :  { %77 = vst.msk [vmem:[#allocation4 + $0x60] sm:$0xff] %vm64_vm0, %v1837_v3 }
  0x33   :  { %78 = vst.msk [vmem:[#allocation4 + $0x68] sm:$0xff] %vm64_vm0, %v1837_v3 }
  0x34   :  { %79 = vst.msk [vmem:[#allocation4 + $0x70] sm:$0xff] %vm64_vm0, %v1837_v3 }
  0x35   :  { %1594 = vmatmul.msk.bf16.gmra.mxu0 %vm64_vm0, %v1634_v7  ;;  %80 = vst.msk [vmem:[#allocation4 + $0x78] sm:$0xff] %vm64_vm0, %v1837_v3 }
  0x45   :  { %1595 = vmatmul.msk.bf16.gmra.mxu0 %vm64_vm0, %v1635_v8  ;;  %v2040_v8 = vld [vmem:[#allocation2 + $0x50] sm:$0xff] }
  0x82   :  { %v211_v11 = vpop.f32.mrf.mxu0 }
  0x83   :  { %v1920_v13 = vadd.f32 %v1650_v10, %v211_v11  ;;  %v2044_v10 = vld [vmem:[#allocation2 + $0x8] sm:$0xff] }
  0x85   :  { %267 = vmax.xlane.f32.xlu0 %v1920_v13 }
  0x88   :  { %v236_v16 = vpop.f32.mrf.mxu3 }
  0x89   :  { %v1923_v17 = vadd.f32 %v1670_v14, %v236_v16  ;;  %v2061_v16 = vld [vmem:[#allocation2 + $0x58] sm:$0xff] }
  0x8a   :  { %v213_v18 = vpop.f32.mrf.mxu0 }
  0x8b   :  { %v1925_v19 = vadd.f32 %v1651_v15, %v213_v18  ;;  %287 = vmax.xlane.f32.xlu1 %v1923_v17 }
  0x8d   :  { %269 = vmax.xlane.f32.xlu0 %v1925_v19 }
  0x90   :  { %v238_v23 = vpop.f32.mrf.mxu3 }
  0x91   :  { %v1932_v24 = vadd.f32 %v1671_v21, %v238_v23 }
  0x92   :  { %v216_v25 = vpop.f32.mrf.mxu0 }
  0x93   :  { %v1937_v27 = vadd.f32 %v1654_v22, %v216_v25  ;;  %289 = vmax.xlane.f32.xlu2 %v1932_v24 }
  0x95   :  { %271 = vmax.xlane.f32.xlu1 %v1937_v27 }
  0x98   :  { %v241_v30 = vpop.f32.mrf.mxu3 }
  0x99   :  { %v1941_v31 = vadd.f32 %v1674_v28, %v241_v30  ;;  %v2080_v28 = vld [vmem:[#allocation2 + $0x60] sm:$0xff] }
  0x9a   :  { %v218_v32 = vpop.f32.mrf.mxu0 }
  0x9b   :  { %v1943_v33 = vadd.f32 %v1655_v29, %v218_v32  ;;  %291 = vmax.xlane.f32.xlu0 %v1941_v31  ;;  %v2082_v29 = vld [vmem:[#allocation2 + $0x18] sm:$0xff] }
  0x9d   :  { %273 = vmax.xlane.f32.xlu1 %v1943_v33 }
  0xa0   :  { %v243_v37 = vpop.f32.mrf.mxu3 }
  0xa1   :  { %v1950_v38 = vadd.f32 %v1675_v35, %v243_v37  ;;  %v2097_v37 = vld [vmem:[#allocation2 + $0x20] sm:$0xff] }
  0xa2   :  { %v221_v39 = vpop.f32.mrf.mxu0 }
  0xa3   :  { %v1955_v41 = vadd.f32 %v1658_v36, %v221_v39  ;;  %v2099_v39 = vld [vmem:[#allocation2 + $0x68] sm:$0xff] }
  0xa5   :  { %275 = vmax.xlane.f32.xlu2 %v1955_v41  ;;  %293 = vmax.xlane.f32.xlu1 %v1950_v38 }
  0xa8   :  { %v246_v43 = vpop.f32.mrf.mxu3 }
  0xa9   :  { %v1959_v44 = vadd.f32 %v1678_v42, %v246_v43 }
  0xaa   :  { %v223_v45 = vpop.f32.mrf.mxu0 }
  0xab   :  { %v1972_v53 = vadd.f32 %v1659_v48, %v223_v45 }
  0xad   :  { %295 = vmax.xlane.f32.xlu2 %v1959_v44 }
  0xb0   :  { %v248_v49 = vpop.f32.mrf.mxu3 }
  0xb1   :  { %v1965_v50 = vadd.f32 %v1679_v46, %v248_v49 }
  0xb2   :  { %v226_v52 = vpop.f32.mrf.mxu0 }
  0xb3   :  { %297 = vmax.xlane.f32.xlu0 %v1965_v50  ;;  %v1982_v56 = vadd.f32 %v1662_v54, %v226_v52  ;;  %v256_v54 = vld [vmem:[#allocation2 + $0x28] sm:$0xff] }
  0xb5   :  { %277 = vmax.xlane.f32.xlu2 %v1972_v53 }
  0xba   :  { %v228_v57 = vpop.f32.mrf.mxu0 }
  0xbb   :  { %v1986_v58 = vadd.f32 %v1663_v55, %v228_v57  ;;  %279 = vmax.xlane.f32.xlu0 %v1982_v56 }
  0xbd   :  { %281 = vmax.xlane.f32.xlu1 %v1986_v58 }
  0xc2   :  { %v231_v61 = vpop.f32.mrf.mxu0 }
  0xc3   :  { %v1996_v62 = vadd.f32 %v1666_v60, %v231_v61  ;;  %v2131_v61 = vld [vmem:[#allocation2 + $0x30] sm:$0xff] }
  0xc5   :  { %283 = vmax.xlane.f32.xlu2 %v1996_v62 }
  0xca   :  { %v233_v0 = vpop.f32.mrf.mxu0 }
  0xcb   :  { %v1999_v1 = vadd.f32 %v1667_v63, %v233_v0  ;;  %v2133_v0 = vld [vmem:[#allocation2 + $0x38] sm:$0xff] }
  0xcd   :  { %285 = vmax.xlane.f32.xlu0 %v1999_v1 }
  0xf8   :  { %v268_v5 = vpop.xlane.xlu0 %267 }
  0xf9   :  { %v2031_v6 = vmax.f32 %v2025_v4, %v268_v5 }
  0xfb   :  { %v315_v7 = vsub.f32 %v2025_v4, %v2031_v6  ;;  %909 = vst.msk [vmem:[#allocation2] sm:$0xff] %vm31_vm1, %v2031_v6  ;;  %365 = vperm.xlu1 %1700, %v2031_v6   ;;  %v1643_v6 = vld [vmem:[%s2772_s2 + $0x18] sm:$0xff] }
  0xfe   :  { %v288_v9 = vpop.xlane.xlu1 %287 }
  0xff   :  { %v2048_v11 = vmax.f32 %v2040_v8, %v288_v9  ;;  %v2147_v9 = vld [vmem:[#allocation2 + $0x40] sm:$0xff] }
 0x100   :  { %v270_v12 = vpop.xlane.xlu0 %269 }
 0x101   :  { %v325_v14 = vsub.f32 %v2040_v8, %v2048_v11  ;;  %919 = vst.msk [vmem:[#allocation2 + $0x50] sm:$0xff] %vm31_vm1, %v2048_v11  ;;  %v2056_v15 = vmax.f32 %v2044_v10, %v270_v12 }
 0x103   :  { %910 = vst.msk [vmem:[#allocation2 + $0x8] sm:$0xff] %vm31_vm1, %v2056_v15  ;;  %370 = vperm.xlu2 %1701, %v2056_v15  }
 0x106   :  { %v290_v18 = vpop.xlane.xlu2 %289 }
 0x107   :  { %v2066_v21 = vmax.f32 %v2061_v16, %v290_v18 }
 0x108   :  { %v272_v22 = vpop.xlane.xlu1 %271 }
 0x109   :  { %v326_v23 = vsub.f32 %v2061_v16, %v2066_v21  ;;  %920 = vst.msk [vmem:[#allocation2 + $0x58] sm:$0xff] %vm31_vm1, %v2066_v21  ;;  %v2073_v25 = vmax.f32 %v2063_v20, %v272_v22  ;;  %v316_v22 = vsub.f32 %v2044_v10, %v2056_v15  ;;  %v1646_v10 = vld [vmem:[%s2772_s2 + $0x30] sm:$0xff] }
 0x10b   :  { %v317_v26 = vsub.f32 %v2063_v20, %v2073_v25  ;;  %911 = vst.msk [vmem:[#allocation2 + $0x10] sm:$0xff] %vm31_vm1, %v2073_v25  ;;  %375 = vperm.xlu0 %1702, %v2073_v25   ;;  %v353_v4 = vmul.f32 1.442695, %v326_v23  ;;  %v1641_v25 = vld [vmem:[%s2772_s2 + $0x8] sm:$0xff] }
 0x10e   :  { %v292_v30 = vpop.xlane.xlu0 %291 }
 0x10f   :  { %v2085_v32 = vmax.f32 %v2080_v28, %v292_v30  ;;  %v2158_v30 = vld [vmem:[#allocation2 + $0x48] sm:$0xff] }
 0x110   :  { %v274_v34 = vpop.xlane.xlu1 %273 }
 0x111   :  { %v2088_v35 = vmax.f32 %v2082_v29, %v274_v34  ;;  %v327_v36 = vsub.f32 %v2080_v28, %v2085_v32  ;;  %921 = vst.msk [vmem:[#allocation2 + $0x60] sm:$0xff] %vm31_vm1, %v2085_v32  ;;  %v1647_v34 = vld [vmem:[%s2772_s2 + $0x38] sm:$0xff] }
 0x112   :  { %828 = vmatpush.bf16.msra.mxu1 %v1647_v34  ;;  %1688 = vmatpush.bf16.msra.mxu2 %v1647_v34 }
 0x113   :  { %912 = vst.msk [vmem:[#allocation2 + $0x18] sm:$0xff] %vm31_vm1, %v2088_v35  ;;  %380 = vperm.xlu2 %1701, %v2088_v35  }
 0x116   :  { %829 = vmatpush.bf16.msra.mxu1 %v1646_v10  ;;  %1689 = vmatpush.bf16.msra.mxu2 %v1646_v10 }
 0x118   :  { %v276_v40 = vpop.xlane.xlu2 %275  ;;  %v294_v42 = vpop.xlane.xlu1 %293 }
 0x119   :  { %v2102_v43 = vmax.f32 %v2097_v37, %v276_v40  ;;  %v2105_v45 = vmax.f32 %v2099_v39, %v294_v42  ;;  %v333_v40 = vmul.f32 1.442695, %v316_v22 }
 0x11b   :  { %913 = vst.msk [vmem:[#allocation2 + $0x20] sm:$0xff] %vm31_vm1, %v2102_v43  ;;  %v328_v46 = vsub.f32 %v2099_v39, %v2105_v45  ;;  %385 = vperm.xlu1 %1700, %v2102_v43   ;;  %1705 = vpow2.f32 %v333_v40  ;;  %v319_v23 = vsub.f32 %v2097_v37, %v2102_v43  ;;  %v1640_v37 = vld [vmem:[%s2772_s2] sm:$0xff]  ;;  %v355_v40 = vmul.f32 1.442695, %v327_v36 }
 0x11c   :  { %922 = vst.msk [vmem:[#allocation2 + $0x68] sm:$0xff] %vm31_vm1, %v2105_v45 }
 0x11d   :  { %v339_v22 = vmul.f32 1.442695, %v319_v23 }
 0x120   :  { %v296_v48 = vpop.xlane.xlu2 %295 }
 0x121   :  { %v2117_v49 = vmax.f32 %v2114_v47, %v296_v48 }
 0x123   :  { %923 = vst.msk [vmem:[#allocation2 + $0x70] sm:$0xff] %vm31_vm1, %v2117_v49  ;;  %v329_v16 = vsub.f32 %v2114_v47, %v2117_v49 }
 0x126   :  { %v298_v52 = vpop.xlane.xlu0 %297 }
 0x127   :  { %v2124_v55 = vmax.f32 %v2121_v51, %v298_v52  ;;  %v1645_v52 = vld [vmem:[%s2772_s2 + $0x28] sm:$0xff] }
 0x128   :  { %v278_v57 = vpop.xlane.xlu2 %277  ;;  %830 = vmatpush.bf16.msra.mxu1 %v1645_v52  ;;  %1690 = vmatpush.bf16.msra.mxu2 %v1645_v52 }
 0x129   :  { %v330_v59 = vsub.f32 %v2121_v51, %v2124_v55  ;;  %924 = vst.msk [vmem:[#allocation2 + $0x78] sm:$0xff] %vm31_vm1, %v2124_v55  ;;  %v304_v60 = vmax.f32 %v256_v54, %v278_v57  ;;  %v331_v57 = vmul.f32 1.442695, %v315_v7 }
 0x12b   :  { %914 = vst.msk [vmem:[#allocation2 + $0x28] sm:$0xff] %vm31_vm1, %v304_v60  ;;  %390 = vperm.xlu2 %1701, %v304_v60   ;;  %v320_v15 = vsub.f32 %v256_v54, %v304_v60  ;;  %1707 = vpow2.f32 %v331_v57  ;;  %v1644_v54 = vld [vmem:[%s2772_s2 + $0x20] sm:$0xff]  ;;  %v318_v60 = vsub.f32 %v2082_v29, %v2088_v35  ;;  %v335_v29 = vmul.f32 1.442695, %v317_v26 }
 0x12c   :  { %831 = vmatpush.bf16.msra.mxu1 %v1644_v54  ;;  %1691 = vmatpush.bf16.msra.mxu2 %v1644_v54  ;;  %v359_v26 = vmul.f32 1.442695, %v329_v16 }
 0x12d   :  { %v337_v7 = vmul.f32 1.442695, %v318_v60 }
 0x12e   :  { %v280_v63 = vpop.xlane.xlu0 %279 }
 0x12f   :  { %v2136_v2 = vmax.f32 %v2131_v61, %v280_v63  ;;  %v341_v63 = vmul.f32 1.442695, %v320_v15 }
 0x130   :  { %v282_v3 = vpop.xlane.xlu1 %281  ;;  %832 = vmatpush.bf16.msra.mxu1 %v1643_v6  ;;  %1692 = vmatpush.bf16.msra.mxu2 %v1643_v6 }
 0x131   :  { %915 = vst.msk [vmem:[#allocation2 + $0x30] sm:$0xff] %vm31_vm1, %v2136_v2  ;;  %v2141_v5 = vmax.f32 %v2133_v0, %v282_v3  ;;  %395 = vperm.xlu1 %1700, %v2136_v2   ;;  %v2180_v3 = vpop.eup %1705  ;;  %1709 = vpow2.f32 %v341_v63  ;;  %v321_v20 = vsub.f32 %v2131_v61, %v2136_v2 }
 0x132   :  { %1711 = vpow2.f32 %v353_v4 }
 0x133   :  { %916 = vst.msk [vmem:[#allocation2 + $0x38] sm:$0xff] %vm31_vm1, %v2141_v5  ;;  %400 = vperm.xlu2 %1701, %v2141_v5   ;;  %1713 = vpow2.f32 %v337_v7  ;;  %v343_v47 = vmul.f32 1.442695, %v321_v20  ;;  %v322_v34 = vsub.f32 %v2133_v0, %v2141_v5  ;;  %v351_v0 = vmul.f32 1.442695, %v325_v14 }
 0x134   :  { %1715 = vpow2.f32 %v335_v29 }
 0x135   :  { %1717 = vpow2.f32 %v359_v26  ;;  %v345_v15 = vmul.f32 1.442695, %v322_v34 }
 0x136   :  { %1719 = vpow2.f32 %v343_v47 }
 0x137   :  { %1721 = vpow2.f32 %v339_v22 }
 0x138   :  { %v284_v12 = vpop.xlane.xlu2 %283  ;;  %1723 = vpow2.f32 %v355_v40 }
 0x139   :  { %v2150_v18 = vmax.f32 %v2147_v9, %v284_v12  ;;  %v2196_v12 = vpop.eup %1707 }
 0x13a   :  { %v2201_v35 = vpop.eup %1709 }
 0x13b   :  { %917 = vst.msk [vmem:[#allocation2 + $0x40] sm:$0xff] %vm31_vm1, %v2150_v18  ;;  %415 = vperm.xlu2 %1701, %v2048_v11   ;;  %405 = vperm.xlu1 %1700, %v2150_v18   ;;  %v323_v43 = vsub.f32 %v2147_v9, %v2150_v18 }
 0x140   :  { %v286_v42 = vpop.xlane.xlu0 %285 }
 0x141   :  { %v2164_v48 = vmax.f32 %v2158_v30, %v286_v42  ;;  %v347_v42 = vmul.f32 1.442695, %v323_v43 }
 0x143   :  { %918 = vst.msk [vmem:[#allocation2 + $0x48] sm:$0xff] %vm31_vm1, %v2164_v48  ;;  %430 = vperm.xlu2 %1701, %v2105_v45   ;;  %420 = vperm.xlu1 %1700, %v2066_v21   ;;  %v1642_v21 = vld [vmem:[%s2772_s2 + $0x10] sm:$0xff]  ;;  %1725 = vpow2.f32 %v347_v42 }
 0x144   :  { %410 = vperm.xlu0 %1702, %v2164_v48   ;;  %833 = vmatpush.bf16.msra.mxu1 %v1642_v21  ;;  %1727 = vpow2.f32 %v345_v15 }
 0x145   :  { %1693 = vmatpush.bf16.msra.mxu2 %v1642_v21 }
 0x148   :  { %834 = vmatpush.bf16.msra.mxu1 %v1641_v25 }
 0x149   :  { %1694 = vmatpush.bf16.msra.mxu2 %v1641_v25 }
 0x14b   :  { %611 = vperm.xlu2 %1701, %v2180_v3   ;;  %435 = vperm.xlu1 %1700, %v2117_v49   ;;  %v2218_v49 = vpop.eup %1711 }
 0x14c   :  { %425 = vperm.xlu0 %1702, %v2085_v32   ;;  %v2220_v61 = vpop.eup %1713  ;;  %835 = vmatpush.bf16.msra.mxu1 %v1640_v37  ;;  %v361_v32 = vmul.f32 1.442695, %v330_v59 }
 0x14d   :  { %v2222_v2 = vpop.eup %1715  ;;  %1695 = vmatpush.bf16.msra.mxu2 %v1640_v37 }
 0x14e   :  { %v2237_v10 = vpop.eup %1717  ;;  %1729 = vpow2.f32 %v361_v32 }
 0x14f   :  { %v2239_v52 = vpop.eup %1719  ;;  %1731 = vpow2.f32 %v351_v0 }
 0x150   :  { %v2241_v57 = vpop.eup %1721 }
 0x151   :  { %v2250_v36 = vpop.eup %1723 }
 0x152   :  { %v2255_v5 = vpop.eup %1725 }
 0x153   :  { %631 = vperm.xlu2 %1701, %v2201_v35   ;;  %606 = vperm.xlu1 %1700, %v2196_v12   ;;  %v2257_v63 = vpop.eup %1727 }
 0x154   :  { %440 = vperm.xlu0 %1702, %v2124_v55   ;;  %v357_v55 = vmul.f32 1.442695, %v328_v46  ;;  %v2268_v59 = vpop.eup %1729 }
 0x155   :  { %v2270_v54 = vpop.eup %1731 }
 0x15b   :  { %661 = vperm.xlu2 %1701, %v2218_v49   ;;  %621 = vperm.xlu1 %1700, %v2220_v61  }
 0x15c   :  { %616 = vperm.xlu0 %1702, %v2222_v2  }
 0x15d   :  { %v371_v9 = vpop.permute.xlu2 %370 }
 0x15e   :  { %v444_v28 = vsub.f32 %v1925_v19, %v371_v9  ;;  %v324_v19 = vsub.f32 %v2158_v30, %v2164_v48 }
 0x160   :  { %v461_v18 = vmul.f32 1.442695, %v444_v28  ;;  %v349_v11 = vmul.f32 1.442695, %v324_v19 }
 0x162   :  { %1733 = vpow2.f32 %v461_v18 }
 0x163   :  { %676 = vperm.xlu2 %1701, %v2237_v10   ;;  %636 = vperm.xlu1 %1700, %v2239_v52  }
 0x164   :  { %626 = vperm.xlu0 %1702, %v2241_v57  }
 0x168   :  { %v2273_v30 = vpop.eup %1733 }
 0x169   :  { %v701_v39 = vpack.c.bf16 %v2273_v30, %v2273_v30 }
 0x16b   :  { %646 = vperm.xlu2 %1701, %v2255_v5   ;;  %666 = vperm.xlu1 %1700, %v2250_v36   ;;  %v749_v29 = vunpack.c.l.b16 %v701_v39 }
 0x16c   :  { %641 = vperm.xlu0 %1702, %v2257_v63  }
 0x16d   :  { %v366_v51 = vpop.permute.xlu1 %365  ;;  %v381_v60 = vpop.permute.xlu2 %380 }
 0x16e   :  { %v443_v8 = vsub.f32 %v1920_v13, %v366_v51  ;;  %v446_v13 = vsub.f32 %v1943_v33, %v381_v60 }
 0x170   :  { %v459_v14 = vmul.f32 1.442695, %v443_v8  ;;  %v465_v4 = vmul.f32 1.442695, %v446_v13 }
 0x172   :  { %1735 = vpow2.f32 %v459_v14 }
 0x173   :  { %681 = vperm.xlu1 %1700, %v2268_v59   ;;  %1737 = vpow2.f32 %v349_v11 }
 0x174   :  { %656 = vperm.xlu0 %1702, %v2270_v54   ;;  %1739 = vpow2.f32 %v357_v55 }
 0x175   :  { %1741 = vpow2.f32 %v465_v4 }
 0x178   :  { %v1736_v45 = vpop.eup %1735 }
 0x179   :  { %v700_v46 = vpack.c.bf16 %v1736_v45, %v1736_v45  ;;  %v2279_v48 = vpop.eup %1737 }
 0x17a   :  { %v2281_v6 = vpop.eup %1739 }
 0x17b   :  { %651 = vperm.xlu1 %1700, %v2279_v48   ;;  %v748_v7 = vunpack.c.l.b16 %v700_v46  ;;  %v2286_v23 = vpop.eup %1741 }
 0x17c   :  { %671 = vperm.xlu0 %1702, %v2281_v6   ;;  %v703_v47 = vpack.c.bf16 %v2286_v23, %v2286_v23 }
 0x17d   :  { %v376_v16 = vpop.permute.xlu0 %375  ;;  %v764_v21 = vpack.c.b16 %v749_v29, %v748_v7 }
 0x17e   :  { %v445_v33 = vsub.f32 %v1937_v27, %v376_v16  ;;  %v751_v40 = vunpack.c.l.b16 %v703_v47 }
 0x17f   :  { %836 = vmatmul.bf16.vlgmr.msra.gmra.mxu1 %v764_v21 }
 0x180   :  { %v463_v20 = vmul.f32 1.442695, %v445_v33 }
 0x182   :  { %1743 = vpow2.f32 %v463_v20 }
 0x185   :  { %v391_v25 = vpop.permute.xlu2 %390 }
 0x186   :  { %v448_v26 = vsub.f32 %v1972_v53, %v391_v25 }
 0x188   :  { %v1744_v22 = vpop.eup %1743  ;;  %v469_v43 = vmul.f32 1.442695, %v448_v26 }
 0x189   :  { %v702_v37 = vpack.c.bf16 %v1744_v22, %v1744_v22 }
 0x18a   :  { %1745 = vpow2.f32 %v469_v43 }
 0x18b   :  { %v750_v34 = vunpack.c.l.b16 %v702_v37 }
 0x18d   :  { %v386_v42 = vpop.permute.xlu1 %385  ;;  %v401_v15 = vpop.permute.xlu2 %400  ;;  %v765_v9 = vpack.c.b16 %v751_v40, %v750_v34 }
 0x18e   :  { %v447_v27 = vsub.f32 %v1955_v41, %v386_v42  ;;  %v450_v55 = vsub.f32 %v1986_v58, %v401_v15 }
 0x18f   :  { %841 = vmatmul.bf16.gmra.mxu1 %v765_v9 }
 0x190   :  { %v467_v28 = vmul.f32 1.442695, %v447_v27  ;;  %v2292_v32 = vpop.eup %1745  ;;  %v473_v60 = vmul.f32 1.442695, %v450_v55 }
 0x191   :  { %v705_v18 = vpack.c.bf16 %v2292_v32, %v2292_v32 }
 0x192   :  { %1747 = vpow2.f32 %v467_v28 }
 0x193   :  { %v753_v14 = vunpack.c.l.b16 %v705_v18 }
 0x194   :  { %523 = vadd.xlane.f32.xlu2 %v1736_v45 }
 0x195   :  { %v416_v53 = vpop.permute.xlu2 %415 }
 0x196   :  { %v453_v0 = vsub.f32 %v1923_v17, %v416_v53 }
 0x198   :  { %v1748_v19 = vpop.eup %1747  ;;  %v479_v8 = vmul.f32 1.442695, %v453_v0 }
 0x199   :  { %v704_v51 = vpack.c.bf16 %v1748_v19, %v1748_v19 }
 0x19a   :  { %1749 = vpow2.f32 %v479_v8 }
 0x19b   :  { %v752_v11 = vunpack.c.l.b16 %v704_v51  ;;  %1751 = vpow2.f32 %v473_v60 }
 0x19d   :  { %v766_v41 = vpack.c.b16 %v753_v14, %v752_v11  ;;  %v431_v13 = vpop.permute.xlu2 %430 }
 0x19e   :  { %v456_v46 = vsub.f32 %v1950_v38, %v431_v13 }
 0x19f   :  { %846 = vmatmul.bf16.gmra.mxu1 %v766_v41 }
 0x1a0   :  { %v2298_v45 = vpop.eup %1749  ;;  %v485_v58 = vmul.f32 1.442695, %v456_v46 }
 0x1a1   :  { %v1752_v7 = vpop.eup %1751  ;;  %v710_v60 = vpack.c.bf16 %v2298_v45, %v2298_v45 }
 0x1a2   :  { %v707_v16 = vpack.c.bf16 %v1752_v7, %v1752_v7 }
 0x1a3   :  { %v396_v39 = vpop.permute.xlu1 %395 }
 0x1a4   :  { %v449_v17 = vsub.f32 %v1982_v56, %v396_v39  ;;  %v755_v56 = vunpack.c.l.b16 %v707_v16 }
 0x1a5   :  { %543 = vadd.xlane.f32.xlu1 %v2298_v45 }
 0x1a6   :  { %v471_v4 = vmul.f32 1.442695, %v449_v17  ;;  %527 = vadd.xlane.f32.xlu0 %v1744_v22  ;;  %v758_v17 = vunpack.c.l.b16 %v710_v60 }
 0x1a8   :  { %1753 = vpow2.f32 %v471_v4 }
 0x1a9   :  { %1755 = vpow2.f32 %v485_v58 }
 0x1ad   :  { %v406_v29 = vpop.permute.xlu1 %405  ;;  %525 = vadd.xlane.f32.xlu1 %v2273_v30 }
 0x1ae   :  { %v1754_v21 = vpop.eup %1753  ;;  %v451_v33 = vsub.f32 %v1996_v62, %v406_v29 }
 0x1af   :  { %v706_v20 = vpack.c.bf16 %v1754_v21, %v1754_v21  ;;  %v1756_v37 = vpop.eup %1755 }
 0x1b0   :  { %v475_v26 = vmul.f32 1.442695, %v451_v33 }
 0x1b1   :  { %v754_v25 = vunpack.c.l.b16 %v706_v20 }
 0x1b2   :  { %1757 = vpow2.f32 %v475_v26 }
 0x1b3   :  { %v767_v47 = vpack.c.b16 %v755_v56, %v754_v25 }
 0x1b5   :  { %v421_v38 = vpop.permute.xlu1 %420  ;;  %549 = vadd.xlane.f32.xlu1 %v1756_v37  ;;  %851 = vmatmul.bf16.gmra.mxu1 %v767_v47 }
 0x1b6   :  { %v454_v22 = vsub.f32 %v1932_v24, %v421_v38  ;;  %v411_v43 = vpop.permute.xlu0 %410 }
 0x1b7   :  { %v452_v30 = vsub.f32 %v1999_v1, %v411_v43  ;;  %v588_v43 = vld [vmem:[#allocation4] sm:$0xff] }
 0x1b8   :  { %v481_v34 = vmul.f32 1.442695, %v454_v22  ;;  %v1758_v62 = vpop.eup %1757 }
 0x1b9   :  { %v477_v40 = vmul.f32 1.442695, %v452_v30  ;;  %v708_v28 = vpack.c.bf16 %v1758_v62, %v1758_v62 }
 0x1ba   :  { %1759 = vpow2.f32 %v481_v34 }
 0x1bb   :  { %1761 = vpow2.f32 %v477_v40  ;;  %v756_v1 = vunpack.c.l.b16 %v708_v28  ;;  %v491_v28 = vld [vmem:[#allocation3] sm:$0xff] }
 0x1bd   :  { %531 = vadd.xlane.f32.xlu1 %v1748_v19  ;;  %v436_v15 = vpop.permute.xlu1 %435 }
 0x1be   :  { %v426_v42 = vpop.permute.xlu0 %425  ;;  %v457_v24 = vsub.f32 %v1959_v44, %v436_v15 }
 0x1bf   :  { %v455_v9 = vsub.f32 %v1941_v31, %v426_v42 }
 0x1c0   :  { %v1760_v27 = vpop.eup %1759  ;;  %v487_v8 = vmul.f32 1.442695, %v457_v24 }
 0x1c1   :  { %v1762_v53 = vpop.eup %1761  ;;  %v483_v0 = vmul.f32 1.442695, %v455_v9  ;;  %545 = vadd.xlane.f32.xlu2 %v1760_v27  ;;  %v711_v41 = vpack.c.bf16 %v1760_v27, %v1760_v27  ;;  %v589_v9 = vld [vmem:[#allocation4 + $0x8] sm:$0xff] }
 0x1c2   :  { %v709_v18 = vpack.c.bf16 %v1762_v53, %v1762_v53 }
 0x1c3   :  { %1763 = vpow2.f32 %v483_v0  ;;  %v759_v39 = vunpack.c.l.b16 %v711_v41 }
 0x1c4   :  { %v757_v51 = vunpack.c.l.b16 %v709_v18  ;;  %1765 = vpow2.f32 %v487_v8  ;;  %v507_v18 = vmul.f32 %v2196_v12, %v491_v28  ;;  %v590_v8 = vld [vmem:[#allocation4 + $0x10] sm:$0xff] }
 0x1c5   :  { %537 = vadd.xlane.f32.xlu1 %v1752_v7  ;;  %v769_v46 = vpack.c.b16 %v759_v39, %v758_v17  ;;  %v713_v7 = vpack.c.bf16 %v1756_v37, %v1756_v37  ;;  %v501_v17 = vld [vmem:[#allocation3 + $0x50] sm:$0xff] }
 0x1c6   :  { %v441_v11 = vpop.permute.xlu0 %440  ;;  %v768_v14 = vpack.c.b16 %v757_v51, %v756_v1 }
 0x1c7   :  { %v458_v19 = vsub.f32 %v1965_v50, %v441_v11  ;;  %v612_v50 = vpop.permute.xlu2 %611  ;;  %v761_v45 = vunpack.c.l.b16 %v713_v7 }
 0x1c8   :  { %856 = vmatmul.bf16.vlgmr.msra.gmra.mxu2 %v768_v14  ;;  %v685_v27 = vmul.f32 %v612_v50, %v589_v9  ;;  %v493_v50 = vld [vmem:[#allocation3 + $0x10] sm:$0xff]  ;;  %v504_v9 = vld [vmem:[#allocation3 + $0x68] sm:$0xff] }
 0x1c9   :  { %v1764_v55 = vpop.eup %1763  ;;  %v489_v31 = vmul.f32 1.442695, %v458_v19  ;;  %529 = vadd.xlane.f32.xlu2 %v2286_v23  ;;  %v607_v23 = vpop.permute.xlu1 %606  ;;  %v520_v28 = vmul.f32 %v2281_v6, %v504_v9 }
 0x1ca   :  { %547 = vadd.xlane.f32.xlu0 %v1764_v55  ;;  %v1766_v44 = vpop.eup %1765  ;;  %v712_v4 = vpack.c.bf16 %v1764_v55, %v1764_v55  ;;  %v684_v30 = vmul.f32 %v607_v23, %v588_v43  ;;  %v517_v23 = vmul.f32 %v2270_v54, %v501_v17 }
 0x1cb   :  { %1767 = vpow2.f32 %v489_v31  ;;  %v714_v26 = vpack.c.bf16 %v1766_v44, %v1766_v44  ;;  %v591_v31 = vld [vmem:[#allocation4 + $0x18] sm:$0xff] }
 0x1cc   :  { %v760_v29 = vunpack.c.l.b16 %v712_v4  ;;  %v592_v4 = vld [vmem:[#allocation4 + $0x20] sm:$0xff] }
 0x1cd   :  { %v762_v38 = vunpack.c.l.b16 %v714_v26 }
 0x1ce   :  { %v770_v16 = vpack.c.b16 %v761_v45, %v760_v29  ;;  %v617_v20 = vpop.permute.xlu0 %616  ;;  %v509_v29 = vmul.f32 %v2222_v2, %v493_v50  ;;  %v498_v50 = vld [vmem:[#allocation3 + $0x38] sm:$0xff] }
 0x1cf   :  { %v2314_v58 = vpop.permute.xlu2 %631  ;;  %v686_v14 = vmul.f32 %v617_v20, %v590_v8  ;;  %v594_v8 = vld [vmem:[#allocation4 + $0x30] sm:$0xff] }
 0x1d1   :  { %v1768_v13 = vpop.eup %1767  ;;  %551 = vadd.xlane.f32.xlu2 %v1766_v44  ;;  %v622_v33 = vpop.permute.xlu1 %621 }
 0x1d2   :  { %553 = vadd.xlane.f32.xlu0 %v1768_v13  ;;  %v715_v56 = vpack.c.bf16 %v1768_v13, %v1768_v13  ;;  %v687_v13 = vmul.f32 %v622_v33, %v591_v31 }
 0x1d7   :  { %v2316_v25 = vpop.permute.xlu2 %661 }
 0x1d8   :  { %861 = vmatmul.bf16.gmra.mxu2 %v769_v46 }
 0x1d9   :  { %533 = vadd.xlane.f32.xlu2 %v2292_v32  ;;  %v2318_v47 = vpop.permute.xlu1 %636  ;;  %v763_v32 = vunpack.c.l.b16 %v715_v56 }
 0x1da   :  { %535 = vadd.xlane.f32.xlu0 %v1754_v21  ;;  %v627_v21 = vpop.permute.xlu0 %626 }
 0x1db   :  { %v771_v22 = vpack.c.b16 %v763_v32, %v762_v38  ;;  %v688_v26 = vmul.f32 %v627_v21, %v592_v4  ;;  %v492_v32 = vld [vmem:[#allocation3 + $0x8] sm:$0xff] }
 0x1dc   :  { %v508_v54 = vmul.f32 %v2180_v3, %v492_v32 }
 0x1df   :  { %v2320_v37 = vpop.permute.xlu2 %676 }
 0x1e1   :  { %539 = vadd.xlane.f32.xlu2 %v1758_v62  ;;  %v2322_v34 = vpop.permute.xlu1 %666 }
 0x1e2   :  { %541 = vadd.xlane.f32.xlu0 %v1762_v53  ;;  %v2324_v62 = vpop.permute.xlu0 %641 }
 0x1e7   :  { %v2326_v15 = vpop.permute.xlu2 %646 }
 0x1e8   :  { %866 = vmatmul.bf16.gmra.mxu2 %v770_v16 }
 0x1e9   :  { %v2329_v24 = vpop.permute.xlu1 %681 }
 0x1ea   :  { %v2332_v1 = vpop.permute.xlu0 %656 }
 0x1f1   :  { %v2337_v41 = vpop.permute.xlu1 %651 }
 0x1f2   :  { %v2339_v44 = vpop.permute.xlu0 %671 }
 0x1f8   :  { %871 = vmatmul.bf16.gmra.mxu2 %v771_v22  ;;  %v593_v22 = vld [vmem:[#allocation4 + $0x28] sm:$0xff] }
 0x1fc   :  { %v837_v40 = vpop.f32.mrf.mxu1 }
 0x1fd   :  { %v877_v42 = vadd.f32 %v837_v40, %v684_v30  ;;  %v689_v40 = vmul.f32 %v2314_v58, %v593_v22  ;;  %v495_v58 = vld [vmem:[#allocation3 + $0x20] sm:$0xff] }
 0x1ff   :  { %893 = vst.msk [vmem:[#allocation4] sm:$0xff] %vm64_vm0, %v877_v42 }
 0x204   :  { %v839_v53 = vpop.f32.mrf.mxu1 }
 0x205   :  { %v878_v0 = vadd.f32 %v839_v53, %v685_v27 }
 0x207   :  { %894 = vst.msk [vmem:[#allocation4 + $0x8] sm:$0xff] %vm64_vm0, %v878_v0  ;;  %v524_v51 = vpop.xlane.xlu2 %523 }
 0x208   :  { %v555_v11 = vadd.f32 %v524_v51, %v507_v18 }
 0x20a   :  { %572 = vst.msk [vmem:[#allocation3] sm:$0xff] %vm31_vm1, %v555_v11  ;;  %v511_v11 = vmul.f32 %v2241_v57, %v495_v58  ;;  %v596_v58 = vld [vmem:[#allocation4 + $0x40] sm:$0xff] }
 0x20c   :  { %v842_v19 = vpop.f32.mrf.mxu1 }
 0x20d   :  { %v879_v55 = vadd.f32 %v842_v19, %v686_v14  ;;  %v502_v19 = vld [vmem:[#allocation3 + $0x58] sm:$0xff] }
 0x20f   :  { %895 = vst.msk [vmem:[#allocation4 + $0x10] sm:$0xff] %vm64_vm0, %v879_v55  ;;  %v690_v55 = vmul.f32 %v2318_v47, %v594_v8  ;;  %v514_v47 = vmul.f32 %v2257_v63, %v498_v50 }
 0x211   :  { %v928_v12 = vld [vmem:[#allocation3] sm:$0xff] }
 0x212   :  { %v944_v60 = vmax.f32 %v928_v12, 1e-20 }
 0x214   :  { %v844_v39 = vpop.f32.mrf.mxu1  ;;  %1769 = vrcp.f32 %v944_v60 }
 0x215   :  { %v880_v46 = vadd.f32 %v844_v39, %v687_v13  ;;  %v518_v39 = vmul.f32 %v2218_v49, %v502_v19  ;;  %v692_v19 = vmul.f32 %v2326_v15, %v596_v58  ;;  %v597_v15 = vld [vmem:[#allocation4 + $0x48] sm:$0xff] }
 0x217   :  { %896 = vst.msk [vmem:[#allocation4 + $0x18] sm:$0xff] %vm64_vm0, %v880_v46 }
 0x218   :  { %v544_v7 = vpop.xlane.xlu1 %543 }
 0x219   :  { %v565_v45 = vadd.f32 %v544_v7, %v517_v23  ;;  %v528_v16 = vpop.xlane.xlu0 %527  ;;  %v595_v23 = vld [vmem:[#allocation4 + $0x38] sm:$0xff] }
 0x21a   :  { %v1770_v20 = vpop.eup %1769  ;;  %v557_v56 = vadd.f32 %v528_v16, %v509_v29  ;;  %v494_v7 = vld [vmem:[#allocation3 + $0x18] sm:$0xff]  ;;  %v691_v29 = vmul.f32 %v2324_v62, %v595_v23  ;;  %v503_v16 = vld [vmem:[#allocation3 + $0x60] sm:$0xff] }
 0x21b   :  { %582 = vst.msk [vmem:[#allocation3 + $0x50] sm:$0xff] %vm31_vm1, %v565_v45  ;;  %994 = vperm.xlu0 %1702, %v1770_v20  }
 0x21c   :  { %574 = vst.msk [vmem:[#allocation3 + $0x10] sm:$0xff] %vm31_vm1, %v557_v56  ;;  %v847_v33 = vpop.f32.mrf.mxu1 }
 0x21d   :  { %v881_v38 = vadd.f32 %v847_v33, %v688_v26  ;;  %v510_v33 = vmul.f32 %v2220_v61, %v494_v7  ;;  %v500_v7 = vld [vmem:[#allocation3 + $0x48] sm:$0xff] }
 0x21f   :  { %897 = vst.msk [vmem:[#allocation4 + $0x20] sm:$0xff] %vm64_vm0, %v881_v38 }
 0x220   :  { %v526_v43 = vpop.xlane.xlu1 %525 }
 0x221   :  { %v556_v2 = vadd.f32 %v526_v43, %v508_v54  ;;  %v519_v54 = vmul.f32 %v2250_v36, %v503_v16 }
 0x222   :  { %v938_v30 = vld [vmem:[#allocation3 + $0x50] sm:$0xff] }
 0x223   :  { %573 = vst.msk [vmem:[#allocation3 + $0x8] sm:$0xff] %vm31_vm1, %v556_v2  ;;  %v954_v21 = vmax.f32 %v938_v30, 1e-20  ;;  %v505_v30 = vld [vmem:[#allocation3 + $0x70] sm:$0xff] }
 0x224   :  { %v849_v42 = vpop.f32.mrf.mxu1  ;;  %v521_v36 = vmul.f32 %v2237_v10, %v505_v30 }
 0x225   :  { %v882_v27 = vadd.f32 %v849_v42, %v689_v40  ;;  %1771 = vrcp.f32 %v954_v21  ;;  %v506_v40 = vld [vmem:[#allocation3 + $0x78] sm:$0xff]  ;;  %v930_v21 = vld [vmem:[#allocation3 + $0x10] sm:$0xff] }
 0x227   :  { %898 = vst.msk [vmem:[#allocation4 + $0x28] sm:$0xff] %vm64_vm0, %v882_v27 }
 0x228   :  { %v550_v53 = vpop.xlane.xlu1 %549 }
 0x229   :  { %v568_v0 = vadd.f32 %v550_v53, %v520_v28  ;;  %v522_v28 = vmul.f32 %v2268_v59, %v506_v40 }
 0x22a   :  { %v929_v3 = vld [vmem:[#allocation3 + $0x8] sm:$0xff] }
 0x22b   :  { %v1772_v18 = vpop.eup %1771  ;;  %585 = vst.msk [vmem:[#allocation3 + $0x68] sm:$0xff] %vm31_vm1, %v568_v0  ;;  %v945_v51 = vmax.f32 %v929_v3, 1e-20  ;;  %v946_v3 = vmax.f32 %v930_v21, 1e-20  ;;  %v599_v21 = vld [vmem:[#allocation4 + $0x58] sm:$0xff] }
 0x22c   :  { %1044 = vperm.xlu2 %1701, %v1772_v18  }
 0x22d   :  { %1773 = vrcp.f32 %v945_v51 }
 0x230   :  { %v532_v14 = vpop.xlane.xlu1 %531 }
 0x231   :  { %v559_v31 = vadd.f32 %v532_v14, %v511_v11  ;;  %v496_v11 = vld [vmem:[#allocation3 + $0x28] sm:$0xff]  ;;  %v497_v14 = vld [vmem:[#allocation3 + $0x30] sm:$0xff] }
 0x232   :  { %v852_v12 = vpop.f32.mrf.mxu1  ;;  %v941_v6 = vld [vmem:[#allocation3 + $0x68] sm:$0xff] }
 0x233   :  { %v1774_v60 = vpop.eup %1773  ;;  %576 = vst.msk [vmem:[#allocation3 + $0x20] sm:$0xff] %vm31_vm1, %v559_v31  ;;  %v883_v13 = vadd.f32 %v852_v12, %v690_v55  ;;  %v957_v17 = vmax.f32 %v941_v6, 1e-20  ;;  %v512_v31 = vmul.f32 %v2201_v35, %v496_v11  ;;  %v499_v35 = vld [vmem:[#allocation3 + $0x40] sm:$0xff] }
 0x234   :  { %v546_v46 = vpop.xlane.xlu2 %545  ;;  %999 = vperm.xlu2 %1701, %v1774_v60  }
 0x235   :  { %899 = vst.msk [vmem:[#allocation4 + $0x30] sm:$0xff] %vm64_vm0, %v883_v13  ;;  %v566_v57 = vadd.f32 %v546_v46, %v518_v39  ;;  %1775 = vrcp.f32 %v957_v17  ;;  %v513_v13 = vmul.f32 %v2239_v52, %v497_v14  ;;  %v693_v52 = vmul.f32 %v2337_v41, %v597_v15 }
 0x237   :  { %583 = vst.msk [vmem:[#allocation3 + $0x58] sm:$0xff] %vm31_vm1, %v566_v57 }
 0x238   :  { %v538_v4 = vpop.xlane.xlu1 %537 }
 0x239   :  { %v562_v45 = vadd.f32 %v538_v4, %v514_v47 }
 0x23a   :  { %v854_v49 = vpop.f32.mrf.mxu1  ;;  %v932_v20 = vld [vmem:[#allocation3 + $0x20] sm:$0xff] }
 0x23b   :  { %v1776_v56 = vpop.eup %1775  ;;  %579 = vst.msk [vmem:[#allocation3 + $0x38] sm:$0xff] %vm31_vm1, %v562_v45  ;;  %v884_v26 = vadd.f32 %v854_v49, %v691_v29  ;;  %v948_v32 = vmax.f32 %v932_v20, 1e-20  ;;  %v515_v45 = vmul.f32 %v2255_v5, %v499_v35 }
 0x23c   :  { %v530_v38 = vpop.xlane.xlu2 %529  ;;  %1059 = vperm.xlu2 %1701, %v1776_v56   ;;  %v516_v56 = vmul.f32 %v2279_v48, %v500_v7 }
 0x23d   :  { %900 = vst.msk [vmem:[#allocation4 + $0x38] sm:$0xff] %vm64_vm0, %v884_v26  ;;  %v558_v63 = vadd.f32 %v530_v38, %v510_v33  ;;  %v548_v22 = vpop.xlane.xlu0 %547  ;;  %1777 = vrcp.f32 %v948_v32 }
 0x23e   :  { %v567_v62 = vadd.f32 %v548_v22, %v519_v54  ;;  %v939_v43 = vld [vmem:[#allocation3 + $0x58] sm:$0xff]  ;;  %v598_v22 = vld [vmem:[#allocation4 + $0x50] sm:$0xff] }
 0x23f   :  { %575 = vst.msk [vmem:[#allocation3 + $0x18] sm:$0xff] %vm31_vm1, %v558_v63  ;;  %v955_v2 = vmax.f32 %v939_v43, 1e-20  ;;  %v694_v5 = vmul.f32 %v2332_v1, %v598_v22  ;;  %v1092_v22 = vld [vmem:[%s2773_s3 + $0x20] sm:$0xff] }
 0x240   :  { %584 = vst.msk [vmem:[#allocation3 + $0x60] sm:$0xff] %vm31_vm1, %v567_v62 }
 0x241   :  { %1779 = vrcp.f32 %v955_v2 }
 0x242   :  { %v935_v61 = vld [vmem:[#allocation3 + $0x38] sm:$0xff] }
 0x243   :  { %v1778_v42 = vpop.eup %1777  ;;  %v951_v9 = vmax.f32 %v935_v61, 1e-20 }
 0x244   :  { %v552_v27 = vpop.xlane.xlu2 %551  ;;  %1014 = vperm.xlu2 %1701, %v1778_v42  }
 0x245   :  { %v569_v53 = vadd.f32 %v552_v27, %v521_v36  ;;  %v554_v0 = vpop.xlane.xlu0 %553  ;;  %1781 = vrcp.f32 %v951_v9  ;;  %v695_v9 = vmul.f32 %v2316_v25, %v599_v21  ;;  %v601_v25 = vld [vmem:[#allocation4 + $0x68] sm:$0xff] }
 0x246   :  { %v570_v18 = vadd.f32 %v554_v0, %v522_v28  ;;  %1783 = vrcp.f32 %v946_v3  ;;  %v931_v12 = vld [vmem:[#allocation3 + $0x18] sm:$0xff]  ;;  %v600_v3 = vld [vmem:[#allocation4 + $0x60] sm:$0xff] }
 0x247   :  { %v1780_v51 = vpop.eup %1779  ;;  %586 = vst.msk [vmem:[#allocation3 + $0x70] sm:$0xff] %vm31_vm1, %v569_v53  ;;  %v940_v8 = vld [vmem:[#allocation3 + $0x60] sm:$0xff]  ;;  %v947_v57 = vmax.f32 %v931_v12, 1e-20 }
 0x248   :  { %587 = vst.msk [vmem:[#allocation3 + $0x78] sm:$0xff] %vm31_vm1, %v570_v18  ;;  %1049 = vperm.xlu1 %1700, %v1780_v51   ;;  %v956_v10 = vmax.f32 %v940_v8, 1e-20  ;;  %v696_v51 = vmul.f32 %v2322_v34, %v600_v3  ;;  %v603_v34 = vld [vmem:[#allocation4 + $0x78] sm:$0xff] }
 0x24a   :  { %1785 = vrcp.f32 %v956_v10  ;;  %v697_v10 = vmul.f32 %v2339_v44, %v601_v25 }
 0x24b   :  { %v1782_v59 = vpop.eup %1781  ;;  %v857_v55 = vpop.f32.mrf.mxu2 }
 0x24c   :  { %v885_v6 = vadd.f32 %v857_v55, %v692_v19  ;;  %v534_v60 = vpop.xlane.xlu2 %533  ;;  %1029 = vperm.xlu2 %1701, %v1782_v59   ;;  %v1784_v23 = vpop.eup %1783  ;;  %v602_v59 = vld [vmem:[#allocation4 + $0x70] sm:$0xff] }
 0x24d   :  { %v560_v39 = vadd.f32 %v534_v60, %v512_v31  ;;  %v536_v17 = vpop.xlane.xlu0 %535  ;;  %v698_v55 = vmul.f32 %v2320_v37, %v602_v59 }
 0x24e   :  { %901 = vst.msk [vmem:[#allocation4 + $0x40] sm:$0xff] %vm64_vm0, %v885_v6  ;;  %v561_v46 = vadd.f32 %v536_v17, %v513_v13  ;;  %v942_v50 = vld [vmem:[#allocation3 + $0x70] sm:$0xff]  ;;  %v699_v6 = vmul.f32 %v2329_v24, %v603_v34 }
 0x24f   :  { %577 = vst.msk [vmem:[#allocation3 + $0x28] sm:$0xff] %vm31_vm1, %v560_v39  ;;  %v958_v47 = vmax.f32 %v942_v50, 1e-20  ;;  %v943_v16 = vld [vmem:[#allocation3 + $0x78] sm:$0xff]  ;;  %v976_v50 = vld [vmem:[#allocation4] sm:$0xff] }
 0x250   :  { %v1786_v4 = vpop.eup %1785  ;;  %578 = vst.msk [vmem:[#allocation3 + $0x30] sm:$0xff] %vm31_vm1, %v561_v46  ;;  %1004 = vperm.xlu1 %1700, %v1784_v23   ;;  %v959_v54 = vmax.f32 %v943_v16, 1e-20  ;;  %v1098_v46 = vld [vmem:[%s2773_s3 + $0x50] sm:$0xff]  ;;  %v1088_v23 = vld [vmem:[%s2773_s3] sm:$0xff] }
 0x251   :  { %1054 = vperm.xlu0 %1702, %v1786_v4   ;;  %1787 = vrcp.f32 %v958_v47  ;;  %v977_v47 = vld [vmem:[#allocation4 + $0x8] sm:$0xff] }
 0x252   :  { %1789 = vrcp.f32 %v947_v57 }
 0x253   :  { %v859_v29 = vpop.f32.mrf.mxu2 }
 0x254   :  { %v886_v49 = vadd.f32 %v859_v29, %v693_v52  ;;  %v540_v20 = vpop.xlane.xlu2 %539  ;;  %v1089_v29 = vld [vmem:[%s2773_s3 + $0x8] sm:$0xff] }
 0x255   :  { %v563_v26 = vadd.f32 %v540_v20, %v515_v45  ;;  %v542_v33 = vpop.xlane.xlu0 %541 }
 0x256   :  { %902 = vst.msk [vmem:[#allocation4 + $0x48] sm:$0xff] %vm64_vm0, %v886_v49  ;;  %v564_v32 = vadd.f32 %v542_v33, %v516_v56  ;;  %v933_v38 = vld [vmem:[#allocation3 + $0x28] sm:$0xff] }
 0x257   :  { %v1788_v63 = vpop.eup %1787  ;;  %580 = vst.msk [vmem:[#allocation3 + $0x40] sm:$0xff] %vm31_vm1, %v563_v26  ;;  %v949_v41 = vmax.f32 %v933_v38, 1e-20  ;;  %v934_v43 = vld [vmem:[#allocation3 + $0x30] sm:$0xff]  ;;  %v1101_v26 = vld [vmem:[%s2773_s3 + $0x68] sm:$0xff]  ;;  %v980_v38 = vld [vmem:[#allocation4 + $0x20] sm:$0xff] }
 0x258   :  { %v1790_v62 = vpop.eup %1789  ;;  %581 = vst.msk [vmem:[#allocation3 + $0x48] sm:$0xff] %vm31_vm1, %v564_v32  ;;  %1064 = vperm.xlu1 %1700, %v1788_v63   ;;  %v950_v40 = vmax.f32 %v934_v43, 1e-20 }
 0x259   :  { %1009 = vperm.xlu0 %1702, %v1790_v62   ;;  %1791 = vrcp.f32 %v949_v41 }
 0x25a   :  { %1793 = vrcp.f32 %v959_v54 }
 0x25b   :  { %v862_v48 = vpop.f32.mrf.mxu2 }
 0x25c   :  { %v887_v2 = vadd.f32 %v862_v48, %v694_v5  ;;  %v983_v5 = vld [vmem:[#allocation4 + $0x38] sm:$0xff] }
 0x25e   :  { %903 = vst.msk [vmem:[#allocation4 + $0x50] sm:$0xff] %vm64_vm0, %v887_v2  ;;  %v936_v30 = vld [vmem:[#allocation3 + $0x40] sm:$0xff]  ;;  %v1095_v2 = vld [vmem:[%s2773_s3 + $0x38] sm:$0xff] }
 0x25f   :  { %v1792_v61 = vpop.eup %1791  ;;  %v952_v42 = vmax.f32 %v936_v30, 1e-20  ;;  %v937_v1 = vld [vmem:[#allocation3 + $0x48] sm:$0xff] }
 0x260   :  { %v1794_v36 = vpop.eup %1793  ;;  %1019 = vperm.xlu1 %1700, %v1792_v61   ;;  %v953_v53 = vmax.f32 %v937_v1, 1e-20  ;;  %v978_v1 = vld [vmem:[#allocation4 + $0x10] sm:$0xff] }
 0x261   :  { %1069 = vperm.xlu0 %1702, %v1794_v36   ;;  %1795 = vrcp.f32 %v952_v42  ;;  %v1099_v42 = vld [vmem:[%s2773_s3 + $0x58] sm:$0xff] }
 0x262   :  { %1797 = vrcp.f32 %v950_v40 }
 0x263   :  { %v864_v27 = vpop.f32.mrf.mxu2  ;;  %1799 = vrcp.f32 %v953_v53  ;;  %v1090_v53 = vld [vmem:[%s2773_s3 + $0x10] sm:$0xff] }
 0x264   :  { %v888_v28 = vadd.f32 %v864_v27, %v695_v9 }
 0x265   :  { %v986_v44 = vld [vmem:[#allocation4 + $0x50] sm:$0xff] }
 0x266   :  { %904 = vst.msk [vmem:[#allocation4 + $0x58] sm:$0xff] %vm64_vm0, %v888_v28 }
 0x267   :  { %v1796_v0 = vpop.eup %1795 }
 0x268   :  { %v1798_v18 = vpop.eup %1797  ;;  %1034 = vperm.xlu1 %1700, %v1796_v0  }
 0x269   :  { %1024 = vperm.xlu0 %1702, %v1798_v18   ;;  %v1800_v11 = vpop.eup %1799 }
 0x26b   :  { %v867_v58 = vpop.f32.mrf.mxu2 }
 0x26c   :  { %v889_v8 = vadd.f32 %v867_v58, %v696_v51  ;;  %v1100_v51 = vld [vmem:[%s2773_s3 + $0x60] sm:$0xff] }
 0x26d   :  { %v987_v21 = vld [vmem:[#allocation4 + $0x58] sm:$0xff] }
 0x26e   :  { %905 = vst.msk [vmem:[#allocation4 + $0x60] sm:$0xff] %vm64_vm0, %v889_v8 }
 0x271   :  { %1039 = vperm.xlu0 %1702, %v1800_v11  }
 0x273   :  { %v869_v14 = vpop.f32.mrf.mxu2 }
 0x274   :  { %v890_v19 = vadd.f32 %v869_v14, %v697_v10 }
 0x275   :  { %v988_v3 = vld [vmem:[#allocation4 + $0x60] sm:$0xff] }
 0x276   :  { %906 = vst.msk [vmem:[#allocation4 + $0x68] sm:$0xff] %vm64_vm0, %v890_v19  ;;  %v979_v19 = vld [vmem:[#allocation4 + $0x18] sm:$0xff] }
 0x27b   :  { %v872_v31 = vpop.f32.mrf.mxu2 }
 0x27c   :  { %v891_v12 = vadd.f32 %v872_v31, %v698_v55  ;;  %v1091_v55 = vld [vmem:[%s2773_s3 + $0x18] sm:$0xff] }
 0x27d   :  { %v989_v49 = vld [vmem:[#allocation4 + $0x68] sm:$0xff] }
 0x27e   :  { %907 = vst.msk [vmem:[#allocation4 + $0x70] sm:$0xff] %vm64_vm0, %v891_v12 }
 0x283   :  { %v874_v60 = vpop.f32.mrf.mxu2 }
 0x284   :  { %v892_v13 = vadd.f32 %v874_v60, %v699_v6  ;;  %v981_v6 = vld [vmem:[#allocation4 + $0x28] sm:$0xff] }
 0x286   :  { %908 = vst.msk [vmem:[#allocation4 + $0x78] sm:$0xff] %vm64_vm0, %v892_v13  ;;  %v1045_v39 = vpop.permute.xlu2 %1044  ;;  %v1093_v13 = vld [vmem:[%s2773_s3 + $0x28] sm:$0xff] }
 0x287   :  { %v1082_v17 = vmul.f32 %v1045_v39, %v986_v44 }
 0x289   :  { %v2398_v57 = vadd.f32 %v1098_v46, %v1082_v17 }
 0x28b   :  { %v1150_v7 = vsel %vm64_vm0, %v2398_v57, 0.0 }
 0x28d   :  { %v995_v37 = vpop.permute.xlu0 %994 }
 0x28e   :  { %v1072_v24 = vmul.f32 %v995_v37, %v976_v50  ;;  %v1000_v15 = vpop.permute.xlu2 %999  ;;  %v984_v50 = vld [vmem:[#allocation4 + $0x40] sm:$0xff] }
 0x28f   :  { %v1073_v35 = vmul.f32 %v1000_v15, %v977_v47  ;;  %v982_v15 = vld [vmem:[#allocation4 + $0x30] sm:$0xff] }
 0x290   :  { %v2403_v4 = vadd.f32 %v1088_v23, %v1072_v24  ;;  %v1096_v23 = vld [vmem:[%s2773_s3 + $0x40] sm:$0xff] }
 0x291   :  { %v2412_v45 = vadd.f32 %v1089_v29, %v1073_v35  ;;  %v1094_v35 = vld [vmem:[%s2773_s3 + $0x30] sm:$0xff] }
 0x292   :  { %1151 = vadd.xlane.f32.xlu1 %v1150_v7  ;;  %v1120_v52 = vsel %vm64_vm0, %v2403_v4, 0.0  ;;  %v990_v29 = vld [vmem:[#allocation4 + $0x70] sm:$0xff] }
 0x293   :  { %1121 = vadd.xlane.f32.xlu2 %v1120_v52  ;;  %v1123_v56 = vsel %vm64_vm0, %v2412_v45, 0.0 }
 0x296   :  { %v1060_v16 = vpop.permute.xlu2 %1059 }
 0x297   :  { %v1085_v20 = vmul.f32 %v1060_v16, %v989_v49 }
 0x299   :  { %v2419_v33 = vadd.f32 %v1101_v26, %v1085_v20  ;;  %v1102_v26 = vld [vmem:[%s2773_s3 + $0x70] sm:$0xff] }
 0x29a   :  { %1124 = vadd.xlane.f32.xlu1 %v1123_v56 }
 0x29b   :  { %v1159_v63 = vsel %vm64_vm0, %v2419_v33, 0.0 }
 0x29e   :  { %v1015_v32 = vpop.permute.xlu2 %1014 }
 0x29f   :  { %v1076_v54 = vmul.f32 %v1015_v32, %v980_v38  ;;  %v985_v32 = vld [vmem:[#allocation4 + $0x48] sm:$0xff] }
 0x2a1   :  { %v2426_v41 = vadd.f32 %v1092_v22, %v1076_v54 }
 0x2a2   :  { %1160 = vadd.xlane.f32.xlu1 %v1159_v63  ;;  %v1097_v63 = vld [vmem:[%s2773_s3 + $0x48] sm:$0xff] }
 0x2a3   :  { %v1132_v43 = vsel %vm64_vm0, %v2426_v41, 0.0 }
 0x2a6   :  { %v1030_v62 = vpop.permute.xlu2 %1029 }
 0x2a7   :  { %v1079_v48 = vmul.f32 %v1030_v62, %v983_v5  ;;  %v991_v5 = vld [vmem:[#allocation4 + $0x78] sm:$0xff] }
 0x2a9   :  { %v2433_v30 = vadd.f32 %v1095_v2, %v1079_v48 }
 0x2aa   :  { %1133 = vadd.xlane.f32.xlu1 %v1132_v43 }
 0x2ab   :  { %v1141_v40 = vsel %vm64_vm0, %v2433_v30, 0.0 }
 0x2b2   :  { %1142 = vadd.xlane.f32.xlu1 %v1141_v40  ;;  %v1103_v40 = vld [vmem:[%s2773_s3 + $0x78] sm:$0xff] }
 0x2ba   :  { %v1050_v61 = vpop.permute.xlu1 %1049 }
 0x2bb   :  { %v1083_v36 = vmul.f32 %v1050_v61, %v987_v21  ;;  %v1838_v61 = vmov 16.0  }
 0x2bc   :  { %1801 = vrcp.f32 %v1838_v61 }
 0x2bd   :  { %v2440_v9 = vadd.f32 %v1099_v42, %v1083_v36 }
 0x2bf   :  { %v1153_v27 = vsel %vm64_vm0, %v2440_v9, 0.0 }
 0x2c0   :  { %1154 = vadd.xlane.f32.xlu0 %v1153_v27 }
 0x2c2   :  { %v1005_v28 = vpop.permute.xlu1 %1004  ;;  %v1802_v42 = vpop.eup %1801 }
 0x2c3   :  { %v1074_v0 = vmul.f32 %v1005_v28, %v978_v1  ;;  %v1055_v18 = vpop.permute.xlu0 %1054  ;;  %v1169_v27 = vmul.f32 16.0, %v1802_v42  ;;  %vm1173_vm2 = vweird.f32 %v1802_v42 }
 0x2c4   :  { %v1084_v58 = vmul.f32 %v1055_v18, %v988_v3 }
 0x2c5   :  { %v2450_v8 = vadd.f32 %v1090_v53, %v1074_v0  ;;  %v1170_v1 = vsub.f32 1.0, %v1169_v27 }
 0x2c6   :  { %v2452_v25 = vadd.f32 %v1100_v51, %v1084_v58 }
 0x2c7   :  { %v1126_v11 = vsel %vm64_vm0, %v2450_v8, 0.0  ;;  %v1171_v28 = vmul.f32 %v1802_v42, %v1170_v1 }
 0x2c8   :  { %1127 = vadd.xlane.f32.xlu0 %v1126_v11  ;;  %v1156_v10 = vsel %vm64_vm0, %v2452_v25, 0.0 }
 0x2c9   :  { %1157 = vadd.xlane.f32.xlu2 %v1156_v10  ;;  %v1172_v53 = vadd.f32 %v1802_v42, %v1171_v28 }
 0x2ca   :  { %v1065_v14 = vpop.permute.xlu1 %1064 }
 0x2cb   :  { %v1010_v59 = vpop.permute.xlu0 %1009  ;;  %v1086_v49 = vmul.f32 %v1065_v14, %v990_v29  ;;  %v2507_v0 = vsel %vm1173_vm2, %v1802_v42, %v1172_v53 }
 0x2cc   :  { %v1075_v31 = vmul.f32 %v1010_v59, %v979_v19 }
 0x2cd   :  { %v2489_v54 = vadd.f32 %v1102_v26, %v1086_v49 }
 0x2ce   :  { %v2461_v12 = vadd.f32 %v1091_v55, %v1075_v31 }
 0x2cf   :  { %v1162_v48 = vsel %vm64_vm0, %v2489_v54, 0.0 }
 0x2d0   :  { %v1129_v34 = vsel %vm64_vm0, %v2461_v12, 0.0 }
 0x2d1   :  { %1130 = vadd.xlane.f32.xlu2 %v1129_v34 }
 0x2d2   :  { %v1020_v60 = vpop.permute.xlu1 %1019 }
 0x2d3   :  { %v1077_v39 = vmul.f32 %v1020_v60, %v981_v6  ;;  %v1070_v44 = vpop.permute.xlu0 %1069 }
 0x2d4   :  { %v1087_v43 = vmul.f32 %v1070_v44, %v991_v5 }
 0x2d5   :  { %v2468_v17 = vadd.f32 %v1093_v13, %v1077_v39 }
 0x2d6   :  { %v2503_v21 = vadd.f32 %v1103_v40, %v1087_v43 }
 0x2d7   :  { %v1135_v46 = vsel %vm64_vm0, %v2468_v17, 0.0 }
 0x2d8   :  { %1136 = vadd.xlane.f32.xlu0 %v1135_v46  ;;  %v1165_v36 = vsel %vm64_vm0, %v2503_v21, 0.0 }
 0x2da   :  { %v1035_v37 = vpop.permute.xlu1 %1034 }
 0x2db   :  { %v1080_v24 = vmul.f32 %v1035_v37, %v984_v50  ;;  %v1025_v47 = vpop.permute.xlu0 %1024 }
 0x2dc   :  { %v1078_v7 = vmul.f32 %v1025_v47, %v982_v15 }
 0x2dd   :  { %v2478_v52 = vadd.f32 %v1096_v23, %v1080_v24 }
 0x2de   :  { %v2480_v16 = vadd.f32 %v1094_v35, %v1078_v7 }
 0x2df   :  { %v1144_v20 = vsel %vm64_vm0, %v2478_v52, 0.0 }
 0x2e0   :  { %1145 = vadd.xlane.f32.xlu0 %v1144_v20  ;;  %v1138_v56 = vsel %vm64_vm0, %v2480_v16, 0.0 }
 0x2e1   :  { %1139 = vadd.xlane.f32.xlu2 %v1138_v56 }
 0x2e3   :  { %v1040_v38 = vpop.permute.xlu0 %1039 }
 0x2e4   :  { %v1081_v22 = vmul.f32 %v1040_v38, %v985_v32 }
 0x2e6   :  { %v2494_v62 = vadd.f32 %v1097_v63, %v1081_v22 }
 0x2e8   :  { %1163 = vadd.xlane.f32.xlu0 %v1162_v48  ;;  %v1147_v2 = vsel %vm64_vm0, %v2494_v62, 0.0 }
 0x2e9   :  { %1148 = vadd.xlane.f32.xlu2 %v1147_v2 }
 0x2f1   :  { %1166 = vadd.xlane.f32.xlu2 %v1165_v36 }
 0x305   :  { %v1152_v3 = vpop.xlane.xlu1 %1151 }
 0x306   :  { %v1185_v18 = vmul.f32 %v2507_v0, %v1152_v3  ;;  %v1122_v51 = vpop.xlane.xlu2 %1121 }
 0x307   :  { %v1175_v58 = vmul.f32 %v2507_v0, %v1122_v51 }
 0x308   :  { %v2512_v11 = vsub.f32 %v2398_v57, %v1185_v18 }
 0x309   :  { %v2515_v10 = vsub.f32 %v2403_v4, %v1175_v58 }
 0x30a   :  { %v1217_v14 = vmul.f32 %v2512_v11, %v2512_v11 }
 0x30b   :  { %v1207_v19 = vmul.f32 %v2515_v10, %v2515_v10 }
 0x30c   :  { %v1253_v59 = vsel %vm64_vm0, %v1217_v14, 0.0 }
 0x30d   :  { %v1125_v55 = vpop.xlane.xlu1 %1124  ;;  %1254 = vadd.xlane.f32.xlu0 %v1253_v59  ;;  %v1223_v31 = vsel %vm64_vm0, %v1207_v19, 0.0 }
 0x30e   :  { %v1176_v34 = vmul.f32 %v2507_v0, %v1125_v55  ;;  %1224 = vadd.xlane.f32.xlu1 %v1223_v31 }
 0x310   :  { %v2525_v57 = vsub.f32 %v2412_v45, %v1176_v34 }
 0x312   :  { %v1208_v4 = vmul.f32 %v2525_v57, %v2525_v57 }
 0x314   :  { %v1226_v6 = vsel %vm64_vm0, %v1208_v4, 0.0 }
 0x315   :  { %v1161_v60 = vpop.xlane.xlu1 %1160  ;;  %1227 = vadd.xlane.f32.xlu0 %v1226_v6 }
 0x316   :  { %v1188_v23 = vmul.f32 %v2507_v0, %v1161_v60 }
 0x31d   :  { %v1134_v13 = vpop.xlane.xlu1 %1133 }
 0x31e   :  { %v1179_v39 = vmul.f32 %v2507_v0, %v1134_v13 }
 0x320   :  { %v2532_v44 = vsub.f32 %v2426_v41, %v1179_v39  ;;  %v2545_v41 = vsub.f32 %v2419_v33, %v1188_v23 }
 0x322   :  { %v1211_v46 = vmul.f32 %v2532_v44, %v2532_v44  ;;  %v1220_v35 = vmul.f32 %v2545_v41, %v2545_v41 }
 0x324   :  { %v1235_v50 = vsel %vm64_vm0, %v1211_v46, 0.0  ;;  %v1262_v49 = vsel %vm64_vm0, %v1220_v35, 0.0 }
 0x325   :  { %v1143_v45 = vpop.xlane.xlu1 %1142  ;;  %1236 = vadd.xlane.f32.xlu0 %v1235_v50 }
 0x326   :  { %v1182_v37 = vmul.f32 %v2507_v0, %v1143_v45 }
 0x328   :  { %v2540_v24 = vsub.f32 %v2433_v30, %v1182_v37 }
 0x32a   :  { %v1214_v15 = vmul.f32 %v2540_v24, %v2540_v24 }
 0x32c   :  { %v1244_v47 = vsel %vm64_vm0, %v1214_v15, 0.0 }
 0x32d   :  { %1245 = vadd.xlane.f32.xlu0 %v1244_v47 }
 0x333   :  { %v1155_v7 = vpop.xlane.xlu0 %1154 }
 0x334   :  { %v1186_v29 = vmul.f32 %v2507_v0, %v1155_v7 }
 0x335   :  { %1263 = vadd.xlane.f32.xlu0 %v1262_v49 }
 0x336   :  { %v2553_v30 = vsub.f32 %v2440_v9, %v1186_v29 }
 0x338   :  { %v1218_v20 = vmul.f32 %v2553_v30, %v2553_v30 }
 0x33a   :  { %v1256_v33 = vsel %vm64_vm0, %v1218_v20, 0.0 }
 0x33b   :  { %1257 = vadd.xlane.f32.xlu2 %v1256_v33  ;;  %v1128_v56 = vpop.xlane.xlu0 %1127 }
 0x33c   :  { %v1158_v26 = vpop.xlane.xlu2 %1157  ;;  %v1177_v32 = vmul.f32 %v2507_v0, %v1128_v56 }
 0x33d   :  { %v1187_v38 = vmul.f32 %v2507_v0, %v1158_v26 }
 0x33e   :  { %v2561_v63 = vsub.f32 %v2450_v8, %v1177_v32 }
 0x33f   :  { %v2564_v22 = vsub.f32 %v2452_v25, %v1187_v38 }
 0x340   :  { %v1209_v9 = vmul.f32 %v2561_v63, %v2561_v63 }
 0x341   :  { %v1219_v5 = vmul.f32 %v2564_v22, %v2564_v22 }
 0x342   :  { %v1229_v48 = vsel %vm64_vm0, %v1209_v9, 0.0 }
 0x343   :  { %v1259_v43 = vsel %vm64_vm0, %v1219_v5, 0.0  ;;  %1230 = vadd.xlane.f32.xlu2 %v1229_v48 }
 0x344   :  { %1260 = vadd.xlane.f32.xlu1 %v1259_v43  ;;  %v1131_v2 = vpop.xlane.xlu2 %1130 }
 0x345   :  { %v1178_v40 = vmul.f32 %v2507_v0, %v1131_v2 }
 0x347   :  { %v2574_v8 = vsub.f32 %v2461_v12, %v1178_v40 }
 0x349   :  { %v1210_v25 = vmul.f32 %v2574_v8, %v2574_v8 }
 0x34b   :  { %v1232_v61 = vsel %vm64_vm0, %v1210_v25, 0.0  ;;  %v1137_v42 = vpop.xlane.xlu0 %1136 }
 0x34c   :  { %1233 = vadd.xlane.f32.xlu1 %v1232_v61  ;;  %v1180_v36 = vmul.f32 %v2507_v0, %v1137_v42  ;;  %v2627_v61 = vld [vmem:[%s2774_s5] ss:$0 sm:$0xff] }
 0x34e   :  { %v2581_v27 = vsub.f32 %v2468_v17, %v1180_v36 }
 0x350   :  { %v1212_v1 = vmul.f32 %v2581_v27, %v2581_v27 }
 0x352   :  { %v1238_v28 = vsel %vm64_vm0, %v1212_v1, 0.0 }
 0x353   :  { %1239 = vadd.xlane.f32.xlu2 %v1238_v28  ;;  %v1146_v12 = vpop.xlane.xlu0 %1145  ;;  %v2632_v28 = vld [vmem:[%s2775_s6] ss:$0 sm:$0xff] }
 0x354   :  { %v1140_v53 = vpop.xlane.xlu2 %1139  ;;  %v1183_v3 = vmul.f32 %v2507_v0, %v1146_v12 }
 0x355   :  { %v1181_v18 = vmul.f32 %v2507_v0, %v1140_v53 }
 0x356   :  { %v2589_v51 = vsub.f32 %v2478_v52, %v1183_v3 }
 0x357   :  { %v2592_v58 = vsub.f32 %v2480_v16, %v1181_v18 }
 0x358   :  { %v1215_v17 = vmul.f32 %v2589_v51, %v2589_v51 }
 0x359   :  { %v1213_v14 = vmul.f32 %v2592_v58, %v2592_v58 }
 0x35a   :  { %v1247_v19 = vsel %vm64_vm0, %v1215_v17, 0.0 }
 0x35b   :  { %v1241_v59 = vsel %vm64_vm0, %v1213_v14, 0.0  ;;  %1248 = vadd.xlane.f32.xlu2 %v1247_v19  ;;  %v1164_v55 = vpop.xlane.xlu0 %1163 }
 0x35c   :  { %1242 = vadd.xlane.f32.xlu1 %v1241_v59  ;;  %v1149_v31 = vpop.xlane.xlu2 %1148  ;;  %v1189_v52 = vmul.f32 %v2507_v0, %v1164_v55 }
 0x35d   :  { %v1184_v34 = vmul.f32 %v2507_v0, %v1149_v31 }
 0x35e   :  { %v2603_v16 = vsub.f32 %v2489_v54, %v1189_v52 }
 0x35f   :  { %v2606_v4 = vsub.f32 %v2494_v62, %v1184_v34 }
 0x360   :  { %v1221_v6 = vmul.f32 %v2603_v16, %v2603_v16 }
 0x361   :  { %v1216_v60 = vmul.f32 %v2606_v4, %v2606_v4 }
 0x362   :  { %v1265_v13 = vsel %vm64_vm0, %v1221_v6, 0.0 }
 0x363   :  { %v1250_v39 = vsel %vm64_vm0, %v1216_v60, 0.0  ;;  %1266 = vadd.xlane.f32.xlu2 %v1265_v13 }
 0x364   :  { %1251 = vadd.xlane.f32.xlu1 %v1250_v39  ;;  %v1167_v46 = vpop.xlane.xlu2 %1166 }
 0x365   :  { %v1190_v50 = vmul.f32 %v2507_v0, %v1167_v46 }
 0x367   :  { %v2616_v54 = vsub.f32 %v2503_v21, %v1190_v50 }
 0x369   :  { %v1222_v62 = vmul.f32 %v2616_v54, %v2616_v54 }
 0x36b   :  { %v1268_v45 = vsel %vm64_vm0, %v1222_v62, 0.0 }
 0x36c   :  { %1269 = vadd.xlane.f32.xlu1 %v1268_v45 }
 0x380   :  { %v1255_v37 = vpop.xlane.xlu0 %1254 }
 0x381   :  { %v1281_v23 = vmul.f32 %v1255_v37, %v2507_v0  ;;  %v1225_v15 = vpop.xlane.xlu1 %1224 }
 0x382   :  { %v1271_v47 = vmul.f32 %v1225_v15, %v2507_v0 }
 0x383   :  { %v1297_v35 = vadd.f32 1e-05, %v1281_v23 }
 0x384   :  { %v1287_v7 = vadd.f32 1e-05, %v1271_v47 }
 0x385   :  { %1803 = vrsqrt.f32 %v1297_v35  ;;  %vm1409_vm5 = vweird.f32 %v1297_v35 }
 0x386   :  { %1805 = vrsqrt.f32 %v1287_v7  ;;  %vm1309_vm7 = vweird.f32 %v1287_v7 }
 0x388   :  { %v1228_v29 = vpop.xlane.xlu0 %1227 }
 0x389   :  { %v1272_v21 = vmul.f32 %v1228_v29, %v2507_v0 }
 0x38b   :  { %v1804_v49 = vpop.eup %1803  ;;  %v1288_v20 = vadd.f32 1e-05, %v1272_v21 }
 0x38c   :  { %v1806_v33 = vpop.eup %1805  ;;  %v1404_v56 = vmul.f32 %v1804_v49, %v1297_v35  ;;  %vm1410_vm3 = vweird.f32 %v1804_v49 }
 0x38d   :  { %v1304_v26 = vmul.f32 %v1806_v33, %v1287_v7  ;;  %1807 = vrsqrt.f32 %v1288_v20  ;;  %vm1310_vm4 = vweird.f32 %v1806_v33  ;;  %vm1411_vm6 = vmor %vm1409_vm5, %vm1410_vm3  ;;  %vm1319_vm10 = vweird.f32 %v1288_v20 }
 0x38e   :  { %v1405_v32 = vmul.f32 %v1804_v49, %v1404_v56  ;;  %vm1311_vm8 = vmor %vm1309_vm7, %vm1310_vm4 }
 0x38f   :  { %v1305_v38 = vmul.f32 %v1806_v33, %v1304_v26 }
 0x390   :  { %v1406_v9 = vmul.f32 0.5, %v1405_v32 }
 0x391   :  { %v1306_v5 = vmul.f32 0.5, %v1305_v38 }
 0x392   :  { %v1407_v48 = vsub.f32 1.5, %v1406_v9 }
 0x393   :  { %v1808_v43 = vpop.eup %1807  ;;  %v1307_v2 = vsub.f32 1.5, %v1306_v5 }
 0x394   :  { %v1408_v40 = vmul.f32 %v1804_v49, %v1407_v48  ;;  %v1314_v25 = vmul.f32 %v1808_v43, %v1288_v20  ;;  %vm1320_vm9 = vweird.f32 %v1808_v43 }
 0x395   :  { %v1308_v42 = vmul.f32 %v1806_v33, %v1307_v2  ;;  %vm1321_vm11 = vmor %vm1319_vm10, %vm1320_vm9 }
 0x396   :  { %v1412_v36 = vsel %vm1411_vm6, %v1804_v49, %v1408_v40  ;;  %v1315_v1 = vmul.f32 %v1808_v43, %v1314_v25 }
 0x397   :  { %v1473_v12 = vmul.f32 %v1412_v36, %v2512_v11  ;;  %v1312_v53 = vsel %vm1311_vm8, %v1806_v33, %v1308_v42 }
 0x398   :  { %v1463_v3 = vmul.f32 %v1312_v53, %v2515_v10  ;;  %v1316_v18 = vmul.f32 0.5, %v1315_v1  ;;  %v1237_v17 = vpop.xlane.xlu0 %1236 }
 0x399   :  { %v1493_v14 = vmul.f32 %v2627_v61, %v1473_v12  ;;  %v1275_v19 = vmul.f32 %v1237_v17, %v2507_v0 }
 0x39a   :  { %v1483_v59 = vmul.f32 %v2627_v61, %v1463_v3  ;;  %v1317_v55 = vsub.f32 1.5, %v1316_v18 }
 0x39b   :  { %v1513_v31 = vadd.f32 %v2632_v28, %v1493_v14  ;;  %v1291_v52 = vadd.f32 1e-05, %v1275_v19 }
 0x39c   :  { %v1503_v34 = vadd.f32 %v2632_v28, %v1483_v59  ;;  %v1318_v6 = vmul.f32 %v1808_v43, %v1317_v55 }
 0x39d   :  { %v1529_v11 = vmax.f32 %v1513_v31, 0.0  ;;  %1809 = vrsqrt.f32 %v1291_v52  ;;  %vm1349_vm13 = vweird.f32 %v1291_v52 }
 0x39e   :  { %v1519_v10 = vmax.f32 %v1503_v34, 0.0  ;;  %v1322_v60 = vsel %vm1321_vm11, %v1808_v43, %v1318_v6 }
 0x39f   :  { %1545 = vst.msk [vmem:[%s2776_s7 + $0x50] sm:$0xff] %vm64_vm0, %v1529_v11  ;;  %v1464_v13 = vmul.f32 %v1322_v60, %v2525_v57 }
 0x3a0   :  { %1535 = vst.msk [vmem:[%s2776_s7] sm:$0xff] %vm64_vm0, %v1519_v10  ;;  %v1246_v39 = vpop.xlane.xlu0 %1245 }
 0x3a1   :  { %v1484_v46 = vmul.f32 %v2627_v61, %v1464_v13  ;;  %v1278_v50 = vmul.f32 %v1246_v39, %v2507_v0 }
 0x3a3   :  { %v1810_v62 = vpop.eup %1809  ;;  %v1504_v45 = vadd.f32 %v2632_v28, %v1484_v46  ;;  %v1294_v37 = vadd.f32 1e-05, %v1278_v50 }
 0x3a4   :  { %v1344_v23 = vmul.f32 %v1810_v62, %v1291_v52  ;;  %vm1350_vm12 = vweird.f32 %v1810_v62 }
 0x3a5   :  { %v1520_v15 = vmax.f32 %v1504_v45, 0.0  ;;  %1811 = vrsqrt.f32 %v1294_v37  ;;  %vm1351_vm14 = vmor %vm1349_vm13, %vm1350_vm12  ;;  %vm1379_vm1 = vweird.f32 %v1294_v37 }
 0x3a6   :  { %v1345_v47 = vmul.f32 %v1810_v62, %v1344_v23 }
 0x3a7   :  { %1536 = vst.msk [vmem:[%s2776_s7 + $0x8] sm:$0xff] %vm64_vm0, %v1520_v15 }
 0x3a8   :  { %v1346_v57 = vmul.f32 0.5, %v1345_v47  ;;  %v1264_v35 = vpop.xlane.xlu0 %1263 }
 0x3a9   :  { %v1284_v7 = vmul.f32 %v1264_v35, %v2507_v0 }
 0x3aa   :  { %v1347_v29 = vsub.f32 1.5, %v1346_v57 }
 0x3ab   :  { %v1812_v21 = vpop.eup %1811  ;;  %v1300_v49 = vadd.f32 1e-05, %v1284_v7 }
 0x3ac   :  { %v1348_v20 = vmul.f32 %v1810_v62, %v1347_v29  ;;  %v1374_v33 = vmul.f32 %v1812_v21, %v1294_v37  ;;  %vm1380_vm15 = vweird.f32 %v1812_v21 }
 0x3ad   :  { %1813 = vrsqrt.f32 %v1300_v49  ;;  %vm1381_vm2 = vmor %vm1379_vm1, %vm1380_vm15  ;;  %vm1439_vm4 = vweird.f32 %v1300_v49 }
 0x3ae   :  { %v1352_v56 = vsel %vm1351_vm14, %v1810_v62, %v1348_v20  ;;  %v1375_v26 = vmul.f32 %v1812_v21, %v1374_v33  ;;  %v1258_v32 = vpop.xlane.xlu2 %1257 }
 0x3af   :  { %v1467_v38 = vmul.f32 %v1352_v56, %v2532_v44  ;;  %v1282_v9 = vmul.f32 %v1258_v32, %v2507_v0 }
 0x3b0   :  { %v1376_v5 = vmul.f32 0.5, %v1375_v26 }
 0x3b1   :  { %v1487_v48 = vmul.f32 %v2627_v61, %v1467_v38  ;;  %v1298_v43 = vadd.f32 1e-05, %v1282_v9 }
 0x3b2   :  { %v1377_v2 = vsub.f32 1.5, %v1376_v5 }
 0x3b3   :  { %v1814_v40 = vpop.eup %1813  ;;  %v1507_v25 = vadd.f32 %v2632_v28, %v1487_v48  ;;  %1815 = vrsqrt.f32 %v1298_v43  ;;  %vm1419_vm7 = vweird.f32 %v1298_v43 }
 0x3b4   :  { %v1378_v42 = vmul.f32 %v1812_v21, %v1377_v2  ;;  %v1434_v36 = vmul.f32 %v1814_v40, %v1300_v49  ;;  %vm1440_vm3 = vweird.f32 %v1814_v40 }
 0x3b5   :  { %v1523_v1 = vmax.f32 %v1507_v25, 0.0  ;;  %vm1441_vm5 = vmor %vm1439_vm4, %vm1440_vm3 }
 0x3b6   :  { %v1382_v12 = vsel %vm1381_vm2, %v1812_v21, %v1378_v42  ;;  %v1435_v53 = vmul.f32 %v1814_v40, %v1434_v36  ;;  %v1231_v44 = vpop.xlane.xlu2 %1230 }
 0x3b7   :  { %1539 = vst.msk [vmem:[%s2776_s7 + $0x20] sm:$0xff] %vm64_vm0, %v1523_v1  ;;  %v1470_v3 = vmul.f32 %v1382_v12, %v2540_v24  ;;  %v1261_v18 = vpop.xlane.xlu1 %1260  ;;  %v1273_v17 = vmul.f32 %v1231_v44, %v2507_v0 }
 0x3b8   :  { %v1436_v14 = vmul.f32 0.5, %v1435_v53  ;;  %v1283_v19 = vmul.f32 %v1261_v18, %v2507_v0 }
 0x3b9   :  { %v1816_v59 = vpop.eup %1815  ;;  %v1490_v55 = vmul.f32 %v2627_v61, %v1470_v3  ;;  %v1289_v31 = vadd.f32 1e-05, %v1273_v17 }
 0x3ba   :  { %v1437_v52 = vsub.f32 1.5, %v1436_v14  ;;  %v1414_v34 = vmul.f32 %v1816_v59, %v1298_v43  ;;  %v1299_v6 = vadd.f32 1e-05, %v1283_v19  ;;  %vm1420_vm6 = vweird.f32 %v1816_v59 }
 0x3bb   :  { %v1510_v11 = vadd.f32 %v2632_v28, %v1490_v55  ;;  %1817 = vrsqrt.f32 %v1289_v31  ;;  %vm1421_vm8 = vmor %vm1419_vm7, %vm1420_vm6  ;;  %vm1329_vm11 = vweird.f32 %v1289_v31 }
 0x3bc   :  { %v1438_v10 = vmul.f32 %v1814_v40, %v1437_v52  ;;  %v1415_v24 = vmul.f32 %v1816_v59, %v1414_v34  ;;  %1819 = vrsqrt.f32 %v1299_v6  ;;  %vm1429_vm12 = vweird.f32 %v1299_v6 }
 0x3bd   :  { %v1526_v60 = vmax.f32 %v1510_v11, 0.0 }
 0x3be   :  { %v1442_v13 = vsel %vm1441_vm5, %v1814_v40, %v1438_v10  ;;  %v1416_v39 = vmul.f32 0.5, %v1415_v24 }
 0x3bf   :  { %1542 = vst.msk [vmem:[%s2776_s7 + $0x38] sm:$0xff] %vm64_vm0, %v1526_v60  ;;  %v1476_v46 = vmul.f32 %v1442_v13, %v2545_v41  ;;  %v1234_v50 = vpop.xlane.xlu1 %1233 }
 0x3c0   :  { %v1417_v62 = vsub.f32 1.5, %v1416_v39  ;;  %v1274_v45 = vmul.f32 %v1234_v50, %v2507_v0 }
 0x3c1   :  { %v1818_v37 = vpop.eup %1817  ;;  %v1496_v23 = vmul.f32 %v2627_v61, %v1476_v46 }
 0x3c2   :  { %v1820_v15 = vpop.eup %1819  ;;  %v1418_v47 = vmul.f32 %v1816_v59, %v1417_v62  ;;  %v1324_v57 = vmul.f32 %v1818_v37, %v1289_v31  ;;  %v1290_v35 = vadd.f32 1e-05, %v1274_v45  ;;  %vm1330_vm9 = vweird.f32 %v1818_v37 }
 0x3c3   :  { %v1516_v7 = vadd.f32 %v2632_v28, %v1496_v23  ;;  %v1424_v29 = vmul.f32 %v1820_v15, %v1299_v6  ;;  %vm1430_vm10 = vweird.f32 %v1820_v15  ;;  %vm1331_vm13 = vmor %vm1329_vm11, %vm1330_vm9 }
 0x3c4   :  { %v1422_v21 = vsel %vm1421_vm8, %v1816_v59, %v1418_v47  ;;  %v1325_v49 = vmul.f32 %v1818_v37, %v1324_v57  ;;  %1821 = vrsqrt.f32 %v1290_v35  ;;  %vm1431_vm14 = vmor %vm1429_vm12, %vm1430_vm10  ;;  %vm1339_vm1 = vweird.f32 %v1290_v35 }
 0x3c5   :  { %v1532_v41 = vmax.f32 %v1516_v7, 0.0  ;;  %v1474_v20 = vmul.f32 %v1422_v21, %v2553_v30  ;;  %v1425_v33 = vmul.f32 %v1820_v15, %v1424_v29 }
 0x3c6   :  { %v1326_v56 = vmul.f32 0.5, %v1325_v49  ;;  %v1240_v26 = vpop.xlane.xlu2 %1239 }
 0x3c7   :  { %1548 = vst.msk [vmem:[%s2776_s7 + $0x68] sm:$0xff] %vm64_vm0, %v1532_v41  ;;  %v1494_v32 = vmul.f32 %v2627_v61, %v1474_v20  ;;  %v1426_v38 = vmul.f32 0.5, %v1425_v33  ;;  %v1276_v9 = vmul.f32 %v1240_v26, %v2507_v0 }
 0x3c8   :  { %v1327_v5 = vsub.f32 1.5, %v1326_v56 }
 0x3c9   :  { %v1514_v48 = vadd.f32 %v2632_v28, %v1494_v32  ;;  %v1427_v43 = vsub.f32 1.5, %v1426_v38  ;;  %v1292_v30 = vadd.f32 1e-05, %v1276_v9 }
 0x3ca   :  { %v1822_v2 = vpop.eup %1821  ;;  %v1328_v40 = vmul.f32 %v1818_v37, %v1327_v5 }
 0x3cb   :  { %v1530_v25 = vmax.f32 %v1514_v48, 0.0  ;;  %v1428_v42 = vmul.f32 %v1820_v15, %v1427_v43  ;;  %v1334_v36 = vmul.f32 %v1822_v2, %v1290_v35  ;;  %1823 = vrsqrt.f32 %v1292_v30 }
 0x3cc   :  { %v1332_v1 = vsel %vm1331_vm13, %v1818_v37, %v1328_v40  ;;  %vm1340_vm15 = vweird.f32 %v1822_v2  ;;  %vm1359_vm4 = vweird.f32 %v1292_v30 }
 0x3cd   :  { %1546 = vst.msk [vmem:[%s2776_s7 + $0x58] sm:$0xff] %vm64_vm0, %v1530_v25  ;;  %v1432_v12 = vsel %vm1431_vm14, %v1820_v15, %v1428_v42  ;;  %v1465_v53 = vmul.f32 %v1332_v1, %v2561_v63  ;;  %v1335_v44 = vmul.f32 %v1822_v2, %v1334_v36  ;;  %vm1341_vm2 = vmor %vm1339_vm1, %vm1340_vm15 }
 0x3ce   :  { %v1475_v3 = vmul.f32 %v1432_v12, %v2564_v22  ;;  %v1249_v18 = vpop.xlane.xlu2 %1248 }
 0x3cf   :  { %v1485_v17 = vmul.f32 %v2627_v61, %v1465_v53  ;;  %v1336_v14 = vmul.f32 0.5, %v1335_v44  ;;  %v1243_v19 = vpop.xlane.xlu1 %1242  ;;  %v1279_v59 = vmul.f32 %v1249_v18, %v2507_v0 }
 0x3d0   :  { %v1495_v55 = vmul.f32 %v2627_v61, %v1475_v3  ;;  %v1277_v31 = vmul.f32 %v1243_v19, %v2507_v0 }
 0x3d1   :  { %v1505_v52 = vadd.f32 %v2632_v28, %v1485_v17  ;;  %v1337_v34 = vsub.f32 1.5, %v1336_v14  ;;  %v2698_v6 = vadd.f32 1e-05, %v1279_v59  ;;  %v1824_v63 = vpop.eup %1823 }
 0x3d2   :  { %v1515_v22 = vadd.f32 %v2632_v28, %v1495_v55  ;;  %v1293_v11 = vadd.f32 1e-05, %v1277_v31  ;;  %v1354_v60 = vmul.f32 %v1824_v63, %v1292_v30  ;;  %vm1360_vm3 = vweird.f32 %v1824_v63 }
 0x3d3   :  { %v1521_v10 = vmax.f32 %v1505_v52, 0.0  ;;  %v1338_v24 = vmul.f32 %v1822_v2, %v1337_v34  ;;  %vm1361_vm5 = vmor %vm1359_vm4, %vm1360_vm3  ;;  %vm1389_vm10 = vweird.f32 %v2698_v6 }
 0x3d4   :  { %v1531_v13 = vmax.f32 %v1515_v22, 0.0  ;;  %1825 = vrsqrt.f32 %v1293_v11  ;;  %v1355_v46 = vmul.f32 %v1824_v63, %v1354_v60  ;;  %vm1369_vm8 = vweird.f32 %v1293_v11 }
 0x3d5   :  { %1537 = vst.msk [vmem:[%s2776_s7 + $0x10] sm:$0xff] %vm64_vm0, %v1521_v10  ;;  %v1342_v39 = vsel %vm1341_vm2, %v1822_v2, %v1338_v24  ;;  %1827 = vrsqrt.f32 %v2698_v6 }
 0x3d6   :  { %1547 = vst.msk [vmem:[%s2776_s7 + $0x60] sm:$0xff] %vm64_vm0, %v1531_v13  ;;  %v1466_v50 = vmul.f32 %v1342_v39, %v2574_v8  ;;  %v1267_v62 = vpop.xlane.xlu2 %1266  ;;  %v1356_v45 = vmul.f32 0.5, %v1355_v46 }
 0x3d7   :  { %v1252_v37 = vpop.xlane.xlu1 %1251  ;;  %v1285_v23 = vmul.f32 %v1267_v62, %v2507_v0 }
 0x3d8   :  { %v1486_v15 = vmul.f32 %v2627_v61, %v1466_v50  ;;  %v1280_v47 = vmul.f32 %v1252_v37, %v2507_v0  ;;  %v1357_v57 = vsub.f32 1.5, %v1356_v45 }
 0x3d9   :  { %v2714_v35 = vadd.f32 1e-05, %v1285_v23 }
 0x3da   :  { %v1826_v7 = vpop.eup %1825  ;;  %v1506_v29 = vadd.f32 %v2632_v28, %v1486_v15  ;;  %v1296_v21 = vadd.f32 1e-05, %v1280_v47  ;;  %v1358_v41 = vmul.f32 %v1824_v63, %v1357_v57 }
 0x3db   :  { %v1828_v49 = vpop.eup %1827  ;;  %v1364_v8 = vmul.f32 %v1826_v7, %v1293_v11  ;;  %1829 = vrsqrt.f32 %v2714_v35  ;;  %vm1370_vm6 = vweird.f32 %v1826_v7  ;;  %vm1449_vm14 = vweird.f32 %v2714_v35 }
 0x3dc   :  { %v1522_v20 = vmax.f32 %v1506_v29, 0.0  ;;  %v1384_v33 = vmul.f32 %v1828_v49, %v2698_v6  ;;  %1831 = vrsqrt.f32 %v1296_v21  ;;  %v1362_v56 = vsel %vm1361_vm5, %v1824_v63, %v1358_v41  ;;  %vm1371_vm9 = vmor %vm1369_vm8, %vm1370_vm6 }
 0x3dd   :  { %v1365_v26 = vmul.f32 %v1826_v7, %v1364_v8  ;;  %v1468_v32 = vmul.f32 %v1362_v56, %v2581_v27  ;;  %vm1390_vm7 = vweird.f32 %v1828_v49  ;;  %vm1399_vm15 = vweird.f32 %v1296_v21 }
 0x3de   :  { %1538 = vst.msk [vmem:[%s2776_s7 + $0x18] sm:$0xff] %vm64_vm0, %v1522_v20  ;;  %v1385_v38 = vmul.f32 %v1828_v49, %v1384_v33  ;;  %vm1391_vm11 = vmor %vm1389_vm10, %vm1390_vm7 }
 0x3df   :  { %v1366_v9 = vmul.f32 0.5, %v1365_v26  ;;  %v1270_v5 = vpop.xlane.xlu1 %1269  ;;  %v1488_v48 = vmul.f32 %v2627_v61, %v1468_v32 }
 0x3e0   :  { %v1386_v43 = vmul.f32 0.5, %v1385_v38  ;;  %v1286_v30 = vmul.f32 %v1270_v5, %v2507_v0 }
 0x3e1   :  { %v1830_v2 = vpop.eup %1829  ;;  %v1367_v40 = vsub.f32 1.5, %v1366_v9  ;;  %v1508_v42 = vadd.f32 %v2632_v28, %v1488_v48 }
 0x3e2   :  { %v1832_v25 = vpop.eup %1831  ;;  %v1387_v36 = vsub.f32 1.5, %v1386_v43  ;;  %v1444_v1 = vmul.f32 %v1830_v2, %v2714_v35  ;;  %v1302_v53 = vadd.f32 1e-05, %v1286_v30  ;;  %vm1450_vm12 = vweird.f32 %v1830_v2 }
 0x3e3   :  { %v1368_v12 = vmul.f32 %v1826_v7, %v1367_v40  ;;  %v1394_v27 = vmul.f32 %v1832_v25, %v1296_v21  ;;  %v1524_v44 = vmax.f32 %v1508_v42, 0.0  ;;  %vm1400_vm13 = vweird.f32 %v1832_v25  ;;  %vm1451_vm1 = vmor %vm1449_vm14, %vm1450_vm12 }
 0x3e4   :  { %v1388_v3 = vmul.f32 %v1828_v49, %v1387_v36  ;;  %v1445_v0 = vmul.f32 %v1830_v2, %v1444_v1  ;;  %1833 = vrsqrt.f32 %v1302_v53  ;;  %vm1401_vm2 = vmor %vm1399_vm15, %vm1400_vm13  ;;  %vm1459_vm4 = vweird.f32 %v1302_v53 }
 0x3e5   :  { %v1372_v18 = vsel %vm1371_vm9, %v1826_v7, %v1368_v12  ;;  %v1395_v17 = vmul.f32 %v1832_v25, %v1394_v27  ;;  %1540 = vst.msk [vmem:[%s2776_s7 + $0x28] sm:$0xff] %vm64_vm0, %v1524_v44 }
 0x3e6   :  { %v1469_v14 = vmul.f32 %v1372_v18, %v2592_v58  ;;  %v1392_v19 = vsel %vm1391_vm11, %v1828_v49, %v1388_v3  ;;  %v1446_v59 = vmul.f32 0.5, %v1445_v0 }
 0x3e7   :  { %v1471_v55 = vmul.f32 %v1392_v19, %v2589_v51  ;;  %v1396_v31 = vmul.f32 0.5, %v1395_v17 }
 0x3e8   :  { %v1489_v52 = vmul.f32 %v2627_v61, %v1469_v14  ;;  %v1447_v34 = vsub.f32 1.5, %v1446_v59 }
 0x3e9   :  { %v1491_v6 = vmul.f32 %v2627_v61, %v1471_v55  ;;  %v1397_v63 = vsub.f32 1.5, %v1396_v31 }
 0x3ea   :  { %v1509_v22 = vadd.f32 %v2632_v28, %v1489_v52  ;;  %v1448_v11 = vmul.f32 %v1830_v2, %v1447_v34  ;;  %v1834_v10 = vpop.eup %1833 }
 0x3eb   :  { %v1511_v58 = vadd.f32 %v2632_v28, %v1491_v6  ;;  %v1398_v24 = vmul.f32 %v1832_v25, %v1397_v63  ;;  %v1454_v13 = vmul.f32 %v1834_v10, %v1302_v53  ;;  %vm1460_vm3 = vweird.f32 %v1834_v10 }
 0x3ec   :  { %v1525_v51 = vmax.f32 %v1509_v22, 0.0  ;;  %v1452_v60 = vsel %vm1451_vm1, %v1830_v2, %v1448_v11  ;;  %vm1461_vm5 = vmor %vm1459_vm4, %vm1460_vm3 }
 0x3ed   :  { %v1527_v39 = vmax.f32 %v1511_v58, 0.0  ;;  %v1402_v46 = vsel %vm1401_vm2, %v1832_v25, %v1398_v24  ;;  %v1477_v50 = vmul.f32 %v1452_v60, %v2603_v16  ;;  %v1455_v45 = vmul.f32 %v1834_v10, %v1454_v13 }
 0x3ee   :  { %1541 = vst.msk [vmem:[%s2776_s7 + $0x30] sm:$0xff] %vm64_vm0, %v1525_v51  ;;  %v1472_v62 = vmul.f32 %v1402_v46, %v2606_v4 }
 0x3ef   :  { %1543 = vst.msk [vmem:[%s2776_s7 + $0x40] sm:$0xff] %vm64_vm0, %v1527_v39  ;;  %v1497_v37 = vmul.f32 %v2627_v61, %v1477_v50  ;;  %v1456_v15 = vmul.f32 0.5, %v1455_v45 }
 0x3f0   :  { %v1492_v23 = vmul.f32 %v2627_v61, %v1472_v62 }
 0x3f1   :  { %v1517_v16 = vadd.f32 %v2632_v28, %v1497_v37  ;;  %v1457_v57 = vsub.f32 1.5, %v1456_v15 }
 0x3f2   :  { %v1512_v47 = vadd.f32 %v2632_v28, %v1492_v23 }
 0x3f3   :  { %v1533_v35 = vmax.f32 %v1517_v16, 0.0  ;;  %v1458_v4 = vmul.f32 %v1834_v10, %v1457_v57 }
 0x3f4   :  { %v1528_v7 = vmax.f32 %v1512_v47, 0.0 }
 0x3f5   :  { %1549 = vst.msk [vmem:[%s2776_s7 + $0x70] sm:$0xff] %vm64_vm0, %v1533_v35  ;;  %v1462_v29 = vsel %vm1461_vm5, %v1834_v10, %v1458_v4 }
 0x3f6   :  { %1544 = vst.msk [vmem:[%s2776_s7 + $0x48] sm:$0xff] %vm64_vm0, %v1528_v7  ;;  %v1478_v21 = vmul.f32 %v1462_v29, %v2616_v54 }
 0x3f8   :  { %v1498_v49 = vmul.f32 %v2627_v61, %v1478_v21 }
 0x3fa   :  { %v1518_v41 = vadd.f32 %v2632_v28, %v1498_v49 }
 0x3fc   :  { %v1534_v8 = vmax.f32 %v1518_v41, 0.0 }
 0x3fe   :  { %1550 = vst.msk [vmem:[%s2776_s7 + $0x78] sm:$0xff] %vm64_vm0, %v1534_v8 }

// kernel: gtn_forward.5
= control target key start
LH: loop header
LB: loop body
LE: loop exit
PB: predicated region body
PF: predicated region fallthrough
CT: control target
= control target key end

     0   :  { %vm390_vm0 = vcmask 1043456   ;;  %vm160_vm1 = vcmask 64512   ;;  %vm31_vm2 = vcmask 7168   ;;  %s5680_s26 = smov 24   ;;  %vm4335_vm3 = vcmask 130048   ;;  %s8750_s1 = inlined_call_operand.vmem [shape: bf16[4,8,128], index: 1, kind: input, shape index: {}]   ;;  %s8751_s0 = inlined_call_operand.vmem [shape: bf16[4,128,8], index: 0, kind: input, shape index: {}]   ;;  %s8752_s4 = inlined_call_operand.vmem [shape: bf16[128,128], index: 4, kind: input, shape index: {}]   ;;  %s8753_s2 = inlined_call_operand.vmem [shape: bf16[4,128,8], index: 2, kind: input, shape index: {}]   ;;  %s8754_s3 = inlined_call_operand.vmem [shape: f32[128,32], index: 3, kind: input, shape index: {}]   ;;  %s8755_s5 = inlined_call_operand.vmem [shape: f32[1,32], index: 5, kind: input, shape index: {}]   ;;  %s8756_s6 = inlined_call_operand.vmem [shape: f32[1,32], index: 6, kind: input, shape index: {}]   ;;  %s8757_s7 = inlined_call_operand.vmem [shape: bf16[128,32], index: 7, kind: output, shape index: {}]  }
   0x1   :  { %v321_v0 = vld [vmem:[%s8750_s1] sm:$0xf]  ;;  %v322_v1 = vld [vmem:[%s8750_s1 + $0x4] sm:$0xf]  ;;  %v323_v2 = vld [vmem:[%s8750_s1 + $0x8] sm:$0xf] }
   0x2   :  { %v392_v3 = vsel %vm390_vm0, %v321_v0, 0  ;;  %v508_v4 = vsel %vm390_vm0, %v322_v1, 0  ;;  %v624_v5 = vsel %vm390_vm0, %v323_v2, 0  ;;  %v324_v6 = vld [vmem:[%s8750_s1 + $0xc] sm:$0xf]  ;;  %v5142_v7 = vld [vmem:[%s8751_s0] sm:$0xff] }
   0x3   :  { %401 = vmatpush.bf16.msra.mxu0 %v392_v3  ;;  %517 = vmatpush.bf16.msra.mxu1 %v508_v4  ;;  %v740_v8 = vsel %vm390_vm0, %v324_v6, 0  ;;  %v5150_v9 = vld [vmem:[%s8751_s0 + $0x40] sm:$0xff]  ;;  %v5143_v12 = vld [vmem:[%s8751_s0 + $0x8] sm:$0xff]  ;;  %v5144_v16 = vld [vmem:[%s8751_s0 + $0x10] sm:$0xff]  ;;  %vm4352_vm4 = vcmask 195584   ;;  %vm4401_vm5 = vcmask 261120  }
   0x4   :  { %v5158_v10 = vld [vmem:[%s8751_s0 + $0x80] sm:$0xff]  ;;  %633 = vmatpush.bf16.msra.mxu2 %v624_v5  ;;  %749 = vmatpush.bf16.msra.mxu3 %v740_v8  ;;  %v5151_v13 = vld [vmem:[%s8751_s0 + $0x48] sm:$0xff]  ;;  %v5152_v17 = vld [vmem:[%s8751_s0 + $0x50] sm:$0xff]  ;;  %vm4833_vm15 = vcmask 257024  }
   0x5   :  { %v5166_v11 = vld [vmem:[%s8751_s0 + $0xc0] sm:$0xff]  ;;  %v5159_v14 = vld [vmem:[%s8751_s0 + $0x88] sm:$0xff]  ;;  %v5160_v18 = vld [vmem:[%s8751_s0 + $0x90] sm:$0xff] }
   0x6   :  { %4886 = vmatmul.msk.bf16.vlgmr.msra.gmra.mxu0 %vm160_vm1, %v5142_v7  ;;  %4926 = vmatmul.msk.bf16.vlgmr.msra.gmra.mxu1 %vm160_vm1, %v5150_v9  ;;  %v5167_v15 = vld [vmem:[%s8751_s0 + $0xc8] sm:$0xff]  ;;  %v5168_v19 = vld [vmem:[%s8751_s0 + $0xd0] sm:$0xff]  ;;  %v5145_v20 = vld [vmem:[%s8751_s0 + $0x18] sm:$0xff] }
   0x7   :  { %4966 = vmatmul.msk.bf16.vlgmr.msra.gmra.mxu2 %vm160_vm1, %v5158_v10  ;;  %5006 = vmatmul.msk.bf16.vlgmr.msra.gmra.mxu3 %vm160_vm1, %v5166_v11  ;;  %v5153_v21 = vld [vmem:[%s8751_s0 + $0x58] sm:$0xff]  ;;  %v5146_v24 = vld [vmem:[%s8751_s0 + $0x20] sm:$0xff]  ;;  %v5147_v28 = vld [vmem:[%s8751_s0 + $0x28] sm:$0xff] }
   0x8   :  { %v5161_v22 = vld [vmem:[%s8751_s0 + $0x98] sm:$0xff]  ;;  %v5154_v25 = vld [vmem:[%s8751_s0 + $0x60] sm:$0xff]  ;;  %v5155_v29 = vld [vmem:[%s8751_s0 + $0x68] sm:$0xff] }
   0x9   :  { %v5169_v23 = vld [vmem:[%s8751_s0 + $0xd8] sm:$0xff]  ;;  %v5162_v26 = vld [vmem:[%s8751_s0 + $0xa0] sm:$0xff]  ;;  %v5163_v30 = vld [vmem:[%s8751_s0 + $0xa8] sm:$0xff] }
   0xa   :  { %v5170_v27 = vld [vmem:[%s8751_s0 + $0xe0] sm:$0xff]  ;;  %v5171_v31 = vld [vmem:[%s8751_s0 + $0xe8] sm:$0xff]  ;;  %v5148_v32 = vld [vmem:[%s8751_s0 + $0x30] sm:$0xff] }
   0xb   :  { %v5156_v33 = vld [vmem:[%s8751_s0 + $0x70] sm:$0xff]  ;;  %v5165_v36 = vld [vmem:[%s8751_s0 + $0xb8] sm:$0xff]  ;;  %v5207_v38 = vld [vmem:[%s8752_s4] sm:$0xff]  }
   0xc   :  { %v5164_v34 = vld [vmem:[%s8751_s0 + $0xb0] sm:$0xff]  ;;  %v5149_v37 = vld [vmem:[%s8751_s0 + $0x38] sm:$0xff]  ;;  %v5208_v41 = vunpack.c.l.bf16 %v5207_v38  ;;  %v5209_v51 = vunpack.c.h.bf16 %v5207_v38  ;;  %v5238_v55 = vld [vmem:[%s8752_s4 + $0x8] sm:$0xff]  }
   0xd   :  { %v5172_v35 = vld [vmem:[%s8751_s0 + $0xf0] sm:$0xff]  ;;  %v5157_v39 = vld [vmem:[%s8751_s0 + $0x78] sm:$0xff]  ;;  %v5212_v60 = vunpack.c.l.bf16 %v5238_v55  ;;  %v5213_v5 = vunpack.c.h.bf16 %v5238_v55 }
   0xe   :  { %v5173_v40 = vld [vmem:[%s8751_s0 + $0xf8] sm:$0xff]  ;;  %v5239_v8 = vld [vmem:[%s8752_s4 + $0x10] sm:$0xff]   ;;  %s5679_s0 = smov 16  }
   0xf   :  { %v5216_v11 = vunpack.c.l.bf16 %v5239_v8 }
  0x16   :  { %4887 = vmatmul.msk.bf16.gmra.mxu0 %vm160_vm1, %v5143_v12  ;;  %4927 = vmatmul.msk.bf16.gmra.mxu1 %vm160_vm1, %v5151_v13 }
  0x17   :  { %4967 = vmatmul.msk.bf16.gmra.mxu2 %vm160_vm1, %v5159_v14  ;;  %5007 = vmatmul.msk.bf16.gmra.mxu3 %vm160_vm1, %v5167_v15 }
  0x26   :  { %4888 = vmatmul.msk.bf16.gmra.mxu0 %vm160_vm1, %v5144_v16  ;;  %4928 = vmatmul.msk.bf16.gmra.mxu1 %vm160_vm1, %v5152_v17 }
  0x27   :  { %4968 = vmatmul.msk.bf16.gmra.mxu2 %vm160_vm1, %v5160_v18  ;;  %5008 = vmatmul.msk.bf16.gmra.mxu3 %vm160_vm1, %v5168_v19 }
  0x36   :  { %4889 = vmatmul.msk.bf16.gmra.mxu0 %vm160_vm1, %v5145_v20  ;;  %4929 = vmatmul.msk.bf16.gmra.mxu1 %vm160_vm1, %v5153_v21 }
  0x37   :  { %4969 = vmatmul.msk.bf16.gmra.mxu2 %vm160_vm1, %v5161_v22  ;;  %5009 = vmatmul.msk.bf16.gmra.mxu3 %vm160_vm1, %v5169_v23  ;;  %v5217_v22 = vunpack.c.h.bf16 %v5239_v8 }
  0x46   :  { %4890 = vmatmul.msk.bf16.gmra.mxu0 %vm160_vm1, %v5146_v24  ;;  %4930 = vmatmul.msk.bf16.gmra.mxu1 %vm160_vm1, %v5154_v25 }
  0x47   :  { %4970 = vmatmul.msk.bf16.gmra.mxu2 %vm160_vm1, %v5162_v26  ;;  %5010 = vmatmul.msk.bf16.gmra.mxu3 %vm160_vm1, %v5170_v27 }
  0x56   :  { %4891 = vmatmul.msk.bf16.gmra.mxu0 %vm160_vm1, %v5147_v28  ;;  %4931 = vmatmul.msk.bf16.gmra.mxu1 %vm160_vm1, %v5155_v29  ;;  %v5240_v28 = vld [vmem:[%s8752_s4 + $0x18] sm:$0xff]  }
  0x57   :  { %4971 = vmatmul.msk.bf16.gmra.mxu2 %vm160_vm1, %v5163_v30  ;;  %5011 = vmatmul.msk.bf16.gmra.mxu3 %vm160_vm1, %v5171_v31  ;;  %v5220_v31 = vunpack.c.l.bf16 %v5240_v28 }
  0x66   :  { %4892 = vmatmul.msk.bf16.gmra.mxu0 %vm160_vm1, %v5148_v32  ;;  %4932 = vmatmul.msk.bf16.gmra.mxu1 %vm160_vm1, %v5156_v33 }
  0x67   :  { %4972 = vmatmul.msk.bf16.gmra.mxu2 %vm160_vm1, %v5164_v34  ;;  %5012 = vmatmul.msk.bf16.gmra.mxu3 %vm160_vm1, %v5172_v35 }
  0x76   :  { %4893 = vmatmul.msk.bf16.gmra.mxu0 %vm160_vm1, %v5149_v37  ;;  %4933 = vmatmul.msk.bf16.gmra.mxu1 %vm160_vm1, %v5157_v39 }
  0x77   :  { %4973 = vmatmul.msk.bf16.gmra.mxu2 %vm160_vm1, %v5165_v36  ;;  %5013 = vmatmul.msk.bf16.gmra.mxu3 %vm160_vm1, %v5173_v40 }
  0x83   :  { %v403_v42 = vpop.f32.mrf.mxu0  ;;  %v519_v43 = vpop.f32.mrf.mxu1 }
  0x84   :  { %v5865_v44 = vadd.f32 %v5208_v41, %v403_v42  ;;  %v5867_v45 = vadd.f32 %v5208_v41, %v519_v43 }
  0x86   :  { %855 = vmax.xlane.f32.xlu0 %v5865_v44  ;;  %887 = vmax.xlane.f32.xlu1 %v5867_v45 }
  0x8a   :  { %v635_v46 = vpop.f32.mrf.mxu2  ;;  %v751_v47 = vpop.f32.mrf.mxu3 }
  0x8b   :  { %v5871_v48 = vadd.f32 %v5208_v41, %v635_v46  ;;  %v405_v49 = vpop.f32.mrf.mxu0  ;;  %v5873_v50 = vadd.f32 %v5208_v41, %v751_v47  ;;  %v521_v52 = vpop.f32.mrf.mxu1  ;;  %v5221_v46 = vunpack.c.h.bf16 %v5240_v28 }
  0x8c   :  { %v5880_v56 = vadd.f32 %v5209_v51, %v521_v52  ;;  %v5884_v59 = vadd.f32 %v5209_v51, %v405_v49 }
  0x8d   :  { %919 = vmax.xlane.f32.xlu2 %v5871_v48 }
  0x8e   :  { %951 = vmax.xlane.f32.xlu0 %v5873_v50 }
  0x92   :  { %v637_v53 = vpop.f32.mrf.mxu2  ;;  %v753_v54 = vpop.f32.mrf.mxu3 }
  0x93   :  { %v5882_v57 = vadd.f32 %v5209_v51, %v753_v54  ;;  %v408_v58 = vpop.f32.mrf.mxu0  ;;  %v524_v62 = vpop.f32.mrf.mxu1  ;;  %v5893_v2 = vadd.f32 %v5209_v51, %v637_v53  ;;  %v5241_v51 = vld [vmem:[%s8752_s4 + $0x20] sm:$0xff]  }
  0x94   :  { %v5889_v61 = vadd.f32 %v5212_v60, %v408_v58  ;;  %v5900_v6 = vadd.f32 %v5212_v60, %v524_v62  ;;  %v5224_v55 = vunpack.c.l.bf16 %v5241_v51  ;;  %v5675_v62 = vmov -5e+29  }
  0x95   :  { %889 = vmax.xlane.f32.xlu2 %v5880_v56  ;;  %953 = vmax.xlane.f32.xlu1 %v5882_v57  ;;  %32 = vst.msk [vmem:[#allocation2] sm:$0xff] %vm31_vm2, %v5675_v62 }
  0x96   :  { %857 = vmax.xlane.f32.xlu0 %v5884_v59  ;;  %8934 = vst [vmem:[#allocation7_spill] sm:$0xff] %v5900_v6 }
  0x97   :  { %33 = vst.msk [vmem:[#allocation2 + $0x8] sm:$0xff] %vm31_vm2, %v5675_v62 }
  0x98   :  { %34 = vst.msk [vmem:[#allocation2 + $0x10] sm:$0xff] %vm31_vm2, %v5675_v62 }
  0x99   :  { %35 = vst.msk [vmem:[#allocation2 + $0x18] sm:$0xff] %vm31_vm2, %v5675_v62 }
  0x9a   :  { %v640_v63 = vpop.f32.mrf.mxu2  ;;  %v756_v0 = vpop.f32.mrf.mxu3  ;;  %36 = vst.msk [vmem:[#allocation2 + $0x20] sm:$0xff] %vm31_vm2, %v5675_v62 }
  0x9b   :  { %v5891_v1 = vadd.f32 %v5212_v60, %v756_v0  ;;  %v410_v3 = vpop.f32.mrf.mxu0  ;;  %v5898_v4 = vadd.f32 %v5212_v60, %v640_v63  ;;  %v526_v10 = vpop.f32.mrf.mxu1  ;;  %37 = vst.msk [vmem:[#allocation2 + $0x28] sm:$0xff] %vm31_vm2, %v5675_v62 }
  0x9c   :  { %v5912_v15 = vadd.f32 %v5213_v5, %v410_v3  ;;  %v5923_v21 = vadd.f32 %v5213_v5, %v526_v10  ;;  %38 = vst.msk [vmem:[#allocation2 + $0x30] sm:$0xff] %vm31_vm2, %v5675_v62  ;;  %v5225_v10 = vunpack.c.h.bf16 %v5241_v51 }
  0x9d   :  { %8932 = vst [vmem:[#allocation5_spill] sm:$0xff] %v5891_v1  ;;  %955 = vmax.xlane.f32.xlu2 %v5891_v1  ;;  %859 = vmax.xlane.f32.xlu1 %v5889_v61 }
  0x9e   :  { %921 = vmax.xlane.f32.xlu0 %v5893_v2  ;;  %8933 = vst [vmem:[#allocation6_spill] sm:$0xff] %v5898_v4 }
  0x9f   :  { %8940 = vst [vmem:[#allocation13_spill] sm:$0xff] %v5923_v21 }
  0xa0   :  { %39 = vst.msk [vmem:[#allocation2 + $0x38] sm:$0xff] %vm31_vm2, %v5675_v62 }
  0xa1   :  { %40 = vst.msk [vmem:[#allocation2 + $0x40] sm:$0xff] %vm31_vm2, %v5675_v62 }
  0xa2   :  { %v642_v7 = vpop.f32.mrf.mxu2  ;;  %v758_v14 = vpop.f32.mrf.mxu3  ;;  %41 = vst.msk [vmem:[#allocation2 + $0x48] sm:$0xff] %vm31_vm2, %v5675_v62 }
  0xa3   :  { %v5905_v9 = vadd.f32 %v5213_v5, %v642_v7  ;;  %v413_v12 = vpop.f32.mrf.mxu0  ;;  %v5914_v16 = vadd.f32 %v5213_v5, %v758_v14  ;;  %v529_v17 = vpop.f32.mrf.mxu1  ;;  %42 = vst.msk [vmem:[#allocation2 + $0x50] sm:$0xff] %vm31_vm2, %v5675_v62 }
  0xa4   :  { %v5910_v13 = vadd.f32 %v5216_v11, %v413_v12  ;;  %v5919_v18 = vadd.f32 %v5216_v11, %v529_v17  ;;  %43 = vst.msk [vmem:[#allocation2 + $0x58] sm:$0xff] %vm31_vm2, %v5675_v62 }
  0xa5   :  { %8935 = vst [vmem:[#allocation8_spill] sm:$0xff] %v5905_v9  ;;  %925 = vmax.xlane.f32.xlu2 %v5905_v9  ;;  %923 = vmax.xlane.f32.xlu1 %v5898_v4 }
  0xa6   :  { %891 = vmax.xlane.f32.xlu0 %v5900_v6  ;;  %8936 = vst [vmem:[#allocation9_spill] sm:$0xff] %v5910_v13 }
  0xa7   :  { %8937 = vst [vmem:[#allocation10_spill] sm:$0xff] %v5914_v16 }
  0xa8   :  { %8938 = vst [vmem:[#allocation11_spill] sm:$0xff] %v5919_v18 }
  0xa9   :  { %44 = vst.msk [vmem:[#allocation2 + $0x60] sm:$0xff] %vm31_vm2, %v5675_v62 }
  0xaa   :  { %v645_v19 = vpop.f32.mrf.mxu2  ;;  %v761_v23 = vpop.f32.mrf.mxu3  ;;  %45 = vst.msk [vmem:[#allocation2 + $0x68] sm:$0xff] %vm31_vm2, %v5675_v62 }
  0xab   :  { %v5921_v20 = vadd.f32 %v5216_v11, %v645_v19  ;;  %v415_v24 = vpop.f32.mrf.mxu0  ;;  %v5928_v25 = vadd.f32 %v5216_v11, %v761_v23  ;;  %v531_v26 = vpop.f32.mrf.mxu1  ;;  %46 = vst.msk [vmem:[#allocation2 + $0x70] sm:$0xff] %vm31_vm2, %v5675_v62 }
  0xac   :  { %v5930_v27 = vadd.f32 %v5217_v22, %v415_v24  ;;  %v5935_v29 = vadd.f32 %v5217_v22, %v531_v26  ;;  %47 = vst.msk [vmem:[#allocation2 + $0x78] sm:$0xff] %vm31_vm2, %v5675_v62  ;;  %v5242_v24 = vld [vmem:[%s8752_s4 + $0x28] sm:$0xff]  }
  0xad   :  { %863 = vmax.xlane.f32.xlu2 %v5910_v13  ;;  %861 = vmax.xlane.f32.xlu1 %v5912_v15  ;;  %8939 = vst [vmem:[#allocation12_spill] sm:$0xff] %v5921_v20 }
  0xae   :  { %957 = vmax.xlane.f32.xlu0 %v5914_v16  ;;  %8941 = vst [vmem:[#allocation14_spill] sm:$0xff] %v5928_v25 }
  0xaf   :  { %8942 = vst [vmem:[#allocation15_spill] sm:$0xff] %v5930_v27 }
  0xb0   :  { %8943 = vst [vmem:[#allocation16_spill] sm:$0xff] %v5935_v29 }
  0xb1   :  { %48 = vst.msk [vmem:[#allocation2 + $0x80] sm:$0xff] %vm31_vm2, %v5675_v62 }
  0xb2   :  { %v647_v30 = vpop.f32.mrf.mxu2  ;;  %v763_v32 = vpop.f32.mrf.mxu3  ;;  %49 = vst.msk [vmem:[#allocation2 + $0x88] sm:$0xff] %vm31_vm2, %v5675_v62 }
  0xb3   :  { %v418_v33 = vpop.f32.mrf.mxu0  ;;  %v5942_v35 = vadd.f32 %v5217_v22, %v763_v32  ;;  %v5944_v36 = vadd.f32 %v5217_v22, %v647_v30  ;;  %v534_v37 = vpop.f32.mrf.mxu1  ;;  %50 = vst.msk [vmem:[#allocation2 + $0x90] sm:$0xff] %vm31_vm2, %v5675_v62 }
  0xb4   :  { %v5940_v34 = vadd.f32 %v5220_v31, %v418_v33  ;;  %v5949_v39 = vadd.f32 %v5220_v31, %v534_v37  ;;  %51 = vst.msk [vmem:[#allocation2 + $0x98] sm:$0xff] %vm31_vm2, %v5675_v62 }
  0xb5   :  { %895 = vmax.xlane.f32.xlu2 %v5919_v18  ;;  %893 = vmax.xlane.f32.xlu1 %v5923_v21  ;;  %8945 = vst [vmem:[#allocation18_spill] sm:$0xff] %v5942_v35 }
  0xb6   :  { %927 = vmax.xlane.f32.xlu0 %v5921_v20  ;;  %8944 = vst [vmem:[#allocation17_spill] sm:$0xff] %v5940_v34 }
  0xb7   :  { %8946 = vst [vmem:[#allocation19_spill] sm:$0xff] %v5944_v36 }
  0xb8   :  { %8947 = vst [vmem:[#allocation20_spill] sm:$0xff] %v5949_v39 }
  0xb9   :  { %52 = vst.msk [vmem:[#allocation2 + $0xa0] sm:$0xff] %vm31_vm2, %v5675_v62 }
  0xba   :  { %v650_v38 = vpop.f32.mrf.mxu2  ;;  %v766_v41 = vpop.f32.mrf.mxu3  ;;  %53 = vst.msk [vmem:[#allocation2 + $0xa8] sm:$0xff] %vm31_vm2, %v5675_v62 }
  0xbb   :  { %v5951_v40 = vadd.f32 %v5220_v31, %v650_v38  ;;  %v5953_v42 = vadd.f32 %v5220_v31, %v766_v41  ;;  %v420_v43 = vpop.f32.mrf.mxu0  ;;  %v536_v47 = vpop.f32.mrf.mxu1  ;;  %v5228_v31 = vunpack.c.l.bf16 %v5242_v24  ;;  %54 = vst.msk [vmem:[#allocation2 + $0xb0] sm:$0xff] %vm31_vm2, %v5675_v62 }
  0xbc   :  { %v5961_v52 = vadd.f32 %v5221_v46, %v536_v47  ;;  %v5963_v53 = vadd.f32 %v5221_v46, %v420_v43  ;;  %55 = vst.msk [vmem:[#allocation2 + $0xb8] sm:$0xff] %vm31_vm2, %v5675_v62  ;;  %v5229_v47 = vunpack.c.h.bf16 %v5242_v24 }
  0xbd   :  { %865 = vmax.xlane.f32.xlu2 %v5930_v27  ;;  %959 = vmax.xlane.f32.xlu1 %v5928_v25  ;;  %8948 = vst [vmem:[#allocation21_spill] sm:$0xff] %v5951_v40 }
  0xbe   :  { %897 = vmax.xlane.f32.xlu0 %v5935_v29  ;;  %8949 = vst [vmem:[#allocation22_spill] sm:$0xff] %v5953_v42 }
  0xbf   :  { %8950 = vst [vmem:[#allocation23_spill] sm:$0xff] %v5961_v52 }
  0xc0   :  { %8951 = vst [vmem:[#allocation24_spill] sm:$0xff] %v5963_v53 }
  0xc1   :  { %56 = vst.msk [vmem:[#allocation2 + $0xc0] sm:$0xff] %vm31_vm2, %v5675_v62 }
  0xc2   :  { %v652_v49 = vpop.f32.mrf.mxu2  ;;  %v768_v58 = vpop.f32.mrf.mxu3  ;;  %57 = vst.msk [vmem:[#allocation2 + $0xc8] sm:$0xff] %vm31_vm2, %v5675_v62 }
  0xc3   :  { %v5965_v54 = vadd.f32 %v5221_v46, %v652_v49  ;;  %v423_v60 = vpop.f32.mrf.mxu0  ;;  %v539_v0 = vpop.f32.mrf.mxu1  ;;  %v5982_v5 = vadd.f32 %v5221_v46, %v768_v58  ;;  %58 = vst.msk [vmem:[#allocation2 + $0xd0] sm:$0xff] %vm31_vm2, %v5675_v62  ;;  %v6073_v49 = vld [vmem:[#allocation2] sm:$0xff] }
  0xc4   :  { %v5974_v63 = vadd.f32 %v5224_v55, %v423_v60  ;;  %v5978_v3 = vadd.f32 %v5224_v55, %v539_v0  ;;  %59 = vst.msk [vmem:[#allocation2 + $0xd8] sm:$0xff] %vm31_vm2, %v5675_v62 }
  0xc5   :  { %961 = vmax.xlane.f32.xlu2 %v5942_v35  ;;  %929 = vmax.xlane.f32.xlu1 %v5944_v36  ;;  %8952 = vst [vmem:[#allocation25_spill] sm:$0xff] %v5965_v54 }
  0xc6   :  { %867 = vmax.xlane.f32.xlu0 %v5940_v34  ;;  %8953 = vst [vmem:[#allocation26_spill] sm:$0xff] %v5974_v63 }
  0xc7   :  { %8954 = vst [vmem:[#allocation27_spill] sm:$0xff] %v5978_v3 }
  0xc8   :  { %8955 = vst [vmem:[#allocation28_spill] sm:$0xff] %v5982_v5 }
  0xc9   :  { %60 = vst.msk [vmem:[#allocation2 + $0xe0] sm:$0xff] %vm31_vm2, %v5675_v62 }
  0xca   :  { %v655_v7 = vpop.f32.mrf.mxu2  ;;  %v771_v8 = vpop.f32.mrf.mxu3  ;;  %61 = vst.msk [vmem:[#allocation2 + $0xe8] sm:$0xff] %vm31_vm2, %v5675_v62 }
  0xcb   :  { %v5999_v11 = vadd.f32 %v5224_v55, %v655_v7  ;;  %v425_v12 = vpop.f32.mrf.mxu0  ;;  %v6001_v14 = vadd.f32 %v5224_v55, %v771_v8  ;;  %v541_v19 = vpop.f32.mrf.mxu1  ;;  %62 = vst.msk [vmem:[#allocation2 + $0xf0] sm:$0xff] %vm31_vm2, %v5675_v62  ;;  %v5243_v8 = vld [vmem:[%s8752_s4 + $0x30] sm:$0xff]  }
  0xcc   :  { %v6009_v17 = vadd.f32 %v5225_v10, %v425_v12  ;;  %v6031_v26 = vadd.f32 %v5225_v10, %v541_v19  ;;  %63 = vst.msk [vmem:[#allocation2 + $0xf8] sm:$0xff] %vm31_vm2, %v5675_v62 }
  0xcd   :  { %931 = vmax.xlane.f32.xlu2 %v5951_v40  ;;  %899 = vmax.xlane.f32.xlu1 %v5949_v39  ;;  %8956 = vst [vmem:[#allocation29_spill] sm:$0xff] %v5999_v11 }
  0xce   :  { %963 = vmax.xlane.f32.xlu0 %v5953_v42  ;;  %8957 = vst [vmem:[#allocation30_spill] sm:$0xff] %v6001_v14 }
  0xcf   :  { %8958 = vst [vmem:[#allocation31_spill] sm:$0xff] %v6009_v17 }
  0xd0   :  { %8959 = vst [vmem:[#allocation32_spill] sm:$0xff] %v6031_v26 }
  0xd1   :  { %8965 = vst [vmem:[#allocation38_spill] sm:$0xff] %v6073_v49 }
  0xd2   :  { %v657_v22 = vpop.f32.mrf.mxu2  ;;  %v773_v23 = vpop.f32.mrf.mxu3  ;;  %64 = vst.msk [vmem:[#allocation2 + $0x100] sm:$0xff] %vm31_vm2, %v5675_v62 }
  0xd3   :  { %v6033_v28 = vadd.f32 %v5225_v10, %v657_v22  ;;  %v6037_v30 = vadd.f32 %v5225_v10, %v773_v23  ;;  %v428_v32 = vpop.f32.mrf.mxu0  ;;  %v544_v33 = vpop.f32.mrf.mxu1  ;;  %65 = vst.msk [vmem:[#allocation2 + $0x108] sm:$0xff] %vm31_vm2, %v5675_v62  ;;  %v5232_v22 = vunpack.c.l.bf16 %v5243_v8 }
  0xd4   :  { %v6052_v37 = vadd.f32 %v5228_v31, %v428_v32  ;;  %v6054_v38 = vadd.f32 %v5228_v31, %v544_v33  ;;  %66 = vst.msk [vmem:[#allocation2 + $0x110] sm:$0xff] %vm31_vm2, %v5675_v62 }
  0xd5   :  { %901 = vmax.xlane.f32.xlu2 %v5961_v52  ;;  %869 = vmax.xlane.f32.xlu1 %v5963_v53  ;;  %8960 = vst [vmem:[#allocation33_spill] sm:$0xff] %v6033_v28 }
  0xd6   :  { %933 = vmax.xlane.f32.xlu0 %v5965_v54  ;;  %8961 = vst [vmem:[#allocation34_spill] sm:$0xff] %v6037_v30 }
  0xd7   :  { %8962 = vst [vmem:[#allocation35_spill] sm:$0xff] %v6052_v37 }
  0xd8   :  { %8963 = vst [vmem:[#allocation36_spill] sm:$0xff] %v6054_v38 }
  0xd9   :  { %67 = vst.msk [vmem:[#allocation2 + $0x118] sm:$0xff] %vm31_vm2, %v5675_v62 }
  0xda   :  { %v660_v41 = vpop.f32.mrf.mxu2  ;;  %v776_v46 = vpop.f32.mrf.mxu3  ;;  %68 = vst.msk [vmem:[#allocation2 + $0x120] sm:$0xff] %vm31_vm2, %v5675_v62 }
  0xdb   :  { %v6058_v43 = vadd.f32 %v5228_v31, %v660_v41  ;;  %v430_v51 = vpop.f32.mrf.mxu0  ;;  %v6079_v55 = vadd.f32 %v5228_v31, %v776_v46  ;;  %v546_v58 = vpop.f32.mrf.mxu1  ;;  %69 = vst.msk [vmem:[#allocation2 + $0x128] sm:$0xff] %vm31_vm2, %v5675_v62 }
  0xdc   :  { %v6088_v7 = vadd.f32 %v5229_v47, %v430_v51  ;;  %v6095_v10 = vadd.f32 %v5229_v47, %v546_v58  ;;  %70 = vst.msk [vmem:[#allocation2 + $0x130] sm:$0xff] %vm31_vm2, %v5675_v62 }
  0xdd   :  { %871 = vmax.xlane.f32.xlu2 %v5974_v63  ;;  %965 = vmax.xlane.f32.xlu1 %v5982_v5  ;;  %8964 = vst [vmem:[#allocation37_spill] sm:$0xff] %v6058_v43 }
  0xde   :  { %903 = vmax.xlane.f32.xlu0 %v5978_v3  ;;  %8966 = vst [vmem:[#allocation39_spill] sm:$0xff] %v6079_v55  ;;  %v5676_v3 = vmov 0  }
  0xdf   :  { %8968 = vst [vmem:[#allocation41_spill] sm:$0xff] %v6088_v7  ;;  %5254 = vset.pattern.permute.xlu0 %v5676_v3  ;;  %5253 = vset.pattern.permute.xlu2 %v5676_v3 }
  0xe0   :  { %8969 = vst [vmem:[#allocation42_spill] sm:$0xff] %v6095_v10  ;;  %5252 = vset.pattern.permute.xlu1 %v5676_v3  ;;  %v6319_v3 = vld [vmem:[#allocation2 + $0x98] sm:$0xff] }
  0xe1   :  { %71 = vst.msk [vmem:[#allocation2 + $0x138] sm:$0xff] %vm31_vm2, %v5675_v62 }
  0xe2   :  { %v662_v12 = vpop.f32.mrf.mxu2  ;;  %v778_v23 = vpop.f32.mrf.mxu3  ;;  %72 = vst.msk [vmem:[#allocation2 + $0x140] sm:$0xff] %vm31_vm2, %v5675_v62 }
  0xe3   :  { %73 = vst.msk [vmem:[#allocation2 + $0x148] sm:$0xff] %vm31_vm2, %v5675_v62  ;;  %v433_v31 = vpop.f32.mrf.mxu0  ;;  %v6118_v41 = vadd.f32 %v5229_v47, %v662_v12  ;;  %v6120_v46 = vadd.f32 %v5229_v47, %v778_v23  ;;  %v549_v51 = vpop.f32.mrf.mxu1 }
  0xe4   :  { %74 = vst.msk [vmem:[#allocation2 + $0x150] sm:$0xff] %vm31_vm2, %v5675_v62  ;;  %v6116_v33 = vadd.f32 %v5232_v22, %v433_v31  ;;  %v6139_v12 = vadd.f32 %v5232_v22, %v549_v51 }
  0xe5   :  { %967 = vmax.xlane.f32.xlu2 %v6001_v14  ;;  %935 = vmax.xlane.f32.xlu1 %v5999_v11  ;;  %8971 = vst [vmem:[#allocation44_spill] sm:$0xff] %v6118_v41 }
  0xe6   :  { %873 = vmax.xlane.f32.xlu0 %v6009_v17  ;;  %8970 = vst [vmem:[#allocation43_spill] sm:$0xff] %v6116_v33 }
  0xe7   :  { %8972 = vst [vmem:[#allocation45_spill] sm:$0xff] %v6120_v46 }
  0xe8   :  { %75 = vst.msk [vmem:[#allocation2 + $0x158] sm:$0xff] %vm31_vm2, %v5675_v62 }
  0xe9   :  { %76 = vst.msk [vmem:[#allocation2 + $0x160] sm:$0xff] %vm31_vm2, %v5675_v62 }
  0xea   :  { %77 = vst.msk [vmem:[#allocation2 + $0x168] sm:$0xff] %vm31_vm2, %v5675_v62  ;;  %v665_v47 = vpop.f32.mrf.mxu2  ;;  %v781_v31 = vpop.f32.mrf.mxu3 }
  0xeb   :  { %78 = vst.msk [vmem:[#allocation2 + $0x170] sm:$0xff] %vm31_vm2, %v5675_v62  ;;  %v6141_v23 = vadd.f32 %v5232_v22, %v665_v47  ;;  %v435_v51 = vpop.f32.mrf.mxu0  ;;  %v5233_v47 = vunpack.c.h.bf16 %v5243_v8  ;;  %v6173_v8 = vld [vmem:[#allocation2 + $0x80] sm:$0xff] }
  0xec   :  { %79 = vst.msk [vmem:[#allocation2 + $0x178] sm:$0xff] %vm31_vm2, %v5675_v62 }
  0xed   :  { %937 = vmax.xlane.f32.xlu2 %v6033_v28  ;;  %905 = vmax.xlane.f32.xlu1 %v6031_v26  ;;  %80 = vst.msk [vmem:[#allocation2 + $0x180] sm:$0xff] %vm31_vm2, %v5675_v62  ;;  %v6191_v28 = vld [vmem:[#allocation2 + $0x88] sm:$0xff] }
  0xee   :  { %969 = vmax.xlane.f32.xlu0 %v6037_v30  ;;  %81 = vst.msk [vmem:[#allocation2 + $0x188] sm:$0xff] %vm31_vm2, %v5675_v62 }
  0xef   :  { %8973 = vst [vmem:[#allocation46_spill] sm:$0xff] %v6139_v12 }
  0xf0   :  { %8974 = vst [vmem:[#allocation47_spill] sm:$0xff] %v6141_v23 }
  0xf1   :  { %82 = vst.msk [vmem:[#allocation2 + $0x190] sm:$0xff] %vm31_vm2, %v5675_v62 }
  0xf2   :  { %83 = vst.msk [vmem:[#allocation2 + $0x198] sm:$0xff] %vm31_vm2, %v5675_v62 }
  0xf3   :  { %84 = vst.msk [vmem:[#allocation2 + $0x1a0] sm:$0xff] %vm31_vm2, %v5675_v62 }
  0xf4   :  { %85 = vst.msk [vmem:[#allocation2 + $0x1a8] sm:$0xff] %vm31_vm2, %v5675_v62 }
  0xf5   :  { %907 = vmax.xlane.f32.xlu2 %v6054_v38  ;;  %875 = vmax.xlane.f32.xlu1 %v6052_v37  ;;  %86 = vst.msk [vmem:[#allocation2 + $0x1b0] sm:$0xff] %vm31_vm2, %v5675_v62  ;;  %v6182_v37 = vadd.f32 %v5233_v47, %v435_v51  ;;  %v6201_v51 = vld [vmem:[#allocation2 + $0x188] sm:$0xff] }
  0xf6   :  { %939 = vmax.xlane.f32.xlu0 %v6058_v43  ;;  %87 = vst.msk [vmem:[#allocation2 + $0x1b8] sm:$0xff] %vm31_vm2, %v5675_v62 }
  0xf7   :  { %88 = vst.msk [vmem:[#allocation2 + $0x1c0] sm:$0xff] %vm31_vm2, %v5675_v62 }
  0xf8   :  { %89 = vst.msk [vmem:[#allocation2 + $0x1c8] sm:$0xff] %vm31_vm2, %v5675_v62 }
  0xf9   :  { %v856_v60 = vpop.xlane.xlu0 %855  ;;  %v6106_v19 = vpop.xlane.xlu1 %887  ;;  %90 = vst.msk [vmem:[#allocation2 + $0x1d0] sm:$0xff] %vm31_vm2, %v5675_v62 }
  0xfa   :  { %v6084_v0 = vmax.f32 %v6073_v49, %v856_v60  ;;  %8979 = vst [vmem:[#allocation52_spill] sm:$0xff] %v6173_v8 }
  0xfb   :  { %91 = vst.msk [vmem:[#allocation2 + $0x1d8] sm:$0xff] %vm31_vm2, %v5675_v62 }
  0xfc   :  { %8967 = vst [vmem:[#allocation40_spill] sm:$0xff] %v6084_v0 }
  0xfd   :  { %3420 = vst.msk [vmem:[#allocation2] sm:$0xff] %vm31_vm2, %v6084_v0  ;;  %877 = vmax.xlane.f32.xlu2 %v6088_v7  ;;  %971 = vmax.xlane.f32.xlu1 %v6079_v55  ;;  %v6169_v7 = vld [vmem:[#allocation2 + $0x100] sm:$0xff] }
  0xfe   :  { %909 = vmax.xlane.f32.xlu0 %v6095_v10  ;;  %8978 = vst [vmem:[#allocation51_spill] sm:$0xff] %v6169_v7  ;;  %v6222_v10 = vld [vmem:[#allocation2 + $0x10] sm:$0xff] }
  0xff   :  { %8980 = vst [vmem:[#allocation53_spill] sm:$0xff] %v6182_v37 }
 0x100   :  { %v920_v24 = vpop.xlane.xlu2 %919  ;;  %92 = vst.msk [vmem:[#allocation2 + $0x1e0] sm:$0xff] %vm31_vm2, %v5675_v62 }
 0x101   :  { %v952_v32 = vpop.xlane.xlu0 %951  ;;  %8983 = vst [vmem:[#allocation56_spill] sm:$0xff] %v6191_v28 }
 0x102   :  { %93 = vst.msk [vmem:[#allocation2 + $0x1e8] sm:$0xff] %vm31_vm2, %v5675_v62 }
 0x103   :  { %8986 = vst [vmem:[#allocation59_spill] sm:$0xff] %v6201_v51 }
 0x104   :  { %94 = vst.msk [vmem:[#allocation2 + $0x1f0] sm:$0xff] %vm31_vm2, %v5675_v62 }
 0x105   :  { %973 = vmax.xlane.f32.xlu2 %v6120_v46  ;;  %941 = vmax.xlane.f32.xlu1 %v6118_v41  ;;  %v6145_v46 = vadd.f32 %v5232_v22, %v781_v31  ;;  %v6160_v22 = vld [vmem:[#allocation2 + $0x180] sm:$0xff]  ;;  %v551_v31 = vpop.f32.mrf.mxu1  ;;  %v6189_v41 = vmax.f32 %v6169_v7, %v920_v24  ;;  %v6207_v24 = vld [vmem:[#allocation2 + $0x8] sm:$0xff]  ;;  %v438_v7 = vpop.f32.mrf.mxu0  ;;  %95 = vst.msk [vmem:[#allocation2 + $0x1f8] sm:$0xff] %vm31_vm2, %v5675_v62 }
 0x106   :  { %879 = vmax.xlane.f32.xlu0 %v6116_v33  ;;  %8976 = vst [vmem:[#allocation49_spill] sm:$0xff] %v6160_v22  ;;  %v6184_v43 = vadd.f32 %v5233_v47, %v551_v31 }
 0x107   :  { %8975 = vst [vmem:[#allocation48_spill] sm:$0xff] %v6145_v46 }
 0x108   :  { %v890_v58 = vpop.xlane.xlu2 %889  ;;  %v954_v60 = vpop.xlane.xlu1 %953  ;;  %8981 = vst [vmem:[#allocation54_spill] sm:$0xff] %v6184_v43 }
 0x109   :  { %v858_v49 = vpop.xlane.xlu0 %857  ;;  %8982 = vst [vmem:[#allocation55_spill] sm:$0xff] %v6189_v41 }
 0x10a   :  { %8987 = vst [vmem:[#allocation60_spill] sm:$0xff] %v6207_v24  ;;  %v6227_v62 = vmax.f32 %v6207_v24, %v858_v49 }
 0x10b   :  { %3452 = vst.msk [vmem:[#allocation2 + $0x100] sm:$0xff] %vm31_vm2, %v6189_v41 }
 0x10c   :  { %8991 = vst [vmem:[#allocation64_spill] sm:$0xff] %v6222_v10 }
 0x10d   :  { %943 = vmax.xlane.f32.xlu2 %v6141_v23  ;;  %911 = vmax.xlane.f32.xlu1 %v6139_v12  ;;  %v6165_v23 = vmax.f32 %v6160_v22, %v952_v32  ;;  %v5244_v32 = vld [vmem:[%s8752_s4 + $0x38] sm:$0xff]   ;;  %v6199_v22 = vmax.f32 %v6173_v8, %v6106_v19  ;;  %v6213_v19 = vmax.f32 %v6191_v28, %v890_v58  ;;  %v6215_v8 = vld [vmem:[#allocation2 + $0x190] sm:$0xff]  ;;  %v6229_v58 = vld [vmem:[#allocation2 + $0x108] sm:$0xff] }
 0x10e   :  { %975 = vmax.xlane.f32.xlu0 %v6145_v46  ;;  %v667_v46 = vpop.f32.mrf.mxu2  ;;  %v5236_v31 = vunpack.c.l.bf16 %v5244_v32  ;;  %8989 = vst [vmem:[#allocation62_spill] sm:$0xff] %v6215_v8 }
 0x10f   :  { %8977 = vst [vmem:[#allocation50_spill] sm:$0xff] %v6165_v23  ;;  %v6193_v38 = vadd.f32 %v5233_v47, %v667_v46  ;;  %v783_v46 = vpop.f32.mrf.mxu3 }
 0x110   :  { %v956_v12 = vpop.xlane.xlu2 %955  ;;  %v860_v33 = vpop.xlane.xlu1 %859  ;;  %8985 = vst [vmem:[#allocation58_spill] sm:$0xff] %v6199_v22  ;;  %v6231_v28 = vadd.f32 %v5236_v31, %v438_v7  ;;  %v6247_v24 = vadd.f32 %v5233_v47, %v783_v46  ;;  %v6249_v7 = vld [vmem:[#allocation2 + $0x110] sm:$0xff]  ;;  %v6273_v47 = vld [vmem:[#allocation2 + $0x18] sm:$0xff] }
 0x111   :  { %v922_v55 = vpop.xlane.xlu0 %921  ;;  %8984 = vst [vmem:[#allocation57_spill] sm:$0xff] %v6193_v38  ;;  %v6245_v49 = vmax.f32 %v6222_v10, %v860_v33  ;;  %v440_v10 = vpop.f32.mrf.mxu0 }
 0x112   :  { %8988 = vst [vmem:[#allocation61_spill] sm:$0xff] %v6213_v19 }
 0x113   :  { %3436 = vst.msk [vmem:[#allocation2 + $0x80] sm:$0xff] %vm31_vm2, %v6199_v22 }
 0x114   :  { %8992 = vst [vmem:[#allocation65_spill] sm:$0xff] %v6227_v62 }
 0x115   :  { %913 = vmax.xlane.f32.xlu2 %v6184_v43  ;;  %881 = vmax.xlane.f32.xlu1 %v6182_v37  ;;  %v554_v43 = vpop.f32.mrf.mxu1  ;;  %v6220_v37 = vmax.f32 %v6201_v51, %v954_v60  ;;  %8993 = vst [vmem:[#allocation66_spill] sm:$0xff] %v6229_v58  ;;  %v6236_v60 = vmax.f32 %v6215_v8, %v956_v12  ;;  %v6238_v51 = vld [vmem:[#allocation2 + $0x118] sm:$0xff]  ;;  %v6256_v8 = vld [vmem:[#allocation2 + $0x90] sm:$0xff] }
 0x116   :  { %945 = vmax.xlane.f32.xlu0 %v6193_v38  ;;  %8994 = vst [vmem:[#allocation67_spill] sm:$0xff] %v6231_v28  ;;  %v6240_v63 = vadd.f32 %v5236_v31, %v554_v43  ;;  %v6254_v12 = vmax.f32 %v6229_v58, %v922_v55  ;;  %v6271_v55 = vld [vmem:[#allocation2 + $0x20] sm:$0xff]  ;;  %v6280_v58 = vld [vmem:[#allocation2 + $0x198] sm:$0xff] }
 0x117   :  { %8990 = vst [vmem:[#allocation63_spill] sm:$0xff] %v6220_v37  ;;  %v786_v46 = vpop.f32.mrf.mxu3 }
 0x118   :  { %v926_v14 = vpop.xlane.xlu2 %925  ;;  %v924_v38 = vpop.xlane.xlu1 %923  ;;  %3468 = vst.msk [vmem:[#allocation2 + $0x180] sm:$0xff] %vm31_vm2, %v6165_v23 }
 0x119   :  { %v892_v11 = vpop.xlane.xlu0 %891  ;;  %8995 = vst [vmem:[#allocation68_spill] sm:$0xff] %v6236_v60  ;;  %v6261_v43 = vmax.f32 %v6238_v51, %v926_v14  ;;  %v6268_v33 = vmax.f32 %v6249_v7, %v924_v38  ;;  %v670_v14 = vpop.f32.mrf.mxu2 }
 0x11a   :  { %8996 = vst [vmem:[#allocation69_spill] sm:$0xff] %v6238_v51  ;;  %v6278_v51 = vmax.f32 %v6256_v8, %v892_v11  ;;  %v6284_v38 = vadd.f32 %v5236_v31, %v670_v14 }
 0x11b   :  { %8997 = vst [vmem:[#allocation70_spill] sm:$0xff] %v6240_v63 }
 0x11c   :  { %3437 = vst.msk [vmem:[#allocation2 + $0x88] sm:$0xff] %vm31_vm2, %v6213_v19 }
 0x11d   :  { %8998 = vst [vmem:[#allocation71_spill] sm:$0xff] %v6245_v49  ;;  %883 = vmax.xlane.f32.xlu2 %v6231_v28  ;;  %977 = vmax.xlane.f32.xlu1 %v6247_v24  ;;  %v556_v9 = vpop.f32.mrf.mxu1 }
 0x11e   :  { %8999 = vst [vmem:[#allocation72_spill] sm:$0xff] %v6247_v24  ;;  %915 = vmax.xlane.f32.xlu0 %v6240_v63  ;;  %v6286_v63 = vunpack.c.h.bf16 %v5244_v32 }
 0x11f   :  { %9000 = vst [vmem:[#allocation73_spill] sm:$0xff] %v6249_v7 }
 0x120   :  { %3469 = vst.msk [vmem:[#allocation2 + $0x188] sm:$0xff] %vm31_vm2, %v6220_v37  ;;  %v864_v7 = vpop.xlane.xlu2 %863  ;;  %v862_v28 = vpop.xlane.xlu1 %861  ;;  %v6304_v14 = vadd.f32 %v6286_v63, %v440_v10  ;;  %v5677_v10 = vmov 0.0  }
 0x121   :  { %9001 = vst [vmem:[#allocation74_spill] sm:$0xff] %v6254_v12  ;;  %v6291_v24 = vmax.f32 %v6271_v55, %v864_v7  ;;  %v6294_v11 = vmax.f32 %v6273_v47, %v862_v28  ;;  %v958_v30 = vpop.xlane.xlu0 %957  ;;  %v6317_v28 = vld [vmem:[#allocation2 + $0xa0] sm:$0xff]  ;;  %v672_v25 = vpop.f32.mrf.mxu2 }
 0x122   :  { %9002 = vst [vmem:[#allocation75_spill] sm:$0xff] %v6256_v8  ;;  %v6296_v8 = vadd.f32 %v5236_v31, %v786_v46  ;;  %v6301_v32 = vmax.f32 %v6280_v58, %v958_v30  ;;  %v6321_v30 = vld [vmem:[#allocation2 + $0x120] sm:$0xff] }
 0x123   :  { %3421 = vst.msk [vmem:[#allocation2 + $0x8] sm:$0xff] %vm31_vm2, %v6227_v62 }
 0x124   :  { %9003 = vst [vmem:[#allocation76_spill] sm:$0xff] %v6261_v43 }
 0x125   :  { %3470 = vst.msk [vmem:[#allocation2 + $0x190] sm:$0xff] %vm31_vm2, %v6236_v60  ;;  %979 = vmax.xlane.f32.xlu2 %v6296_v8  ;;  %947 = vmax.xlane.f32.xlu1 %v6284_v38 }
 0x126   :  { %9004 = vst [vmem:[#allocation77_spill] sm:$0xff] %v6268_v33  ;;  %885 = vmax.xlane.f32.xlu0 %v6304_v14 }
 0x127   :  { %9005 = vst [vmem:[#allocation78_spill] sm:$0xff] %v6271_v55 }
 0x128   :  { %9006 = vst [vmem:[#allocation79_spill] sm:$0xff] %v6273_v47  ;;  %v896_v31 = vpop.xlane.xlu2 %895  ;;  %v894_v7 = vpop.xlane.xlu1 %893 }
 0x129   :  { %3422 = vst.msk [vmem:[#allocation2 + $0x10] sm:$0xff] %vm31_vm2, %v6245_v49  ;;  %v6328_v46 = vmax.f32 %v6317_v28, %v896_v31  ;;  %v6346_v31 = vld [vmem:[#allocation2 + $0x28] sm:$0xff] }
 0x12a   :  { %9007 = vst [vmem:[#allocation80_spill] sm:$0xff] %v6278_v51 }
 0x12b   :  { %9008 = vst [vmem:[#allocation81_spill] sm:$0xff] %v6280_v58  ;;  %v928_v58 = vpop.xlane.xlu0 %927 }
 0x12c   :  { %3453 = vst.msk [vmem:[#allocation2 + $0x108] sm:$0xff] %vm31_vm2, %v6254_v12  ;;  %v6336_v55 = vmax.f32 %v6321_v30, %v928_v58  ;;  %v6352_v58 = vld [vmem:[#allocation2 + $0xa8] sm:$0xff] }
 0x12d   :  { %9009 = vst [vmem:[#allocation82_spill] sm:$0xff] %v6284_v38 }
 0x12e   :  { %3455 = vst.msk [vmem:[#allocation2 + $0x118] sm:$0xff] %vm31_vm2, %v6261_v43 }
 0x12f   :  { %9010 = vst [vmem:[#allocation83_spill] sm:$0xff] %v6294_v11 }
 0x130   :  { %9011 = vst [vmem:[#allocation84_spill] sm:$0xff] %v6296_v8  ;;  %v6331_v8 = vmax.f32 %v6319_v3, %v894_v7  ;;  %v6348_v7 = vld [vmem:[#allocation2 + $0x1a0] sm:$0xff] }
 0x131   :  { %3454 = vst.msk [vmem:[#allocation2 + $0x110] sm:$0xff] %vm31_vm2, %v6268_v33 }
 0x132   :  { %9012 = vst [vmem:[#allocation85_spill] sm:$0xff] %v6301_v32 }
 0x133   :  { %9013 = vst [vmem:[#allocation86_spill] sm:$0xff] %v6304_v14  ;;  %v898_v38 = vpop.xlane.xlu0 %897 }
 0x134   :  { %3438 = vst.msk [vmem:[#allocation2 + $0x90] sm:$0xff] %vm31_vm2, %v6278_v51  ;;  %v6367_v14 = vmax.f32 %v6352_v58, %v898_v38  ;;  %v6383_v38 = vld [vmem:[#allocation2 + $0x30] sm:$0xff] }
 0x135   :  { %3424 = vst.msk [vmem:[#allocation2 + $0x20] sm:$0xff] %vm31_vm2, %v6291_v24 }
 0x136   :  { %3423 = vst.msk [vmem:[#allocation2 + $0x18] sm:$0xff] %vm31_vm2, %v6294_v11 }
 0x137   :  { %3471 = vst.msk [vmem:[#allocation2 + $0x198] sm:$0xff] %vm31_vm2, %v6301_v32 }
 0x138   :  { %9014 = vst [vmem:[#allocation87_spill] sm:$0xff] %v6317_v28  ;;  %v960_v28 = vpop.xlane.xlu1 %959 }
 0x139   :  { %9015 = vst [vmem:[#allocation88_spill] sm:$0xff] %v6319_v3  ;;  %v6362_v47 = vmax.f32 %v6348_v7, %v960_v28  ;;  %v6377_v28 = vld [vmem:[#allocation2 + $0x1a8] sm:$0xff] }
 0x13a   :  { %9016 = vst [vmem:[#allocation89_spill] sm:$0xff] %v6321_v30  ;;  %v866_v30 = vpop.xlane.xlu2 %865  ;;  %1481 = vperm.xlu0 %5254, %v6165_v23  }
 0x13b   :  { %98 = vst.msk [vmem:[#allocation3 + $0x10] sm:$0xff] %vm31_vm2, %v5677_v10  ;;  %v6359_v3 = vmax.f32 %v6346_v31, %v866_v30  ;;  %v6379_v30 = vld [vmem:[#allocation2 + $0x128] sm:$0xff]  ;;  %v868_v52 = vpop.xlane.xlu0 %867 }
 0x13c   :  { %96 = vst.msk [vmem:[#allocation3] sm:$0xff] %vm31_vm2, %v5677_v10  ;;  %v6398_v17 = vmax.f32 %v6383_v38, %v868_v52  ;;  %v6411_v52 = vld [vmem:[#allocation2 + $0x130] sm:$0xff] }
 0x13d   :  { %97 = vst.msk [vmem:[#allocation3 + $0x8] sm:$0xff] %vm31_vm2, %v5677_v10  ;;  %1321 = vperm.xlu2 %5253, %v6199_v22  }
 0x13e   :  { %99 = vst.msk [vmem:[#allocation3 + $0x18] sm:$0xff] %vm31_vm2, %v5677_v10  ;;  %1241 = vperm.xlu1 %5252, %v6084_v0  }
 0x13f   :  { %3440 = vst.msk [vmem:[#allocation2 + $0xa0] sm:$0xff] %vm31_vm2, %v6328_v46 }
 0x140   :  { %3439 = vst.msk [vmem:[#allocation2 + $0x98] sm:$0xff] %vm31_vm2, %v6331_v8 }
 0x141   :  { %3456 = vst.msk [vmem:[#allocation2 + $0x120] sm:$0xff] %vm31_vm2, %v6336_v55 }
 0x142   :  { %9017 = vst [vmem:[#allocation90_spill] sm:$0xff] %v6346_v31  ;;  %v930_v31 = vpop.xlane.xlu1 %929 }
 0x143   :  { %9018 = vst [vmem:[#allocation91_spill] sm:$0xff] %v6348_v7  ;;  %v962_v7 = vpop.xlane.xlu2 %961  ;;  %v6393_v26 = vmax.f32 %v6379_v30, %v930_v31  ;;  %v6413_v31 = vld [vmem:[#allocation2 + $0xb0] sm:$0xff] }
 0x144   :  { %100 = vst.msk [vmem:[#allocation3 + $0x20] sm:$0xff] %vm31_vm2, %v5677_v10 }
 0x145   :  { %9019 = vst [vmem:[#allocation92_spill] sm:$0xff] %v6352_v58  ;;  %v6390_v58 = vmax.f32 %v6377_v28, %v962_v7  ;;  %v6417_v7 = vld [vmem:[#allocation2 + $0x1b0] sm:$0xff] }
 0x146   :  { %101 = vst.msk [vmem:[#allocation3 + $0x28] sm:$0xff] %vm31_vm2, %v5677_v10 }
 0x147   :  { %102 = vst.msk [vmem:[#allocation3 + $0x30] sm:$0xff] %vm31_vm2, %v5677_v10 }
 0x148   :  { %9020 = vst [vmem:[#allocation93_spill] sm:$0xff] %v6362_v47 }
 0x149   :  { %103 = vst.msk [vmem:[#allocation3 + $0x38] sm:$0xff] %vm31_vm2, %v5677_v10 }
 0x14a   :  { %104 = vst.msk [vmem:[#allocation3 + $0x40] sm:$0xff] %vm31_vm2, %v5677_v10  ;;  %v900_v23 = vpop.xlane.xlu1 %899 }
 0x14b   :  { %3425 = vst.msk [vmem:[#allocation2 + $0x28] sm:$0xff] %vm31_vm2, %v6359_v3  ;;  %v6427_v22 = vmax.f32 %v6413_v31, %v900_v23  ;;  %v6442_v23 = vld [vmem:[#allocation2 + $0xb8] sm:$0xff] }
 0x14c   :  { %3472 = vst.msk [vmem:[#allocation2 + $0x1a0] sm:$0xff] %vm31_vm2, %v6362_v47 }
 0x14d   :  { %3441 = vst.msk [vmem:[#allocation2 + $0xa8] sm:$0xff] %vm31_vm2, %v6367_v14 }
 0x14e   :  { %9021 = vst [vmem:[#allocation94_spill] sm:$0xff] %v6377_v28  ;;  %v932_v28 = vpop.xlane.xlu2 %931 }
 0x14f   :  { %9022 = vst [vmem:[#allocation95_spill] sm:$0xff] %v6379_v30  ;;  %v6424_v30 = vmax.f32 %v6411_v52, %v932_v28  ;;  %v6444_v28 = vld [vmem:[#allocation2 + $0x38] sm:$0xff] }
 0x150   :  { %105 = vst.msk [vmem:[#allocation3 + $0x48] sm:$0xff] %vm31_vm2, %v5677_v10 }
 0x151   :  { %9023 = vst [vmem:[#allocation96_spill] sm:$0xff] %v6383_v38  ;;  %v964_v38 = vpop.xlane.xlu0 %963 }
 0x152   :  { %106 = vst.msk [vmem:[#allocation3 + $0x50] sm:$0xff] %vm31_vm2, %v5677_v10  ;;  %v6432_v0 = vmax.f32 %v6417_v7, %v964_v38  ;;  %v6448_v38 = vld [vmem:[#allocation2 + $0x138] sm:$0xff] }
 0x153   :  { %107 = vst.msk [vmem:[#allocation3 + $0x58] sm:$0xff] %vm31_vm2, %v5677_v10 }
 0x154   :  { %9024 = vst [vmem:[#allocation97_spill] sm:$0xff] %v6390_v58 }
 0x155   :  { %9025 = vst [vmem:[#allocation98_spill] sm:$0xff] %v6393_v26 }
 0x156   :  { %108 = vst.msk [vmem:[#allocation3 + $0x60] sm:$0xff] %vm31_vm2, %v5677_v10 }
 0x157   :  { %109 = vst.msk [vmem:[#allocation3 + $0x68] sm:$0xff] %vm31_vm2, %v5677_v10 }
 0x158   :  { %3473 = vst.msk [vmem:[#allocation2 + $0x1a8] sm:$0xff] %vm31_vm2, %v6390_v58 }
 0x159   :  { %3457 = vst.msk [vmem:[#allocation2 + $0x128] sm:$0xff] %vm31_vm2, %v6393_v26  ;;  %v934_v39 = vpop.xlane.xlu0 %933 }
 0x15a   :  { %3426 = vst.msk [vmem:[#allocation2 + $0x30] sm:$0xff] %vm31_vm2, %v6398_v17  ;;  %v6463_v5 = vmax.f32 %v6448_v38, %v934_v39  ;;  %v6479_v39 = vld [vmem:[#allocation2 + $0xc0] sm:$0xff] }
 0x15b   :  { %9026 = vst [vmem:[#allocation99_spill] sm:$0xff] %v6411_v52  ;;  %v870_v52 = vpop.xlane.xlu1 %869 }
 0x15c   :  { %9027 = vst [vmem:[#allocation100_spill] sm:$0xff] %v6413_v31  ;;  %v6458_v40 = vmax.f32 %v6444_v28, %v870_v52  ;;  %v6473_v52 = vld [vmem:[#allocation2 + $0x40] sm:$0xff] }
 0x15d   :  { %110 = vst.msk [vmem:[#allocation3 + $0x70] sm:$0xff] %vm31_vm2, %v5677_v10 }
 0x15e   :  { %9028 = vst [vmem:[#allocation101_spill] sm:$0xff] %v6417_v7  ;;  %v902_v7 = vpop.xlane.xlu2 %901 }
 0x15f   :  { %111 = vst.msk [vmem:[#allocation3 + $0x78] sm:$0xff] %vm31_vm2, %v5677_v10  ;;  %v6455_v31 = vmax.f32 %v6442_v23, %v902_v7  ;;  %v6475_v7 = vld [vmem:[#allocation2 + $0x1b8] sm:$0xff] }
 0x160   :  { %112 = vst.msk [vmem:[#allocation3 + $0x80] sm:$0xff] %vm31_vm2, %v5677_v10 }
 0x161   :  { %9029 = vst [vmem:[#allocation102_spill] sm:$0xff] %v6424_v30  ;;  %v904_v54 = vpop.xlane.xlu0 %903 }
 0x162   :  { %113 = vst.msk [vmem:[#allocation3 + $0x88] sm:$0xff] %vm31_vm2, %v5677_v10  ;;  %v6494_v42 = vmax.f32 %v6479_v39, %v904_v54  ;;  %v6510_v54 = vld [vmem:[#allocation2 + $0x48] sm:$0xff] }
 0x163   :  { %9030 = vst [vmem:[#allocation103_spill] sm:$0xff] %v6432_v0 }
 0x164   :  { %114 = vst.msk [vmem:[#allocation3 + $0x90] sm:$0xff] %vm31_vm2, %v5677_v10 }
 0x165   :  { %3458 = vst.msk [vmem:[#allocation2 + $0x130] sm:$0xff] %vm31_vm2, %v6424_v30 }
 0x166   :  { %3442 = vst.msk [vmem:[#allocation2 + $0xb0] sm:$0xff] %vm31_vm2, %v6427_v22 }
 0x167   :  { %3474 = vst.msk [vmem:[#allocation2 + $0x1b0] sm:$0xff] %vm31_vm2, %v6432_v0 }
 0x168   :  { %9031 = vst [vmem:[#allocation104_spill] sm:$0xff] %v6442_v23  ;;  %v966_v23 = vpop.xlane.xlu1 %965 }
 0x169   :  { %9032 = vst [vmem:[#allocation105_spill] sm:$0xff] %v6444_v28  ;;  %v6489_v34 = vmax.f32 %v6475_v7, %v966_v23  ;;  %v6504_v23 = vld [vmem:[#allocation2 + $0x1c0] sm:$0xff]  ;;  %v874_v35 = vpop.xlane.xlu0 %873 }
 0x16a   :  { %115 = vst.msk [vmem:[#allocation3 + $0x98] sm:$0xff] %vm31_vm2, %v5677_v10  ;;  %v6525_v18 = vmax.f32 %v6510_v54, %v874_v35  ;;  %v788_v35 = vpop.f32.mrf.mxu3 }
 0x16b   :  { %9033 = vst [vmem:[#allocation106_spill] sm:$0xff] %v6448_v38  ;;  %v872_v38 = vpop.xlane.xlu2 %871  ;;  %v6556_v20 = vadd.f32 %v6286_v63, %v788_v35  ;;  %v6579_v35 = vld [vmem:[#allocation2 + $0x50] sm:$0xff] }
 0x16c   :  { %116 = vst.msk [vmem:[#allocation3 + $0xa0] sm:$0xff] %vm31_vm2, %v5677_v10  ;;  %v6486_v28 = vmax.f32 %v6473_v52, %v872_v38  ;;  %v6506_v38 = vld [vmem:[#allocation2 + $0x140] sm:$0xff] }
 0x16d   :  { %117 = vst.msk [vmem:[#allocation3 + $0xa8] sm:$0xff] %vm31_vm2, %v5677_v10  ;;  %981 = vmax.xlane.f32.xlu0 %v6556_v20 }
 0x16e   :  { %118 = vst.msk [vmem:[#allocation3 + $0xb0] sm:$0xff] %vm31_vm2, %v5677_v10 }
 0x16f   :  { %9034 = vst [vmem:[#allocation107_spill] sm:$0xff] %v6463_v5 }
 0x170   :  { %119 = vst.msk [vmem:[#allocation3 + $0xb8] sm:$0xff] %vm31_vm2, %v5677_v10 }
 0x171   :  { %3443 = vst.msk [vmem:[#allocation2 + $0xb8] sm:$0xff] %vm31_vm2, %v6455_v31  ;;  %v970_v13 = vpop.xlane.xlu0 %969 }
 0x172   :  { %3427 = vst.msk [vmem:[#allocation2 + $0x38] sm:$0xff] %vm31_vm2, %v6458_v40 }
 0x173   :  { %3459 = vst.msk [vmem:[#allocation2 + $0x138] sm:$0xff] %vm31_vm2, %v6463_v5 }
 0x174   :  { %9035 = vst [vmem:[#allocation108_spill] sm:$0xff] %v6473_v52  ;;  %v936_v52 = vpop.xlane.xlu1 %935 }
 0x175   :  { %9036 = vst [vmem:[#allocation109_spill] sm:$0xff] %v6475_v7  ;;  %v968_v7 = vpop.xlane.xlu2 %967  ;;  %v6520_v53 = vmax.f32 %v6506_v38, %v936_v52  ;;  %v6535_v52 = vld [vmem:[#allocation2 + $0x148] sm:$0xff] }
 0x176   :  { %120 = vst.msk [vmem:[#allocation3 + $0xc0] sm:$0xff] %vm31_vm2, %v5677_v10 }
 0x177   :  { %9037 = vst [vmem:[#allocation110_spill] sm:$0xff] %v6479_v39  ;;  %v6517_v39 = vmax.f32 %v6504_v23, %v968_v7  ;;  %v6537_v7 = vld [vmem:[#allocation2 + $0xc8] sm:$0xff] }
 0x178   :  { %121 = vst.msk [vmem:[#allocation3 + $0xc8] sm:$0xff] %vm31_vm2, %v5677_v10 }
 0x179   :  { %122 = vst.msk [vmem:[#allocation3 + $0xd0] sm:$0xff] %vm31_vm2, %v5677_v10 }
 0x17a   :  { %9038 = vst [vmem:[#allocation111_spill] sm:$0xff] %v6486_v28 }
 0x17b   :  { %9039 = vst [vmem:[#allocation112_spill] sm:$0xff] %v6489_v34 }
 0x17c   :  { %123 = vst.msk [vmem:[#allocation3 + $0xd8] sm:$0xff] %vm31_vm2, %v5677_v10 }
 0x17d   :  { %124 = vst.msk [vmem:[#allocation3 + $0xe0] sm:$0xff] %vm31_vm2, %v5677_v10 }
 0x17e   :  { %3428 = vst.msk [vmem:[#allocation2 + $0x40] sm:$0xff] %vm31_vm2, %v6486_v28 }
 0x17f   :  { %3475 = vst.msk [vmem:[#allocation2 + $0x1b8] sm:$0xff] %vm31_vm2, %v6489_v34 }
 0x180   :  { %3444 = vst.msk [vmem:[#allocation2 + $0xc0] sm:$0xff] %vm31_vm2, %v6494_v42 }
 0x181   :  { %9040 = vst [vmem:[#allocation113_spill] sm:$0xff] %v6504_v23  ;;  %v6541_v23 = vld [vmem:[#allocation2 + $0x1c8] sm:$0xff]  ;;  %1406 = vperm.xlu0 %5254, %v6254_v12  }
 0x182   :  { %9041 = vst [vmem:[#allocation114_spill] sm:$0xff] %v6506_v38  ;;  %v938_v38 = vpop.xlane.xlu2 %937  ;;  %v6559_v27 = vmax.f32 %v6541_v23, %v970_v13  ;;  %v6574_v13 = vadd.f32 %v6286_v63, %v556_v9 }
 0x183   :  { %125 = vst.msk [vmem:[#allocation3 + $0xe8] sm:$0xff] %vm31_vm2, %v5677_v10  ;;  %v6548_v36 = vmax.f32 %v6535_v52, %v938_v38  ;;  %v6566_v38 = vadd.f32 %v6286_v63, %v672_v25  ;;  %v6583_v25 = vld [vmem:[#allocation2 + $0x150] sm:$0xff] }
 0x184   :  { %9042 = vst [vmem:[#allocation115_spill] sm:$0xff] %v6510_v54  ;;  %v906_v54 = vpop.xlane.xlu1 %905  ;;  %917 = vmax.xlane.f32.xlu1 %v6574_v13 }
 0x185   :  { %126 = vst.msk [vmem:[#allocation3 + $0xf0] sm:$0xff] %vm31_vm2, %v5677_v10  ;;  %v6551_v29 = vmax.f32 %v6537_v7, %v906_v54  ;;  %949 = vmax.xlane.f32.xlu2 %v6566_v38  ;;  %v6577_v54 = vld [vmem:[#allocation2 + $0xd0] sm:$0xff] }
 0x186   :  { %127 = vst.msk [vmem:[#allocation3 + $0xf8] sm:$0xff] %vm31_vm2, %v5677_v10 }
 0x187   :  { %9043 = vst [vmem:[#allocation116_spill] sm:$0xff] %v6517_v39 }
 0x188   :  { %9044 = vst [vmem:[#allocation117_spill] sm:$0xff] %v6520_v53 }
 0x189   :  { %128 = vst.msk [vmem:[#allocation3 + $0x100] sm:$0xff] %vm31_vm2, %v5677_v10  ;;  %1251 = vperm.xlu0 %5254, %v6245_v49  }
 0x18a   :  { %129 = vst.msk [vmem:[#allocation3 + $0x108] sm:$0xff] %vm31_vm2, %v5677_v10 }
 0x18b   :  { %3476 = vst.msk [vmem:[#allocation2 + $0x1c0] sm:$0xff] %vm31_vm2, %v6517_v39 }
 0x18c   :  { %3460 = vst.msk [vmem:[#allocation2 + $0x140] sm:$0xff] %vm31_vm2, %v6520_v53 }
 0x18d   :  { %3429 = vst.msk [vmem:[#allocation2 + $0x48] sm:$0xff] %vm31_vm2, %v6525_v18 }
 0x18e   :  { %9045 = vst [vmem:[#allocation118_spill] sm:$0xff] %v6535_v52  ;;  %v876_v52 = vpop.xlane.xlu1 %875 }
 0x18f   :  { %9046 = vst [vmem:[#allocation119_spill] sm:$0xff] %v6537_v7  ;;  %v6594_v63 = vmax.f32 %v6579_v35, %v876_v52  ;;  %v940_v7 = vpop.xlane.xlu0 %939  ;;  %v6611_v52 = vld [vmem:[#allocation2 + $0x1d0] sm:$0xff] }
 0x190   :  { %130 = vst.msk [vmem:[#allocation3 + $0x110] sm:$0xff] %vm31_vm2, %v5677_v10 }
 0x191   :  { %9047 = vst [vmem:[#allocation120_spill] sm:$0xff] %v6541_v23  ;;  %v908_v23 = vpop.xlane.xlu2 %907  ;;  %1331 = vperm.xlu0 %5254, %v6278_v51  }
 0x192   :  { %131 = vst.msk [vmem:[#allocation3 + $0x118] sm:$0xff] %vm31_vm2, %v5677_v10  ;;  %v6591_v9 = vmax.f32 %v6577_v54, %v908_v23  ;;  %v6609_v23 = vld [vmem:[#allocation2 + $0x58] sm:$0xff] }
 0x193   :  { %132 = vst.msk [vmem:[#allocation3 + $0x120] sm:$0xff] %vm31_vm2, %v5677_v10 }
 0x194   :  { %9048 = vst [vmem:[#allocation121_spill] sm:$0xff] %v6548_v36 }
 0x195   :  { %9049 = vst [vmem:[#allocation122_spill] sm:$0xff] %v6551_v29 }
 0x196   :  { %133 = vst.msk [vmem:[#allocation3 + $0x128] sm:$0xff] %vm31_vm2, %v5677_v10 }
 0x197   :  { %9050 = vst [vmem:[#allocation123_spill] sm:$0xff] %v6556_v20  ;;  %v6599_v20 = vmax.f32 %v6583_v25, %v940_v7  ;;  %v6615_v7 = vld [vmem:[#allocation2 + $0xd8] sm:$0xff] }
 0x198   :  { %9051 = vst [vmem:[#allocation124_spill] sm:$0xff] %v6559_v27 }
 0x199   :  { %134 = vst.msk [vmem:[#allocation3 + $0x130] sm:$0xff] %vm31_vm2, %v5677_v10  ;;  %1496 = vperm.xlu0 %5254, %v6301_v32  }
 0x19a   :  { %3461 = vst.msk [vmem:[#allocation2 + $0x148] sm:$0xff] %vm31_vm2, %v6548_v36 }
 0x19b   :  { %9052 = vst [vmem:[#allocation125_spill] sm:$0xff] %v6566_v38 }
 0x19c   :  { %3445 = vst.msk [vmem:[#allocation2 + $0xc8] sm:$0xff] %vm31_vm2, %v6551_v29 }
 0x19d   :  { %3477 = vst.msk [vmem:[#allocation2 + $0x1c8] sm:$0xff] %vm31_vm2, %v6559_v27  ;;  %1246 = vperm.xlu2 %5253, %v6227_v62   ;;  %1401 = vperm.xlu1 %5252, %v6189_v41  }
 0x19e   :  { %9053 = vst [vmem:[#allocation126_spill] sm:$0xff] %v6574_v13  ;;  %v910_v13 = vpop.xlane.xlu0 %909 }
 0x19f   :  { %9054 = vst [vmem:[#allocation127_spill] sm:$0xff] %v6577_v54  ;;  %v972_v54 = vpop.xlane.xlu1 %971  ;;  %v6630_v1 = vmax.f32 %v6615_v7, %v910_v13  ;;  %v6646_v13 = vld [vmem:[#allocation2 + $0x60] sm:$0xff] }
 0x1a0   :  { %9055 = vst [vmem:[#allocation128_spill] sm:$0xff] %v6579_v35  ;;  %v6625_v38 = vmax.f32 %v6611_v52, %v972_v54  ;;  %v6640_v54 = vld [vmem:[#allocation2 + $0x1d8] sm:$0xff] }
 0x1a1   :  { %135 = vst.msk [vmem:[#allocation3 + $0x138] sm:$0xff] %vm31_vm2, %v5677_v10  ;;  %1421 = vperm.xlu0 %5254, %v6336_v55  }
 0x1a2   :  { %9056 = vst [vmem:[#allocation129_spill] sm:$0xff] %v6583_v25  ;;  %v878_v25 = vpop.xlane.xlu2 %877 }
 0x1a3   :  { %136 = vst.msk [vmem:[#allocation3 + $0x140] sm:$0xff] %vm31_vm2, %v5677_v10  ;;  %v6622_v35 = vmax.f32 %v6609_v23, %v878_v25  ;;  %v6642_v25 = vld [vmem:[#allocation2 + $0x158] sm:$0xff] }
 0x1a4   :  { %137 = vst.msk [vmem:[#allocation3 + $0x148] sm:$0xff] %vm31_vm2, %v5677_v10 }
 0x1a5   :  { %9057 = vst [vmem:[#allocation130_spill] sm:$0xff] %v6591_v9  ;;  %1486 = vperm.xlu2 %5253, %v6220_v37   ;;  %1326 = vperm.xlu1 %5252, %v6213_v19  }
 0x1a6   :  { %9058 = vst [vmem:[#allocation131_spill] sm:$0xff] %v6594_v63  ;;  %v880_v16 = vpop.xlane.xlu0 %879 }
 0x1a7   :  { %138 = vst.msk [vmem:[#allocation3 + $0x150] sm:$0xff] %vm31_vm2, %v5677_v10  ;;  %v6662_v21 = vmax.f32 %v6646_v13, %v880_v16  ;;  %v6679_v16 = vld [vmem:[#allocation2 + $0x1e0] sm:$0xff] }
 0x1a8   :  { %9059 = vst [vmem:[#allocation132_spill] sm:$0xff] %v6599_v20 }
 0x1a9   :  { %139 = vst.msk [vmem:[#allocation3 + $0x158] sm:$0xff] %vm31_vm2, %v5677_v10  ;;  %1346 = vperm.xlu0 %5254, %v6367_v14  }
 0x1aa   :  { %3446 = vst.msk [vmem:[#allocation2 + $0xd0] sm:$0xff] %vm31_vm2, %v6591_v9 }
 0x1ab   :  { %3430 = vst.msk [vmem:[#allocation2 + $0x50] sm:$0xff] %vm31_vm2, %v6594_v63 }
 0x1ac   :  { %3462 = vst.msk [vmem:[#allocation2 + $0x150] sm:$0xff] %vm31_vm2, %v6599_v20 }
 0x1ad   :  { %9060 = vst [vmem:[#allocation133_spill] sm:$0xff] %v6609_v23  ;;  %v942_v23 = vpop.xlane.xlu1 %941  ;;  %1411 = vperm.xlu2 %5253, %v6268_v33   ;;  %1491 = vperm.xlu1 %5252, %v6236_v60  }
 0x1ae   :  { %9061 = vst [vmem:[#allocation134_spill] sm:$0xff] %v6611_v52  ;;  %v974_v52 = vpop.xlane.xlu2 %973  ;;  %v6657_v6 = vmax.f32 %v6642_v25, %v942_v23  ;;  %v6673_v23 = vld [vmem:[#allocation2 + $0x160] sm:$0xff]  ;;  %v976_v62 = vpop.xlane.xlu0 %975 }
 0x1af   :  { %140 = vst.msk [vmem:[#allocation3 + $0x160] sm:$0xff] %vm31_vm2, %v5677_v10  ;;  %v6696_v4 = vmax.f32 %v6679_v16, %v976_v62  ;;  %v6713_v62 = vld [vmem:[#allocation2 + $0x168] sm:$0xff] }
 0x1b0   :  { %9062 = vst [vmem:[#allocation135_spill] sm:$0xff] %v6615_v7  ;;  %v6654_v7 = vmax.f32 %v6640_v54, %v974_v52  ;;  %v6675_v52 = vld [vmem:[#allocation2 + $0xe0] sm:$0xff] }
 0x1b1   :  { %141 = vst.msk [vmem:[#allocation3 + $0x168] sm:$0xff] %vm31_vm2, %v5677_v10  ;;  %1511 = vperm.xlu0 %5254, %v6432_v0   ;;  %v6992_v0 = vld [vmem:[#allocation2 + $0x1f8] sm:$0xff] }
 0x1b2   :  { %142 = vst.msk [vmem:[#allocation3 + $0x170] sm:$0xff] %vm31_vm2, %v5677_v10 }
 0x1b3   :  { %9063 = vst [vmem:[#allocation136_spill] sm:$0xff] %v6622_v35 }
 0x1b4   :  { %9064 = vst [vmem:[#allocation137_spill] sm:$0xff] %v6625_v38 }
 0x1b5   :  { %143 = vst.msk [vmem:[#allocation3 + $0x178] sm:$0xff] %vm31_vm2, %v5677_v10  ;;  %1256 = vperm.xlu2 %5253, %v6294_v11   ;;  %1416 = vperm.xlu1 %5252, %v6261_v43   ;;  %v5191_v43 = vld [vmem:[%s8753_s2 + $0x88] sm:$0xff] }
 0x1b6   :  { %144 = vst.msk [vmem:[#allocation3 + $0x180] sm:$0xff] %vm31_vm2, %v5677_v10  ;;  %v946_v41 = vpop.xlane.xlu0 %945 }
 0x1b7   :  { %3431 = vst.msk [vmem:[#allocation2 + $0x58] sm:$0xff] %vm31_vm2, %v6622_v35  ;;  %v6730_v49 = vmax.f32 %v6713_v62, %v946_v41  ;;  %v6747_v41 = vld [vmem:[#allocation2 + $0xf0] sm:$0xff] }
 0x1b8   :  { %3478 = vst.msk [vmem:[#allocation2 + $0x1d0] sm:$0xff] %vm31_vm2, %v6625_v38 }
 0x1b9   :  { %3447 = vst.msk [vmem:[#allocation2 + $0xd8] sm:$0xff] %vm31_vm2, %v6630_v1  ;;  %1436 = vperm.xlu0 %5254, %v6463_v5  }
 0x1ba   :  { %9065 = vst [vmem:[#allocation138_spill] sm:$0xff] %v6640_v54  ;;  %v944_v54 = vpop.xlane.xlu2 %943 }
 0x1bb   :  { %9066 = vst [vmem:[#allocation139_spill] sm:$0xff] %v6642_v25  ;;  %v912_v25 = vpop.xlane.xlu1 %911 }
 0x1bc   :  { %145 = vst.msk [vmem:[#allocation3 + $0x188] sm:$0xff] %vm31_vm2, %v5677_v10  ;;  %v6690_v12 = vmax.f32 %v6675_v52, %v912_v25  ;;  %v6709_v25 = vld [vmem:[#allocation2 + $0x68] sm:$0xff] }
 0x1bd   :  { %9067 = vst [vmem:[#allocation140_spill] sm:$0xff] %v6646_v13  ;;  %v6687_v13 = vmax.f32 %v6673_v23, %v944_v54  ;;  %v6707_v54 = vld [vmem:[#allocation2 + $0xe8] sm:$0xff]  ;;  %1336 = vperm.xlu2 %5253, %v6331_v8   ;;  %1261 = vperm.xlu1 %5252, %v6291_v24  }
 0x1be   :  { %146 = vst.msk [vmem:[#allocation3 + $0x190] sm:$0xff] %vm31_vm2, %v5677_v10  ;;  %v916_v19 = vpop.xlane.xlu0 %915 }
 0x1bf   :  { %147 = vst.msk [vmem:[#allocation3 + $0x198] sm:$0xff] %vm31_vm2, %v5677_v10  ;;  %v6764_v51 = vmax.f32 %v6747_v41, %v916_v19  ;;  %v6781_v19 = vld [vmem:[#allocation2 + $0x78] sm:$0xff] }
 0x1c0   :  { %9068 = vst [vmem:[#allocation141_spill] sm:$0xff] %v6654_v7 }
 0x1c1   :  { %9069 = vst [vmem:[#allocation142_spill] sm:$0xff] %v6657_v6  ;;  %1361 = vperm.xlu0 %5254, %v6494_v42  }
 0x1c2   :  { %148 = vst.msk [vmem:[#allocation3 + $0x1a0] sm:$0xff] %vm31_vm2, %v5677_v10 }
 0x1c3   :  { %9070 = vst [vmem:[#allocation143_spill] sm:$0xff] %v6662_v21 }
 0x1c4   :  { %149 = vst.msk [vmem:[#allocation3 + $0x1a8] sm:$0xff] %vm31_vm2, %v5677_v10 }
 0x1c5   :  { %3479 = vst.msk [vmem:[#allocation2 + $0x1d8] sm:$0xff] %vm31_vm2, %v6654_v7  ;;  %1501 = vperm.xlu2 %5253, %v6362_v47   ;;  %1341 = vperm.xlu1 %5252, %v6328_v46  }
 0x1c6   :  { %3463 = vst.msk [vmem:[#allocation2 + $0x158] sm:$0xff] %vm31_vm2, %v6657_v6 }
 0x1c7   :  { %3432 = vst.msk [vmem:[#allocation2 + $0x60] sm:$0xff] %vm31_vm2, %v6662_v21 }
 0x1c8   :  { %9071 = vst [vmem:[#allocation144_spill] sm:$0xff] %v6673_v23  ;;  %v882_v23 = vpop.xlane.xlu1 %881 }
 0x1c9   :  { %9072 = vst [vmem:[#allocation145_spill] sm:$0xff] %v6675_v52  ;;  %v6724_v52 = vmax.f32 %v6709_v25, %v882_v23  ;;  %v6741_v23 = vld [vmem:[#allocation2 + $0x70] sm:$0xff]  ;;  %1286 = vperm.xlu0 %5254, %v6525_v18  }
 0x1ca   :  { %150 = vst.msk [vmem:[#allocation3 + $0x1b0] sm:$0xff] %vm31_vm2, %v5677_v10 }
 0x1cb   :  { %9073 = vst [vmem:[#allocation146_spill] sm:$0xff] %v6679_v16  ;;  %v914_v16 = vpop.xlane.xlu2 %913 }
 0x1cc   :  { %151 = vst.msk [vmem:[#allocation3 + $0x1b8] sm:$0xff] %vm31_vm2, %v5677_v10  ;;  %v6721_v37 = vmax.f32 %v6707_v54, %v914_v16  ;;  %v6743_v16 = vld [vmem:[#allocation2 + $0x1e8] sm:$0xff] }
 0x1cd   :  { %152 = vst.msk [vmem:[#allocation3 + $0x1c0] sm:$0xff] %vm31_vm2, %v5677_v10  ;;  %1266 = vperm.xlu2 %5253, %v6359_v3   ;;  %1506 = vperm.xlu1 %5252, %v6390_v58   ;;  %v5203_v58 = vld [vmem:[%s8753_s2 + $0xe8] sm:$0xff] }
 0x1ce   :  { %9074 = vst [vmem:[#allocation147_spill] sm:$0xff] %v6687_v13 }
 0x1cf   :  { %9075 = vst [vmem:[#allocation148_spill] sm:$0xff] %v6690_v12 }
 0x1d0   :  { %153 = vst.msk [vmem:[#allocation3 + $0x1c8] sm:$0xff] %vm31_vm2, %v5677_v10 }
 0x1d1   :  { %9076 = vst [vmem:[#allocation149_spill] sm:$0xff] %v6696_v4  ;;  %1526 = vperm.xlu0 %5254, %v6559_v27   ;;  %v5201_v27 = vld [vmem:[%s8753_s2 + $0xd8] sm:$0xff] }
 0x1d2   :  { %154 = vst.msk [vmem:[#allocation3 + $0x1d0] sm:$0xff] %vm31_vm2, %v5677_v10 }
 0x1d3   :  { %3464 = vst.msk [vmem:[#allocation2 + $0x160] sm:$0xff] %vm31_vm2, %v6687_v13 }
 0x1d4   :  { %3448 = vst.msk [vmem:[#allocation2 + $0xe0] sm:$0xff] %vm31_vm2, %v6690_v12 }
 0x1d5   :  { %3480 = vst.msk [vmem:[#allocation2 + $0x1e0] sm:$0xff] %vm31_vm2, %v6696_v4  ;;  %1426 = vperm.xlu2 %5253, %v6393_v26   ;;  %1271 = vperm.xlu1 %5252, %v6398_v17  }
 0x1d6   :  { %9077 = vst [vmem:[#allocation150_spill] sm:$0xff] %v6707_v54  ;;  %v978_v54 = vpop.xlane.xlu1 %977 }
 0x1d7   :  { %9078 = vst [vmem:[#allocation151_spill] sm:$0xff] %v6709_v25  ;;  %v6758_v33 = vmax.f32 %v6743_v16, %v978_v54  ;;  %v6775_v54 = vld [vmem:[#allocation2 + $0x1f0] sm:$0xff] }
 0x1d8   :  { %155 = vst.msk [vmem:[#allocation3 + $0x1d8] sm:$0xff] %vm31_vm2, %v5677_v10 }
 0x1d9   :  { %9079 = vst [vmem:[#allocation152_spill] sm:$0xff] %v6713_v62  ;;  %v884_v62 = vpop.xlane.xlu2 %883  ;;  %1451 = vperm.xlu0 %5254, %v6599_v20  }
 0x1da   :  { %156 = vst.msk [vmem:[#allocation3 + $0x1e0] sm:$0xff] %vm31_vm2, %v5677_v10  ;;  %v6755_v25 = vmax.f32 %v6741_v23, %v884_v62  ;;  %v6777_v62 = vld [vmem:[#allocation2 + $0x170] sm:$0xff] }
 0x1db   :  { %157 = vst.msk [vmem:[#allocation3 + $0x1e8] sm:$0xff] %vm31_vm2, %v5677_v10 }
 0x1dc   :  { %9080 = vst [vmem:[#allocation153_spill] sm:$0xff] %v6721_v37 }
 0x1dd   :  { %9081 = vst [vmem:[#allocation154_spill] sm:$0xff] %v6724_v52  ;;  %1351 = vperm.xlu2 %5253, %v6427_v22   ;;  %1431 = vperm.xlu1 %5252, %v6424_v30   ;;  %v7004_v30 = vld [vmem:[#allocation2 + $0x178] sm:$0xff] }
 0x1de   :  { %158 = vst.msk [vmem:[#allocation3 + $0x1f0] sm:$0xff] %vm31_vm2, %v5677_v10  ;;  %v948_v60 = vpop.xlane.xlu1 %947 }
 0x1df   :  { %9082 = vst [vmem:[#allocation155_spill] sm:$0xff] %v6730_v49 }
 0x1e0   :  { %159 = vst.msk [vmem:[#allocation3 + $0x1f8] sm:$0xff] %vm31_vm2, %v5677_v10 }
 0x1e1   :  { %3449 = vst.msk [vmem:[#allocation2 + $0xe8] sm:$0xff] %vm31_vm2, %v6721_v37  ;;  %1376 = vperm.xlu0 %5254, %v6630_v1  }
 0x1e2   :  { %3433 = vst.msk [vmem:[#allocation2 + $0x68] sm:$0xff] %vm31_vm2, %v6724_v52 }
 0x1e3   :  { %3465 = vst.msk [vmem:[#allocation2 + $0x168] sm:$0xff] %vm31_vm2, %v6730_v49 }
 0x1e4   :  { %9083 = vst [vmem:[#allocation156_spill] sm:$0xff] %v6741_v23  ;;  %v6792_v23 = vmax.f32 %v6777_v62, %v948_v60  ;;  %v5181_v60 = vld [vmem:[%s8753_s2 + $0x38] sm:$0xff] }
 0x1e5   :  { %9084 = vst [vmem:[#allocation157_spill] sm:$0xff] %v6743_v16  ;;  %v980_v16 = vpop.xlane.xlu2 %979  ;;  %2808 = vmatpush.bf16.msrb.mxu0 %v5181_v60  ;;  %v5205_v60 = vld [vmem:[%s8753_s2 + $0xf8] sm:$0xff]  ;;  %1276 = vperm.xlu2 %5253, %v6458_v40  }
 0x1e6   :  { %161 = vst.msk [vmem:[#allocation4] sm:$0xff] %vm160_vm1, %v5677_v10  ;;  %v6789_v32 = vmax.f32 %v6775_v54, %v980_v16  ;;  %v5180_v16 = vld [vmem:[%s8753_s2 + $0x30] sm:$0xff]  ;;  %3243 = vmatpush.bf16.msrb.mxu3 %v5205_v60  ;;  %v5177_v60 = vld [vmem:[%s8753_s2 + $0x18] sm:$0xff]  ;;  %1356 = vperm.xlu1 %5252, %v6455_v31  }
 0x1e7   :  { %9085 = vst [vmem:[#allocation158_spill] sm:$0xff] %v6747_v41  ;;  %v886_v41 = vpop.xlane.xlu0 %885 }
 0x1e8   :  { %162 = vst.msk [vmem:[#allocation4 + $0x8] sm:$0xff] %vm160_vm1, %v5677_v10  ;;  %v6798_v11 = vmax.f32 %v6781_v19, %v886_v41  ;;  %v5179_v41 = vld [vmem:[%s8753_s2 + $0x28] sm:$0xff] }
 0x1e9   :  { %163 = vst.msk [vmem:[#allocation4 + $0x10] sm:$0xff] %vm160_vm1, %v5677_v10  ;;  %2809 = vmatpush.bf16.msrb.mxu0 %v5180_v16  ;;  %v5178_v16 = vld [vmem:[%s8753_s2 + $0x20] sm:$0xff]  ;;  %1301 = vperm.xlu0 %5254, %v6662_v21  }
 0x1ea   :  { %9086 = vst [vmem:[#allocation159_spill] sm:$0xff] %v6755_v25 }
 0x1eb   :  { %9087 = vst [vmem:[#allocation160_spill] sm:$0xff] %v6758_v33 }
 0x1ec   :  { %164 = vst.msk [vmem:[#allocation4 + $0x18] sm:$0xff] %vm160_vm1, %v5677_v10 }
 0x1ed   :  { %9088 = vst [vmem:[#allocation161_spill] sm:$0xff] %v6764_v51  ;;  %2810 = vmatpush.bf16.msrb.mxu0 %v5179_v41  ;;  %v5197_v41 = vld [vmem:[%s8753_s2 + $0xb8] sm:$0xff]  ;;  %1516 = vperm.xlu2 %5253, %v6489_v34   ;;  %v5175_v34 = vld [vmem:[%s8753_s2 + $0x8] sm:$0xff]  ;;  %v6974_v47 = vpop.permute.xlu2 %1321 }
 0x1ee   :  { %165 = vst.msk [vmem:[#allocation4 + $0x20] sm:$0xff] %vm160_vm1, %v5677_v10  ;;  %3098 = vmatpush.bf16.msrb.mxu2 %v5197_v41  ;;  %v5196_v41 = vld [vmem:[%s8753_s2 + $0xb0] sm:$0xff]  ;;  %1281 = vperm.xlu1 %5252, %v6486_v28  }
 0x1ef   :  { %3434 = vst.msk [vmem:[#allocation2 + $0x70] sm:$0xff] %vm31_vm2, %v6755_v25 }
 0x1f0   :  { %3481 = vst.msk [vmem:[#allocation2 + $0x1e8] sm:$0xff] %vm31_vm2, %v6758_v33 }
 0x1f1   :  { %3450 = vst.msk [vmem:[#allocation2 + $0xf0] sm:$0xff] %vm31_vm2, %v6764_v51  ;;  %2811 = vmatpush.bf16.msrb.mxu0 %v5178_v16  ;;  %v5176_v16 = vld [vmem:[%s8753_s2 + $0x10] sm:$0xff]  ;;  %1541 = vperm.xlu0 %5254, %v6696_v4  }
 0x1f2   :  { %9089 = vst [vmem:[#allocation162_spill] sm:$0xff] %v6775_v54  ;;  %v5204_v54 = vld [vmem:[%s8753_s2 + $0xf0] sm:$0xff]  ;;  %3099 = vmatpush.bf16.msrb.mxu2 %v5196_v41 }
 0x1f3   :  { %9090 = vst [vmem:[#allocation163_spill] sm:$0xff] %v6777_v62  ;;  %3244 = vmatpush.bf16.msrb.mxu3 %v5204_v54  ;;  %v5202_v54 = vld [vmem:[%s8753_s2 + $0xe0] sm:$0xff]  ;;  %v1242_v62 = vpop.permute.xlu1 %1241  ;;  %v5200_v41 = vld [vmem:[%s8753_s2 + $0xd0] sm:$0xff] }
 0x1f4   :  { %166 = vst.msk [vmem:[#allocation4 + $0x28] sm:$0xff] %vm160_vm1, %v5677_v10  ;;  %v1559_v20 = vsub.f32 %v5865_v44, %v1242_v62  ;;  %v5193_v44 = vld [vmem:[%s8753_s2 + $0x98] sm:$0xff] }
 0x1f5   :  { %9091 = vst [vmem:[#allocation164_spill] sm:$0xff] %v6781_v19  ;;  %2812 = vmatpush.bf16.msrb.mxu0 %v5177_v60  ;;  %v6961_v60 = vpop.permute.xlu0 %1481  ;;  %1441 = vperm.xlu2 %5253, %v6520_v53   ;;  %v5199_v53 = vld [vmem:[%s8753_s2 + $0xc8] sm:$0xff] }
 0x1f6   :  { %167 = vst.msk [vmem:[#allocation4 + $0x30] sm:$0xff] %vm160_vm1, %v5677_v10  ;;  %1521 = vperm.xlu1 %5252, %v6517_v39   ;;  %v1607_v62 = vsub.f32 %v5873_v50, %v6961_v60  ;;  %v5184_v50 = vld [vmem:[%s8753_s2 + $0x50] sm:$0xff] }
 0x1f7   :  { %168 = vst.msk [vmem:[#allocation4 + $0x38] sm:$0xff] %vm160_vm1, %v5677_v10  ;;  %3245 = vmatpush.bf16.msrb.mxu3 %v5203_v58  ;;  %v5189_v58 = vld [vmem:[%s8753_s2 + $0x78] sm:$0xff] }
 0x1f8   :  { %9092 = vst [vmem:[#allocation165_spill] sm:$0xff] %v6789_v32  ;;  %2953 = vmatpush.bf16.msrb.mxu1 %v5189_v58  ;;  %v5188_v58 = vld [vmem:[%s8753_s2 + $0x70] sm:$0xff] }
 0x1f9   :  { %9093 = vst [vmem:[#allocation166_spill] sm:$0xff] %v6792_v23  ;;  %2813 = vmatpush.bf16.msrb.mxu0 %v5176_v16  ;;  %v5195_v16 = vld [vmem:[%s8753_s2 + $0xa8] sm:$0xff]  ;;  %1466 = vperm.xlu0 %5254, %v6730_v49   ;;  %v9110_v49 = vld [vmem:[#allocation16_spill] sm:$0xff] }
 0x1fa   :  { %169 = vst.msk [vmem:[#allocation4 + $0x40] sm:$0xff] %vm160_vm1, %v5677_v10  ;;  %3100 = vmatpush.bf16.msrb.mxu2 %v5195_v16  ;;  %v7011_v16 = vld [vmem:[#allocation2 + $0xf8] sm:$0xff] }
 0x1fb   :  { %9094 = vst [vmem:[#allocation167_spill] sm:$0xff] %v6798_v11  ;;  %3246 = vmatpush.bf16.msrb.mxu3 %v5202_v54  ;;  %v5174_v54 = vld [vmem:[%s8753_s2] sm:$0xff] }
 0x1fc   :  { %170 = vst.msk [vmem:[#allocation4 + $0x48] sm:$0xff] %vm160_vm1, %v5677_v10  ;;  %2954 = vmatpush.bf16.msrb.mxu1 %v5188_v58  ;;  %v5198_v58 = vld [vmem:[%s8753_s2 + $0xc0] sm:$0xff] }
 0x1fd   :  { %3482 = vst.msk [vmem:[#allocation2 + $0x1f0] sm:$0xff] %vm31_vm2, %v6789_v32  ;;  %2814 = vmatpush.bf16.msrb.mxu0 %v5175_v34  ;;  %v5194_v34 = vld [vmem:[%s8753_s2 + $0xa0] sm:$0xff]  ;;  %v950_v32 = vpop.xlane.xlu2 %949  ;;  %1366 = vperm.xlu2 %5253, %v6551_v29  }
 0x1fe   :  { %3466 = vst.msk [vmem:[#allocation2 + $0x170] sm:$0xff] %vm31_vm2, %v6792_v23  ;;  %3101 = vmatpush.bf16.msrb.mxu2 %v5194_v34  ;;  %v1623_v34 = vmul.f32 1.442695, %v1559_v20  ;;  %1446 = vperm.xlu1 %5252, %v6548_v36  }
 0x1ff   :  { %3435 = vst.msk [vmem:[#allocation2 + $0x78] sm:$0xff] %vm31_vm2, %v6798_v11  ;;  %3247 = vmatpush.bf16.msrb.mxu3 %v5201_v27 }
 0x200   :  { %171 = vst.msk [vmem:[#allocation4 + $0x50] sm:$0xff] %vm160_vm1, %v5677_v10  ;;  %5257 = vpow2.f32 %v1623_v34 }
 0x201   :  { %172 = vst.msk [vmem:[#allocation4 + $0x58] sm:$0xff] %vm160_vm1, %v5677_v10  ;;  %2815 = vmatpush.bf16.msrb.mxu0 %v5174_v54  ;;  %v7022_v54 = vmax.f32 %v7004_v30, %v950_v32  ;;  %1391 = vperm.xlu0 %5254, %v6764_v51   ;;  %v9117_v51 = vld [vmem:[#allocation25_spill] sm:$0xff] }
 0x202   :  { %173 = vst.msk [vmem:[#allocation4 + $0x60] sm:$0xff] %vm160_vm1, %v5677_v10  ;;  %3102 = vmatpush.bf16.msrb.mxu2 %v5193_v44  ;;  %v5185_v44 = vld [vmem:[%s8753_s2 + $0x58] sm:$0xff] }
 0x203   :  { %174 = vst.msk [vmem:[#allocation4 + $0x68] sm:$0xff] %vm160_vm1, %v5677_v10  ;;  %3248 = vmatpush.bf16.msrb.mxu3 %v5200_v41  ;;  %v5187_v41 = vld [vmem:[%s8753_s2 + $0x68] sm:$0xff] }
 0x204   :  { %175 = vst.msk [vmem:[#allocation4 + $0x70] sm:$0xff] %vm160_vm1, %v5677_v10  ;;  %2955 = vmatpush.bf16.msrb.mxu1 %v5187_v41 }
 0x205   :  { %176 = vst.msk [vmem:[#allocation4 + $0x78] sm:$0xff] %vm160_vm1, %v5677_v10  ;;  %v1247_v20 = vpop.permute.xlu2 %1246  ;;  %1291 = vperm.xlu2 %5253, %v6594_v63  }
 0x206   :  { %177 = vst.msk [vmem:[#allocation4 + $0x80] sm:$0xff] %vm160_vm1, %v5677_v10  ;;  %v1560_v41 = vsub.f32 %v5884_v59, %v1247_v20  ;;  %v5190_v59 = vld [vmem:[%s8753_s2 + $0x80] sm:$0xff]  ;;  %v7069_v60 = vpop.eup %5257  ;;  %1371 = vperm.xlu1 %5252, %v6591_v9  }
 0x207   :  { %178 = vst.msk [vmem:[#allocation4 + $0x88] sm:$0xff] %vm160_vm1, %v5677_v10  ;;  %3249 = vmatpush.bf16.msrb.mxu3 %v5199_v53  ;;  %v5192_v53 = vld [vmem:[%s8753_s2 + $0x90] sm:$0xff]  ;;  %v2584_v34 = vpack.c.bf16 %v7069_v60, %v7069_v60 }
 0x208   :  { %179 = vst.msk [vmem:[#allocation4 + $0x90] sm:$0xff] %vm160_vm1, %v5677_v10  ;;  %3103 = vmatpush.bf16.msrb.mxu2 %v5192_v53  ;;  %v1625_v39 = vmul.f32 1.442695, %v1560_v41 }
 0x209   :  { %180 = vst.msk [vmem:[#allocation4 + $0x98] sm:$0xff] %vm160_vm1, %v5677_v10  ;;  %v2728_v41 = vunpack.c.l.b16 %v2584_v34  ;;  %1316 = vperm.xlu0 %5254, %v6798_v11  }
 0x20a   :  { %181 = vst.msk [vmem:[#allocation4 + $0xa0] sm:$0xff] %vm160_vm1, %v5677_v10  ;;  %5259 = vpow2.f32 %v1625_v39 }
 0x20b   :  { %182 = vst.msk [vmem:[#allocation4 + $0xa8] sm:$0xff] %vm160_vm1, %v5677_v10  ;;  %3250 = vmatpush.bf16.msrb.mxu3 %v5198_v58 }
 0x20c   :  { %183 = vst.msk [vmem:[#allocation4 + $0xb0] sm:$0xff] %vm160_vm1, %v5677_v10  ;;  %3104 = vmatpush.bf16.msrb.mxu2 %v5191_v43  ;;  %v5183_v43 = vld [vmem:[%s8753_s2 + $0x48] sm:$0xff] }
 0x20d   :  { %184 = vst.msk [vmem:[#allocation4 + $0xb8] sm:$0xff] %vm160_vm1, %v5677_v10  ;;  %v1487_v58 = vpop.permute.xlu2 %1486  ;;  %1531 = vperm.xlu2 %5253, %v6625_v38  }
 0x20e   :  { %185 = vst.msk [vmem:[#allocation4 + $0xc0] sm:$0xff] %vm160_vm1, %v5677_v10  ;;  %v1608_v39 = vsub.f32 %v5882_v57, %v1487_v58  ;;  %v5182_v57 = vld [vmem:[%s8753_s2 + $0x40] sm:$0xff]  ;;  %1296 = vperm.xlu1 %5252, %v6622_v35  }
 0x20f   :  { %186 = vst.msk [vmem:[#allocation4 + $0xc8] sm:$0xff] %vm160_vm1, %v5677_v10 }
 0x210   :  { %187 = vst.msk [vmem:[#allocation4 + $0xd0] sm:$0xff] %vm160_vm1, %v5677_v10  ;;  %3105 = vmatpush.bf16.msrb.mxu2 %v5190_v59  ;;  %v1721_v53 = vmul.f32 1.442695, %v1608_v39 }
 0x211   :  { %188 = vst.msk [vmem:[#allocation4 + $0xd8] sm:$0xff] %vm160_vm1, %v5677_v10 }
 0x212   :  { %189 = vst.msk [vmem:[#allocation4 + $0xe0] sm:$0xff] %vm160_vm1, %v5677_v10 }
 0x213   :  { %190 = vst.msk [vmem:[#allocation4 + $0xe8] sm:$0xff] %vm160_vm1, %v5677_v10 }
 0x214   :  { %191 = vst.msk [vmem:[#allocation4 + $0xf0] sm:$0xff] %vm160_vm1, %v5677_v10 }
 0x215   :  { %192 = vst.msk [vmem:[#allocation4 + $0xf8] sm:$0xff] %vm160_vm1, %v5677_v10  ;;  %v7091_v58 = vpop.permute.xlu2 %1411  ;;  %1456 = vperm.xlu2 %5253, %v6657_v6  }
 0x216   :  { %193 = vst.msk [vmem:[#allocation4 + $0x100] sm:$0xff] %vm160_vm1, %v5677_v10  ;;  %1536 = vperm.xlu1 %5252, %v6654_v7  }
 0x217   :  { %194 = vst.msk [vmem:[#allocation4 + $0x108] sm:$0xff] %vm160_vm1, %v5677_v10 }
 0x218   :  { %195 = vst.msk [vmem:[#allocation4 + $0x110] sm:$0xff] %vm160_vm1, %v5677_v10 }
 0x219   :  { %196 = vst.msk [vmem:[#allocation4 + $0x118] sm:$0xff] %vm160_vm1, %v5677_v10 }
 0x21a   :  { %197 = vst.msk [vmem:[#allocation4 + $0x120] sm:$0xff] %vm160_vm1, %v5677_v10 }
 0x21b   :  { %198 = vst.msk [vmem:[#allocation4 + $0x128] sm:$0xff] %vm160_vm1, %v5677_v10 }
 0x21c   :  { %199 = vst.msk [vmem:[#allocation4 + $0x130] sm:$0xff] %vm160_vm1, %v5677_v10 }
 0x21d   :  { %200 = vst.msk [vmem:[#allocation4 + $0x138] sm:$0xff] %vm160_vm1, %v5677_v10  ;;  %v1257_v38 = vpop.permute.xlu2 %1256  ;;  %1381 = vperm.xlu2 %5253, %v6690_v12  }
 0x21e   :  { %201 = vst.msk [vmem:[#allocation4 + $0x140] sm:$0xff] %vm160_vm1, %v5677_v10  ;;  %1461 = vperm.xlu1 %5252, %v6687_v13   ;;  %v9104_v13 = vld [vmem:[#allocation7_spill] sm:$0xff] }
 0x21f   :  { %202 = vst.msk [vmem:[#allocation4 + $0x148] sm:$0xff] %vm160_vm1, %v5677_v10 }
 0x220   :  { %203 = vst.msk [vmem:[#allocation4 + $0x150] sm:$0xff] %vm160_vm1, %v5677_v10 }
 0x221   :  { %204 = vst.msk [vmem:[#allocation4 + $0x158] sm:$0xff] %vm160_vm1, %v5677_v10 }
 0x222   :  { %205 = vst.msk [vmem:[#allocation4 + $0x160] sm:$0xff] %vm160_vm1, %v5677_v10 }
 0x223   :  { %206 = vst.msk [vmem:[#allocation4 + $0x168] sm:$0xff] %vm160_vm1, %v5677_v10 }
 0x224   :  { %207 = vst.msk [vmem:[#allocation4 + $0x170] sm:$0xff] %vm160_vm1, %v5677_v10 }
 0x225   :  { %208 = vst.msk [vmem:[#allocation4 + $0x178] sm:$0xff] %vm160_vm1, %v5677_v10  ;;  %1306 = vperm.xlu2 %5253, %v6724_v52  }
 0x226   :  { %209 = vst.msk [vmem:[#allocation4 + $0x180] sm:$0xff] %vm160_vm1, %v5677_v10  ;;  %1386 = vperm.xlu1 %5252, %v6721_v37  }
 0x227   :  { %210 = vst.msk [vmem:[#allocation4 + $0x188] sm:$0xff] %vm160_vm1, %v5677_v10 }
 0x228   :  { %211 = vst.msk [vmem:[#allocation4 + $0x190] sm:$0xff] %vm160_vm1, %v5677_v10 }
 0x229   :  { %212 = vst.msk [vmem:[#allocation4 + $0x198] sm:$0xff] %vm160_vm1, %v5677_v10 }
 0x22a   :  { %213 = vst.msk [vmem:[#allocation4 + $0x1a0] sm:$0xff] %vm160_vm1, %v5677_v10 }
 0x22b   :  { %214 = vst.msk [vmem:[#allocation4 + $0x1a8] sm:$0xff] %vm160_vm1, %v5677_v10 }
 0x22c   :  { %215 = vst.msk [vmem:[#allocation4 + $0x1b0] sm:$0xff] %vm160_vm1, %v5677_v10 }
 0x22d   :  { %216 = vst.msk [vmem:[#allocation4 + $0x1b8] sm:$0xff] %vm160_vm1, %v5677_v10  ;;  %1546 = vperm.xlu2 %5253, %v6758_v33  }
 0x22e   :  { %217 = vst.msk [vmem:[#allocation4 + $0x1c0] sm:$0xff] %vm160_vm1, %v5677_v10  ;;  %1311 = vperm.xlu1 %5252, %v6755_v25  }
 0x22f   :  { %218 = vst.msk [vmem:[#allocation4 + $0x1c8] sm:$0xff] %vm160_vm1, %v5677_v10 }
 0x230   :  { %219 = vst.msk [vmem:[#allocation4 + $0x1d0] sm:$0xff] %vm160_vm1, %v5677_v10 }
 0x231   :  { %220 = vst.msk [vmem:[#allocation4 + $0x1d8] sm:$0xff] %vm160_vm1, %v5677_v10 }
 0x232   :  { %221 = vst.msk [vmem:[#allocation4 + $0x1e0] sm:$0xff] %vm160_vm1, %v5677_v10 }
 0x233   :  { %222 = vst.msk [vmem:[#allocation4 + $0x1e8] sm:$0xff] %vm160_vm1, %v5677_v10 }
 0x234   :  { %223 = vst.msk [vmem:[#allocation4 + $0x1f0] sm:$0xff] %vm160_vm1, %v5677_v10 }
 0x235   :  { %224 = vst.msk [vmem:[#allocation4 + $0x1f8] sm:$0xff] %vm160_vm1, %v5677_v10  ;;  %v982_v10 = vpop.xlane.xlu0 %981  ;;  %1471 = vperm.xlu2 %5253, %v6792_v23  }
 0x236   :  { %9095 = vst [vmem:[#allocation168_spill] sm:$0xff] %v6992_v0  ;;  %v7007_v27 = vmax.f32 %v6992_v0, %v982_v10  ;;  %v918_v10 = vpop.xlane.xlu1 %917  ;;  %v1719_v0 = vmul.f32 1.442695, %v1607_v62  ;;  %1476 = vperm.xlu1 %5252, %v7022_v54  }
 0x237   :  { %9096 = vst [vmem:[#allocation169_spill] sm:$0xff] %v7004_v30  ;;  %v7035_v32 = vmax.f32 %v7011_v16, %v918_v10  ;;  %v5186_v10 = vld [vmem:[%s8753_s2 + $0x60] sm:$0xff]  ;;  %s5678_s2 = smov 8  }
 0x238   :  { %9097 = vst [vmem:[#allocation170_spill] sm:$0xff] %v7007_v27  ;;  %2956 = vmatpush.bf16.msrb.mxu1 %v5186_v10  ;;  %5261 = vpow2.f32 %v1719_v0  ;;  %v7079_v10 = vpop.eup %5259  ;;  %1556 = vperm.xlu0 %5254, %v7007_v27  }
 0x239   :  { %9098 = vst [vmem:[#allocation171_spill] sm:$0xff] %v7011_v16  ;;  %v2585_v0 = vpack.c.bf16 %v7079_v10, %v7079_v10  ;;  %5263 = vpow2.f32 %v1721_v53 }
 0x23a   :  { %3483 = vst.msk [vmem:[#allocation2 + $0x1f8] sm:$0xff] %vm31_vm2, %v7007_v27 }
 0x23b   :  { %9099 = vst [vmem:[#allocation172_spill] sm:$0xff] %v7022_v54 }
 0x23c   :  { %3467 = vst.msk [vmem:[#allocation2 + $0x178] sm:$0xff] %vm31_vm2, %v7022_v54  ;;  %2957 = vmatpush.bf16.msrb.mxu1 %v5185_v44  ;;  %v2729_v44 = vunpack.c.l.b16 %v2585_v0 }
 0x23d   :  { %9100 = vst [vmem:[#allocation173_spill] sm:$0xff] %v7035_v32  ;;  %v1407_v62 = vpop.permute.xlu0 %1406  ;;  %1396 = vperm.xlu2 %5253, %v7035_v32  }
 0x23e   :  { %3451 = vst.msk [vmem:[#allocation2 + $0xf8] sm:$0xff] %vm31_vm2, %v7035_v32  ;;  %v1592_v20 = vsub.f32 %v5893_v2, %v1407_v62  ;;  %v2744_v2 = vpack.c.b16 %v2729_v44, %v2728_v41  ;;  %v1402_v62 = vpop.permute.xlu1 %1401  ;;  %v9116_v32 = vld [vmem:[#allocation22_spill] sm:$0xff] }
 0x23f   :  { %v1591_v0 = vsub.f32 %v5871_v48, %v1402_v62  ;;  %v1562_v48 = vsub.f32 %v5912_v15, %v1257_v38  ;;  %v1337_v38 = vpop.permute.xlu2 %1336 }
 0x240   :  { %2958 = vmatpush.bf16.msrb.mxu1 %v5184_v50  ;;  %v7088_v50 = vpop.eup %5261  ;;  %v1689_v59 = vmul.f32 1.442695, %v1592_v20  ;;  %2816 = vmatmul.bf16.vlgmr.msrb.gmra.mxu0 %v2744_v2  ;;  %v1575_v20 = vsub.f32 %v5867_v45, %v6974_v47 }
 0x241   :  { %v2632_v34 = vpack.c.bf16 %v7088_v50, %v7088_v50  ;;  %v7097_v53 = vpop.eup %5263  ;;  %v1687_v44 = vmul.f32 1.442695, %v1591_v0 }
 0x242   :  { %5265 = vpow2.f32 %v1689_v59  ;;  %v2633_v41 = vpack.c.bf16 %v7097_v53, %v7097_v53 }
 0x243   :  { %v3163_v2 = vunpack.c.l.b16 %v2632_v34  ;;  %5267 = vpow2.f32 %v1687_v44 }
 0x244   :  { %2959 = vmatpush.bf16.msrb.mxu1 %v5183_v43 }
 0x245   :  { %v1252_v39 = vpop.permute.xlu0 %1251 }
 0x246   :  { %v1561_v43 = vsub.f32 %v5889_v61, %v1252_v39  ;;  %v3164_v61 = vunpack.c.l.b16 %v2633_v41  ;;  %v1655_v39 = vmul.f32 1.442695, %v1575_v20  ;;  %v1327_v62 = vpop.permute.xlu1 %1326 }
 0x247   :  { %v1576_v34 = vsub.f32 %v5880_v56, %v1327_v62 }
 0x248   :  { %2960 = vmatpush.bf16.msrb.mxu1 %v5182_v57  ;;  %v1627_v57 = vmul.f32 1.442695, %v1561_v43  ;;  %v3179_v45 = vpack.c.b16 %v3164_v61, %v3163_v2  ;;  %v7107_v47 = vpop.eup %5265  ;;  %v1629_v43 = vmul.f32 1.442695, %v1562_v48  ;;  %v9101_v61 = vld [vmem:[#allocation6_spill] sm:$0xff] }
 0x249   :  { %v2617_v20 = vpack.c.bf16 %v7107_v47, %v7107_v47  ;;  %v7113_v0 = vpop.eup %5267  ;;  %v1657_v41 = vmul.f32 1.442695, %v1576_v34  ;;  %v9103_v34 = vld [vmem:[#allocation10_spill] sm:$0xff] }
 0x24a   :  { %5269 = vpow2.f32 %v1627_v57  ;;  %3251 = vmatmul.bf16.vlgmr.msrb.gmra.mxu3 %v3179_v45  ;;  %v2616_v44 = vpack.c.bf16 %v7113_v0, %v7113_v0  ;;  %v9102_v45 = vld [vmem:[#allocation13_spill] sm:$0xff] }
 0x24b   :  { %5271 = vpow2.f32 %v1655_v39  ;;  %v3019_v57 = vunpack.c.l.b16 %v2617_v20  ;;  %v1593_v39 = vsub.f32 %v9101_v61, %v7091_v58  ;;  %v1578_v48 = vsub.f32 %v9102_v45, %v1337_v38  ;;  %v9105_v20 = vld [vmem:[#allocation5_spill] sm:$0xff] }
 0x24c   :  { %5273 = vpow2.f32 %v1629_v43  ;;  %v3018_v56 = vunpack.c.l.b16 %v2616_v44 }
 0x24d   :  { %v1332_v59 = vpop.permute.xlu0 %1331  ;;  %5275 = vpow2.f32 %v1657_v41 }
 0x24e   :  { %v1492_v43 = vpop.permute.xlu1 %1491  ;;  %v3034_v30 = vpack.c.b16 %v3019_v57, %v3018_v56  ;;  %v1577_v44 = vsub.f32 %v9104_v13, %v1332_v59  ;;  %v1691_v56 = vmul.f32 1.442695, %v1593_v39  ;;  %v1661_v57 = vmul.f32 1.442695, %v1578_v48  ;;  %v7144_v59 = vpop.permute.xlu2 %1501 }
 0x24f   :  { %v1609_v36 = vsub.f32 %v9105_v20, %v1492_v43 }
 0x250   :  { %v7118_v15 = vpop.eup %5269  ;;  %3106 = vmatmul.bf16.vlgmr.msrb.gmra.mxu2 %v3034_v30  ;;  %v1659_v30 = vmul.f32 1.442695, %v1577_v44 }
 0x251   :  { %v7122_v2 = vpop.eup %5271  ;;  %v2586_v41 = vpack.c.bf16 %v7118_v15, %v7118_v15  ;;  %v1723_v45 = vmul.f32 1.442695, %v1609_v36 }
 0x252   :  { %v7130_v4 = vpop.eup %5273  ;;  %v2600_v38 = vpack.c.bf16 %v7122_v2, %v7122_v2 }
 0x253   :  { %v2587_v58 = vpack.c.bf16 %v7130_v4, %v7130_v4  ;;  %v7138_v61 = vpop.eup %5275 }
 0x254   :  { %v2873_v39 = vunpack.c.l.b16 %v2600_v38 }
 0x255   :  { %v1497_v62 = vpop.permute.xlu0 %1496  ;;  %v2731_v13 = vunpack.c.l.b16 %v2587_v58 }
 0x256   :  { %v1610_v7 = vsub.f32 %v9103_v34, %v1497_v62  ;;  %v2730_v62 = vunpack.c.l.b16 %v2586_v41  ;;  %v9106_v41 = vld [vmem:[#allocation8_spill] sm:$0xff] }
 0x258   :  { %v1725_v6 = vmul.f32 1.442695, %v1610_v7  ;;  %v2601_v7 = vpack.c.bf16 %v7138_v61, %v7138_v61  ;;  %v2745_v43 = vpack.c.b16 %v2731_v13, %v2730_v62 }
 0x25a   :  { %5277 = vpow2.f32 %v1725_v6  ;;  %v2874_v48 = vunpack.c.l.b16 %v2601_v7  ;;  %v1417_v6 = vpop.permute.xlu1 %1416  ;;  %2821 = vmatmul.bf16.gmra.mxu0 %v2745_v43  ;;  %v1267_v7 = vpop.permute.xlu2 %1266 }
 0x25b   :  { %5279 = vpow2.f32 %v1723_v45  ;;  %v1594_v20 = vsub.f32 %v9106_v41, %v1417_v6 }
 0x25c   :  { %5281 = vpow2.f32 %v1661_v57  ;;  %v2889_v34 = vpack.c.b16 %v2874_v48, %v2873_v39  ;;  %v9107_v39 = vld [vmem:[#allocation15_spill] sm:$0xff] }
 0x25d   :  { %v1422_v36 = vpop.permute.xlu0 %1421  ;;  %5283 = vpow2.f32 %v1691_v56  ;;  %v1693_v45 = vmul.f32 1.442695, %v1594_v20  ;;  %v1564_v48 = vsub.f32 %v9107_v39, %v1267_v7 }
 0x25e   :  { %5285 = vpow2.f32 %v1659_v30  ;;  %2961 = vmatmul.bf16.vlgmr.msrb.gmra.mxu1 %v2889_v34  ;;  %v9108_v34 = vld [vmem:[#allocation12_spill] sm:$0xff] }
 0x25f   :  { %5287 = vpow2.f32 %v1693_v45  ;;  %v1595_v41 = vsub.f32 %v9108_v34, %v1422_v36  ;;  %v1633_v45 = vmul.f32 1.442695, %v1564_v48 }
 0x260   :  { %v7148_v44 = vpop.eup %5277  ;;  %1881 = vadd.xlane.f32.xlu1 %v7079_v10 }
 0x261   :  { %v7150_v58 = vpop.eup %5279  ;;  %v2635_v38 = vpack.c.bf16 %v7148_v44, %v7148_v44  ;;  %5289 = vpow2.f32 %v1633_v45 }
 0x262   :  { %v2634_v56 = vpack.c.bf16 %v7150_v58, %v7150_v58  ;;  %v7157_v57 = vpop.eup %5281  ;;  %v1262_v20 = vpop.permute.xlu1 %1261  ;;  %1883 = vadd.xlane.f32.xlu0 %v7118_v15 }
 0x263   :  { %v3166_v62 = vunpack.c.l.b16 %v2635_v38  ;;  %v7159_v13 = vpop.eup %5283  ;;  %v2603_v27 = vpack.c.bf16 %v7157_v57, %v7157_v57  ;;  %v9109_v38 = vld [vmem:[#allocation9_spill] sm:$0xff] }
 0x264   :  { %v3165_v30 = vunpack.c.l.b16 %v2634_v56  ;;  %v7162_v43 = vpop.eup %5285  ;;  %v1563_v16 = vsub.f32 %v9109_v38, %v1262_v20  ;;  %v2618_v7 = vpack.c.bf16 %v7159_v13, %v7159_v13  ;;  %v9111_v38 = vld [vmem:[#allocation19_spill] sm:$0xff] }
 0x265   :  { %v1347_v6 = vpop.permute.xlu0 %1346  ;;  %v2602_v56 = vpack.c.bf16 %v7162_v43, %v7162_v43  ;;  %v7174_v39 = vpop.eup %5287 }
 0x266   :  { %v3180_v33 = vpack.c.b16 %v3166_v62, %v3165_v30  ;;  %v1580_v37 = vsub.f32 %v9110_v49, %v1347_v6  ;;  %v1631_v36 = vmul.f32 1.442695, %v1563_v16  ;;  %v1695_v62 = vmul.f32 1.442695, %v1595_v41  ;;  %1879 = vadd.xlane.f32.xlu2 %v7069_v60  ;;  %v9128_v60 = vld [vmem:[#allocation29_spill] sm:$0xff] }
 0x267   :  { %v2876_v30 = vunpack.c.l.b16 %v2603_v27  ;;  %v2619_v48 = vpack.c.bf16 %v7174_v39, %v7174_v39  ;;  %v2875_v6 = vunpack.c.l.b16 %v2602_v56  ;;  %v3020_v34 = vunpack.c.l.b16 %v2618_v7  ;;  %v7181_v41 = vpop.eup %5289  ;;  %v9112_v27 = vld [vmem:[#allocation14_spill] sm:$0xff] }
 0x268   :  { %3256 = vmatmul.bf16.gmra.mxu3 %v3180_v33  ;;  %5291 = vpow2.f32 %v1631_v36  ;;  %v1665_v49 = vmul.f32 1.442695, %v1580_v37  ;;  %v1427_v33 = vpop.permute.xlu2 %1426  ;;  %v1611_v12 = vsub.f32 %v9112_v27, %v7144_v59  ;;  %v9113_v36 = vld [vmem:[#allocation11_spill] sm:$0xff]  ;;  %v2589_v56 = vpack.c.bf16 %v7181_v41, %v7181_v41  ;;  %1911 = vadd.xlane.f32.xlu1 %v7122_v2 }
 0x269   :  { %v3021_v20 = vunpack.c.l.b16 %v2619_v48  ;;  %v1596_v25 = vsub.f32 %v9111_v38, %v1427_v33  ;;  %5293 = vpow2.f32 %v1695_v62  ;;  %v2890_v45 = vpack.c.b16 %v2876_v30, %v2875_v6 }
 0x26a   :  { %v1342_v16 = vpop.permute.xlu1 %1341  ;;  %5295 = vpow2.f32 %v1665_v49  ;;  %v1727_v48 = vmul.f32 1.442695, %v1611_v12  ;;  %1915 = vadd.xlane.f32.xlu0 %v7162_v43 }
 0x26b   :  { %v3035_v23 = vpack.c.b16 %v3021_v20, %v3020_v34  ;;  %v1697_v37 = vmul.f32 1.442695, %v1596_v25  ;;  %v1579_v19 = vsub.f32 %v9113_v36, %v1342_v16 }
 0x26d   :  { %v1512_v52 = vpop.permute.xlu0 %1511  ;;  %3111 = vmatmul.bf16.gmra.mxu2 %v3035_v23  ;;  %5297 = vpow2.f32 %v1697_v37  ;;  %v1663_v62 = vmul.f32 1.442695, %v1579_v19  ;;  %v2733_v23 = vunpack.c.l.b16 %v2589_v56  ;;  %v9114_v19 = vld [vmem:[#allocation18_spill] sm:$0xff] }
 0x26e   :  { %2966 = vmatmul.bf16.gmra.mxu1 %v2890_v45  ;;  %v7188_v7 = vpop.eup %5291  ;;  %v1613_v11 = vsub.f32 %v9116_v32, %v1512_v52  ;;  %1885 = vadd.xlane.f32.xlu2 %v7130_v4 }
 0x26f   :  { %v2588_v30 = vpack.c.bf16 %v7188_v7, %v7188_v7  ;;  %5299 = vpow2.f32 %v1663_v62  ;;  %v7193_v59 = vpop.eup %5293 }
 0x270   :  { %v7195_v25 = vpop.permute.xlu2 %1351  ;;  %v7197_v33 = vpop.eup %5295  ;;  %5301 = vpow2.f32 %v1727_v48  ;;  %v2620_v45 = vpack.c.bf16 %v7193_v59, %v7193_v59  ;;  %1887 = vadd.xlane.f32.xlu1 %v7188_v7 }
 0x271   :  { %v2732_v49 = vunpack.c.l.b16 %v2588_v30  ;;  %v2605_v12 = vpack.c.bf16 %v7197_v33, %v7197_v33 }
 0x272   :  { %v1507_v34 = vpop.permute.xlu1 %1506  ;;  %1921 = vadd.xlane.f32.xlu0 %v7197_v33 }
 0x273   :  { %v2746_v20 = vpack.c.b16 %v2733_v23, %v2732_v49  ;;  %v7199_v38 = vpop.eup %5297  ;;  %v1612_v16 = vsub.f32 %v9114_v19, %v1507_v34  ;;  %v2878_v49 = vunpack.c.l.b16 %v2605_v12  ;;  %v3022_v23 = vunpack.c.l.b16 %v2620_v45 }
 0x274   :  { %v2621_v27 = vpack.c.bf16 %v7199_v38, %v7199_v38 }
 0x275   :  { %v1437_v6 = vpop.permute.xlu0 %1436  ;;  %2826 = vmatmul.bf16.gmra.mxu0 %v2746_v20  ;;  %v7208_v37 = vpop.eup %5299  ;;  %v1729_v36 = vmul.f32 1.442695, %v1612_v16  ;;  %v9115_v20 = vld [vmem:[#allocation24_spill] sm:$0xff] }
 0x276   :  { %v2604_v56 = vpack.c.bf16 %v7208_v37, %v7208_v37  ;;  %v3023_v62 = vunpack.c.l.b16 %v2621_v27  ;;  %v7212_v34 = vpop.eup %5301  ;;  %v1598_v9 = vsub.f32 %v9117_v51, %v1437_v6  ;;  %v9118_v27 = vld [vmem:[#allocation17_spill] sm:$0xff]  ;;  %1913 = vadd.xlane.f32.xlu2 %v7138_v61 }
 0x277   :  { %5303 = vpow2.f32 %v1729_v36  ;;  %v2636_v12 = vpack.c.bf16 %v7212_v34, %v7212_v34 }
 0x278   :  { %v1277_v30 = vpop.permute.xlu2 %1276  ;;  %v2877_v48 = vunpack.c.l.b16 %v2604_v56  ;;  %v3036_v16 = vpack.c.b16 %v3023_v62, %v3022_v23  ;;  %v1701_v32 = vmul.f32 1.442695, %v1598_v9  ;;  %v9121_v9 = vld [vmem:[#allocation21_spill] sm:$0xff]  ;;  %1917 = vadd.xlane.f32.xlu1 %v7157_v57 }
 0x279   :  { %v1566_v19 = vsub.f32 %v9115_v20, %v1277_v30  ;;  %v1731_v30 = vmul.f32 1.442695, %v1613_v11  ;;  %v3167_v51 = vunpack.c.l.b16 %v2636_v12  ;;  %v9120_v11 = vld [vmem:[#allocation20_spill] sm:$0xff] }
 0x27a   :  { %v1272_v35 = vpop.permute.xlu1 %1271  ;;  %v2891_v26 = vpack.c.b16 %v2878_v49, %v2877_v48  ;;  %v9119_v48 = vld [vmem:[#allocation28_spill] sm:$0xff] }
 0x27b   :  { %v1637_v63 = vmul.f32 1.442695, %v1566_v19  ;;  %v1565_v36 = vsub.f32 %v9118_v27, %v1272_v35 }
 0x27d   :  { %v7215_v54 = vpop.permute.xlu0 %1361  ;;  %3116 = vmatmul.bf16.gmra.mxu2 %v3036_v16  ;;  %v7222_v45 = vpop.eup %5303  ;;  %5305 = vpow2.f32 %v1637_v63  ;;  %v1635_v56 = vmul.f32 1.442695, %v1565_v36  ;;  %v1581_v63 = vsub.f32 %v9120_v11, %v7195_v25  ;;  %v9123_v11 = vld [vmem:[#allocation23_spill] sm:$0xff] }
 0x27e   :  { %2971 = vmatmul.bf16.gmra.mxu1 %v2891_v26  ;;  %v2637_v52 = vpack.c.bf16 %v7222_v45, %v7222_v45  ;;  %1889 = vadd.xlane.f32.xlu2 %v7181_v41  ;;  %v9136_v41 = vld [vmem:[#allocation39_spill] sm:$0xff] }
 0x27f   :  { %5307 = vpow2.f32 %v1635_v56  ;;  %v1667_v56 = vmul.f32 1.442695, %v1581_v63 }
 0x280   :  { %v1517_v62 = vpop.permute.xlu2 %1516  ;;  %v3168_v6 = vunpack.c.l.b16 %v2637_v52  ;;  %5309 = vpow2.f32 %v1731_v30 }
 0x281   :  { %v1614_v35 = vsub.f32 %v9119_v48, %v1517_v62  ;;  %5311 = vpow2.f32 %v1701_v32 }
 0x282   :  { %v1432_v49 = vpop.permute.xlu1 %1431  ;;  %v3181_v23 = vpack.c.b16 %v3168_v6, %v3167_v51 }
 0x283   :  { %v7228_v20 = vpop.eup %5305  ;;  %v1733_v19 = vmul.f32 1.442695, %v1614_v35  ;;  %v1597_v16 = vsub.f32 %v9121_v9, %v1432_v49  ;;  %v9122_v49 = vld [vmem:[#allocation31_spill] sm:$0xff] }
 0x284   :  { %3261 = vmatmul.bf16.gmra.mxu3 %v3181_v23  ;;  %v2591_v27 = vpack.c.bf16 %v7228_v20, %v7228_v20 }
 0x285   :  { %v1287_v26 = vpop.permute.xlu0 %1286  ;;  %v5308_v36 = vpop.eup %5307  ;;  %5313 = vpow2.f32 %v1733_v19  ;;  %v1699_v15 = vmul.f32 1.442695, %v1597_v16 }
 0x286   :  { %v2590_v12 = vpack.c.bf16 %v5308_v36, %v5308_v36  ;;  %v7235_v30 = vpop.eup %5309  ;;  %v2735_v25 = vunpack.c.l.b16 %v2591_v27  ;;  %v1568_v23 = vsub.f32 %v9122_v49, %v1287_v26  ;;  %v9124_v49 = vld [vmem:[#allocation32_spill] sm:$0xff]  ;;  %1891 = vadd.xlane.f32.xlu0 %v5308_v36  ;;  %1919 = vadd.xlane.f32.xlu2 %v7208_v37  ;;  %v9139_v37 = vld [vmem:[#allocation43_spill] sm:$0xff] }
 0x287   :  { %5315 = vpow2.f32 %v1699_v15  ;;  %v7239_v32 = vpop.eup %5311  ;;  %v2638_v9 = vpack.c.bf16 %v7235_v30, %v7235_v30 }
 0x288   :  { %v7237_v52 = vpop.permute.xlu2 %1441  ;;  %v2734_v62 = vunpack.c.l.b16 %v2590_v12  ;;  %5317 = vpow2.f32 %v1667_v56  ;;  %v2623_v19 = vpack.c.bf16 %v7239_v32, %v7239_v32  ;;  %v1641_v26 = vmul.f32 1.442695, %v1568_v23 }
 0x28a   :  { %v1357_v6 = vpop.permute.xlu1 %1356  ;;  %v2747_v48 = vpack.c.b16 %v2735_v25, %v2734_v62  ;;  %v3025_v25 = vunpack.c.l.b16 %v2623_v19 }
 0x28b   :  { %v7242_v35 = vpop.eup %5313  ;;  %v1582_v63 = vsub.f32 %v9123_v11, %v1357_v6  ;;  %v3169_v6 = vunpack.c.l.b16 %v2638_v9  ;;  %v9127_v9 = vld [vmem:[#allocation26_spill] sm:$0xff] }
 0x28c   :  { %2831 = vmatmul.bf16.gmra.mxu0 %v2747_v48  ;;  %v2639_v43 = vpack.c.bf16 %v7242_v35, %v7242_v35 }
 0x28d   :  { %v1527_v51 = vpop.permute.xlu0 %1526  ;;  %v7252_v16 = vpop.eup %5315  ;;  %v1669_v27 = vmul.f32 1.442695, %v1582_v63  ;;  %v9125_v63 = vld [vmem:[#allocation27_spill] sm:$0xff] }
 0x28e   :  { %v2622_v15 = vpack.c.bf16 %v7252_v16, %v7252_v16  ;;  %v3170_v12 = vunpack.c.l.b16 %v2639_v43  ;;  %v7256_v48 = vpop.eup %5317  ;;  %v1583_v29 = vsub.f32 %v9125_v63, %v7215_v54  ;;  %v9129_v63 = vld [vmem:[#allocation30_spill] sm:$0xff]  ;;  %1945 = vadd.xlane.f32.xlu0 %v7107_v47 }
 0x28f   :  { %5319 = vpow2.f32 %v1669_v27  ;;  %v2606_v33 = vpack.c.bf16 %v7256_v48, %v7256_v48  ;;  %1923 = vadd.xlane.f32.xlu1 %v7256_v48 }
 0x290   :  { %v1367_v56 = vpop.permute.xlu2 %1366  ;;  %v3024_v62 = vunpack.c.l.b16 %v2622_v15  ;;  %v3182_v27 = vpack.c.b16 %v3170_v12, %v3169_v6  ;;  %5321 = vpow2.f32 %v1641_v26  ;;  %v9126_v15 = vld [vmem:[#allocation34_spill] sm:$0xff]  ;;  %v1671_v54 = vmul.f32 1.442695, %v1583_v29 }
 0x291   :  { %v1584_v11 = vsub.f32 %v9124_v49, %v1367_v56  ;;  %v1616_v19 = vsub.f32 %v9126_v15, %v1527_v51  ;;  %v2879_v26 = vunpack.c.l.b16 %v2606_v33 }
 0x292   :  { %v1282_v43 = vpop.permute.xlu1 %1281  ;;  %v3037_v23 = vpack.c.b16 %v3025_v25, %v3024_v62 }
 0x293   :  { %v1567_v21 = vsub.f32 %v9127_v9, %v1282_v43  ;;  %v1673_v49 = vmul.f32 1.442695, %v1584_v11  ;;  %v1737_v12 = vmul.f32 1.442695, %v1616_v19  ;;  %v1599_v11 = vsub.f32 %v9128_v60, %v7237_v52 }
 0x294   :  { %3121 = vmatmul.bf16.gmra.mxu2 %v3037_v23  ;;  %3266 = vmatmul.bf16.gmra.mxu3 %v3182_v27 }
 0x295   :  { %v7260_v5 = vpop.permute.xlu0 %1451  ;;  %v7269_v56 = vpop.eup %5319  ;;  %v1639_v28 = vmul.f32 1.442695, %v1567_v21  ;;  %v1703_v15 = vmul.f32 1.442695, %v1599_v11 }
 0x296   :  { %v2607_v10 = vpack.c.bf16 %v7269_v56, %v7269_v56  ;;  %v7276_v25 = vpop.eup %5321  ;;  %1925 = vadd.xlane.f32.xlu2 %v7269_v56 }
 0x297   :  { %5323 = vpow2.f32 %v1639_v28  ;;  %v2593_v43 = vpack.c.bf16 %v7276_v25, %v7276_v25  ;;  %1893 = vadd.xlane.f32.xlu1 %v7228_v20 }
 0x298   :  { %v7274_v51 = vpop.permute.xlu2 %1291  ;;  %v2880_v62 = vunpack.c.l.b16 %v2607_v10  ;;  %5325 = vpow2.f32 %v1673_v49 }
 0x299   :  { %5327 = vpow2.f32 %v1671_v54  ;;  %v2737_v33 = vunpack.c.l.b16 %v2593_v43 }
 0x29a   :  { %v1522_v21 = vpop.permute.xlu1 %1521  ;;  %v2892_v29 = vpack.c.b16 %v2880_v62, %v2879_v26  ;;  %5329 = vpow2.f32 %v1737_v12  ;;  %v9130_v26 = vld [vmem:[#allocation42_spill] sm:$0xff] }
 0x29b   :  { %v1615_v28 = vsub.f32 %v9129_v63, %v1522_v21  ;;  %v9131_v21 = vld [vmem:[#allocation33_spill] sm:$0xff] }
 0x29c   :  { %2976 = vmatmul.bf16.gmra.mxu1 %v2892_v29 }
 0x29d   :  { %v1377_v6 = vpop.permute.xlu0 %1376  ;;  %v7284_v23 = vpop.eup %5323  ;;  %v1735_v27 = vmul.f32 1.442695, %v1615_v28 }
 0x29e   :  { %v2592_v2 = vpack.c.bf16 %v7284_v23, %v7284_v23  ;;  %v7289_v36 = vpop.eup %5325  ;;  %v1586_v62 = vsub.f32 %v9130_v26, %v1377_v6  ;;  %1895 = vadd.xlane.f32.xlu2 %v7284_v23 }
 0x29f   :  { %5331 = vpow2.f32 %v1735_v27  ;;  %v5328_v52 = vpop.eup %5327  ;;  %v2609_v12 = vpack.c.bf16 %v7289_v36, %v7289_v36  ;;  %1947 = vadd.xlane.f32.xlu1 %v7159_v13 }
 0x2a0   :  { %v7291_v19 = vpop.permute.xlu2 %1531  ;;  %v2736_v9 = vunpack.c.l.b16 %v2592_v2  ;;  %v7293_v49 = vpop.eup %5329  ;;  %5333 = vpow2.f32 %v1703_v15  ;;  %v2608_v60 = vpack.c.bf16 %v5328_v52, %v5328_v52  ;;  %v1677_v43 = vmul.f32 1.442695, %v1586_v62  ;;  %1927 = vadd.xlane.f32.xlu0 %v5328_v52 }
 0x2a1   :  { %v2641_v11 = vpack.c.bf16 %v7293_v49, %v7293_v49  ;;  %v2882_v7 = vunpack.c.l.b16 %v2609_v12 }
 0x2a2   :  { %v1447_v4 = vpop.permute.xlu1 %1446  ;;  %v2748_v10 = vpack.c.b16 %v2737_v33, %v2736_v9  ;;  %v2881_v6 = vunpack.c.l.b16 %v2608_v60  ;;  %v9132_v33 = vld [vmem:[#allocation44_spill] sm:$0xff] }
 0x2a3   :  { %v1600_v29 = vsub.f32 %v9131_v21, %v1447_v4  ;;  %v3172_v15 = vunpack.c.l.b16 %v2641_v11  ;;  %v9135_v11 = vld [vmem:[#allocation36_spill] sm:$0xff] }
 0x2a4   :  { %2836 = vmatmul.bf16.gmra.mxu0 %v2748_v10  ;;  %v9133_v10 = vld [vmem:[#allocation37_spill] sm:$0xff]  ;;  %v2893_v21 = vpack.c.b16 %v2882_v7, %v2881_v6 }
 0x2a5   :  { %v7296_v54 = vpop.permute.xlu0 %1301  ;;  %v7305_v47 = vpop.eup %5331  ;;  %v1705_v63 = vmul.f32 1.442695, %v1600_v29  ;;  %v1601_v26 = vsub.f32 %v9133_v10, %v7260_v5  ;;  %v9134_v29 = vld [vmem:[#allocation35_spill] sm:$0xff]  ;;  %v1617_v10 = vsub.f32 %v9136_v41, %v7291_v19 }
 0x2a6   :  { %v2640_v28 = vpack.c.bf16 %v7305_v47, %v7305_v47  ;;  %v7310_v9 = vpop.eup %5333  ;;  %v1569_v60 = vsub.f32 %v9134_v29, %v7274_v51  ;;  %1943 = vadd.xlane.f32.xlu2 %v7113_v0 }
 0x2a7   :  { %5335 = vpow2.f32 %v1705_v63  ;;  %v2624_v52 = vpack.c.bf16 %v7310_v9, %v7310_v9  ;;  %1929 = vadd.xlane.f32.xlu1 %v7289_v36 }
 0x2a8   :  { %v1457_v27 = vpop.permute.xlu2 %1456  ;;  %v3171_v2 = vunpack.c.l.b16 %v2640_v28  ;;  %5337 = vpow2.f32 %v1677_v43  ;;  %v1643_v6 = vmul.f32 1.442695, %v1569_v60  ;;  %1897 = vadd.xlane.f32.xlu0 %v7276_v25 }
 0x2a9   :  { %v1602_v4 = vsub.f32 %v9132_v33, %v1457_v27  ;;  %v1707_v27 = vmul.f32 1.442695, %v1601_v26  ;;  %v3026_v43 = vunpack.c.l.b16 %v2624_v52  ;;  %v9137_v26 = vld [vmem:[#allocation41_spill] sm:$0xff] }
 0x2aa   :  { %v1372_v61 = vpop.permute.xlu1 %1371  ;;  %v3183_v62 = vpack.c.b16 %v3172_v15, %v3171_v2 }
 0x2ab   :  { %v1585_v63 = vsub.f32 %v9135_v11, %v1372_v61  ;;  %v1709_v5 = vmul.f32 1.442695, %v1602_v4  ;;  %v1739_v11 = vmul.f32 1.442695, %v1617_v10  ;;  %v9141_v10 = vld [vmem:[#allocation45_spill] sm:$0xff] }
 0x2ac   :  { %2981 = vmatmul.bf16.gmra.mxu1 %v2893_v21  ;;  %3271 = vmatmul.bf16.gmra.mxu3 %v3183_v62 }
 0x2ad   :  { %v7316_v12 = vpop.permute.xlu0 %1541  ;;  %v7323_v28 = vpop.eup %5335  ;;  %v1675_v57 = vmul.f32 1.442695, %v1585_v63 }
 0x2ae   :  { %v2625_v7 = vpack.c.bf16 %v7323_v28, %v7323_v28  ;;  %v5338_v15 = vpop.eup %5337 }
 0x2af   :  { %5339 = vpow2.f32 %v1675_v57  ;;  %v2611_v62 = vpack.c.bf16 %v5338_v15, %v5338_v15 }
 0x2b0   :  { %v7328_v51 = vpop.permute.xlu2 %1381  ;;  %v3027_v2 = vunpack.c.l.b16 %v2625_v7  ;;  %5341 = vpow2.f32 %v1709_v5  ;;  %1951 = vadd.xlane.f32.xlu0 %v7193_v59 }
 0x2b1   :  { %5343 = vpow2.f32 %v1707_v27  ;;  %v2884_v5 = vunpack.c.l.b16 %v2611_v62  ;;  %v9138_v27 = vld [vmem:[#allocation53_spill] sm:$0xff] }
 0x2b2   :  { %v1297_v33 = vpop.permute.xlu1 %1296  ;;  %v3038_v4 = vpack.c.b16 %v3027_v2, %v3026_v43  ;;  %5345 = vpow2.f32 %v1643_v6  ;;  %v1571_v6 = vsub.f32 %v9139_v37, %v7296_v54 }
 0x2b3   :  { %v1570_v61 = vsub.f32 %v9137_v26, %v1297_v33 }
 0x2b4   :  { %3126 = vmatmul.bf16.gmra.mxu2 %v3038_v4  ;;  %v9140_v4 = vld [vmem:[#allocation57_spill] sm:$0xff] }
 0x2b5   :  { %v1467_v21 = vpop.permute.xlu0 %1466  ;;  %v7335_v29 = vpop.eup %5339  ;;  %v1645_v60 = vmul.f32 1.442695, %v1570_v61 }
 0x2b6   :  { %v2610_v25 = vpack.c.bf16 %v7335_v29, %v7335_v29  ;;  %v7340_v48 = vpop.eup %5341  ;;  %v1604_v41 = vsub.f32 %v9140_v4, %v1467_v21  ;;  %1931 = vadd.xlane.f32.xlu2 %v7335_v29 }
 0x2b7   :  { %5347 = vpow2.f32 %v1645_v60  ;;  %v7342_v63 = vpop.eup %5343  ;;  %v2627_v33 = vpack.c.bf16 %v7340_v48, %v7340_v48  ;;  %v1647_v60 = vmul.f32 1.442695, %v1571_v6  ;;  %v9143_v6 = vld [vmem:[#allocation48_spill] sm:$0xff] }
 0x2b8   :  { %v1307_v19 = vpop.permute.xlu2 %1306  ;;  %v2883_v52 = vunpack.c.l.b16 %v2610_v25  ;;  %v7344_v57 = vpop.eup %5345  ;;  %5349 = vpow2.f32 %v1739_v11  ;;  %v2626_v59 = vpack.c.bf16 %v7342_v63, %v7342_v63  ;;  %1933 = vadd.xlane.f32.xlu0 %v5338_v15  ;;  %v1619_v56 = vsub.f32 %v9143_v6, %v7316_v12 }
 0x2b9   :  { %v1572_v7 = vsub.f32 %v9138_v27, %v1307_v19  ;;  %v2594_v61 = vpack.c.bf16 %v7344_v57, %v7344_v57  ;;  %v3029_v11 = vunpack.c.l.b16 %v2627_v33  ;;  %v1713_v19 = vmul.f32 1.442695, %v1604_v41  ;;  %1899 = vadd.xlane.f32.xlu1 %v7344_v57 }
 0x2ba   :  { %v1537_v43 = vpop.permute.xlu1 %1536  ;;  %v2894_v2 = vpack.c.b16 %v2884_v5, %v2883_v52  ;;  %v3028_v37 = vunpack.c.l.b16 %v2626_v59 }
 0x2bb   :  { %v1618_v26 = vsub.f32 %v9141_v10, %v1537_v43  ;;  %v1649_v20 = vmul.f32 1.442695, %v1572_v7  ;;  %v2738_v5 = vunpack.c.l.b16 %v2594_v61  ;;  %v9144_v10 = vld [vmem:[#allocation46_spill] sm:$0xff]  ;;  %v9145_v61 = vld [vmem:[#allocation47_spill] sm:$0xff] }
 0x2bc   :  { %2986 = vmatmul.bf16.gmra.mxu1 %v2894_v2  ;;  %v9142_v2 = vld [vmem:[#allocation72_spill] sm:$0xff]  ;;  %v3039_v41 = vpack.c.b16 %v3029_v11, %v3028_v37 }
 0x2bd   :  { %v7359_v54 = vpop.eup %5347  ;;  %v1741_v62 = vmul.f32 1.442695, %v1618_v26  ;;  %v1392_v25 = vpop.permute.xlu0 %1391  ;;  %v1587_v26 = vsub.f32 %v9144_v10, %v7328_v51 }
 0x2be   :  { %v2595_v21 = vpack.c.bf16 %v7359_v54, %v7359_v54  ;;  %v7364_v43 = vpop.eup %5349  ;;  %1901 = vadd.xlane.f32.xlu2 %v7359_v54 }
 0x2bf   :  { %5351 = vpow2.f32 %v1741_v62  ;;  %v2642_v15 = vpack.c.bf16 %v7364_v43, %v7364_v43  ;;  %v1679_v51 = vmul.f32 1.442695, %v1587_v26 }
 0x2c0   :  { %v1547_v52 = vpop.permute.xlu2 %1546  ;;  %v2739_v27 = vunpack.c.l.b16 %v2595_v21  ;;  %5353 = vpow2.f32 %v1649_v20 }
 0x2c1   :  { %v1620_v7 = vsub.f32 %v9142_v2, %v1547_v52  ;;  %5355 = vpow2.f32 %v1647_v60  ;;  %v1743_v60 = vmul.f32 1.442695, %v1619_v56  ;;  %v9146_v2 = vld [vmem:[#allocation70_spill] sm:$0xff]  ;;  %1953 = vadd.xlane.f32.xlu1 %v7199_v38  ;;  %v9153_v38 = vld [vmem:[#allocation71_spill] sm:$0xff] }
 0x2c2   :  { %v1462_v4 = vpop.permute.xlu1 %1461  ;;  %v2749_v33 = vpack.c.b16 %v2739_v27, %v2738_v5  ;;  %5357 = vpow2.f32 %v1713_v19  ;;  %v3173_v5 = vunpack.c.l.b16 %v2642_v15 }
 0x2c3   :  { %v1603_v59 = vsub.f32 %v9145_v61, %v1462_v4  ;;  %v1745_v62 = vmul.f32 1.442695, %v1620_v7  ;;  %v1589_v7 = vsub.f32 %v9146_v2, %v1392_v25  ;;  %v9147_v4 = vld [vmem:[#allocation86_spill] sm:$0xff] }
 0x2c4   :  { %2841 = vmatmul.bf16.gmra.mxu0 %v2749_v33  ;;  %3131 = vmatmul.bf16.gmra.mxu2 %v3039_v41  ;;  %v9148_v41 = vld [vmem:[#allocation54_spill] sm:$0xff] }
 0x2c5   :  { %v7375_v20 = vpop.eup %5351  ;;  %v1711_v12 = vmul.f32 1.442695, %v1603_v59  ;;  %v1317_v19 = vpop.permute.xlu0 %1316  ;;  %v1683_v15 = vmul.f32 1.442695, %v1589_v7  ;;  %v9149_v2 = vld [vmem:[#allocation126_spill] sm:$0xff] }
 0x2c6   :  { %v2643_v13 = vpack.c.bf16 %v7375_v20, %v7375_v20  ;;  %v7380_v21 = vpop.eup %5353  ;;  %v1574_v33 = vsub.f32 %v9147_v4, %v1317_v19  ;;  %v9150_v4 = vld [vmem:[#allocation82_spill] sm:$0xff]  ;;  %1949 = vadd.xlane.f32.xlu2 %v7174_v39 }
 0x2c7   :  { %5359 = vpow2.f32 %v1711_v12  ;;  %v5356_v11 = vpop.eup %5355  ;;  %v2597_v56 = vpack.c.bf16 %v7380_v21, %v7380_v21 }
 0x2c8   :  { %v1472_v52 = vpop.permute.xlu2 %1471  ;;  %v3174_v27 = vunpack.c.l.b16 %v2643_v13  ;;  %v7382_v37 = vpop.eup %5357  ;;  %5361 = vpow2.f32 %v1745_v62  ;;  %1903 = vadd.xlane.f32.xlu0 %v5356_v11  ;;  %v2596_v26 = vpack.c.bf16 %v5356_v11, %v5356_v11 }
 0x2c9   :  { %5363 = vpow2.f32 %v1743_v60  ;;  %v2629_v61 = vpack.c.bf16 %v7382_v37, %v7382_v37  ;;  %v2741_v36 = vunpack.c.l.b16 %v2597_v56  ;;  %v1653_v60 = vmul.f32 1.442695, %v1574_v33 }
 0x2ca   :  { %v1387_v23 = vpop.permute.xlu1 %1386  ;;  %v3184_v6 = vpack.c.b16 %v3174_v27, %v3173_v5  ;;  %5365 = vpow2.f32 %v1679_v51  ;;  %v2740_v11 = vunpack.c.l.b16 %v2596_v26  ;;  %v1605_v33 = vsub.f32 %v9150_v4, %v1472_v52 }
 0x2cb   :  { %v1588_v10 = vsub.f32 %v9148_v41, %v1387_v23  ;;  %v3031_v5 = vunpack.c.l.b16 %v2629_v61  ;;  %v9151_v41 = vld [vmem:[#allocation67_spill] sm:$0xff] }
 0x2cc   :  { %3276 = vmatmul.bf16.gmra.mxu3 %v3184_v6  ;;  %v2750_v7 = vpack.c.b16 %v2741_v36, %v2740_v11 }
 0x2cd   :  { %v7392_v59 = vpop.eup %5359  ;;  %v1681_v25 = vmul.f32 1.442695, %v1588_v10 }
 0x2ce   :  { %v2628_v62 = vpack.c.bf16 %v7392_v59, %v7392_v59  ;;  %v7397_v12 = vpop.eup %5361 }
 0x2cf   :  { %5367 = vpow2.f32 %v1681_v25  ;;  %v7399_v13 = vpop.eup %5363  ;;  %v2645_v56 = vpack.c.bf16 %v7397_v12, %v7397_v12 }
 0x2d0   :  { %v1397_v51 = vpop.permute.xlu2 %1396  ;;  %v3030_v19 = vunpack.c.l.b16 %v2628_v62  ;;  %v5366_v27 = vpop.eup %5365  ;;  %1957 = vadd.xlane.f32.xlu0 %v7239_v32  ;;  %5369 = vpow2.f32 %v1683_v15  ;;  %v2644_v32 = vpack.c.bf16 %v7399_v13, %v7399_v13  ;;  %v1715_v62 = vmul.f32 1.442695, %v1605_v33 }
 0x2d1   :  { %v1590_v23 = vsub.f32 %v9149_v2, %v1397_v51  ;;  %5371 = vpow2.f32 %v1653_v60  ;;  %v2612_v26 = vpack.c.bf16 %v5366_v27, %v5366_v27  ;;  %v3176_v36 = vunpack.c.l.b16 %v2645_v56  ;;  %1935 = vadd.xlane.f32.xlu1 %v5366_v27  ;;  %v9155_v27 = vld [vmem:[#allocation80_spill] sm:$0xff] }
 0x2d2   :  { %v1312_v0 = vpop.permute.xlu1 %1311  ;;  %v3040_v6 = vpack.c.b16 %v3031_v5, %v3030_v19  ;;  %v3175_v11 = vunpack.c.l.b16 %v2644_v32  ;;  %v9154_v32 = vld [vmem:[#allocation64_spill] sm:$0xff] }
 0x2d3   :  { %v1573_v10 = vsub.f32 %v9151_v41, %v1312_v0  ;;  %v1685_v25 = vmul.f32 1.442695, %v1590_v23  ;;  %v2885_v51 = vunpack.c.l.b16 %v2612_v26  ;;  %v9152_v23 = vld [vmem:[#allocation125_spill] sm:$0xff] }
 0x2d4   :  { %2846 = vmatmul.bf16.gmra.mxu0 %v2750_v7  ;;  %3136 = vmatmul.bf16.gmra.mxu2 %v3040_v6  ;;  %v3185_v0 = vpack.c.b16 %v3176_v36, %v3175_v11 }
 0x2d5   :  { %v5368_v61 = vpop.eup %5367  ;;  %v1651_v57 = vmul.f32 1.442695, %v1573_v10 }
 0x2d6   :  { %v2613_v15 = vpack.c.bf16 %v5368_v61, %v5368_v61  ;;  %v5370_v60 = vpop.eup %5369  ;;  %1937 = vadd.xlane.f32.xlu2 %v5368_v61  ;;  %v9160_v61 = vld [vmem:[#allocation40_spill] sm:$0xff] }
 0x2d7   :  { %5373 = vpow2.f32 %v1651_v57  ;;  %v5372_v19 = vpop.eup %5371  ;;  %v2614_v36 = vpack.c.bf16 %v5370_v60, %v5370_v60 }
 0x2d8   :  { %v2886_v52 = vunpack.c.l.b16 %v2613_v15  ;;  %5375 = vpow2.f32 %v1685_v25  ;;  %1939 = vadd.xlane.f32.xlu0 %v5370_v60  ;;  %v2599_v29 = vpack.c.bf16 %v5372_v19, %v5372_v19  ;;  %v1049_v25 = vsub.f32 %v9154_v32, %v9153_v38  ;;  %v9156_v60 = vld [vmem:[#allocation75_spill] sm:$0xff] }
 0x2d9   :  { %5377 = vpow2.f32 %v1715_v62  ;;  %1905 = vadd.xlane.f32.xlu1 %v7380_v21  ;;  %v9158_v21 = vld [vmem:[#allocation65_spill] sm:$0xff] }
 0x2da   :  { %v1477_v5 = vpop.permute.xlu1 %1476  ;;  %v2895_v2 = vpack.c.b16 %v2886_v52, %v2885_v51  ;;  %v2743_v10 = vunpack.c.l.b16 %v2599_v29  ;;  %v1115_v51 = vmul.f32 1.442695, %v1049_v25  ;;  %v7429_v29 = vpop.permute.xlu0 %1556 }
 0x2db   :  { %v1606_v7 = vsub.f32 %v9152_v23, %v1477_v5 }
 0x2dc   :  { %2991 = vmatmul.bf16.gmra.mxu1 %v2895_v2  ;;  %3281 = vmatmul.bf16.gmra.mxu3 %v3185_v0  ;;  %v1065_v0 = vsub.f32 %v9156_v60, %v9155_v27 }
 0x2dd   :  { %v5374_v6 = vpop.eup %5373  ;;  %v1717_v56 = vmul.f32 1.442695, %v1606_v7 }
 0x2de   :  { %v2598_v4 = vpack.c.bf16 %v5374_v6, %v5374_v6  ;;  %v5376_v33 = vpop.eup %5375  ;;  %v1147_v39 = vmul.f32 1.442695, %v1065_v0  ;;  %1907 = vadd.xlane.f32.xlu2 %v5374_v6 }
 0x2df   :  { %5379 = vpow2.f32 %v1717_v56  ;;  %v7414_v26 = vpop.eup %5377  ;;  %v2615_v15 = vpack.c.bf16 %v5376_v33, %v5376_v33 }
 0x2e0   :  { %v2742_v41 = vunpack.c.l.b16 %v2598_v4  ;;  %1909 = vadd.xlane.f32.xlu0 %v5372_v19  ;;  %v2630_v62 = vpack.c.bf16 %v7414_v26, %v7414_v26  ;;  %v2887_v19 = vunpack.c.l.b16 %v2614_v36  ;;  %5381 = vpow2.f32 %v1115_v51  ;;  %v1753_v4 = vld [vmem:[#allocation3 + $0x10] sm:$0xff]  ;;  %v9161_v36 = vld [vmem:[#allocation38_spill] sm:$0xff] }
 0x2e1   :  { %v2888_v52 = vunpack.c.l.b16 %v2615_v15  ;;  %5383 = vpow2.f32 %v1147_v39  ;;  %1959 = vadd.xlane.f32.xlu1 %v7310_v9  ;;  %v9162_v9 = vld [vmem:[#allocation96_spill] sm:$0xff] }
 0x2e2   :  { %v2751_v57 = vpack.c.b16 %v2743_v10, %v2742_v41  ;;  %v3032_v5 = vunpack.c.l.b16 %v2630_v62  ;;  %v9159_v10 = vld [vmem:[#allocation60_spill] sm:$0xff]  ;;  %v1884_v25 = vpop.xlane.xlu0 %1883  ;;  %v1047_v62 = vsub.f32 %v9161_v36, %v9160_v61 }
 0x2e3   :  { %v2896_v23 = vpack.c.b16 %v2888_v52, %v2887_v19  ;;  %v1048_v38 = vsub.f32 %v9159_v10, %v9158_v21  ;;  %v1053_v52 = vsub.f32 %v9162_v9, %v6398_v17  ;;  %v9163_v19 = vld [vmem:[#allocation58_spill] sm:$0xff]  ;;  %v9171_v9 = vld [vmem:[#allocation56_spill] sm:$0xff] }
 0x2e4   :  { %2851 = vmatmul.bf16.gmra.mxu0 %v2751_v57  ;;  %v9168_v21 = vld [vmem:[#allocation66_spill] sm:$0xff] }
 0x2e5   :  { %v7420_v54 = vpop.eup %5379  ;;  %v1113_v51 = vmul.f32 1.442695, %v1048_v38  ;;  %v1123_v0 = vmul.f32 1.442695, %v1053_v52 }
 0x2e6   :  { %v2631_v11 = vpack.c.bf16 %v7420_v54, %v7420_v54  ;;  %v7431_v56 = vpop.eup %5381  ;;  %1955 = vadd.xlane.f32.xlu2 %v7252_v16  ;;  %v9169_v16 = vld [vmem:[#allocation78_spill] sm:$0xff] }
 0x2e7   :  { %v1817_v32 = vmul.f32 %v7431_v56, %v1753_v4  ;;  %v1051_v38 = vsub.f32 %v9169_v16, %v6291_v24 }
 0x2e8   :  { %v3033_v2 = vunpack.c.l.b16 %v2631_v11  ;;  %1963 = vadd.xlane.f32.xlu0 %v7342_v63  ;;  %v9157_v63 = vld [vmem:[#allocation92_spill] sm:$0xff]  ;;  %v1111_v11 = vmul.f32 1.442695, %v1047_v62  ;;  %v1751_v62 = vld [vmem:[#allocation3] sm:$0xff] }
 0x2e9   :  { %v1068_v41 = vsub.f32 %v9157_v63, %v6367_v14  ;;  %v2009_v57 = vadd.f32 %v1884_v25, %v1817_v32  ;;  %v1769_v14 = vld [vmem:[#allocation3 + $0x90] sm:$0xff]  ;;  %1941 = vadd.xlane.f32.xlu1 %v5376_v33  ;;  %v1772_v33 = vld [vmem:[#allocation3 + $0xa8] sm:$0xff] }
 0x2ea   :  { %v3041_v7 = vpack.c.b16 %v3033_v2, %v3032_v5  ;;  %v9164_v5 = vld [vmem:[#allocation52_spill] sm:$0xff]  ;;  %v1916_v27 = vpop.xlane.xlu0 %1915  ;;  %v1752_v63 = vld [vmem:[#allocation3 + $0x8] sm:$0xff] }
 0x2eb   :  { %v1153_v15 = vmul.f32 1.442695, %v1068_v41  ;;  %2074 = vst.msk [vmem:[#allocation3 + $0x10] sm:$0xff] %vm31_vm2, %v2009_v57  ;;  %v1063_v6 = vsub.f32 %v9164_v5, %v9163_v19  ;;  %v9167_v41 = vld [vmem:[#allocation74_spill] sm:$0xff]  ;;  %v1757_v5 = vld [vmem:[#allocation3 + $0x30] sm:$0xff] }
 0x2ec   :  { %2996 = vmatmul.bf16.gmra.mxu1 %v2896_v23  ;;  %3141 = vmatmul.bf16.gmra.mxu2 %v3041_v7  ;;  %v9166_v7 = vld [vmem:[#allocation79_spill] sm:$0xff]  ;;  %v1080_v10 = vsub.f32 %v9168_v21, %v9167_v41 }
 0x2ed   :  { %5385 = vpow2.f32 %v1153_v15  ;;  %v1143_v23 = vmul.f32 1.442695, %v1063_v6 }
 0x2ee   :  { %5387 = vpow2.f32 %v1113_v51  ;;  %v1177_v51 = vmul.f32 1.442695, %v1080_v10  ;;  %1961 = vadd.xlane.f32.xlu2 %v7323_v28  ;;  %v1767_v28 = vld [vmem:[#allocation3 + $0x80] sm:$0xff] }
 0x2ef   :  { %5389 = vpow2.f32 %v1111_v11  ;;  %v1119_v11 = vmul.f32 1.442695, %v1051_v38 }
 0x2f0   :  { %1969 = vadd.xlane.f32.xlu0 %v7382_v37  ;;  %v7443_v37 = vpop.eup %5383  ;;  %5391 = vpow2.f32 %v1123_v0 }
 0x2f1   :  { %v1833_v2 = vmul.f32 %v7443_v37, %v1769_v14  ;;  %1965 = vadd.xlane.f32.xlu1 %v7340_v48  ;;  %5393 = vpow2.f32 %v1143_v23  ;;  %v9170_v48 = vld [vmem:[#allocation61_spill] sm:$0xff] }
 0x2f2   :  { %v1922_v15 = vpop.xlane.xlu0 %1921  ;;  %v1064_v52 = vsub.f32 %v9171_v9, %v9170_v48  ;;  %v9177_v9 = vld [vmem:[#allocation100_spill] sm:$0xff] }
 0x2f3   :  { %v2025_v60 = vadd.f32 %v1916_v27, %v1833_v2  ;;  %v7455_v17 = vpop.eup %5385  ;;  %v1880_v2 = vpop.xlane.xlu2 %1879  ;;  %v9172_v27 = vld [vmem:[#allocation110_spill] sm:$0xff] }
 0x2f4   :  { %v7457_v4 = vpop.eup %5387  ;;  %v1836_v25 = vmul.f32 %v7455_v17, %v1772_v33  ;;  %v1145_v23 = vmul.f32 1.442695, %v1064_v52  ;;  %v1069_v52 = vsub.f32 %v9177_v9, %v6427_v22  ;;  %v9182_v9 = vld [vmem:[#allocation135_spill] sm:$0xff] }
 0x2f5   :  { %2090 = vst.msk [vmem:[#allocation3 + $0x90] sm:$0xff] %vm31_vm2, %v2025_v60  ;;  %v1816_v57 = vmul.f32 %v7457_v4, %v1752_v63  ;;  %v7467_v61 = vpop.eup %5389  ;;  %v1071_v60 = vsub.f32 %v9172_v27, %v6494_v42  ;;  %v1754_v42 = vld [vmem:[#allocation3 + $0x18] sm:$0xff] }
 0x2f6   :  { %v2028_v36 = vadd.f32 %v1922_v15, %v1836_v25  ;;  %v7473_v24 = vpop.eup %5391  ;;  %v1815_v19 = vmul.f32 %v7467_v61, %v1751_v62  ;;  %1967 = vadd.xlane.f32.xlu2 %v7392_v59  ;;  %v1755_v62 = vld [vmem:[#allocation3 + $0x20] sm:$0xff] }
 0x2f7   :  { %v7477_v6 = vpop.eup %5393  ;;  %v1159_v10 = vmul.f32 1.442695, %v1071_v60  ;;  %v9178_v60 = vld [vmem:[#allocation87_spill] sm:$0xff] }
 0x2f8   :  { %1975 = vadd.xlane.f32.xlu0 %v7088_v50  ;;  %v9165_v50 = vld [vmem:[#allocation83_spill] sm:$0xff]  ;;  %2093 = vst.msk [vmem:[#allocation3 + $0xa8] sm:$0xff] %vm31_vm2, %v2028_v36  ;;  %v2007_v0 = vadd.f32 %v1880_v2, %v1815_v19  ;;  %v1831_v33 = vmul.f32 %v7477_v6, %v1767_v28  ;;  %v1768_v28 = vld [vmem:[#allocation3 + $0x88] sm:$0xff]  ;;  %v1067_v22 = vsub.f32 %v9178_v60, %v6328_v46  ;;  %v9179_v46 = vld [vmem:[#allocation89_spill] sm:$0xff] }
 0x2f9   :  { %v1050_v39 = vsub.f32 %v9166_v7, %v9165_v50  ;;  %1971 = vadd.xlane.f32.xlu1 %v7414_v26  ;;  %v9173_v50 = vld [vmem:[#allocation88_spill] sm:$0xff] }
 0x2fa   :  { %v1066_v7 = vsub.f32 %v9173_v50, %v6331_v8  ;;  %2072 = vst.msk [vmem:[#allocation3] sm:$0xff] %vm31_vm2, %v2007_v0  ;;  %v9174_v8 = vld [vmem:[#allocation90_spill] sm:$0xff]  ;;  %v1155_v0 = vmul.f32 1.442695, %v1069_v52 }
 0x2fb   :  { %v1117_v32 = vmul.f32 1.442695, %v1050_v39  ;;  %v1821_v39 = vmul.f32 %v7473_v24, %v1757_v5  ;;  %v1052_v38 = vsub.f32 %v9174_v8, %v6359_v3  ;;  %v1886_v59 = vpop.xlane.xlu2 %1885  ;;  %v9176_v3 = vld [vmem:[#allocation123_spill] sm:$0xff] }
 0x2fc   :  { %v1149_v26 = vmul.f32 1.442695, %v1066_v7  ;;  %v1775_v7 = vld [vmem:[#allocation3 + $0xc0] sm:$0xff] }
 0x2fd   :  { %5395 = vpow2.f32 %v1117_v32  ;;  %v1121_v48 = vmul.f32 1.442695, %v1052_v38 }
 0x2fe   :  { %5397 = vpow2.f32 %v1177_v51  ;;  %v1622_v51 = vsub.f32 %v9176_v3, %v7429_v29  ;;  %1973 = vadd.xlane.f32.xlu2 %v7420_v54  ;;  %v1770_v54 = vld [vmem:[#allocation3 + $0x98] sm:$0xff] }
 0x2ff   :  { %5399 = vpow2.f32 %v1119_v11 }
 0x300   :  { %1981 = vadd.xlane.f32.xlu0 %v7148_v44  ;;  %v1882_v44 = vpop.xlane.xlu1 %1881  ;;  %5401 = vpow2.f32 %v1145_v23  ;;  %v1749_v27 = vmul.f32 1.442695, %v1622_v51  ;;  %v1760_v51 = vld [vmem:[#allocation3 + $0x48] sm:$0xff] }
 0x301   :  { %v2008_v14 = vadd.f32 %v1882_v44, %v1816_v57  ;;  %v1784_v57 = vld [vmem:[#allocation3 + $0x108] sm:$0xff]  ;;  %v9175_v44 = vld [vmem:[#allocation115_spill] sm:$0xff]  ;;  %5403 = vpow2.f32 %v1159_v10  ;;  %1977 = vadd.xlane.f32.xlu1 %v7097_v53 }
 0x302   :  { %v1056_v36 = vsub.f32 %v9175_v44, %v6525_v18  ;;  %5405 = vpow2.f32 %v1149_v26 }
 0x303   :  { %2073 = vst.msk [vmem:[#allocation3 + $0x8] sm:$0xff] %vm31_vm2, %v2008_v14  ;;  %v7488_v63 = vpop.eup %5395  ;;  %5407 = vpow2.f32 %v1121_v48 }
 0x304   :  { %v7494_v32 = vpop.eup %5397  ;;  %v1818_v25 = vmul.f32 %v7488_v63, %v1754_v42  ;;  %v1129_v5 = vmul.f32 1.442695, %v1056_v36  ;;  %v9180_v42 = vld [vmem:[#allocation105_spill] sm:$0xff] }
 0x305   :  { %v7498_v15 = vpop.eup %5399  ;;  %v1848_v11 = vmul.f32 %v7494_v32, %v1784_v57  ;;  %v1054_v10 = vsub.f32 %v9180_v42, %v6458_v40  ;;  %v9181_v40 = vld [vmem:[#allocation104_spill] sm:$0xff] }
 0x306   :  { %v2010_v14 = vadd.f32 %v1886_v59, %v1818_v25  ;;  %v1819_v18 = vmul.f32 %v7498_v15, %v1755_v62  ;;  %v7511_v19 = vpop.eup %5401  ;;  %5409 = vpow2.f32 %v1129_v5  ;;  %v1756_v25 = vld [vmem:[#allocation3 + $0x28] sm:$0xff]  ;;  %1979 = vadd.xlane.f32.xlu2 %v7150_v58  ;;  %v1070_v36 = vsub.f32 %v9181_v40, %v6455_v31  ;;  %v1773_v58 = vld [vmem:[#allocation3 + $0xb0] sm:$0xff]  ;;  %v1758_v42 = vld [vmem:[#allocation3 + $0x38] sm:$0xff] }
 0x307   :  { %v7517_v23 = vpop.eup %5403  ;;  %v1832_v50 = vmul.f32 %v7511_v19, %v1768_v28  ;;  %5411 = vpow2.f32 %v1749_v27  ;;  %v1125_v59 = vmul.f32 1.442695, %v1054_v10  ;;  %v1074_v31 = vsub.f32 %v9182_v9, %v6630_v1  ;;  %v1771_v1 = vld [vmem:[#allocation3 + $0xa0] sm:$0xff]  ;;  %v9188_v10 = vld [vmem:[#allocation140_spill] sm:$0xff]  ;;  %v9192_v9 = vld [vmem:[#allocation51_spill] sm:$0xff] }
 0x308   :  { %1987 = vadd.xlane.f32.xlu0 %v7235_v30  ;;  %v1892_v30 = vpop.xlane.xlu0 %1891  ;;  %v1912_v41 = vpop.xlane.xlu1 %1911  ;;  %2075 = vst.msk [vmem:[#allocation3 + $0x18] sm:$0xff] %vm31_vm2, %v2010_v14  ;;  %5413 = vpow2.f32 %v1155_v0  ;;  %v1157_v5 = vmul.f32 1.442695, %v1070_v36 }
 0x309   :  { %v2013_v21 = vadd.f32 %v1892_v30, %v1821_v39  ;;  %v2023_v16 = vadd.f32 %v1912_v41, %v1831_v33  ;;  %v7521_v39 = vpop.eup %5405  ;;  %v1914_v33 = vpop.xlane.xlu2 %1913  ;;  %v1083_v30 = vsub.f32 %v9179_v46, %v6336_v55  ;;  %1983 = vadd.xlane.f32.xlu1 %v7212_v34 }
 0x30a   :  { %v2024_v41 = vadd.f32 %v1914_v33, %v1832_v50  ;;  %v1834_v26 = vmul.f32 %v7521_v39, %v1770_v54  ;;  %v7532_v8 = vpop.eup %5407  ;;  %v9185_v50 = vld [vmem:[#allocation111_spill] sm:$0xff] }
 0x30b   :  { %2078 = vst.msk [vmem:[#allocation3 + $0x30] sm:$0xff] %vm31_vm2, %v2013_v21  ;;  %v1151_v21 = vmul.f32 1.442695, %v1067_v22  ;;  %v1183_v57 = vmul.f32 1.442695, %v1083_v30  ;;  %v1820_v3 = vmul.f32 %v7532_v8, %v1756_v25  ;;  %v1787_v30 = vld [vmem:[#allocation3 + $0x120] sm:$0xff] }
 0x30c   :  { %2088 = vst.msk [vmem:[#allocation3 + $0x80] sm:$0xff] %vm31_vm2, %v2023_v16  ;;  %v1839_v16 = vmul.f32 %v7517_v23, %v1775_v7  ;;  %v7535_v34 = vpop.eup %5409  ;;  %v1165_v22 = vmul.f32 1.442695, %v1074_v31  ;;  %v9186_v7 = vld [vmem:[#allocation108_spill] sm:$0xff] }
 0x30d   :  { %2089 = vst.msk [vmem:[#allocation3 + $0x88] sm:$0xff] %vm31_vm2, %v2024_v41  ;;  %5415 = vpow2.f32 %v1151_v21  ;;  %v7540_v62 = vpop.eup %5411  ;;  %v1055_v33 = vsub.f32 %v9186_v7, %v9185_v50 }
 0x30e   :  { %v7544_v14 = vpop.eup %5413  ;;  %5417 = vpow2.f32 %v1183_v57  ;;  %1985 = vadd.xlane.f32.xlu2 %v7222_v45  ;;  %v9187_v45 = vld [vmem:[#allocation143_spill] sm:$0xff] }
 0x30f   :  { %5419 = vpow2.f32 %v1125_v59 }
 0x310   :  { %1993 = vadd.xlane.f32.xlu0 %v7293_v49  ;;  %v1946_v49 = vpop.xlane.xlu0 %1945  ;;  %v1888_v2 = vpop.xlane.xlu1 %1887  ;;  %5421 = vpow2.f32 %v1157_v5 }
 0x311   :  { %v2040_v29 = vadd.f32 %v1946_v49, %v1848_v11  ;;  %v2011_v53 = vadd.f32 %v1888_v2, %v1819_v18  ;;  %v1890_v48 = vpop.xlane.xlu2 %1889  ;;  %1989 = vadd.xlane.f32.xlu1 %v7242_v35  ;;  %v9183_v11 = vld [vmem:[#allocation77_spill] sm:$0xff]  ;;  %v1824_v2 = vmul.f32 %v7535_v34, %v1760_v51  ;;  %5423 = vpow2.f32 %v1165_v22  ;;  %v1774_v51 = vld [vmem:[#allocation3 + $0xb8] sm:$0xff]  ;;  %v9195_v22 = vld [vmem:[#allocation131_spill] sm:$0xff] }
 0x312   :  { %v2012_v52 = vadd.f32 %v1890_v48, %v1820_v3  ;;  %v9184_v18 = vld [vmem:[#allocation73_spill] sm:$0xff] }
 0x313   :  { %2105 = vst.msk [vmem:[#allocation3 + $0x108] sm:$0xff] %vm31_vm2, %v2040_v29  ;;  %v1081_v49 = vsub.f32 %v9184_v18, %v9183_v11  ;;  %v1837_v29 = vmul.f32 %v7544_v14, %v1773_v58  ;;  %v7555_v27 = vpop.eup %5415 }
 0x314   :  { %2076 = vst.msk [vmem:[#allocation3 + $0x20] sm:$0xff] %vm31_vm2, %v2011_v53  ;;  %v7561_v54 = vpop.eup %5417  ;;  %v1835_v46 = vmul.f32 %v7555_v27, %v1771_v1 }
 0x315   :  { %2077 = vst.msk [vmem:[#allocation3 + $0x28] sm:$0xff] %vm31_vm2, %v2012_v52  ;;  %v1179_v35 = vmul.f32 1.442695, %v1081_v49  ;;  %v7565_v41 = vpop.eup %5419  ;;  %v1851_v57 = vmul.f32 %v7561_v54, %v1787_v30  ;;  %v1778_v49 = vld [vmem:[#allocation3 + $0xd8] sm:$0xff] }
 0x316   :  { %v7575_v36 = vpop.eup %5421  ;;  %1991 = vadd.xlane.f32.xlu2 %v7305_v47  ;;  %v9194_v47 = vld [vmem:[#allocation106_spill] sm:$0xff] }
 0x317   :  { %5425 = vpow2.f32 %v1179_v35  ;;  %v7581_v11 = vpop.eup %5423  ;;  %v1838_v18 = vmul.f32 %v7575_v36, %v1774_v51  ;;  %v9201_v51 = vld [vmem:[#allocation98_spill] sm:$0xff] }
 0x318   :  { %1999 = vadd.xlane.f32.xlu0 %v7399_v13  ;;  %v1928_v13 = vpop.xlane.xlu0 %1927  ;;  %v1918_v38 = vpop.xlane.xlu1 %1917  ;;  %v1842_v50 = vmul.f32 %v7581_v11, %v1778_v49 }
 0x319   :  { %v2031_v55 = vadd.f32 %v1928_v13, %v1839_v16  ;;  %v2026_v44 = vadd.f32 %v1918_v38, %v1834_v26  ;;  %v1920_v21 = vpop.xlane.xlu2 %1919  ;;  %v1059_v16 = vsub.f32 %v9188_v10, %v9187_v45  ;;  %1995 = vadd.xlane.f32.xlu1 %v7364_v43  ;;  %v1127_v13 = vmul.f32 1.442695, %v1055_v33  ;;  %v9189_v38 = vld [vmem:[#allocation122_spill] sm:$0xff]  ;;  %v9191_v43 = vld [vmem:[#allocation55_spill] sm:$0xff] }
 0x31a   :  { %v2027_v26 = vadd.f32 %v1920_v21, %v1835_v46  ;;  %v1079_v31 = vsub.f32 %v9192_v9, %v9191_v43  ;;  %v9197_v10 = vld [vmem:[#allocation130_spill] sm:$0xff] }
 0x31b   :  { %2096 = vst.msk [vmem:[#allocation3 + $0xc0] sm:$0xff] %vm31_vm2, %v2031_v55  ;;  %v9190_v55 = vld [vmem:[#allocation119_spill] sm:$0xff]  ;;  %v1135_v48 = vmul.f32 1.442695, %v1059_v16  ;;  %5427 = vpow2.f32 %v1127_v13 }
 0x31c   :  { %2091 = vst.msk [vmem:[#allocation3 + $0x98] sm:$0xff] %vm31_vm2, %v2026_v44  ;;  %v1072_v25 = vsub.f32 %v9190_v55, %v9189_v38  ;;  %v1822_v44 = vmul.f32 %v7565_v41, %v1758_v42  ;;  %v1175_v1 = vmul.f32 1.442695, %v1079_v31  ;;  %v1759_v42 = vld [vmem:[#allocation3 + $0x40] sm:$0xff]  ;;  %v9198_v16 = vld [vmem:[#allocation127_spill] sm:$0xff] }
 0x31d   :  { %2092 = vst.msk [vmem:[#allocation3 + $0xa0] sm:$0xff] %vm31_vm2, %v2027_v26  ;;  %v7585_v5 = vpop.eup %5425  ;;  %5429 = vpow2.f32 %v1135_v48  ;;  %v1073_v26 = vsub.f32 %v9198_v16, %v9197_v10  ;;  %v9202_v48 = vld [vmem:[#allocation95_spill] sm:$0xff]  ;;  %v9207_v10 = vld [vmem:[#allocation148_spill] sm:$0xff]  ;;  %v9208_v16 = vld [vmem:[#allocation145_spill] sm:$0xff] }
 0x31e   :  { %v1161_v52 = vmul.f32 1.442695, %v1072_v25  ;;  %1997 = vadd.xlane.f32.xlu2 %v7375_v20  ;;  %v1763_v25 = vld [vmem:[#allocation3 + $0x60] sm:$0xff] }
 0x31f   :  { %v9199_v20 = vld [vmem:[#allocation161_spill] sm:$0xff]  ;;  %v1163_v43 = vmul.f32 1.442695, %v1073_v26  ;;  %v1075_v26 = vsub.f32 %v9208_v16, %v9207_v10  ;;  %v1762_v10 = vld [vmem:[#allocation3 + $0x58] sm:$0xff] }
 0x320   :  { %2005 = vadd.xlane.f32.xlu0 %v7540_v62  ;;  %v1898_v28 = vpop.xlane.xlu0 %1897  ;;  %v1924_v53 = vpop.xlane.xlu1 %1923  ;;  %5431 = vpow2.f32 %v1161_v52 }
 0x321   :  { %v2016_v60 = vadd.f32 %v1898_v28, %v1824_v2  ;;  %v2029_v0 = vadd.f32 %v1924_v53, %v1837_v29  ;;  %v1926_v2 = vpop.xlane.xlu2 %1925  ;;  %v1785_v29 = vld [vmem:[#allocation3 + $0x110] sm:$0xff]  ;;  %2001 = vadd.xlane.f32.xlu1 %v7397_v12  ;;  %v7595_v46 = vpop.eup %5427  ;;  %5433 = vpow2.f32 %v1175_v1  ;;  %v9204_v1 = vld [vmem:[#allocation133_spill] sm:$0xff] }
 0x322   :  { %v9193_v28 = vld [vmem:[#allocation107_spill] sm:$0xff]  ;;  %v1849_v7 = vmul.f32 %v7585_v5, %v1785_v29  ;;  %v1823_v55 = vmul.f32 %v7595_v46, %v1759_v42  ;;  %v1783_v29 = vld [vmem:[#allocation3 + $0x100] sm:$0xff] }
 0x323   :  { %2081 = vst.msk [vmem:[#allocation3 + $0x48] sm:$0xff] %vm31_vm2, %v2016_v60  ;;  %v1086_v53 = vsub.f32 %v9194_v47, %v9193_v28  ;;  %v2030_v60 = vadd.f32 %v1926_v2, %v1838_v18  ;;  %v7602_v38 = vpop.eup %5429 }
 0x324   :  { %2094 = vst.msk [vmem:[#allocation3 + $0xb0] sm:$0xff] %vm31_vm2, %v2029_v0  ;;  %v9196_v0 = vld [vmem:[#allocation128_spill] sm:$0xff]  ;;  %v1827_v9 = vmul.f32 %v7602_v38, %v1763_v25 }
 0x325   :  { %v1057_v35 = vsub.f32 %v9196_v0, %v9195_v22  ;;  %2095 = vst.msk [vmem:[#allocation3 + $0xb8] sm:$0xff] %vm31_vm2, %v2030_v60  ;;  %v1189_v12 = vmul.f32 1.442695, %v1086_v53  ;;  %v9203_v60 = vld [vmem:[#allocation136_spill] sm:$0xff] }
 0x326   :  { %v1058_v22 = vsub.f32 %v9204_v1, %v9203_v60  ;;  %v9214_v60 = vld [vmem:[#allocation129_spill] sm:$0xff] }
 0x327   :  { %v1131_v13 = vmul.f32 1.442695, %v1057_v35  ;;  %5435 = vpow2.f32 %v1189_v12 }
 0x328   :  { %v1952_v40 = vpop.xlane.xlu0 %1951  ;;  %v1894_v59 = vpop.xlane.xlu1 %1893 }
 0x329   :  { %v2043_v3 = vadd.f32 %v1952_v40, %v1851_v57  ;;  %v2014_v58 = vadd.f32 %v1894_v59, %v1822_v44  ;;  %v1896_v57 = vpop.xlane.xlu2 %1895  ;;  %v1776_v44 = vld [vmem:[#allocation3 + $0xc8] sm:$0xff]  ;;  %5437 = vpow2.f32 %v1131_v13 }
 0x32a   :  { %v9200_v40 = vld [vmem:[#allocation158_spill] sm:$0xff]  ;;  %5439 = vpow2.f32 %v1163_v43  ;;  %v9211_v43 = vld [vmem:[#allocation76_spill] sm:$0xff] }
 0x32b   :  { %2108 = vst.msk [vmem:[#allocation3 + $0x120] sm:$0xff] %vm31_vm2, %v2043_v3  ;;  %v1077_v59 = vsub.f32 %v9200_v40, %v9199_v20  ;;  %v2015_v3 = vadd.f32 %v1896_v57, %v1823_v55  ;;  %v1777_v40 = vld [vmem:[#allocation3 + $0xd0] sm:$0xff] }
 0x32c   :  { %2079 = vst.msk [vmem:[#allocation3 + $0x38] sm:$0xff] %vm31_vm2, %v2014_v58  ;;  %v1084_v58 = vsub.f32 %v9202_v48, %v9201_v51 }
 0x32d   :  { %2080 = vst.msk [vmem:[#allocation3 + $0x40] sm:$0xff] %vm31_vm2, %v2015_v3  ;;  %v1171_v28 = vmul.f32 1.442695, %v1077_v59  ;;  %v9209_v59 = vld [vmem:[#allocation154_spill] sm:$0xff]  ;;  %v9210_v3 = vld [vmem:[#allocation151_spill] sm:$0xff] }
 0x32e   :  { %v1185_v53 = vmul.f32 1.442695, %v1084_v58  ;;  %v1060_v51 = vsub.f32 %v9210_v3, %v9209_v59 }
 0x32f   :  { %5441 = vpow2.f32 %v1171_v28 }
 0x330   :  { %v1934_v33 = vpop.xlane.xlu0 %1933  ;;  %v1948_v30 = vpop.xlane.xlu1 %1947  ;;  %5443 = vpow2.f32 %v1185_v53  ;;  %v9213_v53 = vld [vmem:[#allocation132_spill] sm:$0xff] }
 0x331   :  { %v2034_v21 = vadd.f32 %v1934_v33, %v1842_v50  ;;  %v2041_v45 = vadd.f32 %v1948_v30, %v1849_v7  ;;  %v1790_v50 = vld [vmem:[#allocation3 + $0x138] sm:$0xff]  ;;  %v1944_v33 = vpop.xlane.xlu2 %1943  ;;  %v9205_v30 = vld [vmem:[#allocation167_spill] sm:$0xff]  ;;  %v1089_v1 = vsub.f32 %v9214_v60, %v9213_v53 }
 0x333   :  { %2099 = vst.msk [vmem:[#allocation3 + $0xd8] sm:$0xff] %vm31_vm2, %v2034_v21  ;;  %v9206_v21 = vld [vmem:[#allocation164_spill] sm:$0xff]  ;;  %v1195_v16 = vmul.f32 1.442695, %v1089_v1 }
 0x334   :  { %2212 = vperm.xlu0 %5254, %v7431_v56   ;;  %2106 = vst.msk [vmem:[#allocation3 + $0x110] sm:$0xff] %vm31_vm2, %v2041_v45  ;;  %v7606_v56 = vpop.eup %5431  ;;  %v1062_v42 = vsub.f32 %v9206_v21, %v9205_v30  ;;  %v1133_v45 = vmul.f32 1.442695, %v1058_v22  ;;  %v1137_v22 = vmul.f32 1.442695, %v1060_v51  ;;  %v1779_v51 = vld [vmem:[#allocation3 + $0xe0] sm:$0xff] }
 0x335   :  { %v1840_v31 = vmul.f32 %v7606_v56, %v1776_v44  ;;  %v7615_v18 = vpop.eup %5433 }
 0x336   :  { %v7621_v0 = vpop.eup %5435  ;;  %v1847_v35 = vmul.f32 %v7615_v18, %v1783_v29  ;;  %v1141_v48 = vmul.f32 1.442695, %v1062_v42  ;;  %5445 = vpow2.f32 %v1133_v45 }
 0x337   :  { %v5438_v7 = vpop.eup %5437  ;;  %v1854_v13 = vmul.f32 %v7621_v0, %v1790_v50 }
 0x338   :  { %v1930_v49 = vpop.xlane.xlu1 %1929  ;;  %v2039_v12 = vadd.f32 %v1944_v33, %v1847_v35  ;;  %v7631_v57 = vpop.eup %5439  ;;  %5447 = vpow2.f32 %v1141_v48  ;;  %v9215_v33 = vld [vmem:[#allocation165_spill] sm:$0xff]  ;;  %v9218_v48 = vld [vmem:[#allocation155_spill] sm:$0xff] }
 0x339   :  { %v2032_v47 = vadd.f32 %v1930_v49, %v1840_v31  ;;  %v7639_v49 = vpop.eup %5441  ;;  %v1932_v28 = vpop.xlane.xlu2 %1931 }
 0x33a   :  { %2104 = vst.msk [vmem:[#allocation3 + $0x100] sm:$0xff] %vm31_vm2, %v2039_v12  ;;  %v7643_v29 = vpop.eup %5443  ;;  %1551 = vperm.xlu1 %5252, %v9215_v33  }
 0x33b   :  { %v1904_v52 = vpop.xlane.xlu0 %1903  ;;  %2097 = vst.msk [vmem:[#allocation3 + $0xc8] sm:$0xff] %vm31_vm2, %v2032_v47  ;;  %v1788_v47 = vld [vmem:[#allocation3 + $0x128] sm:$0xff] }
 0x33c   :  { %v2019_v2 = vadd.f32 %v1904_v52, %v1827_v9  ;;  %2222 = vperm.xlu0 %5254, %v7498_v15   ;;  %v1761_v15 = vld [vmem:[#allocation3 + $0x50] sm:$0xff]  ;;  %v9212_v9 = vld [vmem:[#allocation69_spill] sm:$0xff]  ;;  %v1167_v52 = vmul.f32 1.442695, %v1075_v26  ;;  %v1852_v30 = vmul.f32 %v7643_v29, %v1788_v47  ;;  %v7651_v42 = vpop.eup %5445 }
 0x33d   :  { %v1825_v55 = vmul.f32 %v5438_v7, %v1761_v15  ;;  %v1082_v31 = vsub.f32 %v9212_v9, %v9211_v43 }
 0x33e   :  { %2084 = vst.msk [vmem:[#allocation3 + $0x60] sm:$0xff] %vm31_vm2, %v2019_v2  ;;  %v1841_v2 = vmul.f32 %v7631_v57, %v1777_v40  ;;  %5449 = vpow2.f32 %v1167_v52  ;;  %v1766_v40 = vld [vmem:[#allocation3 + $0x78] sm:$0xff]  ;;  %v9221_v52 = vld [vmem:[#allocation114_spill] sm:$0xff] }
 0x33f   :  { %v1181_v50 = vmul.f32 1.442695, %v1082_v31  ;;  %5451 = vpow2.f32 %v1137_v22  ;;  %v9220_v31 = vld [vmem:[#allocation117_spill] sm:$0xff] }
 0x340   :  { %v1900_v44 = vpop.xlane.xlu1 %1899  ;;  %v2033_v35 = vadd.f32 %v1932_v28, %v1841_v2  ;;  %v1087_v2 = vsub.f32 %v9221_v52, %v9220_v31  ;;  %v1780_v31 = vld [vmem:[#allocation3 + $0xe8] sm:$0xff]  ;;  %v9224_v52 = vld [vmem:[#allocation49_spill] sm:$0xff] }
 0x341   :  { %v2017_v58 = vadd.f32 %v1900_v44, %v1825_v55  ;;  %5453 = vpow2.f32 %v1181_v50  ;;  %v9217_v55 = vld [vmem:[#allocation150_spill] sm:$0xff]  ;;  %v7656_v44 = vpop.eup %5447  ;;  %v1902_v3 = vpop.xlane.xlu2 %1901  ;;  %v1786_v50 = vld [vmem:[#allocation3 + $0x118] sm:$0xff] }
 0x342   :  { %2098 = vst.msk [vmem:[#allocation3 + $0xd0] sm:$0xff] %vm31_vm2, %v2033_v35  ;;  %5455 = vpow2.f32 %v1195_v16  ;;  %2202 = vperm.xlu1 %5252, %v7467_v61   ;;  %v1830_v28 = vmul.f32 %v7656_v44, %v1766_v40  ;;  %v9223_v61 = vld [vmem:[#allocation156_spill] sm:$0xff] }
 0x343   :  { %v1958_v25 = vpop.xlane.xlu0 %1957  ;;  %2082 = vst.msk [vmem:[#allocation3 + $0x50] sm:$0xff] %vm31_vm2, %v2017_v58  ;;  %v9219_v58 = vld [vmem:[#allocation152_spill] sm:$0xff] }
 0x344   :  { %v2046_v20 = vadd.f32 %v1958_v25, %v1854_v13  ;;  %2237 = vperm.xlu0 %5254, %v7565_v41   ;;  %v1781_v41 = vld [vmem:[#allocation3 + $0xf0] sm:$0xff]  ;;  %v9216_v13 = vld [vmem:[#allocation153_spill] sm:$0xff]  ;;  %v7660_v59 = vpop.eup %5449  ;;  %v1092_v43 = vsub.f32 %v9219_v58, %v9218_v48 }
 0x345   :  { %v1845_v15 = vmul.f32 %v7639_v49, %v1781_v41  ;;  %v1076_v25 = vsub.f32 %v9217_v55, %v9216_v13  ;;  %v5452_v47 = vpop.eup %5451  ;;  %v1843_v53 = vmul.f32 %v7660_v59, %v1779_v51  ;;  %v1764_v55 = vld [vmem:[#allocation3 + $0x68] sm:$0xff] }
 0x346   :  { %2111 = vst.msk [vmem:[#allocation3 + $0x138] sm:$0xff] %vm31_vm2, %v2046_v20  ;;  %v1826_v20 = vmul.f32 %v7651_v42, %v1762_v10  ;;  %v1828_v51 = vmul.f32 %v5452_v47, %v1764_v55 }
 0x347   :  { %v1169_v41 = vmul.f32 1.442695, %v1076_v25  ;;  %v7672_v1 = vpop.eup %5453 }
 0x348   :  { %v1954_v12 = vpop.xlane.xlu1 %1953  ;;  %v2018_v9 = vadd.f32 %v1902_v3, %v1826_v20  ;;  %v7677_v10 = vpop.eup %5455  ;;  %v1850_v16 = vmul.f32 %v7672_v1, %v1786_v50  ;;  %v9230_v50 = vld [vmem:[#allocation173_spill] sm:$0xff] }
 0x349   :  { %v2044_v26 = vadd.f32 %v1954_v12, %v1852_v30  ;;  %5457 = vpow2.f32 %v1169_v41  ;;  %v9222_v12 = vld [vmem:[#allocation159_spill] sm:$0xff]  ;;  %v1950_v13 = vpop.xlane.xlu2 %1949 }
 0x34a   :  { %2083 = vst.msk [vmem:[#allocation3 + $0x58] sm:$0xff] %vm31_vm2, %v2018_v9  ;;  %v2042_v25 = vadd.f32 %v1950_v13, %v1850_v16  ;;  %2217 = vperm.xlu1 %5252, %v7488_v63   ;;  %v9228_v63 = vld [vmem:[#allocation99_spill] sm:$0xff]  ;;  %v9232_v16 = vld [vmem:[#allocation85_spill] sm:$0xff] }
 0x34b   :  { %v1940_v21 = vpop.xlane.xlu0 %1939  ;;  %2109 = vst.msk [vmem:[#allocation3 + $0x128] sm:$0xff] %vm31_vm2, %v2044_v26  ;;  %v1793_v26 = vld [vmem:[#allocation3 + $0x150] sm:$0xff] }
 0x34c   :  { %v2037_v45 = vadd.f32 %v1940_v21, %v1845_v15  ;;  %2252 = vperm.xlu0 %5254, %v5438_v7   ;;  %v7662_v7 = vpop.f32.mrf.mxu0  ;;  %v1201_v15 = vmul.f32 1.442695, %v1092_v43  ;;  %v1191_v21 = vmul.f32 1.442695, %v1087_v2  ;;  %v1857_v3 = vmul.f32 %v7677_v10, %v1793_v26  ;;  %2107 = vst.msk [vmem:[#allocation3 + $0x118] sm:$0xff] %vm31_vm2, %v2042_v25  ;;  %v9225_v2 = vld [vmem:[#allocation50_spill] sm:$0xff] }
 0x34d   :  { %v9226_v41 = vsub.f32 %v9224_v52, %v9225_v2  ;;  %v9233_v26 = vld [vmem:[#allocation81_spill] sm:$0xff] }
 0x34e   :  { %2102 = vst.msk [vmem:[#allocation3 + $0xf0] sm:$0xff] %vm31_vm2, %v2037_v45  ;;  %v1061_v45 = vsub.f32 %v9223_v61, %v9222_v12  ;;  %5459 = vpow2.f32 %v1201_v15  ;;  %v1098_v13 = vsub.f32 %v9233_v26, %v9232_v16  ;;  %v9239_v16 = vld [vmem:[#allocation101_spill] sm:$0xff] }
 0x34f   :  { %5461 = vpow2.f32 %v1191_v21  ;;  %v7686_v58 = vpop.eup %5457  ;;  %v1796_v21 = vld [vmem:[#allocation3 + $0x168] sm:$0xff] }
 0x350   :  { %v1936_v22 = vpop.xlane.xlu1 %1935  ;;  %v1139_v20 = vmul.f32 1.442695, %v1061_v45  ;;  %v1791_v45 = vld [vmem:[#allocation3 + $0x140] sm:$0xff] }
 0x351   :  { %v2035_v30 = vadd.f32 %v1936_v22, %v1843_v53  ;;  %v1938_v61 = vpop.xlane.xlu2 %1937 }
 0x352   :  { %5463 = vpow2.f32 %v1139_v20  ;;  %v9234_v20 = vld [vmem:[#allocation142_spill] sm:$0xff]  ;;  %2232 = vperm.xlu1 %5252, %v7473_v24   ;;  %v9236_v24 = vld [vmem:[#allocation121_spill] sm:$0xff] }
 0x353   :  { %v1910_v60 = vpop.xlane.xlu0 %1909  ;;  %2100 = vst.msk [vmem:[#allocation3 + $0xe0] sm:$0xff] %vm31_vm2, %v2035_v30 }
 0x354   :  { %v2022_v35 = vadd.f32 %v1910_v60, %v1830_v28  ;;  %2267 = vperm.xlu0 %5254, %v5452_v47   ;;  %v7681_v40 = vpop.f32.mrf.mxu0  ;;  %v1207_v28 = vmul.f32 1.442695, %v9226_v41  ;;  %v9227_v60 = vld [vmem:[#allocation102_spill] sm:$0xff]  ;;  %v7698_v30 = vpop.eup %5459 }
 0x355   :  { %v1085_v22 = vsub.f32 %v9228_v63, %v9227_v60  ;;  %v7702_v12 = vpop.eup %5461  ;;  %v7717_v60 = vpop.f32.mrf.mxu1 }
 0x356   :  { %2087 = vst.msk [vmem:[#allocation3 + $0x78] sm:$0xff] %vm31_vm2, %v2022_v35  ;;  %v9229_v35 = vld [vmem:[#allocation171_spill] sm:$0xff]  ;;  %5465 = vpow2.f32 %v1207_v28 }
 0x357   :  { %v9231_v47 = vsub.f32 %v9229_v35, %v9230_v50  ;;  %v1187_v25 = vmul.f32 1.442695, %v1085_v22  ;;  %v1765_v28 = vld [vmem:[#allocation3 + $0x70] sm:$0xff]  ;;  %v9237_v22 = vld [vmem:[#allocation118_spill] sm:$0xff] }
 0x358   :  { %v1906_v43 = vpop.xlane.xlu1 %1905  ;;  %v7714_v52 = vpop.eup %5463  ;;  %v1088_v35 = vsub.f32 %v9237_v22, %v9236_v24  ;;  %v9243_v22 = vld [vmem:[#allocation144_spill] sm:$0xff] }
 0x359   :  { %v2020_v53 = vadd.f32 %v1906_v43, %v1828_v51  ;;  %v1173_v15 = vmul.f32 1.442695, %v9231_v47  ;;  %v1860_v43 = vmul.f32 %v7698_v30, %v1796_v21  ;;  %v1908_v21 = vpop.xlane.xlu2 %1907 }
 0x35a   :  { %2247 = vperm.xlu1 %5252, %v7535_v34   ;;  %v9242_v34 = vld [vmem:[#allocation147_spill] sm:$0xff] }
 0x35b   :  { %v1964_v48 = vpop.xlane.xlu0 %1963  ;;  %2085 = vst.msk [vmem:[#allocation3 + $0x68] sm:$0xff] %vm31_vm2, %v2020_v53  ;;  %5467 = vpow2.f32 %v1173_v15  ;;  %v1213_v53 = vmul.f32 1.442695, %v1098_v13  ;;  %v1829_v15 = vmul.f32 %v7714_v52, %v1765_v28 }
 0x35c   :  { %v2049_v9 = vadd.f32 %v1964_v48, %v1857_v3  ;;  %2282 = vperm.xlu0 %5254, %v7477_v6   ;;  %v1844_v6 = vmul.f32 %v7686_v58, %v1780_v31  ;;  %v9235_v3 = vld [vmem:[#allocation139_spill] sm:$0xff]  ;;  %v7708_v48 = vpop.f32.mrf.mxu0  ;;  %5469 = vpow2.f32 %v1187_v25  ;;  %v7722_v47 = vpop.eup %5465  ;;  %v9240_v25 = vld [vmem:[#allocation166_spill] sm:$0xff] }
 0x35d   :  { %v1090_v51 = vsub.f32 %v9235_v3, %v9234_v20  ;;  %5471 = vpow2.f32 %v1213_v53  ;;  %v2021_v13 = vadd.f32 %v1908_v21, %v1829_v15  ;;  %v9241_v20 = vld [vmem:[#allocation163_spill] sm:$0xff] }
 0x35e   :  { %2114 = vst.msk [vmem:[#allocation3 + $0x150] sm:$0xff] %vm31_vm2, %v2049_v9  ;;  %v2036_v55 = vadd.f32 %v1938_v61, %v1844_v6  ;;  %v1855_v9 = vmul.f32 %v7702_v12, %v1791_v45  ;;  %v1799_v6 = vld [vmem:[#allocation3 + $0x180] sm:$0xff]  ;;  %v1782_v61 = vld [vmem:[#allocation3 + $0xf8] sm:$0xff]  ;;  %v9238_v45 = vld [vmem:[#allocation103_spill] sm:$0xff]  ;;  %v1093_v3 = vsub.f32 %v9241_v20, %v9240_v25 }
 0x35f   :  { %v1197_v50 = vmul.f32 1.442695, %v1090_v51  ;;  %v1101_v26 = vsub.f32 %v9239_v16, %v9238_v45  ;;  %v1863_v51 = vmul.f32 %v7722_v47, %v1799_v6  ;;  %2086 = vst.msk [vmem:[#allocation3 + $0x70] sm:$0xff] %vm31_vm2, %v2021_v13  ;;  %v1789_v53 = vld [vmem:[#allocation3 + $0x130] sm:$0xff]  ;;  %v7746_v6 = vpop.f32.mrf.mxu1  ;;  %v1794_v16 = vld [vmem:[#allocation3 + $0x158] sm:$0xff] }
 0x360   :  { %2101 = vst.msk [vmem:[#allocation3 + $0xe8] sm:$0xff] %vm31_vm2, %v2036_v55  ;;  %v1960_v2 = vpop.xlane.xlu1 %1959  ;;  %v1193_v55 = vmul.f32 1.442695, %v1088_v35  ;;  %v1091_v35 = vsub.f32 %v9243_v22, %v9242_v34  ;;  %v9246_v13 = vld [vmem:[#allocation120_spill] sm:$0xff]  ;;  %v9247_v20 = vld [vmem:[#allocation63_spill] sm:$0xff]  ;;  %v1792_v22 = vld [vmem:[#allocation3 + $0x148] sm:$0xff] }
 0x361   :  { %v2047_v63 = vadd.f32 %v1960_v2, %v1855_v9  ;;  %5473 = vpow2.f32 %v1197_v50  ;;  %v1203_v50 = vmul.f32 1.442695, %v1093_v3  ;;  %9244 = vst [vmem:[#allocation6_spill] sm:$0xff] %v7746_v6  ;;  %v1956_v45 = vpop.xlane.xlu2 %1955  ;;  %v9248_v3 = vld [vmem:[#allocation59_spill] sm:$0xff]  ;;  %v9267_v6 = vld [vmem:[#allocation94_spill] sm:$0xff] }
 0x362   :  { %5475 = vpow2.f32 %v1193_v55  ;;  %2262 = vperm.xlu1 %5252, %v7602_v38  }
 0x363   :  { %v1970_v31 = vpop.xlane.xlu0 %1969  ;;  %2112 = vst.msk [vmem:[#allocation3 + $0x140] sm:$0xff] %vm31_vm2, %v2047_v63  ;;  %v1219_v63 = vmul.f32 1.442695, %v1101_v26  ;;  %v9245_v26 = vld [vmem:[#allocation124_spill] sm:$0xff] }
 0x364   :  { %v2052_v41 = vadd.f32 %v1970_v31, %v1860_v43  ;;  %2297 = vperm.xlu0 %5254, %v7521_v39   ;;  %v7726_v39 = vpop.eup %5467  ;;  %v7738_v2 = vpop.f32.mrf.mxu0  ;;  %v1104_v55 = vsub.f32 %v9246_v13, %v9245_v26  ;;  %v1797_v13 = vld [vmem:[#allocation3 + $0x170] sm:$0xff] }
 0x365   :  { %v1846_v43 = vmul.f32 %v7726_v39, %v1782_v61  ;;  %v7736_v31 = vpop.eup %5469  ;;  %v1802_v61 = vld [vmem:[#allocation3 + $0x198] sm:$0xff]  ;;  %5477 = vpow2.f32 %v1219_v63 }
 0x366   :  { %2117 = vst.msk [vmem:[#allocation3 + $0x168] sm:$0xff] %vm31_vm2, %v2052_v41  ;;  %v7744_v15 = vpop.eup %5471  ;;  %v1853_v21 = vmul.f32 %v7736_v31, %v1789_v53  ;;  %5479 = vpow2.f32 %v1203_v50 }
 0x368   :  { %v1942_v41 = vpop.xlane.xlu1 %1941  ;;  %v2045_v25 = vadd.f32 %v1956_v45, %v1853_v21  ;;  %v1805_v45 = vld [vmem:[#allocation3 + $0x1b0] sm:$0xff] }
 0x369   :  { %v2038_v24 = vadd.f32 %v1942_v41, %v1846_v43  ;;  %v1199_v43 = vmul.f32 1.442695, %v1091_v35  ;;  %v1225_v35 = vmul.f32 1.442695, %v1104_v55  ;;  %v1962_v26 = vpop.xlane.xlu2 %1961 }
 0x36a   :  { %2110 = vst.msk [vmem:[#allocation3 + $0x130] sm:$0xff] %vm31_vm2, %v2045_v25  ;;  %v9250_v25 = vld [vmem:[#allocation146_spill] sm:$0xff]  ;;  %2277 = vperm.xlu1 %5252, %v7656_v44  }
 0x36b   :  { %v1976_v9 = vpop.xlane.xlu0 %1975  ;;  %2103 = vst.msk [vmem:[#allocation3 + $0xf8] sm:$0xff] %vm31_vm2, %v2038_v24  ;;  %5481 = vpow2.f32 %v1199_v43  ;;  %v9252_v43 = vld [vmem:[#allocation91_spill] sm:$0xff] }
 0x36c   :  { %v2055_v28 = vadd.f32 %v1976_v9, %v1863_v51  ;;  %2312 = vperm.xlu0 %5254, %v7544_v14   ;;  %v7750_v14 = vpop.eup %5473  ;;  %v1096_v51 = vsub.f32 %v9248_v3, %v9247_v20  ;;  %v1866_v9 = vmul.f32 %v7744_v15, %v1802_v61  ;;  %v7762_v63 = vpop.f32.mrf.mxu0  ;;  %5483 = vpow2.f32 %v1225_v35 }
 0x36d   :  { %v1858_v41 = vmul.f32 %v7750_v14, %v1794_v16  ;;  %v7760_v53 = vpop.eup %5475  ;;  %v7774_v20 = vpop.f32.mrf.mxu1 }
 0x36e   :  { %2120 = vst.msk [vmem:[#allocation3 + $0x180] sm:$0xff] %vm31_vm2, %v2055_v28  ;;  %v1209_v21 = vmul.f32 1.442695, %v1096_v51  ;;  %v7766_v38 = vpop.eup %5477  ;;  %v1856_v61 = vmul.f32 %v7760_v53, %v1792_v22  ;;  %v9251_v51 = vld [vmem:[#allocation93_spill] sm:$0xff] }
 0x36f   :  { %v7770_v16 = vpop.eup %5479  ;;  %v1869_v22 = vmul.f32 %v7766_v38, %v1805_v45 }
 0x370   :  { %v1966_v24 = vpop.xlane.xlu1 %1965  ;;  %v2048_v3 = vadd.f32 %v1962_v26, %v1856_v61  ;;  %5485 = vpow2.f32 %v1209_v21  ;;  %v1861_v35 = vmul.f32 %v7770_v16, %v1797_v13  ;;  %v1795_v26 = vld [vmem:[#allocation3 + $0x160] sm:$0xff] }
 0x371   :  { %v2050_v50 = vadd.f32 %v1966_v24, %v1858_v41  ;;  %v9253_v41 = vld [vmem:[#allocation169_spill] sm:$0xff] }
 0x372   :  { %2113 = vst.msk [vmem:[#allocation3 + $0x148] sm:$0xff] %vm31_vm2, %v2048_v3  ;;  %2292 = vperm.xlu1 %5252, %v7443_v37  }
 0x373   :  { %v1982_v28 = vpop.xlane.xlu0 %1981  ;;  %2115 = vst.msk [vmem:[#allocation3 + $0x158] sm:$0xff] %vm31_vm2, %v2050_v50 }
 0x374   :  { %v2058_v34 = vadd.f32 %v1982_v28, %v1866_v9  ;;  %2327 = vperm.xlu0 %5254, %v7606_v56   ;;  %v9249_v56 = vld [vmem:[#allocation149_spill] sm:$0xff]  ;;  %v1099_v9 = vsub.f32 %v9252_v43, %v9251_v51  ;;  %v9254_v28 = vld [vmem:[#allocation172_spill] sm:$0xff]  ;;  %v7790_v45 = vpop.f32.mrf.mxu0 }
 0x375   :  { %v1107_v55 = vsub.f32 %v9250_v25, %v9249_v56  ;;  %v9255_v24 = vsub.f32 %v9253_v41, %v9254_v28  ;;  %v7785_v56 = vpop.eup %5481  ;;  %v9257_v43 = vld [vmem:[#allocation68_spill] sm:$0xff]  ;;  %v9258_v41 = vld [vmem:[#allocation62_spill] sm:$0xff]  ;;  %9259 = vst [vmem:[#allocation10_spill] sm:$0xff] %v7790_v45 }
 0x376   :  { %2123 = vst.msk [vmem:[#allocation3 + $0x198] sm:$0xff] %vm31_vm2, %v2058_v34  ;;  %v1097_v28 = vsub.f32 %v9258_v41, %v9257_v43  ;;  %v1215_v44 = vmul.f32 1.442695, %v1099_v9  ;;  %v7793_v13 = vpop.eup %5483  ;;  %v1859_v3 = vmul.f32 %v7785_v56, %v1795_v26  ;;  %v9260_v9 = vld [vmem:[#allocation112_spill] sm:$0xff]  ;;  %v7803_v43 = vpop.f32.mrf.mxu1 }
 0x377   :  { %v1205_v34 = vmul.f32 1.442695, %v9255_v24  ;;  %9256 = vst [vmem:[#allocation13_spill] sm:$0xff] %v7785_v56  ;;  %v1231_v25 = vmul.f32 1.442695, %v1107_v55  ;;  %v1808_v24 = vld [vmem:[#allocation3 + $0x1c8] sm:$0xff]  ;;  %v1968_v55 = vpop.xlane.xlu2 %1967 }
 0x378   :  { %v1972_v61 = vpop.xlane.xlu1 %1971 }
 0x379   :  { %v2053_v51 = vadd.f32 %v1972_v61, %v1861_v35  ;;  %5487 = vpow2.f32 %v1205_v34  ;;  %v2051_v35 = vadd.f32 %v1968_v55, %v1859_v3  ;;  %v9261_v34 = vld [vmem:[#allocation109_spill] sm:$0xff]  ;;  %v9264_v55 = vld [vmem:[#allocation170_spill] sm:$0xff] }
 0x37a   :  { %5489 = vpow2.f32 %v1231_v25  ;;  %v1102_v61 = vsub.f32 %v9261_v34, %v9260_v9  ;;  %2307 = vperm.xlu1 %5252, %v7455_v17   ;;  %v9273_v17 = vld [vmem:[#allocation113_spill] sm:$0xff] }
 0x37b   :  { %v1988_v50 = vpop.xlane.xlu0 %1987  ;;  %2118 = vst.msk [vmem:[#allocation3 + $0x170] sm:$0xff] %vm31_vm2, %v2053_v51  ;;  %5491 = vpow2.f32 %v1215_v44  ;;  %v9263_v44 = vld [vmem:[#allocation168_spill] sm:$0xff] }
 0x37c   :  { %v2061_v21 = vadd.f32 %v1988_v50, %v1869_v22  ;;  %2342 = vperm.xlu0 %5254, %v7660_v59   ;;  %v7797_v59 = vpop.eup %5485  ;;  %v1800_v22 = vld [vmem:[#allocation3 + $0x188] sm:$0xff]  ;;  %v1211_v50 = vmul.f32 1.442695, %v1097_v28  ;;  %2116 = vst.msk [vmem:[#allocation3 + $0x160] sm:$0xff] %vm31_vm2, %v2051_v35  ;;  %v1798_v28 = vld [vmem:[#allocation3 + $0x178] sm:$0xff]  ;;  %v9265_v9 = vsub.f32 %v9263_v44, %v9264_v55  ;;  %v7815_v45 = vpop.f32.mrf.mxu0 }
 0x37d   :  { %v1864_v26 = vmul.f32 %v7797_v59, %v1800_v22  ;;  %v1221_v35 = vmul.f32 1.442695, %v1102_v61  ;;  %v9269_v61 = vld [vmem:[#allocation134_spill] sm:$0xff] }
 0x37e   :  { %2126 = vst.msk [vmem:[#allocation3 + $0x1b0] sm:$0xff] %vm31_vm2, %v2061_v21  ;;  %v1872_v21 = vmul.f32 %v7793_v13, %v1808_v24  ;;  %v1237_v37 = vmul.f32 1.442695, %v9265_v9  ;;  %5493 = vpow2.f32 %v1211_v50  ;;  %v9266_v24 = vld [vmem:[#allocation97_spill] sm:$0xff] }
 0x37f   :  { %v7807_v41 = vpop.eup %5487  ;;  %v1100_v56 = vsub.f32 %v9267_v6, %v9266_v24  ;;  %v1974_v44 = vpop.xlane.xlu2 %1973  ;;  %v9268_v6 = vld [vmem:[#allocation137_spill] sm:$0xff] }
 0x380   :  { %9262 = vst [vmem:[#allocation7_spill] sm:$0xff] %v7807_v41  ;;  %v1978_v25 = vpop.xlane.xlu1 %1977  ;;  %v7818_v22 = vpop.eup %5489  ;;  %5495 = vpow2.f32 %v1237_v37  ;;  %v1105_v55 = vsub.f32 %v9269_v61, %v9268_v6  ;;  %v1814_v6 = vld [vmem:[#allocation3 + $0x1f8] sm:$0xff] }
 0x381   :  { %v2056_v34 = vadd.f32 %v1978_v25, %v1864_v26  ;;  %v1803_v26 = vld [vmem:[#allocation3 + $0x1a0] sm:$0xff]  ;;  %v1217_v25 = vmul.f32 1.442695, %v1100_v56  ;;  %5497 = vpow2.f32 %v1221_v35  ;;  %v1801_v56 = vld [vmem:[#allocation3 + $0x190] sm:$0xff]  ;;  %v7833_v37 = vpop.f32.mrf.mxu1 }
 0x382   :  { %9271 = vst [vmem:[#allocation8_spill] sm:$0xff] %v7833_v37  ;;  %2322 = vperm.xlu1 %5252, %v7517_v23  }
 0x383   :  { %v1994_v51 = vpop.xlane.xlu0 %1993  ;;  %2121 = vst.msk [vmem:[#allocation3 + $0x188] sm:$0xff] %vm31_vm2, %v2056_v34  ;;  %5499 = vpow2.f32 %v1217_v25 }
 0x384   :  { %v2064_v3 = vadd.f32 %v1994_v51, %v1872_v21  ;;  %2357 = vperm.xlu0 %5254, %v7726_v39   ;;  %v1862_v39 = vmul.f32 %v7807_v41, %v1798_v28  ;;  %v1811_v21 = vld [vmem:[#allocation3 + $0x1e0] sm:$0xff]  ;;  %v7822_v51 = vpop.eup %5491 }
 0x385   :  { %v1867_v28 = vmul.f32 %v7822_v51, %v1803_v26  ;;  %v7830_v34 = vpop.eup %5493 }
 0x386   :  { %2129 = vst.msk [vmem:[#allocation3 + $0x1c8] sm:$0xff] %vm31_vm2, %v2064_v3  ;;  %v2054_v50 = vadd.f32 %v1974_v44, %v1862_v39  ;;  %v1875_v3 = vmul.f32 %v7818_v22, %v1811_v21  ;;  %v9272_v39 = vld [vmem:[#allocation116_spill] sm:$0xff]  ;;  %v1227_v21 = vmul.f32 1.442695, %v1105_v55  ;;  %v1865_v26 = vmul.f32 %v7830_v34, %v1801_v56  ;;  %v9275_v55 = vld [vmem:[#allocation157_spill] sm:$0xff] }
 0x387   :  { %9270 = vst [vmem:[#allocation5_spill] sm:$0xff] %v7830_v34  ;;  %v1103_v44 = vsub.f32 %v9273_v17, %v9272_v39 }
 0x388   :  { %2119 = vst.msk [vmem:[#allocation3 + $0x178] sm:$0xff] %vm31_vm2, %v2054_v50  ;;  %v1984_v24 = vpop.xlane.xlu1 %1983  ;;  %v7838_v50 = vpop.eup %5495  ;;  %5501 = vpow2.f32 %v1227_v21 }
 0x389   :  { %v2059_v35 = vadd.f32 %v1984_v24, %v1867_v28  ;;  %v7842_v61 = vpop.eup %5497  ;;  %v1806_v28 = vld [vmem:[#allocation3 + $0x1b8] sm:$0xff] }
 0x38a   :  { %v9274_v24 = vld [vmem:[#allocation160_spill] sm:$0xff]  ;;  %v1870_v56 = vmul.f32 %v7842_v61, %v1806_v28  ;;  %v7852_v17 = vpop.eup %5499  ;;  %2337 = vperm.xlu1 %5252, %v7581_v11  }
 0x38b   :  { %v2000_v9 = vpop.xlane.xlu0 %1999  ;;  %2124 = vst.msk [vmem:[#allocation3 + $0x1a0] sm:$0xff] %vm31_vm2, %v2059_v35  ;;  %v1108_v39 = vsub.f32 %v9275_v55, %v9274_v24 }
 0x38c   :  { %v2067_v41 = vadd.f32 %v2000_v9, %v1875_v3  ;;  %2372 = vperm.xlu0 %5254, %v7585_v5   ;;  %v7844_v5 = vpop.f32.mrf.mxu0  ;;  %v1980_v3 = vpop.xlane.xlu2 %1979  ;;  %v1223_v9 = vmul.f32 1.442695, %v1103_v44  ;;  %v1804_v44 = vld [vmem:[#allocation3 + $0x1a8] sm:$0xff] }
 0x38d   :  { %v2057_v25 = vadd.f32 %v1980_v3, %v1865_v26  ;;  %v9276_v26 = vld [vmem:[#allocation141_spill] sm:$0xff]  ;;  %v9277_v3 = vld [vmem:[#allocation138_spill] sm:$0xff]  ;;  %v1233_v23 = vmul.f32 1.442695, %v1108_v39  ;;  %v1868_v28 = vmul.f32 %v7852_v17, %v1804_v44 }
 0x38e   :  { %2132 = vst.msk [vmem:[#allocation3 + $0x1e0] sm:$0xff] %vm31_vm2, %v2067_v41  ;;  %v1878_v41 = vmul.f32 %v7838_v50, %v1814_v6  ;;  %5503 = vpow2.f32 %v1223_v9  ;;  %v1106_v24 = vsub.f32 %v9277_v3, %v9276_v26  ;;  %v7858_v6 = vpop.f32.mrf.mxu1  ;;  %v1807_v44 = vld [vmem:[#allocation3 + $0x1c0] sm:$0xff] }
 0x38f   :  { %2122 = vst.msk [vmem:[#allocation3 + $0x190] sm:$0xff] %vm31_vm2, %v2057_v25  ;;  %v7862_v25 = vpop.eup %5501  ;;  %5505 = vpow2.f32 %v1233_v23  ;;  %v1812_v23 = vld [vmem:[#allocation3 + $0x1e8] sm:$0xff] }
 0x390   :  { %v1990_v37 = vpop.xlane.xlu1 %1989  ;;  %v1229_v9 = vmul.f32 1.442695, %v1106_v24 }
 0x391   :  { %v2062_v21 = vadd.f32 %v1990_v37, %v1870_v56  ;;  %v7871_v56 = vpop.f32.mrf.mxu2 }
 0x392   :  { %9279 = vst [vmem:[#allocation12_spill] sm:$0xff] %v7871_v56  ;;  %5507 = vpow2.f32 %v1229_v9  ;;  %2352 = vperm.xlu1 %5252, %v7639_v49   ;;  %v2138_v9 = vld [vmem:[#allocation4 + $0x10] sm:$0xff] }
 0x393   :  { %v2006_v35 = vpop.xlane.xlu0 %2005  ;;  %2127 = vst.msk [vmem:[#allocation3 + $0x1b8] sm:$0xff] %vm31_vm2, %v2062_v21 }
 0x394   :  { %v2070_v34 = vadd.f32 %v2006_v35, %v1878_v41  ;;  %2387 = vperm.xlu0 %5254, %v7643_v29   ;;  %v7864_v55 = vpop.f32.mrf.mxu0  ;;  %v1986_v29 = vpop.xlane.xlu2 %1985  ;;  %v1809_v41 = vld [vmem:[#allocation3 + $0x1d0] sm:$0xff] }
 0x395   :  { %v2060_v37 = vadd.f32 %v1986_v29, %v1868_v28  ;;  %v7869_v39 = vpop.eup %5503 }
 0x396   :  { %2135 = vst.msk [vmem:[#allocation3 + $0x1f8] sm:$0xff] %vm31_vm2, %v2070_v34  ;;  %v1873_v34 = vmul.f32 %v7862_v25, %v1809_v41  ;;  %v7874_v26 = vpop.f32.mrf.mxu1  ;;  %v1871_v11 = vmul.f32 %v7869_v39, %v1807_v44  ;;  %v7878_v3 = vpop.eup %5505 }
 0x397   :  { %2125 = vst.msk [vmem:[#allocation3 + $0x1a8] sm:$0xff] %vm31_vm2, %v2060_v37 }
 0x398   :  { %9278 = vst [vmem:[#allocation15_spill] sm:$0xff] %v7869_v39  ;;  %v1996_v35 = vpop.xlane.xlu1 %1995  ;;  %v7885_v41 = vpop.eup %5507 }
 0x399   :  { %v2065_v21 = vadd.f32 %v1996_v35, %v1873_v34  ;;  %v1810_v34 = vld [vmem:[#allocation3 + $0x1d8] sm:$0xff]  ;;  %v7888_v44 = vpop.f32.mrf.mxu2 }
 0x39a   :  { %v1874_v49 = vmul.f32 %v7885_v41, %v1810_v34  ;;  %2367 = vperm.xlu1 %5252, %v7494_v32  }
 0x39b   :  { %2130 = vst.msk [vmem:[#allocation3 + $0x1d0] sm:$0xff] %vm31_vm2, %v2065_v21 }
 0x39c   :  { %2402 = vperm.xlu0 %5254, %v7702_v12   ;;  %v1992_v24 = vpop.xlane.xlu2 %1991  ;;  %v7880_v29 = vpop.f32.mrf.mxu0  ;;  %v1876_v12 = vmul.f32 %v7878_v3, %v1812_v23 }
 0x39d   :  { %v2063_v28 = vadd.f32 %v1992_v24, %v1871_v11 }
 0x39f   :  { %2128 = vst.msk [vmem:[#allocation3 + $0x1c0] sm:$0xff] %vm31_vm2, %v2063_v28  ;;  %v7892_v28 = vpop.f32.mrf.mxu1 }
 0x3a0   :  { %v2002_v37 = vpop.xlane.xlu1 %2001 }
 0x3a1   :  { %v2068_v35 = vadd.f32 %v2002_v37, %v1876_v12  ;;  %v7899_v12 = vpop.f32.mrf.mxu2 }
 0x3a2   :  { %2382 = vperm.xlu1 %5252, %v7561_v54  }
 0x3a3   :  { %2133 = vst.msk [vmem:[#allocation3 + $0x1e8] sm:$0xff] %vm31_vm2, %v2068_v35 }
 0x3a4   :  { %2417 = vperm.xlu0 %5254, %v7750_v14   ;;  %v1998_v24 = vpop.xlane.xlu2 %1997  ;;  %v2842_v39 = vpop.f32.mrf.mxu0  ;;  %v2140_v14 = vld [vmem:[#allocation4 + $0x20] sm:$0xff] }
 0x3a5   :  { %v2066_v56 = vadd.f32 %v1998_v24, %v1874_v49  ;;  %v9280_v24 = vld [vmem:[#allocation84_spill] sm:$0xff] }
 0x3a6   :  { %v2213_v21 = vpop.permute.xlu0 %2212 }
 0x3a7   :  { %v2522_v11 = vmul.f32 %v2213_v21, %v2138_v9  ;;  %2131 = vst.msk [vmem:[#allocation3 + $0x1d8] sm:$0xff] %vm31_vm2, %v2066_v56  ;;  %v2143_v56 = vld [vmem:[#allocation4 + $0x38] sm:$0xff] }
 0x3a9   :  { %v3294_v23 = vadd.f32 %v7708_v48, %v2522_v11  ;;  %v7903_v48 = vpop.f32.mrf.mxu1  ;;  %v7909_v21 = vpop.f32.mrf.mxu2 }
 0x3aa   :  { %2397 = vperm.xlu1 %5252, %v7621_v0   ;;  %v2136_v0 = vld [vmem:[#allocation4] sm:$0xff] }
 0x3ab   :  { %3358 = vst.msk [vmem:[#allocation4 + $0x10] sm:$0xff] %vm160_vm1, %v3294_v23 }
 0x3ac   :  { %2432 = vperm.xlu0 %5254, %v7770_v16   ;;  %v7906_v32 = vpop.f32.mrf.mxu0  ;;  %v1552_v54 = vpop.permute.xlu1 %1551 }
 0x3ad   :  { %v1621_v23 = vsub.f32 %v9280_v24, %v1552_v54 }
 0x3ae   :  { %v2223_v37 = vpop.permute.xlu0 %2222 }
 0x3af   :  { %v2524_v9 = vmul.f32 %v2223_v37, %v2140_v14  ;;  %v1747_v37 = vmul.f32 1.442695, %v1621_v23 }
 0x3b1   :  { %v3296_v34 = vadd.f32 %v7762_v63, %v2524_v9  ;;  %v2146_v63 = vld [vmem:[#allocation4 + $0x50] sm:$0xff]  ;;  %v7915_v49 = vpop.f32.mrf.mxu1  ;;  %5509 = vpow2.f32 %v1747_v37 }
 0x3b2   :  { %2412 = vperm.xlu1 %5252, %v7677_v10  }
 0x3b3   :  { %3360 = vst.msk [vmem:[#allocation4 + $0x20] sm:$0xff] %vm160_vm1, %v3296_v34 }
 0x3b4   :  { %2447 = vperm.xlu0 %5254, %v7797_v59   ;;  %v7918_v59 = vpop.f32.mrf.mxu0 }
 0x3b6   :  { %v2238_v35 = vpop.permute.xlu0 %2237 }
 0x3b7   :  { %v2527_v16 = vmul.f32 %v2238_v35, %v2143_v56  ;;  %v2149_v56 = vld [vmem:[#allocation4 + $0x68] sm:$0xff]  ;;  %v5510_v54 = vpop.eup %5509 }
 0x3b8   :  { %2003 = vadd.xlane.f32.xlu2 %v5510_v54  ;;  %v2646_v10 = vpack.c.bf16 %v5510_v54, %v5510_v54 }
 0x3b9   :  { %v3299_v11 = vadd.f32 %v7844_v5, %v2527_v16  ;;  %v7920_v5 = vpop.f32.mrf.mxu2  ;;  %v7928_v24 = vpop.f32.mrf.mxu1 }
 0x3ba   :  { %2427 = vperm.xlu1 %5252, %v7698_v30   ;;  %v3177_v37 = vunpack.c.l.b16 %v2646_v10 }
 0x3bb   :  { %3363 = vst.msk [vmem:[#allocation4 + $0x38] sm:$0xff] %vm160_vm1, %v3299_v11  ;;  %v2647_v11 = vpack.c.bf16 %v7540_v62, %v7540_v62 }
 0x3bc   :  { %2462 = vperm.xlu0 %5254, %v7822_v51   ;;  %v2203_v51 = vpop.permute.xlu1 %2202  ;;  %v2849_v23 = vpop.f32.mrf.mxu0 }
 0x3bd   :  { %v2520_v35 = vmul.f32 %v2203_v51, %v2136_v0  ;;  %v2152_v0 = vld [vmem:[#allocation4 + $0x80] sm:$0xff] }
 0x3be   :  { %v2253_v14 = vpop.permute.xlu0 %2252 }
 0x3bf   :  { %v2530_v9 = vmul.f32 %v2253_v14, %v2146_v63  ;;  %v3292_v63 = vadd.f32 %v7662_v7, %v2520_v35 }
 0x3c1   :  { %v3302_v34 = vadd.f32 %v2842_v39, %v2530_v9  ;;  %3356 = vst.msk [vmem:[#allocation4] sm:$0xff] %vm160_vm1, %v3292_v63  ;;  %v3178_v9 = vunpack.c.l.b16 %v2647_v11  ;;  %v7933_v62 = vpop.f32.mrf.mxu2 }
 0x3c2   :  { %2442 = vperm.xlu1 %5252, %v7722_v47  }
 0x3c3   :  { %3366 = vst.msk [vmem:[#allocation4 + $0x50] sm:$0xff] %vm160_vm1, %v3302_v34  ;;  %v3186_v7 = vpack.c.b16 %v3178_v9, %v3177_v37  ;;  %v3490_v37 = vld [vmem:[#allocation3 + $0x18] sm:$0xff] }
 0x3c4   :  { %2477 = vperm.xlu0 %5254, %v7842_v61   ;;  %v2139_v61 = vld [vmem:[#allocation4 + $0x18] sm:$0xff]  ;;  %v2218_v34 = vpop.permute.xlu1 %2217 }
 0x3c5   :  { %v2523_v51 = vmul.f32 %v2218_v34, %v2139_v61  ;;  %3286 = vmatmul.bf16.gmra.mxu3 %v3186_v7  ;;  %v3554_v7 = vmax.f32 %v3490_v37, 1e-20 }
 0x3c6   :  { %v2268_v16 = vpop.permute.xlu0 %2267 }
 0x3c7   :  { %v2533_v39 = vmul.f32 %v2268_v16, %v2149_v56  ;;  %v7936_v56 = vpop.f32.mrf.mxu3  ;;  %v3487_v16 = vld [vmem:[#allocation3] sm:$0xff]  ;;  %v3295_v30 = vadd.f32 %v7738_v2, %v2523_v51  ;;  %v2145_v51 = vld [vmem:[#allocation4 + $0x48] sm:$0xff] }
 0x3c8   :  { %v3551_v63 = vmax.f32 %v3487_v16, 1e-20  ;;  %v2158_v16 = vld [vmem:[#allocation4 + $0xb0] sm:$0xff] }
 0x3c9   :  { %v3305_v14 = vadd.f32 %v2849_v23, %v2533_v39  ;;  %3359 = vst.msk [vmem:[#allocation4 + $0x18] sm:$0xff] %vm160_vm1, %v3295_v30  ;;  %v7941_v39 = vpop.f32.mrf.mxu1  ;;  %v7945_v23 = vpop.f32.mrf.mxu2 }
 0x3ca   :  { %5511 = vrcp.f32 %v3551_v63  ;;  %2457 = vperm.xlu1 %5252, %v7744_v15  }
 0x3cb   :  { %3369 = vst.msk [vmem:[#allocation4 + $0x68] sm:$0xff] %vm160_vm1, %v3305_v14  ;;  %v2155_v14 = vld [vmem:[#allocation4 + $0x98] sm:$0xff]  ;;  %5513 = vrcp.f32 %v3554_v7 }
 0x3cc   :  { %2492 = vperm.xlu0 %5254, %v7862_v25   ;;  %v2142_v25 = vld [vmem:[#allocation4 + $0x30] sm:$0xff]  ;;  %v2233_v10 = vpop.permute.xlu1 %2232 }
 0x3cd   :  { %v2526_v2 = vmul.f32 %v2233_v10, %v2142_v25 }
 0x3ce   :  { %v2283_v35 = vpop.permute.xlu0 %2282 }
 0x3cf   :  { %v2536_v54 = vmul.f32 %v2283_v35, %v2152_v0  ;;  %v7949_v34 = vpop.f32.mrf.mxu3 }
 0x3d0   :  { %2207 = vperm.xlu2 %5253, %v7457_v4  }
 0x3d1   :  { %v3308_v11 = vadd.f32 %v7717_v60, %v2536_v54  ;;  %v3298_v60 = vadd.f32 %v7815_v45, %v2526_v2  ;;  %v2992_v0 = vpop.f32.mrf.mxu1  ;;  %v7955_v45 = vpop.f32.mrf.mxu2 }
 0x3d2   :  { %2472 = vperm.xlu1 %5252, %v7766_v38  }
 0x3d3   :  { %3372 = vst.msk [vmem:[#allocation4 + $0x80] sm:$0xff] %vm160_vm1, %v3308_v11  ;;  %v3493_v11 = vld [vmem:[#allocation3 + $0x30] sm:$0xff] }
 0x3d4   :  { %2507 = vperm.xlu0 %5254, %v7878_v3   ;;  %3362 = vst.msk [vmem:[#allocation4 + $0x30] sm:$0xff] %vm160_vm1, %v3298_v60  ;;  %v5512_v3 = vpop.eup %5511  ;;  %v2248_v35 = vpop.permute.xlu1 %2247  ;;  %v3557_v10 = vmax.f32 %v3493_v11, 1e-20  ;;  %v2161_v60 = vld [vmem:[#allocation4 + $0xc8] sm:$0xff]  ;;  %v2164_v11 = vld [vmem:[#allocation4 + $0xe0] sm:$0xff] }
 0x3d5   :  { %v2529_v30 = vmul.f32 %v2248_v35, %v2145_v51  ;;  %v5514_v2 = vpop.eup %5513 }
 0x3d6   :  { %v2298_v61 = vpop.permute.xlu0 %2297  ;;  %5515 = vrcp.f32 %v3557_v10 }
 0x3d7   :  { %v2539_v9 = vmul.f32 %v2298_v61, %v2155_v14  ;;  %v3301_v63 = vadd.f32 %v7880_v29, %v2529_v30  ;;  %v7958_v25 = vpop.f32.mrf.mxu3  ;;  %v2148_v14 = vld [vmem:[#allocation4 + $0x60] sm:$0xff]  ;;  %v7964_v61 = vpop.f32.mrf.mxu0 }
 0x3d8   :  { %2227 = vperm.xlu2 %5253, %v7532_v8  }
 0x3d9   :  { %v3311_v47 = vadd.f32 %v7803_v43, %v2539_v9  ;;  %3365 = vst.msk [vmem:[#allocation4 + $0x48] sm:$0xff] %vm160_vm1, %v3301_v63  ;;  %v7967_v37 = vpop.f32.mrf.mxu1  ;;  %v7969_v4 = vpop.f32.mrf.mxu2 }
 0x3da   :  { %2487 = vperm.xlu1 %5252, %v7793_v13  }
 0x3db   :  { %3375 = vst.msk [vmem:[#allocation4 + $0x98] sm:$0xff] %vm160_vm1, %v3311_v47 }
 0x3dc   :  { %3745 = vperm.xlu0 %5254, %v5512_v3   ;;  %v2263_v29 = vpop.permute.xlu1 %2262  ;;  %v5516_v30 = vpop.eup %5515 }
 0x3dd   :  { %v2532_v9 = vmul.f32 %v2263_v29, %v2148_v14 }
 0x3de   :  { %v2313_v54 = vpop.permute.xlu0 %2312 }
 0x3df   :  { %v2542_v43 = vmul.f32 %v2313_v54, %v2158_v16  ;;  %v3304_v7 = vadd.f32 %v7918_v59, %v2532_v9  ;;  %v7975_v35 = vpop.f32.mrf.mxu3  ;;  %v2151_v16 = vld [vmem:[#allocation4 + $0x78] sm:$0xff]  ;;  %v2854_v59 = vpop.f32.mrf.mxu0 }
 0x3e0   :  { %2242 = vperm.xlu2 %5253, %v7595_v46   ;;  %v3502_v46 = vld [vmem:[#allocation3 + $0x78] sm:$0xff] }
 0x3e1   :  { %v3314_v15 = vadd.f32 %v7874_v26, %v2542_v43  ;;  %v3496_v26 = vld [vmem:[#allocation3 + $0x48] sm:$0xff]  ;;  %3368 = vst.msk [vmem:[#allocation4 + $0x60] sm:$0xff] %vm160_vm1, %v3304_v7  ;;  %v7979_v8 = vpop.f32.mrf.mxu1  ;;  %v7981_v14 = vpop.f32.mrf.mxu2  ;;  %v3489_v7 = vld [vmem:[#allocation3 + $0x10] sm:$0xff] }
 0x3e2   :  { %v3560_v3 = vmax.f32 %v3496_v26, 1e-20  ;;  %2502 = vperm.xlu1 %5252, %v7818_v22   ;;  %v2167_v26 = vld [vmem:[#allocation4 + $0xf8] sm:$0xff] }
 0x3e3   :  { %3378 = vst.msk [vmem:[#allocation4 + $0xb0] sm:$0xff] %vm160_vm1, %v3314_v15  ;;  %v3499_v15 = vld [vmem:[#allocation3 + $0x60] sm:$0xff] }
 0x3e4   :  { %3760 = vperm.xlu0 %5254, %v5514_v2   ;;  %v2278_v54 = vpop.permute.xlu1 %2277  ;;  %5517 = vrcp.f32 %v3560_v3  ;;  %v3563_v2 = vmax.f32 %v3499_v15, 1e-20  ;;  %v2170_v15 = vld [vmem:[#allocation4 + $0x110] sm:$0xff] }
 0x3e5   :  { %v2535_v63 = vmul.f32 %v2278_v54, %v2151_v16  ;;  %v3553_v16 = vmax.f32 %v3489_v7, 1e-20  ;;  %v3566_v54 = vmax.f32 %v3502_v46, 1e-20  ;;  %v2160_v7 = vld [vmem:[#allocation4 + $0xc0] sm:$0xff] }
 0x3e6   :  { %v2328_v47 = vpop.permute.xlu0 %2327  ;;  %5519 = vrcp.f32 %v3563_v2 }
 0x3e7   :  { %v2545_v38 = vmul.f32 %v2328_v47, %v2161_v60  ;;  %v7985_v29 = vpop.f32.mrf.mxu3  ;;  %v2154_v60 = vld [vmem:[#allocation4 + $0x90] sm:$0xff]  ;;  %5521 = vrcp.f32 %v3553_v16 }
 0x3e8   :  { %2257 = vperm.xlu2 %5253, %v7651_v42   ;;  %5523 = vrcp.f32 %v3566_v54 }
 0x3e9   :  { %v3317_v51 = vadd.f32 %v7915_v49, %v2545_v38  ;;  %v3307_v49 = vadd.f32 %v2854_v59, %v2535_v63  ;;  %v2157_v59 = vld [vmem:[#allocation4 + $0xa8] sm:$0xff] }
 0x3ea   :  { %v5518_v9 = vpop.eup %5517  ;;  %2517 = vperm.xlu1 %5252, %v7838_v50  }
 0x3eb   :  { %3381 = vst.msk [vmem:[#allocation4 + $0xc8] sm:$0xff] %vm160_vm1, %v3317_v51 }
 0x3ec   :  { %3775 = vperm.xlu0 %5254, %v5516_v30   ;;  %3371 = vst.msk [vmem:[#allocation4 + $0x78] sm:$0xff] %vm160_vm1, %v3307_v49  ;;  %v2293_v47 = vpop.permute.xlu1 %2292  ;;  %v2999_v30 = vpop.f32.mrf.mxu1  ;;  %v3492_v49 = vld [vmem:[#allocation3 + $0x28] sm:$0xff] }
 0x3ed   :  { %v2538_v38 = vmul.f32 %v2293_v47, %v2154_v60  ;;  %v5520_v63 = vpop.eup %5519 }
 0x3ee   :  { %v2343_v43 = vpop.permute.xlu0 %2342  ;;  %v5522_v50 = vpop.eup %5521 }
 0x3ef   :  { %v2548_v10 = vmul.f32 %v2343_v43, %v2164_v11  ;;  %v3310_v3 = vadd.f32 %v7774_v20, %v2538_v38  ;;  %v7992_v11 = vpop.f32.mrf.mxu2  ;;  %v7996_v43 = vpop.f32.mrf.mxu3 }
 0x3f0   :  { %2272 = vperm.xlu2 %5253, %v7714_v52   ;;  %v5524_v38 = vpop.eup %5523 }
 0x3f1   :  { %v3320_v13 = vadd.f32 %v2992_v0, %v2548_v10  ;;  %3374 = vst.msk [vmem:[#allocation4 + $0x90] sm:$0xff] %vm160_vm1, %v3310_v3  ;;  %v3495_v3 = vld [vmem:[#allocation3 + $0x40] sm:$0xff] }
 0x3f2   :  { %3755 = vperm.xlu1 %5252, %v5522_v50   ;;  %v3559_v54 = vmax.f32 %v3495_v3, 1e-20 }
 0x3f3   :  { %3384 = vst.msk [vmem:[#allocation4 + $0xe0] sm:$0xff] %vm160_vm1, %v3320_v13  ;;  %v3505_v13 = vld [vmem:[#allocation3 + $0x90] sm:$0xff] }
 0x3f4   :  { %3790 = vperm.xlu0 %5254, %v5518_v9   ;;  %v2308_v20 = vpop.permute.xlu1 %2307  ;;  %v3556_v9 = vmax.f32 %v3492_v49, 1e-20 }
 0x3f5   :  { %v2541_v42 = vmul.f32 %v2308_v20, %v2157_v59 }
 0x3f6   :  { %v2358_v51 = vpop.permute.xlu0 %2357  ;;  %5525 = vrcp.f32 %v3556_v9 }
 0x3f7   :  { %v2551_v0 = vmul.f32 %v2358_v51, %v2167_v26  ;;  %v3313_v2 = vadd.f32 %v7858_v6, %v2541_v42  ;;  %v3569_v26 = vmax.f32 %v3505_v13, 1e-20  ;;  %v3134_v51 = vpop.f32.mrf.mxu2  ;;  %v2173_v6 = vld [vmem:[#allocation4 + $0x128] sm:$0xff]  ;;  %v8003_v52 = vpop.f32.mrf.mxu3 }
 0x3f8   :  { %2287 = vperm.xlu2 %5253, %v7511_v19  }
 0x3f9   :  { %v3323_v22 = vadd.f32 %v2999_v30, %v2551_v0  ;;  %3377 = vst.msk [vmem:[#allocation4 + $0xa8] sm:$0xff] %vm160_vm1, %v3313_v2  ;;  %5527 = vrcp.f32 %v3569_v26  ;;  %v3508_v30 = vld [vmem:[#allocation3 + $0xa8] sm:$0xff] }
 0x3fa   :  { %v3572_v20 = vmax.f32 %v3508_v30, 1e-20  ;;  %5529 = vrcp.f32 %v3559_v54 }
 0x3fb   :  { %3387 = vst.msk [vmem:[#allocation4 + $0xf8] sm:$0xff] %vm160_vm1, %v3323_v22 }
 0x3fc   :  { %3805 = vperm.xlu0 %5254, %v5520_v63   ;;  %v2323_v46 = vpop.permute.xlu1 %2322  ;;  %v5526_v59 = vpop.eup %5525  ;;  %5531 = vrcp.f32 %v3572_v20 }
 0x3fd   :  { %v2544_v0 = vmul.f32 %v2323_v46, %v2160_v7  ;;  %3770 = vperm.xlu1 %5252, %v5526_v59   ;;  %v2166_v46 = vld [vmem:[#allocation4 + $0xf0] sm:$0xff] }
 0x3fe   :  { %v2373_v10 = vpop.permute.xlu0 %2372 }
 0x3ff   :  { %v2554_v60 = vmul.f32 %v2373_v10, %v2170_v15  ;;  %v2163_v15 = vld [vmem:[#allocation4 + $0xd8] sm:$0xff]  ;;  %v5528_v49 = vpop.eup %5527  ;;  %v2176_v10 = vld [vmem:[#allocation4 + $0x140] sm:$0xff]  ;;  %v8010_v2 = vpop.f32.mrf.mxu2 }
 0x400   :  { %2302 = vperm.xlu2 %5253, %v7555_v27   ;;  %v5530_v26 = vpop.eup %5529  ;;  %v3514_v27 = vld [vmem:[#allocation3 + $0xd8] sm:$0xff] }
 0x401   :  { %v3326_v47 = vadd.f32 %v7899_v12, %v2554_v60  ;;  %v3316_v12 = vadd.f32 %v7903_v48, %v2544_v0  ;;  %v3498_v48 = vld [vmem:[#allocation3 + $0x58] sm:$0xff]  ;;  %v3511_v60 = vld [vmem:[#allocation3 + $0xc0] sm:$0xff]  ;;  %v3501_v0 = vld [vmem:[#allocation3 + $0x70] sm:$0xff] }
 0x402   :  { %v3562_v50 = vmax.f32 %v3498_v48, 1e-20  ;;  %v3565_v54 = vmax.f32 %v3501_v0, 1e-20  ;;  %v3504_v48 = vld [vmem:[#allocation3 + $0x88] sm:$0xff] }
 0x403   :  { %3390 = vst.msk [vmem:[#allocation4 + $0x110] sm:$0xff] %vm160_vm1, %v3326_v47  ;;  %v8013_v47 = vpop.f32.mrf.mxu3 }
 0x404   :  { %3820 = vperm.xlu0 %5254, %v5524_v38   ;;  %3380 = vst.msk [vmem:[#allocation4 + $0xc0] sm:$0xff] %vm160_vm1, %v3316_v12  ;;  %v2338_v42 = vpop.permute.xlu1 %2337  ;;  %v3575_v38 = vmax.f32 %v3511_v60, 1e-20  ;;  %5533 = vrcp.f32 %v3562_v50  ;;  %v3517_v60 = vld [vmem:[#allocation3 + $0xf0] sm:$0xff] }
 0x405   :  { %v2547_v13 = vmul.f32 %v2338_v42, %v2163_v15  ;;  %3785 = vperm.xlu1 %5252, %v5530_v26   ;;  %v3578_v15 = vmax.f32 %v3514_v27, 1e-20 }
 0x406   :  { %v2388_v16 = vpop.permute.xlu0 %2387  ;;  %5535 = vrcp.f32 %v3575_v38 }
 0x407   :  { %v2557_v22 = vmul.f32 %v2388_v16, %v2173_v6  ;;  %v3319_v9 = vadd.f32 %v7941_v39, %v2547_v13  ;;  %v5532_v6 = vpop.eup %5531  ;;  %v2179_v39 = vld [vmem:[#allocation4 + $0x158] sm:$0xff]  ;;  %v8022_v59 = vpop.f32.mrf.mxu2  ;;  %5537 = vrcp.f32 %v3565_v54  ;;  %v9281_v54 = vld [vmem:[#allocation162_spill] sm:$0xff] }
 0x408   :  { %2317 = vperm.xlu2 %5253, %v7575_v36   ;;  %5539 = vrcp.f32 %v3578_v15 }
 0x409   :  { %v3329_v63 = vadd.f32 %v7933_v62, %v2557_v22  ;;  %3383 = vst.msk [vmem:[#allocation4 + $0xd8] sm:$0xff] %vm160_vm1, %v3319_v9 }
 0x40b   :  { %3393 = vst.msk [vmem:[#allocation4 + $0x128] sm:$0xff] %vm160_vm1, %v3329_v63  ;;  %v5534_v63 = vpop.eup %5533 }
 0x40c   :  { %3835 = vperm.xlu0 %5254, %v5528_v49   ;;  %v2353_v3 = vpop.permute.xlu1 %2352  ;;  %v2169_v49 = vld [vmem:[#allocation4 + $0x108] sm:$0xff]  ;;  %v5536_v42 = vpop.eup %5535 }
 0x40d   :  { %v2550_v16 = vmul.f32 %v2353_v3, %v2166_v46  ;;  %3800 = vperm.xlu1 %5252, %v5534_v63   ;;  %v5538_v50 = vpop.eup %5537  ;;  %v2172_v46 = vld [vmem:[#allocation4 + $0x120] sm:$0xff]  ;;  %v1109_v63 = vsub.f32 %v9281_v54, %v9215_v33  ;;  %v2181_v54 = vld [vmem:[#allocation4 + $0x168] sm:$0xff] }
 0x40e   :  { %v2403_v19 = vpop.permute.xlu0 %2402 }
 0x40f   :  { %v2560_v62 = vmul.f32 %v2403_v19, %v2176_v10  ;;  %v3322_v12 = vadd.f32 %v7979_v8, %v2550_v16  ;;  %v2182_v10 = vld [vmem:[#allocation4 + $0x170] sm:$0xff]  ;;  %v3520_v16 = vld [vmem:[#allocation3 + $0x108] sm:$0xff] }
 0x410   :  { %2332 = vperm.xlu2 %5253, %v7631_v57   ;;  %v3584_v15 = vmax.f32 %v3520_v16, 1e-20 }
 0x411   :  { %v3332_v7 = vadd.f32 %v7969_v4, %v2560_v62  ;;  %v8020_v4 = vpop.f32.mrf.mxu3  ;;  %3386 = vst.msk [vmem:[#allocation4 + $0xf0] sm:$0xff] %vm160_vm1, %v3322_v12  ;;  %v3568_v62 = vmax.f32 %v3504_v48, 1e-20  ;;  %v1235_v48 = vmul.f32 1.442695, %v1109_v63 }
 0x413   :  { %3396 = vst.msk [vmem:[#allocation4 + $0x140] sm:$0xff] %vm160_vm1, %v3332_v7  ;;  %v3581_v7 = vmax.f32 %v3517_v60, 1e-20  ;;  %5541 = vrcp.f32 %v3568_v62 }
 0x414   :  { %3850 = vperm.xlu0 %5254, %v5532_v6   ;;  %v2368_v8 = vpop.permute.xlu1 %2367  ;;  %v5540_v6 = vpop.eup %5539 }
 0x415   :  { %v2553_v13 = vmul.f32 %v2368_v8, %v2169_v49  ;;  %3815 = vperm.xlu1 %5252, %v5538_v50   ;;  %5543 = vrcp.f32 %v3581_v7  ;;  %v2178_v50 = vld [vmem:[#allocation4 + $0x150] sm:$0xff] }
 0x416   :  { %v2418_v30 = vpop.permute.xlu0 %2417 }
 0x417   :  { %v2563_v22 = vmul.f32 %v2418_v30, %v2179_v39  ;;  %v3325_v36 = vadd.f32 %v7888_v44, %v2553_v13  ;;  %v2185_v44 = vld [vmem:[#allocation4 + $0x188] sm:$0xff]  ;;  %v3507_v39 = vld [vmem:[#allocation3 + $0xa0] sm:$0xff] }
 0x418   :  { %v3571_v12 = vmax.f32 %v3507_v39, 1e-20  ;;  %2347 = vperm.xlu2 %5253, %v7686_v58   ;;  %v2188_v58 = vld [vmem:[#allocation4 + $0x1a0] sm:$0xff] }
 0x419   :  { %v3335_v20 = vadd.f32 %v3134_v51, %v2563_v22  ;;  %v3142_v51 = vpop.f32.mrf.mxu2  ;;  %3389 = vst.msk [vmem:[#allocation4 + $0x108] sm:$0xff] %vm160_vm1, %v3325_v36  ;;  %v8030_v38 = vpop.f32.mrf.mxu3 }
 0x41a   :  { %v5542_v22 = vpop.eup %5541  ;;  %5545 = vrcp.f32 %v3571_v12 }
 0x41b   :  { %3399 = vst.msk [vmem:[#allocation4 + $0x158] sm:$0xff] %vm160_vm1, %v3335_v20  ;;  %v5544_v8 = vpop.eup %5543  ;;  %5547 = vrcp.f32 %v3584_v15 }
 0x41c   :  { %3865 = vperm.xlu0 %5254, %v5536_v42   ;;  %v2383_v3 = vpop.permute.xlu1 %2382  ;;  %v2175_v42 = vld [vmem:[#allocation4 + $0x138] sm:$0xff]  ;;  %5549 = vpow2.f32 %v1235_v48 }
 0x41d   :  { %v2556_v0 = vmul.f32 %v2383_v3, %v2172_v46  ;;  %3830 = vperm.xlu1 %5252, %v5542_v22   ;;  %v2191_v46 = vld [vmem:[#allocation4 + $0x1b8] sm:$0xff] }
 0x41e   :  { %v2433_v19 = vpop.permute.xlu0 %2432 }
 0x41f   :  { %v2566_v9 = vmul.f32 %v2433_v19, %v2182_v10  ;;  %v3328_v30 = vadd.f32 %v7920_v5, %v2556_v0  ;;  %v3510_v10 = vld [vmem:[#allocation3 + $0xb8] sm:$0xff]  ;;  %v3523_v19 = vld [vmem:[#allocation3 + $0x120] sm:$0xff] }
 0x420   :  { %v3574_v36 = vmax.f32 %v3510_v10, 1e-20  ;;  %2362 = vperm.xlu2 %5253, %v7615_v18  }
 0x421   :  { %v3338_v26 = vadd.f32 %v3142_v51, %v2566_v9  ;;  %3392 = vst.msk [vmem:[#allocation4 + $0x120] sm:$0xff] %vm160_vm1, %v3328_v30  ;;  %v8039_v49 = vpop.f32.mrf.mxu3  ;;  %v5546_v9 = vpop.eup %5545  ;;  %v3587_v51 = vmax.f32 %v3523_v19, 1e-20 }
 0x422   :  { %5551 = vrcp.f32 %v3574_v36  ;;  %v2184_v36 = vld [vmem:[#allocation4 + $0x180] sm:$0xff] }
 0x423   :  { %3402 = vst.msk [vmem:[#allocation4 + $0x170] sm:$0xff] %vm160_vm1, %v3338_v26  ;;  %v5548_v26 = vpop.eup %5547  ;;  %5553 = vrcp.f32 %v3587_v51 }
 0x424   :  { %3880 = vperm.xlu0 %5254, %v5540_v6   ;;  %v2398_v5 = vpop.permute.xlu1 %2397  ;;  %v3513_v6 = vld [vmem:[#allocation3 + $0xd0] sm:$0xff]  ;;  %v8049_v39 = vpop.eup %5549 }
 0x425   :  { %v2559_v13 = vmul.f32 %v2398_v5, %v2175_v42  ;;  %3845 = vperm.xlu1 %5252, %v5546_v9   ;;  %v3577_v16 = vmax.f32 %v3513_v6, 1e-20  ;;  %v2194_v42 = vld [vmem:[#allocation4 + $0x1d0] sm:$0xff] }
 0x426   :  { %v2448_v57 = vpop.permute.xlu0 %2447 }
 0x427   :  { %v2569_v27 = vmul.f32 %v2448_v57, %v2185_v44  ;;  %v3526_v44 = vld [vmem:[#allocation3 + $0x138] sm:$0xff]  ;;  %v1813_v57 = vld [vmem:[#allocation3 + $0x1f0] sm:$0xff]  ;;  %5555 = vrcp.f32 %v3577_v16 }
 0x428   :  { %2377 = vperm.xlu2 %5253, %v7672_v1   ;;  %v5552_v30 = vpop.eup %5551  ;;  %v3590_v12 = vmax.f32 %v3526_v44, 1e-20  ;;  %v1877_v22 = vmul.f32 %v8049_v39, %v1813_v57  ;;  %v3516_v1 = vld [vmem:[#allocation3 + $0xe8] sm:$0xff] }
 0x429   :  { %v3341_v20 = vadd.f32 %v7949_v34, %v2569_v27  ;;  %v3331_v34 = vadd.f32 %v7955_v45, %v2559_v13  ;;  %v8047_v7 = vpop.f32.mrf.mxu3  ;;  %v5554_v63 = vpop.eup %5553  ;;  %v3580_v13 = vmax.f32 %v3516_v1, 1e-20  ;;  %v2141_v57 = vld [vmem:[#allocation4 + $0x28] sm:$0xff]  ;;  %v9283_v1 = vld [vmem:[#allocation13_spill] sm:$0xff] }
 0x42a   :  { %5557 = vrcp.f32 %v3590_v12 }
 0x42b   :  { %3405 = vst.msk [vmem:[#allocation4 + $0x188] sm:$0xff] %vm160_vm1, %v3341_v20  ;;  %v2004_v20 = vpop.xlane.xlu2 %2003  ;;  %5559 = vrcp.f32 %v3580_v13 }
 0x42c   :  { %3895 = vperm.xlu0 %5254, %v5544_v8   ;;  %3395 = vst.msk [vmem:[#allocation4 + $0x138] sm:$0xff] %vm160_vm1, %v3331_v34  ;;  %v2413_v45 = vpop.permute.xlu1 %2412  ;;  %v2137_v34 = vld [vmem:[#allocation4 + $0x8] sm:$0xff] }
 0x42d   :  { %v2562_v18 = vmul.f32 %v2413_v45, %v2178_v50  ;;  %3860 = vperm.xlu1 %5252, %v5552_v30   ;;  %v2197_v50 = vld [vmem:[#allocation4 + $0x1e8] sm:$0xff]  ;;  %v2187_v30 = vld [vmem:[#allocation4 + $0x198] sm:$0xff] }
 0x42e   :  { %v2463_v33 = vpop.permute.xlu0 %2462 }
 0x42f   :  { %v2572_v60 = vmul.f32 %v2463_v33, %v2188_v58  ;;  %v3529_v58 = vld [vmem:[#allocation3 + $0x150] sm:$0xff]  ;;  %v5556_v33 = vpop.eup %5555 }
 0x430   :  { %2392 = vperm.xlu2 %5253, %v7736_v31   ;;  %v5558_v9 = vpop.eup %5557 }
 0x431   :  { %v3344_v62 = vadd.f32 %v7985_v29, %v2572_v60  ;;  %v3334_v29 = vadd.f32 %v7992_v11, %v2562_v18  ;;  %v2069_v11 = vadd.f32 %v2004_v20, %v1877_v22  ;;  %v8057_v5 = vpop.f32.mrf.mxu3  ;;  %v3593_v60 = vmax.f32 %v3529_v58, 1e-20  ;;  %v3522_v22 = vld [vmem:[#allocation3 + $0x118] sm:$0xff] }
 0x433   :  { %3408 = vst.msk [vmem:[#allocation4 + $0x1a0] sm:$0xff] %vm160_vm1, %v3344_v62  ;;  %v2208_v62 = vpop.permute.xlu2 %2207  ;;  %5561 = vrcp.f32 %v3593_v60 }
 0x434   :  { %3910 = vperm.xlu0 %5254, %v5548_v26   ;;  %3398 = vst.msk [vmem:[#allocation4 + $0x150] sm:$0xff] %vm160_vm1, %v3334_v29  ;;  %v2428_v15 = vpop.permute.xlu1 %2427  ;;  %v2521_v51 = vmul.f32 %v2208_v62, %v2137_v34  ;;  %v3519_v26 = vld [vmem:[#allocation3 + $0x100] sm:$0xff]  ;;  %v5560_v29 = vpop.eup %5559  ;;  %v3525_v34 = vld [vmem:[#allocation3 + $0x130] sm:$0xff] }
 0x435   :  { %v2565_v8 = vmul.f32 %v2428_v15, %v2181_v54  ;;  %2134 = vst.msk [vmem:[#allocation3 + $0x1f0] sm:$0xff] %vm31_vm2, %v2069_v11  ;;  %3875 = vperm.xlu1 %5252, %v5556_v33   ;;  %v3535_v11 = vld [vmem:[#allocation3 + $0x180] sm:$0xff] }
 0x436   :  { %v2478_v3 = vpop.permute.xlu0 %2477  ;;  %v3293_v45 = vadd.f32 %v7681_v40, %v2521_v51  ;;  %v3599_v58 = vmax.f32 %v3535_v11, 1e-20  ;;  %v3589_v51 = vmax.f32 %v3525_v34, 1e-20  ;;  %v3534_v34 = vld [vmem:[#allocation3 + $0x178] sm:$0xff] }
 0x437   :  { %v2575_v0 = vmul.f32 %v2478_v3, %v2191_v46  ;;  %v3337_v10 = vadd.f32 %v8022_v59, %v2565_v8  ;;  %v3583_v3 = vmax.f32 %v3519_v26, 1e-20  ;;  %v2147_v26 = vld [vmem:[#allocation4 + $0x58] sm:$0xff] }
 0x438   :  { %3357 = vst.msk [vmem:[#allocation4 + $0x8] sm:$0xff] %vm160_vm1, %v3293_v45  ;;  %2407 = vperm.xlu2 %5253, %v7760_v53   ;;  %v9282_v53 = vld [vmem:[#allocation10_spill] sm:$0xff] }
 0x439   :  { %v3347_v27 = vadd.f32 %v8013_v47, %v2575_v0  ;;  %3401 = vst.msk [vmem:[#allocation4 + $0x168] sm:$0xff] %vm160_vm1, %v3337_v10  ;;  %v3284_v44 = vpop.f32.mrf.mxu3  ;;  %v5562_v40 = vpop.eup %5561  ;;  %5563 = vrcp.f32 %v3583_v3  ;;  %v2190_v10 = vld [vmem:[#allocation4 + $0x1b0] sm:$0xff]  ;;  %v2193_v45 = vld [vmem:[#allocation4 + $0x1c8] sm:$0xff] }
 0x43b   :  { %3411 = vst.msk [vmem:[#allocation4 + $0x1b8] sm:$0xff] %vm160_vm1, %v3347_v27  ;;  %v2228_v27 = vpop.permute.xlu2 %2227 }
 0x43c   :  { %3925 = vperm.xlu0 %5254, %v5554_v63   ;;  %v2443_v59 = vpop.permute.xlu1 %2442 }
 0x43d   :  { %v2568_v31 = vmul.f32 %v2443_v59, %v2184_v36  ;;  %3890 = vperm.xlu1 %5252, %v5560_v29   ;;  %v9284_v59 = vld [vmem:[#allocation7_spill] sm:$0xff] }
 0x43e   :  { %v2493_v47 = vpop.permute.xlu0 %2492  ;;  %v3541_v29 = vld [vmem:[#allocation3 + $0x1b0] sm:$0xff] }
 0x43f   :  { %v2578_v48 = vmul.f32 %v2493_v47, %v2194_v42  ;;  %v3340_v6 = vadd.f32 %v7936_v56, %v2568_v31  ;;  %v2525_v56 = vmul.f32 %v2228_v27, %v2141_v57  ;;  %v3586_v42 = vmax.f32 %v3522_v22, 1e-20  ;;  %v5564_v8 = vpop.eup %5563  ;;  %v2144_v47 = vld [vmem:[#allocation4 + $0x40] sm:$0xff] }
 0x440   :  { %2422 = vperm.xlu2 %5253, %v9283_v1   ;;  %v3605_v27 = vmax.f32 %v3541_v29, 1e-20 }
 0x441   :  { %v3350_v19 = vadd.f32 %v8039_v49, %v2578_v48  ;;  %v3532_v49 = vld [vmem:[#allocation3 + $0x168] sm:$0xff]  ;;  %3404 = vst.msk [vmem:[#allocation4 + $0x180] sm:$0xff] %vm160_vm1, %v3340_v6  ;;  %v3297_v63 = vadd.f32 %v9282_v53, %v2525_v56  ;;  %v2196_v56 = vld [vmem:[#allocation4 + $0x1e0] sm:$0xff] }
 0x442   :  { %v3596_v16 = vmax.f32 %v3532_v49, 1e-20 }
 0x443   :  { %3414 = vst.msk [vmem:[#allocation4 + $0x1d0] sm:$0xff] %vm160_vm1, %v3350_v19  ;;  %v2243_v13 = vpop.permute.xlu2 %2242 }
 0x444   :  { %3940 = vperm.xlu0 %5254, %v5558_v9   ;;  %v2458_v12 = vpop.permute.xlu1 %2457  ;;  %5565 = vrcp.f32 %v3596_v16  ;;  %3361 = vst.msk [vmem:[#allocation4 + $0x28] sm:$0xff] %vm160_vm1, %v3297_v63  ;;  %v2528_v33 = vmul.f32 %v2243_v13, %v2144_v47  ;;  %v3538_v9 = vld [vmem:[#allocation3 + $0x198] sm:$0xff]  ;;  %v9285_v16 = vld [vmem:[#allocation5_spill] sm:$0xff] }
 0x445   :  { %v2571_v54 = vmul.f32 %v2458_v12, %v2187_v30  ;;  %3905 = vperm.xlu1 %5252, %v5564_v8   ;;  %5567 = vrcp.f32 %v3586_v42  ;;  %v3602_v31 = vmax.f32 %v3538_v9, 1e-20  ;;  %v3544_v42 = vld [vmem:[#allocation3 + $0x1c8] sm:$0xff] }
 0x446   :  { %v2508_v46 = vpop.permute.xlu0 %2507  ;;  %5569 = vrcp.f32 %v3599_v58  ;;  %v3300_v60 = vadd.f32 %v7864_v55, %v2528_v33  ;;  %v2153_v58 = vld [vmem:[#allocation4 + $0x88] sm:$0xff] }
 0x447   :  { %v2581_v18 = vmul.f32 %v2508_v46, %v2197_v50  ;;  %v3343_v15 = vadd.f32 %v7975_v35, %v2571_v54  ;;  %5571 = vrcp.f32 %v3589_v51 }
 0x448   :  { %3364 = vst.msk [vmem:[#allocation4 + $0x40] sm:$0xff] %vm160_vm1, %v3300_v60  ;;  %2437 = vperm.xlu2 %5253, %v9284_v59   ;;  %5573 = vrcp.f32 %v3602_v31  ;;  %v9286_v60 = vld [vmem:[#allocation6_spill] sm:$0xff]  ;;  %v3598_v59 = vmax.f32 %v3534_v34, 1e-20  ;;  %v2156_v31 = vld [vmem:[#allocation4 + $0xa0] sm:$0xff] }
 0x449   :  { %v3353_v0 = vadd.f32 %v3284_v44, %v2581_v18  ;;  %3407 = vst.msk [vmem:[#allocation4 + $0x198] sm:$0xff] %vm160_vm1, %v3343_v15  ;;  %v3528_v18 = vld [vmem:[#allocation3 + $0x148] sm:$0xff] }
 0x44a   :  { %v5566_v48 = vpop.eup %5565  ;;  %v3592_v57 = vmax.f32 %v3528_v18, 1e-20  ;;  %v3537_v18 = vld [vmem:[#allocation3 + $0x190] sm:$0xff] }
 0x44b   :  { %3417 = vst.msk [vmem:[#allocation4 + $0x1e8] sm:$0xff] %vm160_vm1, %v3353_v0  ;;  %v5568_v50 = vpop.eup %5567  ;;  %v2258_v49 = vpop.permute.xlu2 %2257 }
 0x44c   :  { %3955 = vperm.xlu0 %5254, %v5562_v40   ;;  %v2473_v19 = vpop.permute.xlu1 %2472  ;;  %v5570_v46 = vpop.eup %5569  ;;  %v2531_v55 = vmul.f32 %v2258_v49, %v2147_v26  ;;  %v2150_v40 = vld [vmem:[#allocation4 + $0x70] sm:$0xff]  ;;  %5575 = vrcp.f32 %v3592_v57  ;;  %v3601_v57 = vmax.f32 %v3537_v18, 1e-20  ;;  %v2168_v18 = vld [vmem:[#allocation4 + $0x100] sm:$0xff] }
 0x44d   :  { %v2574_v35 = vmul.f32 %v2473_v19, %v2190_v10  ;;  %3920 = vperm.xlu1 %5252, %v5568_v50   ;;  %v5572_v30 = vpop.eup %5571  ;;  %5577 = vrcp.f32 %v3605_v27  ;;  %v3608_v10 = vmax.f32 %v3544_v42, 1e-20  ;;  %v9287_v50 = vld [vmem:[#allocation15_spill] sm:$0xff]  ;;  %v3488_v27 = vld [vmem:[#allocation3 + $0x8] sm:$0xff] }
 0x44e   :  { %v8072_v20 = vpop.permute.xlu0 %3745  ;;  %v3303_v3 = vadd.f32 %v7906_v32, %v2531_v55  ;;  %v5574_v12 = vpop.eup %5573 }
 0x44f   :  { %v3346_v62 = vadd.f32 %v8003_v52, %v2574_v35  ;;  %v8092_v32 = vpop.f32.mrf.mxu3 }
 0x450   :  { %3367 = vst.msk [vmem:[#allocation4 + $0x58] sm:$0xff] %vm160_vm1, %v3303_v3  ;;  %2452 = vperm.xlu2 %5253, %v9285_v16  }
 0x451   :  { %3410 = vst.msk [vmem:[#allocation4 + $0x1b0] sm:$0xff] %vm160_vm1, %v3346_v62  ;;  %v3547_v62 = vld [vmem:[#allocation3 + $0x1e0] sm:$0xff] }
 0x452   :  { %v5576_v47 = vpop.eup %5575 }
 0x453   :  { %v2273_v22 = vpop.permute.xlu2 %2272  ;;  %v5578_v13 = vpop.eup %5577 }
 0x454   :  { %3970 = vperm.xlu0 %5254, %v5566_v48   ;;  %v2488_v6 = vpop.permute.xlu1 %2487  ;;  %v2534_v54 = vmul.f32 %v2273_v22, %v2150_v40  ;;  %v2199_v48 = vld [vmem:[#allocation4 + $0x1f8] sm:$0xff] }
 0x455   :  { %v2577_v52 = vmul.f32 %v2488_v6, %v2193_v45  ;;  %3935 = vperm.xlu1 %5252, %v5572_v30   ;;  %v3611_v45 = vmax.f32 %v3547_v62, 1e-20  ;;  %v2159_v30 = vld [vmem:[#allocation4 + $0xb8] sm:$0xff] }
 0x456   :  { %v8079_v36 = vpop.permute.xlu0 %3760  ;;  %v3306_v11 = vadd.f32 %v7964_v61, %v2534_v54 }
 0x457   :  { %v3349_v0 = vadd.f32 %v8030_v38, %v2577_v52  ;;  %v3531_v38 = vld [vmem:[#allocation3 + $0x160] sm:$0xff]  ;;  %v3289_v35 = vpop.f32.mrf.mxu3  ;;  %v9288_v52 = vld [vmem:[#allocation8_spill] sm:$0xff] }
 0x458   :  { %v3595_v8 = vmax.f32 %v3531_v38, 1e-20  ;;  %3370 = vst.msk [vmem:[#allocation4 + $0x70] sm:$0xff] %vm160_vm1, %v3306_v11  ;;  %2467 = vperm.xlu2 %5253, %v7852_v17   ;;  %v3552_v38 = vmax.f32 %v3488_v27, 1e-20 }
 0x459   :  { %3413 = vst.msk [vmem:[#allocation4 + $0x1c8] sm:$0xff] %vm160_vm1, %v3349_v0  ;;  %v3550_v0 = vld [vmem:[#allocation3 + $0x1f8] sm:$0xff] }
 0x45a   :  { %5579 = vrcp.f32 %v3595_v8  ;;  %v3614_v40 = vmax.f32 %v3550_v0, 1e-20  ;;  %v3491_v8 = vld [vmem:[#allocation3 + $0x20] sm:$0xff] }
 0x45b   :  { %v2288_v33 = vpop.permute.xlu2 %2287  ;;  %5581 = vrcp.f32 %v3608_v10 }
 0x45c   :  { %3985 = vperm.xlu0 %5254, %v5570_v46   ;;  %v2503_v53 = vpop.permute.xlu1 %2502  ;;  %v2537_v61 = vmul.f32 %v2288_v33, %v2153_v58  ;;  %5583 = vrcp.f32 %v3598_v59 }
 0x45d   :  { %v2580_v63 = vmul.f32 %v2503_v53, %v2196_v56  ;;  %3950 = vperm.xlu1 %5252, %v5576_v47   ;;  %5585 = vrcp.f32 %v3611_v45  ;;  %v3540_v53 = vld [vmem:[#allocation3 + $0x1a8] sm:$0xff] }
 0x45e   :  { %v8086_v44 = vpop.permute.xlu0 %3775  ;;  %v3309_v9 = vadd.f32 %v9286_v60, %v2537_v61  ;;  %5587 = vrcp.f32 %v3601_v57  ;;  %v3604_v42 = vmax.f32 %v3540_v53, 1e-20 }
 0x45f   :  { %v3352_v1 = vadd.f32 %v8057_v5, %v2580_v63  ;;  %5589 = vrcp.f32 %v3614_v40  ;;  %v9289_v40 = vld [vmem:[#allocation12_spill] sm:$0xff] }
 0x460   :  { %3373 = vst.msk [vmem:[#allocation4 + $0x88] sm:$0xff] %vm160_vm1, %v3309_v9  ;;  %2482 = vperm.xlu2 %5253, %v9287_v50   ;;  %v5580_v26 = vpop.eup %5579  ;;  %5591 = vrcp.f32 %v3552_v38  ;;  %v3494_v9 = vld [vmem:[#allocation3 + $0x38] sm:$0xff]  ;;  %v3703_v38 = vld [vmem:[#allocation4 + $0xc0] sm:$0xff] }
 0x461   :  { %3416 = vst.msk [vmem:[#allocation4 + $0x1e0] sm:$0xff] %vm160_vm1, %v3352_v1  ;;  %v5582_v46 = vpop.eup %5581  ;;  %v2162_v1 = vld [vmem:[#allocation4 + $0xd0] sm:$0xff]  ;;  %5593 = vrcp.f32 %v3604_v42  ;;  %v3558_v50 = vmax.f32 %v3494_v9, 1e-20  ;;  %v3500_v42 = vld [vmem:[#allocation3 + $0x68] sm:$0xff] }
 0x462   :  { %v5584_v16 = vpop.eup %5583 }
 0x463   :  { %v2303_v49 = vpop.permute.xlu2 %2302  ;;  %v5586_v56 = vpop.eup %5585 }
 0x464   :  { %4000 = vperm.xlu0 %5254, %v5574_v12   ;;  %v2518_v19 = vpop.permute.xlu1 %2517  ;;  %v2540_v55 = vmul.f32 %v2303_v49, %v2156_v31 }
 0x465   :  { %v2583_v5 = vmul.f32 %v2518_v19, %v2199_v48  ;;  %3965 = vperm.xlu1 %5252, %v5580_v26  }
 0x466   :  { %v8095_v15 = vpop.permute.xlu0 %3790  ;;  %v3312_v3 = vadd.f32 %v9288_v52, %v2540_v55  ;;  %v3700_v55 = vld [vmem:[#allocation4 + $0xa8] sm:$0xff] }
 0x467   :  { %v3355_v51 = vadd.f32 %v3289_v35, %v2583_v5  ;;  %v3697_v5 = vld [vmem:[#allocation4 + $0x90] sm:$0xff]  ;;  %v2165_v35 = vld [vmem:[#allocation4 + $0xe8] sm:$0xff] }
 0x468   :  { %3376 = vst.msk [vmem:[#allocation4 + $0xa0] sm:$0xff] %vm160_vm1, %v3312_v3  ;;  %2497 = vperm.xlu2 %5253, %v7885_v41   ;;  %v5588_v41 = vpop.eup %5587  ;;  %v3497_v3 = vld [vmem:[#allocation3 + $0x50] sm:$0xff] }
 0x469   :  { %3419 = vst.msk [vmem:[#allocation4 + $0x1f8] sm:$0xff] %vm160_vm1, %v3355_v51  ;;  %v5590_v47 = vpop.eup %5589 }
 0x46a   :  { %v5592_v19 = vpop.eup %5591 }
 0x46b   :  { %v2318_v12 = vpop.permute.xlu2 %2317 }
 0x46c   :  { %4015 = vperm.xlu0 %5254, %v5578_v13   ;;  %v8107_v6 = vpop.permute.xlu1 %3755  ;;  %v2543_v22 = vmul.f32 %v2318_v12, %v2159_v30  ;;  %v3543_v13 = vld [vmem:[#allocation3 + $0x1c0] sm:$0xff]  ;;  %v3561_v30 = vmax.f32 %v3497_v3, 1e-20 }
 0x46d   :  { %3980 = vperm.xlu1 %5252, %v5584_v16   ;;  %v3607_v34 = vmax.f32 %v3543_v13, 1e-20 }
 0x46e   :  { %v8102_v17 = vpop.permute.xlu0 %3805  ;;  %v3315_v63 = vadd.f32 %v7892_v28, %v2543_v22  ;;  %v3555_v28 = vmax.f32 %v3491_v8, 1e-20 }
 0x470   :  { %3379 = vst.msk [vmem:[#allocation4 + $0xb8] sm:$0xff] %vm160_vm1, %v3315_v63  ;;  %2512 = vperm.xlu2 %5253, %v8049_v39   ;;  %v5594_v39 = vpop.eup %5593  ;;  %5595 = vrcp.f32 %v3555_v28  ;;  %v2171_v63 = vld [vmem:[#allocation4 + $0x118] sm:$0xff] }
 0x471   :  { %5597 = vrcp.f32 %v3607_v34  ;;  %v3503_v34 = vld [vmem:[#allocation3 + $0x80] sm:$0xff] }
 0x472   :  { %5599 = vrcp.f32 %v3558_v50  ;;  %v3709_v50 = vld [vmem:[#allocation4 + $0xf0] sm:$0xff] }
 0x473   :  { %v2333_v58 = vpop.permute.xlu2 %2332 }
 0x474   :  { %4030 = vperm.xlu0 %5254, %v5582_v46   ;;  %v8114_v54 = vpop.permute.xlu1 %3770  ;;  %v2546_v10 = vmul.f32 %v2333_v58, %v2162_v1 }
 0x475   :  { %3995 = vperm.xlu1 %5252, %v5588_v41  }
 0x476   :  { %v8110_v29 = vpop.permute.xlu0 %3820  ;;  %v3318_v33 = vadd.f32 %v7928_v24, %v2546_v10  ;;  %v3546_v24 = vld [vmem:[#allocation3 + $0x1d8] sm:$0xff]  ;;  %v5596_v45 = vpop.eup %5595 }
 0x477   :  { %v3610_v46 = vmax.f32 %v3546_v24, 1e-20  ;;  %v5598_v49 = vpop.eup %5597 }
 0x478   :  { %3382 = vst.msk [vmem:[#allocation4 + $0xd0] sm:$0xff] %vm160_vm1, %v3318_v33  ;;  %3750 = vperm.xlu2 %5253, %v5592_v19   ;;  %v5600_v12 = vpop.eup %5599  ;;  %v3706_v33 = vld [vmem:[#allocation4 + $0xd8] sm:$0xff] }
 0x479   :  { %5601 = vrcp.f32 %v3610_v46 }
 0x47a   :  { %5603 = vrcp.f32 %v3561_v30  ;;  %v2180_v30 = vld [vmem:[#allocation4 + $0x160] sm:$0xff] }
 0x47b   :  { %v2348_v62 = vpop.permute.xlu2 %2347 }
 0x47c   :  { %4045 = vperm.xlu0 %5254, %v5586_v56   ;;  %v8119_v48 = vpop.permute.xlu1 %3785  ;;  %v2549_v51 = vmul.f32 %v2348_v62, %v2165_v35 }
 0x47d   :  { %4010 = vperm.xlu1 %5252, %v5594_v39  }
 0x47e   :  { %v3836_v11 = vpop.permute.xlu0 %3835  ;;  %v3321_v26 = vadd.f32 %v7967_v37, %v2549_v51  ;;  %v3549_v37 = vld [vmem:[#allocation3 + $0x1f0] sm:$0xff]  ;;  %v3696_v51 = vld [vmem:[#allocation4 + $0x88] sm:$0xff] }
 0x47f   :  { %v4081_v60 = vmul.f32 %v3836_v11, %v3697_v5  ;;  %v3613_v22 = vmax.f32 %v3549_v37, 1e-20  ;;  %v5602_v53 = vpop.eup %5601  ;;  %v3712_v37 = vld [vmem:[#allocation4 + $0x108] sm:$0xff] }
 0x480   :  { %3385 = vst.msk [vmem:[#allocation4 + $0xe8] sm:$0xff] %vm160_vm1, %v3321_v26  ;;  %3765 = vperm.xlu2 %5253, %v5596_v45   ;;  %v5604_v13 = vpop.eup %5603  ;;  %v2177_v26 = vld [vmem:[#allocation4 + $0x148] sm:$0xff]  ;;  %v3506_v45 = vld [vmem:[#allocation3 + $0x98] sm:$0xff] }
 0x481   :  { %5605 = vrcp.f32 %v3613_v22 }
 0x483   :  { %v2363_v0 = vpop.permute.xlu2 %2362 }
 0x484   :  { %4060 = vperm.xlu0 %5254, %v5590_v47   ;;  %v8123_v59 = vpop.permute.xlu1 %3800  ;;  %v2552_v57 = vmul.f32 %v2363_v0, %v2168_v18  ;;  %v3564_v47 = vmax.f32 %v3500_v42, 1e-20  ;;  %v3699_v0 = vld [vmem:[#allocation4 + $0xa0] sm:$0xff] }
 0x485   :  { %4025 = vperm.xlu1 %5252, %v5598_v49  }
 0x486   :  { %v3851_v61 = vpop.permute.xlu0 %3850  ;;  %v3324_v27 = vadd.f32 %v9289_v40, %v2552_v57  ;;  %5607 = vrcp.f32 %v3564_v47  ;;  %v3512_v47 = vld [vmem:[#allocation3 + $0xc8] sm:$0xff] }
 0x487   :  { %v4084_v52 = vmul.f32 %v3851_v61, %v3700_v55  ;;  %v5606_v28 = vpop.eup %5605  ;;  %v2174_v61 = vld [vmem:[#allocation4 + $0x130] sm:$0xff] }
 0x488   :  { %3388 = vst.msk [vmem:[#allocation4 + $0x100] sm:$0xff] %vm160_vm1, %v3324_v27  ;;  %3780 = vperm.xlu2 %5253, %v5600_v12   ;;  %v3509_v27 = vld [vmem:[#allocation3 + $0xb0] sm:$0xff] }
 0x48b   :  { %v2378_v41 = vpop.permute.xlu2 %2377 }
 0x48c   :  { %4147 = vrot.lane.b32.xlu0 %v4081_v60, %s5678_s2  ;;  %v8128_v16 = vpop.permute.xlu1 %3815  ;;  %v2555_v1 = vmul.f32 %v2378_v41, %v2171_v63  ;;  %v3567_v60 = vmax.f32 %v3503_v34, 1e-20  ;;  %v5608_v62 = vpop.eup %5607  ;;  %v3715_v41 = vld [vmem:[#allocation4 + $0x120] sm:$0xff]  ;;  %v3705_v34 = vld [vmem:[#allocation4 + $0xd0] sm:$0xff] }
 0x48d   :  { %4040 = vperm.xlu1 %5252, %v5602_v53  }
 0x48e   :  { %v3866_v31 = vpop.permute.xlu0 %3865  ;;  %v3327_v58 = vadd.f32 %v7909_v21, %v2555_v1  ;;  %5609 = vrcp.f32 %v3567_v60  ;;  %v2183_v1 = vld [vmem:[#allocation4 + $0x178] sm:$0xff] }
 0x48f   :  { %v4087_v11 = vmul.f32 %v3866_v31, %v3703_v38 }
 0x490   :  { %3391 = vst.msk [vmem:[#allocation4 + $0x118] sm:$0xff] %vm160_vm1, %v3327_v58  ;;  %3795 = vperm.xlu2 %5253, %v5604_v13  }
 0x493   :  { %v2393_v39 = vpop.permute.xlu2 %2392 }
 0x494   :  { %4153 = vrot.lane.b32.xlu0 %v4084_v52, %s5678_s2  ;;  %v3831_v8 = vpop.permute.xlu1 %3830  ;;  %v2558_v5 = vmul.f32 %v2393_v39, %v2174_v61  ;;  %v5610_v3 = vpop.eup %5609 }
 0x495   :  { %4055 = vperm.xlu1 %5252, %v5606_v28   ;;  %v4080_v24 = vmul.f32 %v3831_v8, %v3696_v51  ;;  %v3576_v28 = vmax.f32 %v3512_v47, 1e-20  ;;  %v3727_v47 = vld [vmem:[#allocation4 + $0x180] sm:$0xff] }
 0x496   :  { %v3881_v56 = vpop.permute.xlu0 %3880  ;;  %v3330_v21 = vadd.f32 %v7945_v23, %v2558_v5  ;;  %v3570_v23 = vmax.f32 %v3506_v45, 1e-20  ;;  %v3718_v5 = vld [vmem:[#allocation4 + $0x138] sm:$0xff]  ;;  %v3708_v45 = vld [vmem:[#allocation4 + $0xe8] sm:$0xff] }
 0x497   :  { %v4090_v19 = vmul.f32 %v3881_v56, %v3706_v33 }
 0x498   :  { %3394 = vst.msk [vmem:[#allocation4 + $0x130] sm:$0xff] %vm160_vm1, %v3330_v21  ;;  %3810 = vperm.xlu2 %5253, %v5608_v62   ;;  %5611 = vrcp.f32 %v3570_v23  ;;  %v3515_v21 = vld [vmem:[#allocation3 + $0xe0] sm:$0xff] }
 0x49b   :  { %v2408_v46 = vpop.permute.xlu2 %2407 }
 0x49c   :  { %4159 = vrot.lane.b32.xlu0 %v4087_v11, %s5678_s2  ;;  %v3846_v35 = vpop.permute.xlu1 %3845  ;;  %v2561_v49 = vmul.f32 %v2408_v46, %v2177_v26  ;;  %v3702_v11 = vld [vmem:[#allocation4 + $0xb8] sm:$0xff] }
 0x49d   :  { %4145 = vrot.lane.b32.xlu1 %v4080_v24, %s5678_s2  ;;  %v4083_v57 = vmul.f32 %v3846_v35, %v3699_v0  ;;  %v2186_v35 = vld [vmem:[#allocation4 + $0x190] sm:$0xff]  ;;  %v3579_v24 = vmax.f32 %v3515_v21, 1e-20 }
 0x49e   :  { %v3896_v10 = vpop.permute.xlu0 %3895  ;;  %v3333_v18 = vadd.f32 %v7981_v14, %v2561_v49  ;;  %v3573_v14 = vmax.f32 %v3509_v27, 1e-20  ;;  %v5612_v63 = vpop.eup %5611  ;;  %v3721_v49 = vld [vmem:[#allocation4 + $0x150] sm:$0xff] }
 0x49f   :  { %v4093_v31 = vmul.f32 %v3896_v10, %v3709_v50 }
 0x4a0   :  { %3397 = vst.msk [vmem:[#allocation4 + $0x148] sm:$0xff] %vm160_vm1, %v3333_v18  ;;  %3825 = vperm.xlu2 %5253, %v5610_v3   ;;  %5613 = vrcp.f32 %v3573_v14  ;;  %v3518_v18 = vld [vmem:[#allocation3 + $0xf8] sm:$0xff]  ;;  %v3521_v14 = vld [vmem:[#allocation3 + $0x110] sm:$0xff] }
 0x4a1   :  { %5615 = vrcp.f32 %v3576_v28 }
 0x4a2   :  { %5617 = vrcp.f32 %v3579_v24 }
 0x4a3   :  { %v2423_v56 = vpop.permute.xlu2 %2422 }
 0x4a4   :  { %4165 = vrot.lane.b32.xlu0 %v4090_v19, %s5678_s2  ;;  %v3861_v55 = vpop.permute.xlu1 %3860  ;;  %v2564_v12 = vmul.f32 %v2423_v56, %v2180_v30  ;;  %v3724_v56 = vld [vmem:[#allocation4 + $0x168] sm:$0xff] }
 0x4a5   :  { %4151 = vrot.lane.b32.xlu1 %v4083_v57, %s5678_s2  ;;  %v4086_v42 = vmul.f32 %v3861_v55, %v3702_v11  ;;  %v2189_v55 = vld [vmem:[#allocation4 + $0x1a8] sm:$0xff] }
 0x4a6   :  { %v3911_v9 = vpop.permute.xlu0 %3910  ;;  %v3336_v53 = vadd.f32 %v8010_v2, %v2564_v12  ;;  %v3144_v2 = vpop.f32.mrf.mxu2  ;;  %v2192_v12 = vld [vmem:[#allocation4 + $0x1c0] sm:$0xff] }
 0x4a7   :  { %v4096_v40 = vmul.f32 %v3911_v9, %v3712_v37  ;;  %v5614_v19 = vpop.eup %5613 }
 0x4a8   :  { %3400 = vst.msk [vmem:[#allocation4 + $0x160] sm:$0xff] %vm160_vm1, %v3336_v53  ;;  %3840 = vperm.xlu2 %5253, %v5612_v63  }
 0x4ab   :  { %v2438_v58 = vpop.permute.xlu2 %2437 }
 0x4ac   :  { %4171 = vrot.lane.b32.xlu0 %v4093_v31, %s5678_s2  ;;  %v3876_v22 = vpop.permute.xlu1 %3875  ;;  %v2567_v10 = vmul.f32 %v2438_v58, %v2183_v1  ;;  %v5616_v31 = vpop.eup %5615  ;;  %v3714_v1 = vld [vmem:[#allocation4 + $0x118] sm:$0xff] }
 0x4ad   :  { %4157 = vrot.lane.b32.xlu1 %v4086_v42, %s5678_s2  ;;  %v4089_v39 = vmul.f32 %v3876_v22, %v3705_v34  ;;  %v5618_v30 = vpop.eup %5617  ;;  %v2195_v58 = vld [vmem:[#allocation4 + $0x1d8] sm:$0xff] }
 0x4ae   :  { %v3926_v52 = vpop.permute.xlu0 %3925  ;;  %v3339_v33 = vadd.f32 %v3144_v2, %v2567_v10 }
 0x4af   :  { %v4099_v8 = vmul.f32 %v3926_v52, %v3715_v41 }
 0x4b0   :  { %3403 = vst.msk [vmem:[#allocation4 + $0x178] sm:$0xff] %vm160_vm1, %v3339_v33  ;;  %3855 = vperm.xlu2 %5253, %v5614_v19  }
 0x4b3   :  { %v2453_v9 = vpop.permute.xlu2 %2452 }
 0x4b4   :  { %4209 = vrot.lane.b32.xlu0 %v4096_v40, %s5679_s0  ;;  %v3891_v13 = vpop.permute.xlu1 %3890  ;;  %v2570_v62 = vmul.f32 %v2453_v9, %v2186_v35  ;;  %v3711_v40 = vld [vmem:[#allocation4 + $0x100] sm:$0xff]  ;;  %v3730_v35 = vld [vmem:[#allocation4 + $0x198] sm:$0xff] }
 0x4b5   :  { %4163 = vrot.lane.b32.xlu1 %v4089_v39, %s5678_s2  ;;  %v4092_v46 = vmul.f32 %v3891_v13, %v3708_v45  ;;  %v3524_v13 = vld [vmem:[#allocation3 + $0x128] sm:$0xff]  ;;  %v3717_v39 = vld [vmem:[#allocation4 + $0x130] sm:$0xff]  ;;  %v3527_v9 = vld [vmem:[#allocation3 + $0x140] sm:$0xff] }
 0x4b6   :  { %v3941_v38 = vpop.permute.xlu0 %3940  ;;  %v3342_v50 = vadd.f32 %v7958_v25, %v2570_v62  ;;  %v3582_v25 = vmax.f32 %v3518_v18, 1e-20  ;;  %v3720_v45 = vld [vmem:[#allocation4 + $0x148] sm:$0xff] }
 0x4b7   :  { %v4102_v60 = vmul.f32 %v3941_v38, %v3718_v5 }
 0x4b8   :  { %3406 = vst.msk [vmem:[#allocation4 + $0x190] sm:$0xff] %vm160_vm1, %v3342_v50  ;;  %3870 = vperm.xlu2 %5253, %v5616_v31   ;;  %5619 = vrcp.f32 %v3582_v25  ;;  %v3723_v25 = vld [vmem:[#allocation4 + $0x160] sm:$0xff] }
 0x4bb   :  { %v2468_v52 = vpop.permute.xlu2 %2467 }
 0x4bc   :  { %4215 = vrot.lane.b32.xlu0 %v4099_v8, %s5679_s0  ;;  %v3906_v51 = vpop.permute.xlu1 %3905  ;;  %v2573_v3 = vmul.f32 %v2468_v52, %v2189_v55 }
 0x4bd   :  { %4169 = vrot.lane.b32.xlu1 %v4092_v46, %s5678_s2  ;;  %v4095_v27 = vmul.f32 %v3906_v51, %v3711_v40  ;;  %v3533_v40 = vld [vmem:[#allocation3 + $0x170] sm:$0xff] }
 0x4be   :  { %v3956_v61 = vpop.permute.xlu0 %3955  ;;  %v3345_v57 = vadd.f32 %v7996_v43, %v2573_v3  ;;  %v3585_v43 = vmax.f32 %v3521_v14, 1e-20  ;;  %v5620_v41 = vpop.eup %5619 }
 0x4bf   :  { %v4105_v23 = vmul.f32 %v3956_v61, %v3721_v49  ;;  %v3733_v49 = vld [vmem:[#allocation4 + $0x1b0] sm:$0xff] }
 0x4c0   :  { %3409 = vst.msk [vmem:[#allocation4 + $0x1a8] sm:$0xff] %vm160_vm1, %v3345_v57  ;;  %3885 = vperm.xlu2 %5253, %v5618_v30   ;;  %5621 = vrcp.f32 %v3585_v43 }
 0x4c3   :  { %v2483_v53 = vpop.permute.xlu2 %2482 }
 0x4c4   :  { %4221 = vrot.lane.b32.xlu0 %v4102_v60, %s5679_s0  ;;  %v3921_v0 = vpop.permute.xlu1 %3920  ;;  %v2576_v38 = vmul.f32 %v2483_v53, %v2192_v12  ;;  %v2198_v60 = vld [vmem:[#allocation4 + $0x1f0] sm:$0xff]  ;;  %v3597_v12 = vmax.f32 %v3533_v40, 1e-20  ;;  %v3726_v53 = vld [vmem:[#allocation4 + $0x178] sm:$0xff] }
 0x4c5   :  { %4207 = vrot.lane.b32.xlu1 %v4095_v27, %s5679_s0  ;;  %v4098_v8 = vmul.f32 %v3921_v0, %v3714_v1 }
 0x4c6   :  { %v3971_v26 = vpop.permute.xlu0 %3970  ;;  %v3348_v11 = vadd.f32 %v8020_v4, %v2576_v38  ;;  %v3588_v4 = vmax.f32 %v3524_v13, 1e-20  ;;  %v5622_v34 = vpop.eup %5621  ;;  %v3729_v13 = vld [vmem:[#allocation4 + $0x190] sm:$0xff] }
 0x4c7   :  { %v4108_v22 = vmul.f32 %v3971_v26, %v3724_v56 }
 0x4c8   :  { %3412 = vst.msk [vmem:[#allocation4 + $0x1c0] sm:$0xff] %vm160_vm1, %v3348_v11  ;;  %3900 = vperm.xlu2 %5253, %v5620_v41   ;;  %5623 = vrcp.f32 %v3588_v4  ;;  %v3536_v11 = vld [vmem:[#allocation3 + $0x188] sm:$0xff]  ;;  %v3681_v41 = vld [vmem:[#allocation4 + $0x10] sm:$0xff] }
 0x4cb   :  { %v2498_v2 = vpop.permute.xlu2 %2497 }
 0x4cc   :  { %4227 = vrot.lane.b32.xlu0 %v4105_v23, %s5679_s0  ;;  %v3936_v63 = vpop.permute.xlu1 %3935  ;;  %v2579_v28 = vmul.f32 %v2498_v2, %v2195_v58  ;;  %v3530_v23 = vld [vmem:[#allocation3 + $0x158] sm:$0xff] }
 0x4cd   :  { %4213 = vrot.lane.b32.xlu1 %v4098_v8, %s5679_s0  ;;  %v4101_v5 = vmul.f32 %v3936_v63, %v3717_v39  ;;  %v3594_v3 = vmax.f32 %v3530_v23, 1e-20  ;;  %v3739_v63 = vld [vmem:[#allocation4 + $0x1e0] sm:$0xff]  ;;  %v4065_v8 = vmul.f32 %v8107_v6, %v3681_v41  ;;  %v3545_v23 = vld [vmem:[#allocation3 + $0x1d0] sm:$0xff] }
 0x4ce   :  { %v3986_v37 = vpop.permute.xlu0 %3985  ;;  %v3351_v61 = vadd.f32 %v8047_v7, %v2579_v28  ;;  %v3591_v7 = vmax.f32 %v3527_v9, 1e-20  ;;  %v5624_v31 = vpop.eup %5623 }
 0x4cf   :  { %v4111_v10 = vmul.f32 %v3986_v37, %v3727_v47  ;;  %v3736_v37 = vld [vmem:[#allocation4 + $0x1c8] sm:$0xff]  ;;  %v3600_v47 = vmax.f32 %v3536_v11, 1e-20 }
 0x4d0   :  { %3415 = vst.msk [vmem:[#allocation4 + $0x1d8] sm:$0xff] %vm160_vm1, %v3351_v61  ;;  %3915 = vperm.xlu2 %5253, %v5622_v34   ;;  %5625 = vrcp.f32 %v3591_v7  ;;  %v3539_v61 = vld [vmem:[#allocation3 + $0x1a0] sm:$0xff]  ;;  %v3684_v34 = vld [vmem:[#allocation4 + $0x28] sm:$0xff] }
 0x4d1   :  { %5627 = vrcp.f32 %v3594_v3  ;;  %v4068_v6 = vmul.f32 %v8114_v54, %v3684_v34  ;;  %v3687_v7 = vld [vmem:[#allocation4 + $0x40] sm:$0xff]  ;;  %v3690_v3 = vld [vmem:[#allocation4 + $0x58] sm:$0xff] }
 0x4d2   :  { %5629 = vrcp.f32 %v3597_v12  ;;  %v3548_v12 = vld [vmem:[#allocation3 + $0x1e8] sm:$0xff] }
 0x4d3   :  { %v2513_v62 = vpop.permute.xlu2 %2512  ;;  %5631 = vrcp.f32 %v3600_v47 }
 0x4d4   :  { %4233 = vrot.lane.b32.xlu0 %v4108_v22, %s5679_s0  ;;  %v3951_v33 = vpop.permute.xlu1 %3950  ;;  %v2582_v51 = vmul.f32 %v2513_v62, %v2198_v60 }
 0x4d5   :  { %4219 = vrot.lane.b32.xlu1 %v4101_v5, %s5679_s0  ;;  %v4104_v46 = vmul.f32 %v3951_v33, %v3720_v45  ;;  %v3742_v33 = vld [vmem:[#allocation4 + $0x1f8] sm:$0xff]  ;;  %v3603_v5 = vmax.f32 %v3539_v61, 1e-20 }
 0x4d6   :  { %v4001_v42 = vpop.permute.xlu0 %4000  ;;  %v3354_v50 = vadd.f32 %v8092_v32, %v2582_v51  ;;  %v5626_v0 = vpop.eup %5625  ;;  %v3542_v51 = vld [vmem:[#allocation3 + $0x1b8] sm:$0xff] }
 0x4d7   :  { %v4114_v21 = vmul.f32 %v4001_v42, %v3730_v35  ;;  %v5628_v14 = vpop.eup %5627  ;;  %5633 = vrcp.f32 %v3603_v5  ;;  %v3606_v54 = vmax.f32 %v3542_v51, 1e-20  ;;  %v3686_v61 = vld [vmem:[#allocation4 + $0x38] sm:$0xff]  ;;  %v3695_v5 = vld [vmem:[#allocation4 + $0x80] sm:$0xff] }
 0x4d8   :  { %3418 = vst.msk [vmem:[#allocation4 + $0x1f0] sm:$0xff] %vm160_vm1, %v3354_v50  ;;  %3930 = vperm.xlu2 %5253, %v5624_v31  }
 0x4d9   :  { %5635 = vrcp.f32 %v3606_v54 }
 0x4db   :  { %v8171_v18 = vpop.permute.xlu2 %3750 }
 0x4dc   :  { %4271 = vrot.lane.b32.xlu0 %v4111_v10, %s5680_s26  ;;  %v3966_v24 = vpop.permute.xlu1 %3965  ;;  %v5630_v10 = vpop.eup %5629 }
 0x4dd   :  { %4225 = vrot.lane.b32.xlu1 %v4104_v46, %s5679_s0  ;;  %v4107_v57 = vmul.f32 %v3966_v24, %v3723_v25  ;;  %v5632_v60 = vpop.eup %5631  ;;  %v3735_v46 = vld [vmem:[#allocation4 + $0x1c0] sm:$0xff]  ;;  %v3609_v25 = vmax.f32 %v3545_v23, 1e-20 }
 0x4de   :  { %v4016_v19 = vpop.permute.xlu0 %4015  ;;  %v5634_v45 = vpop.eup %5633 }
 0x4df   :  { %v4117_v55 = vmul.f32 %v4016_v19, %v3733_v49  ;;  %5637 = vrcp.f32 %v3609_v25 }
 0x4e0   :  { %3945 = vperm.xlu2 %5253, %v5626_v0   ;;  %v4074_v0 = vmul.f32 %v8123_v59, %v3690_v3  ;;  %v3701_v3 = vld [vmem:[#allocation4 + $0xb0] sm:$0xff] }
 0x4e3   :  { %v8175_v27 = vpop.permute.xlu2 %3765 }
 0x4e4   :  { %4277 = vrot.lane.b32.xlu0 %v4114_v21, %s5680_s26  ;;  %v3981_v52 = vpop.permute.xlu1 %3980  ;;  %v3732_v21 = vld [vmem:[#allocation4 + $0x1a8] sm:$0xff] }
 0x4e5   :  { %4231 = vrot.lane.b32.xlu1 %v4107_v57, %s5679_s0  ;;  %v4110_v38 = vmul.f32 %v3981_v52, %v3726_v53  ;;  %v5636_v57 = vpop.eup %5635  ;;  %v3693_v53 = vld [vmem:[#allocation4 + $0x70] sm:$0xff] }
 0x4e6   :  { %v4031_v26 = vpop.permute.xlu0 %4030  ;;  %v4077_v59 = vmul.f32 %v8128_v16, %v3693_v53  ;;  %v5638_v41 = vpop.eup %5637  ;;  %v3710_v53 = vld [vmem:[#allocation4 + $0xf8] sm:$0xff] }
 0x4e7   :  { %v4120_v30 = vmul.f32 %v4031_v26, %v3736_v37  ;;  %v4071_v26 = vmul.f32 %v8119_v48, %v3687_v7  ;;  %v3738_v37 = vld [vmem:[#allocation4 + $0x1d8] sm:$0xff] }
 0x4e8   :  { %3960 = vperm.xlu2 %5253, %v5628_v14  }
 0x4eb   :  { %v8179_v42 = vpop.permute.xlu2 %3780 }
 0x4ec   :  { %4283 = vrot.lane.b32.xlu0 %v4117_v55, %s5680_s26  ;;  %v3996_v56 = vpop.permute.xlu1 %3995  ;;  %v4070_v34 = vmul.f32 %v8179_v42, %v3686_v61 }
 0x4ed   :  { %4237 = vrot.lane.b32.xlu1 %v4110_v38, %s5679_s0  ;;  %v4113_v28 = vmul.f32 %v3996_v56, %v3729_v13  ;;  %v3680_v56 = vld [vmem:[#allocation4 + $0x8] sm:$0xff] }
 0x4ee   :  { %v4046_v32 = vpop.permute.xlu0 %4045 }
 0x4ef   :  { %v4123_v43 = vmul.f32 %v4046_v32, %v3739_v63 }
 0x4f0   :  { %3975 = vperm.xlu2 %5253, %v5630_v10  }
 0x4f3   :  { %v8187_v19 = vpop.permute.xlu2 %3795 }
 0x4f4   :  { %4289 = vrot.lane.b32.xlu0 %v4120_v30, %s5680_s26  ;;  %v4011_v1 = vpop.permute.xlu1 %4010 }
 0x4f5   :  { %4275 = vrot.lane.b32.xlu1 %v4113_v28, %s5680_s26  ;;  %v4116_v62 = vmul.f32 %v4011_v1, %v3732_v21  ;;  %v3741_v1 = vld [vmem:[#allocation4 + $0x1f0] sm:$0xff] }
 0x4f6   :  { %v4061_v22 = vpop.permute.xlu0 %4060 }
 0x4f7   :  { %v4126_v4 = vmul.f32 %v4061_v22, %v3742_v33  ;;  %v4064_v22 = vmul.f32 %v8171_v18, %v3680_v56 }
 0x4f8   :  { %3990 = vperm.xlu2 %5253, %v5632_v60  }
 0x4fb   :  { %v8195_v24 = vpop.permute.xlu2 %3810 }
 0x4fc   :  { %4295 = vrot.lane.b32.xlu0 %v4123_v43, %s5680_s26  ;;  %v4026_v39 = vpop.permute.xlu1 %4025  ;;  %v3612_v43 = vmax.f32 %v3548_v12, 1e-20  ;;  %v3707_v12 = vld [vmem:[#allocation4 + $0xe0] sm:$0xff] }
 0x4fd   :  { %4281 = vrot.lane.b32.xlu1 %v4116_v62, %s5680_s26  ;;  %v4119_v55 = vmul.f32 %v4026_v39, %v3735_v46  ;;  %v3689_v62 = vld [vmem:[#allocation4 + $0x50] sm:$0xff]  ;;  %v3692_v46 = vld [vmem:[#allocation4 + $0x68] sm:$0xff] }
 0x4fe   :  { %v4148_v58 = vpop.permute.xlu0 %4147  ;;  %5639 = vrcp.f32 %v3612_v43  ;;  %v4073_v51 = vmul.f32 %v8187_v19, %v3689_v62 }
 0x4ff   :  { %v8184_v2 = vsel %vm160_vm1, %v4065_v8, %v4148_v58  ;;  %v3683_v58 = vld [vmem:[#allocation4 + $0x20] sm:$0xff] }
 0x500   :  { %4005 = vperm.xlu2 %5253, %v5634_v45   ;;  %v4067_v18 = vmul.f32 %v8175_v27, %v3683_v58  ;;  %v3719_v58 = vld [vmem:[#allocation4 + $0x140] sm:$0xff] }
 0x503   :  { %v3826_v52 = vpop.permute.xlu2 %3825 }
 0x504   :  { %4301 = vrot.lane.b32.xlu0 %v4126_v4, %s5680_s26  ;;  %v4041_v50 = vpop.permute.xlu1 %4040  ;;  %v5640_v33 = vpop.eup %5639  ;;  %v4079_v27 = vmul.f32 %v3826_v52, %v3695_v5 }
 0x505   :  { %4287 = vrot.lane.b32.xlu1 %v4119_v55, %s5680_s26  ;;  %v4122_v40 = vmul.f32 %v4041_v50, %v3738_v37  ;;  %v4076_v55 = vmul.f32 %v8195_v24, %v3692_v46 }
 0x506   :  { %v4154_v35 = vpop.permute.xlu0 %4153 }
 0x507   :  { %v8192_v9 = vsel %vm160_vm1, %v4068_v6, %v4154_v35 }
 0x508   :  { %4020 = vperm.xlu2 %5253, %v5636_v57   ;;  %v3704_v57 = vld [vmem:[#allocation4 + $0xc8] sm:$0xff] }
 0x50b   :  { %v3841_v14 = vpop.permute.xlu2 %3840 }
 0x50c   :  { %v4056_v32 = vpop.permute.xlu1 %4055 }
 0x50d   :  { %4293 = vrot.lane.b32.xlu1 %v4122_v40, %s5680_s26  ;;  %v4125_v47 = vmul.f32 %v4056_v32, %v3741_v1 }
 0x50e   :  { %v4160_v31 = vpop.permute.xlu0 %4159 }
 0x50f   :  { %v8199_v49 = vsel %vm160_vm1, %v4071_v26, %v4160_v31  ;;  %v3698_v26 = vld [vmem:[#allocation4 + $0x98] sm:$0xff] }
 0x510   :  { %4035 = vperm.xlu2 %5253, %v5638_v41   ;;  %v4082_v54 = vmul.f32 %v3841_v14, %v3698_v26  ;;  %v3716_v41 = vld [vmem:[#allocation4 + $0x128] sm:$0xff] }
 0x513   :  { %v3856_v10 = vpop.permute.xlu2 %3855 }
 0x514   :  { %v4146_v38 = vpop.permute.xlu1 %4145  ;;  %v4085_v32 = vmul.f32 %v3856_v10, %v3701_v3 }
 0x515   :  { %v4320_v63 = vsel %vm160_vm1, %v4064_v22, %v4146_v38  ;;  %4299 = vrot.lane.b32.xlu1 %v4125_v47, %s5680_s26 }
 0x516   :  { %v4166_v48 = vpop.permute.xlu0 %4165 }
 0x517   :  { %v8204_v30 = vsel %vm160_vm1, %v4074_v0, %v4166_v48 }
 0x518   :  { %4050 = vperm.xlu2 %5253, %v5640_v33   ;;  %v3725_v33 = vld [vmem:[#allocation4 + $0x170] sm:$0xff] }
 0x51b   :  { %v3871_v39 = vpop.permute.xlu2 %3870 }
 0x51c   :  { %v4152_v13 = vpop.permute.xlu1 %4151  ;;  %v4088_v37 = vmul.f32 %v3871_v39, %v3704_v57 }
 0x51d   :  { %v4323_v16 = vsel %vm160_vm1, %v4067_v18, %v4152_v13  ;;  %v3722_v13 = vld [vmem:[#allocation4 + $0x158] sm:$0xff] }
 0x51e   :  { %v4172_v11 = vpop.permute.xlu0 %4171 }
 0x51f   :  { %v8211_v8 = vsel %vm160_vm1, %v4077_v59, %v4172_v11 }
 0x520   :  { %4143 = vrot.lane.b32.xlu2 %v4079_v27, %s5678_s2 }
 0x523   :  { %v3886_v7 = vpop.permute.xlu2 %3885 }
 0x524   :  { %v4158_v6 = vpop.permute.xlu1 %4157  ;;  %v4091_v22 = vmul.f32 %v3886_v7, %v3707_v12 }
 0x525   :  { %v4326_v35 = vsel %vm160_vm1, %v4070_v34, %v4158_v6  ;;  %v3728_v6 = vld [vmem:[#allocation4 + $0x188] sm:$0xff] }
 0x526   :  { %v4210_v28 = vpop.permute.xlu0 %4209 }
 0x527   :  { %v8217_v4 = vsel %vm4335_vm3, %v4320_v63, %v4210_v28  ;;  %v3713_v63 = vld [vmem:[#allocation4 + $0x110] sm:$0xff] }
 0x528   :  { %4149 = vrot.lane.b32.xlu2 %v4082_v54, %s5678_s2  ;;  %v3737_v54 = vld [vmem:[#allocation4 + $0x1d0] sm:$0xff] }
 0x52b   :  { %v3901_v23 = vpop.permute.xlu2 %3900 }
 0x52c   :  { %v4164_v50 = vpop.permute.xlu1 %4163  ;;  %v4094_v38 = vmul.f32 %v3901_v23, %v3710_v53  ;;  %v3740_v23 = vld [vmem:[#allocation4 + $0x1e8] sm:$0xff] }
 0x52d   :  { %v4329_v42 = vsel %vm160_vm1, %v4073_v51, %v4164_v50  ;;  %v3734_v50 = vld [vmem:[#allocation4 + $0x1b8] sm:$0xff] }
 0x52e   :  { %v4216_v60 = vpop.permute.xlu0 %4215 }
 0x52f   :  { %v8222_v21 = vsel %vm4335_vm3, %v4323_v16, %v4216_v60  ;;  %v3731_v60 = vld [vmem:[#allocation4 + $0x1a0] sm:$0xff] }
 0x530   :  { %4155 = vrot.lane.b32.xlu2 %v4085_v32, %s5678_s2 }
 0x533   :  { %v3916_v48 = vpop.permute.xlu2 %3915 }
 0x534   :  { %v4170_v52 = vpop.permute.xlu1 %4169  ;;  %v4097_v43 = vmul.f32 %v3916_v48, %v3713_v63 }
 0x535   :  { %v4332_v19 = vsel %vm160_vm1, %v4076_v55, %v4170_v52 }
 0x536   :  { %v4222_v31 = vpop.permute.xlu0 %4221 }
 0x537   :  { %v8228_v45 = vsel %vm4335_vm3, %v4326_v35, %v4222_v31 }
 0x538   :  { %4161 = vrot.lane.b32.xlu2 %v4088_v37, %s5678_s2 }
 0x53b   :  { %v3931_v24 = vpop.permute.xlu2 %3930 }
 0x53c   :  { %v4100_v1 = vmul.f32 %v3931_v24, %v3716_v41  ;;  %v4208_v34 = vpop.permute.xlu1 %4207 }
 0x53e   :  { %v4228_v0 = vpop.permute.xlu0 %4227 }
 0x53f   :  { %v8234_v25 = vsel %vm4335_vm3, %v4329_v42, %v4228_v0 }
 0x540   :  { %4167 = vrot.lane.b32.xlu2 %v4091_v22, %s5678_s2 }
 0x543   :  { %v3946_v14 = vpop.permute.xlu2 %3945 }
 0x544   :  { %v4103_v18 = vmul.f32 %v3946_v14, %v3719_v58  ;;  %v4214_v35 = vpop.permute.xlu1 %4213  ;;  %v4371_v14 = vld [vmem:[%s8754_s3 + $0x10] sm:$0xff] }
 0x546   :  { %v4234_v40 = vpop.permute.xlu0 %4233 }
 0x547   :  { %v8238_v56 = vsel %vm4335_vm3, %v4332_v19, %v4234_v40  ;;  %v3679_v40 = vld [vmem:[#allocation4] sm:$0xff] }
 0x548   :  { %4173 = vrot.lane.b32.xlu2 %v4094_v38, %s5678_s2  ;;  %v4063_v24 = vmul.f32 %v8072_v20, %v3679_v40  ;;  %v3682_v20 = vld [vmem:[#allocation4 + $0x18] sm:$0xff] }
 0x54b   :  { %v3961_v59 = vpop.permute.xlu2 %3960 }
 0x54c   :  { %v4106_v16 = vmul.f32 %v3961_v59, %v3722_v13  ;;  %v8250_v7 = vpop.permute.xlu1 %4219 }
 0x54e   :  { %v4272_v37 = vpop.permute.xlu0 %4271 }
 0x550   :  { %4211 = vrot.lane.b32.xlu2 %v4097_v43, %s5679_s0 }
 0x553   :  { %v3976_v11 = vpop.permute.xlu2 %3975 }
 0x554   :  { %v4109_v61 = vmul.f32 %v3976_v11, %v3725_v33  ;;  %v8253_v31 = vpop.permute.xlu1 %4225 }
 0x556   :  { %v4278_v11 = vpop.permute.xlu0 %4277 }
 0x558   :  { %4217 = vrot.lane.b32.xlu2 %v4100_v1, %s5679_s0  ;;  %v4066_v1 = vmul.f32 %v8079_v36, %v3682_v20 }
 0x55b   :  { %v3991_v47 = vpop.permute.xlu2 %3990 }
 0x55c   :  { %v4112_v5 = vmul.f32 %v3991_v47, %v3728_v6  ;;  %v8256_v3 = vpop.permute.xlu1 %4231 }
 0x560   :  { %4223 = vrot.lane.b32.xlu2 %v4103_v18, %s5679_s0 }
 0x563   :  { %v4006_v10 = vpop.permute.xlu2 %4005 }
 0x564   :  { %v4115_v62 = vmul.f32 %v4006_v10, %v3731_v60  ;;  %v8259_v32 = vpop.permute.xlu1 %4237  ;;  %v4374_v10 = vld [vmem:[%s8754_s3 + $0x28] sm:$0xff] }
 0x568   :  { %4229 = vrot.lane.b32.xlu2 %v4106_v16, %s5679_s0 }
 0x56b   :  { %v4021_v28 = vpop.permute.xlu2 %4020 }
 0x56c   :  { %v4118_v26 = vmul.f32 %v4021_v28, %v3734_v50  ;;  %v4276_v57 = vpop.permute.xlu1 %4275 }
 0x570   :  { %4235 = vrot.lane.b32.xlu2 %v4109_v61, %s5679_s0  ;;  %v3685_v61 = vld [vmem:[#allocation4 + $0x30] sm:$0xff] }
 0x573   :  { %v4036_v39 = vpop.permute.xlu2 %4035 }
 0x574   :  { %v4121_v46 = vmul.f32 %v4036_v39, %v3737_v54  ;;  %v4282_v59 = vpop.permute.xlu1 %4281 }
 0x578   :  { %4273 = vrot.lane.b32.xlu2 %v4112_v5, %s5680_s26  ;;  %v4069_v5 = vmul.f32 %v8086_v44, %v3685_v61 }
 0x57b   :  { %v4051_v27 = vpop.permute.xlu2 %4050 }
 0x57c   :  { %v4124_v52 = vmul.f32 %v4051_v27, %v3740_v23  ;;  %v4284_v27 = vpop.permute.xlu0 %4283 }
 0x580   :  { %4279 = vrot.lane.b32.xlu2 %v4115_v62, %s5680_s26 }
 0x583   :  { %v4144_v51 = vpop.permute.xlu2 %4143 }
 0x584   :  { %v4319_v12 = vsel %vm160_vm1, %v4063_v24, %v4144_v51  ;;  %v4377_v51 = vld [vmem:[%s8754_s3 + $0x40] sm:$0xff]  ;;  %v4380_v24 = vld [vmem:[%s8754_s3 + $0x58] sm:$0xff] }
 0x585   :  { %v4336_v63 = vsel %vm4335_vm3, %v4319_v12, %v4208_v34  ;;  %v4288_v34 = vpop.permute.xlu1 %4287  ;;  %v4290_v12 = vpop.permute.xlu0 %4289 }
 0x586   :  { %v4353_v47 = vsel %vm4352_vm4, %v4336_v63, %v4272_v37 }
 0x588   :  { %4285 = vrot.lane.b32.xlu2 %v4118_v26, %s5680_s26 }
 0x58b   :  { %v4150_v42 = vpop.permute.xlu2 %4149 }
 0x58c   :  { %v4322_v58 = vsel %vm160_vm1, %v4066_v1, %v4150_v42  ;;  %v4383_v1 = vld [vmem:[%s8754_s3 + $0x70] sm:$0xff] }
 0x58d   :  { %v4339_v28 = vsel %vm4335_vm3, %v4322_v58, %v4214_v35  ;;  %v4372_v35 = vld [vmem:[%s8754_s3 + $0x18] sm:$0xff] }
 0x590   :  { %4291 = vrot.lane.b32.xlu2 %v4121_v46, %s5680_s26  ;;  %v3688_v46 = vld [vmem:[#allocation4 + $0x48] sm:$0xff] }
 0x593   :  { %v4156_v55 = vpop.permute.xlu2 %4155 }
 0x594   :  { %v4325_v60 = vsel %vm160_vm1, %v4069_v5, %v4156_v55 }
 0x595   :  { %v4342_v42 = vsel %vm4335_vm3, %v4325_v60, %v8250_v7  ;;  %v4294_v7 = vpop.permute.xlu1 %4293 }
 0x598   :  { %4297 = vrot.lane.b32.xlu2 %v4124_v52, %s5680_s26  ;;  %v4072_v52 = vmul.f32 %v8095_v15, %v3688_v46 }
 0x59b   :  { %v4162_v19 = vpop.permute.xlu2 %4161 }
 0x59c   :  { %v4328_v37 = vsel %vm160_vm1, %v4072_v52, %v4162_v19 }
 0x5a3   :  { %v8261_v0 = vpop.permute.xlu2 %4167 }
 0x5ab   :  { %v8263_v48 = vpop.permute.xlu2 %4173 }
 0x5b3   :  { %v4212_v22 = vpop.permute.xlu2 %4211 }
 0x5b4   :  { %v4338_v53 = vsel %vm4335_vm3, %v8184_v2, %v4212_v22  ;;  %v4369_v2 = vld [vmem:[%s8754_s3] sm:$0xff] }
 0x5b5   :  { %v4355_v38 = vsel %vm4352_vm4, %v4338_v53, %v4276_v57  ;;  %v8289_v16 = vadd.f32 %v4369_v2, %v4353_v47  ;;  %v4375_v57 = vld [vmem:[%s8754_s3 + $0x30] sm:$0xff]  ;;  %v4345_v53 = vsel %vm4335_vm3, %v4328_v37, %v8253_v31  ;;  %v4300_v47 = vpop.permute.xlu1 %4299 }
 0x5b6   :  { %v8274_v43 = vadd.f32 %v4371_v14, %v4355_v38 }
 0x5b7   :  { %v4402_v6 = vsel %vm4401_vm5, %v8289_v16, 0.0 }
 0x5b8   :  { %v4408_v41 = vsel %vm4401_vm5, %v8274_v43, 0.0 }
 0x5b9   :  { %4409 = vadd.xlane.f32.xlu0 %v4408_v41 }
 0x5bb   :  { %v4218_v18 = vpop.permute.xlu2 %4217 }
 0x5bc   :  { %v4341_v13 = vsel %vm4335_vm3, %v8192_v9, %v4218_v18  ;;  %v4356_v9 = vsel %vm4352_vm4, %v4339_v28, %v4278_v11  ;;  %v4378_v11 = vld [vmem:[%s8754_s3 + $0x48] sm:$0xff]  ;;  %v4296_v18 = vpop.permute.xlu0 %4295 }
 0x5bd   :  { %v4358_v36 = vsel %vm4352_vm4, %v4341_v13, %v4282_v59  ;;  %v8310_v44 = vadd.f32 %v4372_v35, %v4356_v9  ;;  %v3691_v59 = vld [vmem:[#allocation4 + $0x60] sm:$0xff] }
 0x5be   :  { %v8293_v33 = vadd.f32 %v4374_v10, %v4358_v36  ;;  %v4075_v20 = vmul.f32 %v8102_v17, %v3691_v59 }
 0x5bf   :  { %v4411_v23 = vsel %vm4401_vm5, %v8310_v44, 0.0 }
 0x5c0   :  { %v4417_v39 = vsel %vm4401_vm5, %v8293_v33, 0.0  ;;  %v4331_v31 = vsel %vm160_vm1, %v4075_v20, %v8261_v0  ;;  %v3694_v0 = vld [vmem:[#allocation4 + $0x78] sm:$0xff] }
 0x5c1   :  { %4418 = vadd.xlane.f32.xlu0 %v4417_v39  ;;  %4403 = vadd.xlane.f32.xlu2 %v4402_v6  ;;  %v4348_v10 = vsel %vm4335_vm3, %v4331_v31, %v8256_v3  ;;  %v4078_v61 = vmul.f32 %v8110_v29, %v3694_v0  ;;  %v4370_v3 = vld [vmem:[%s8754_s3 + $0x8] sm:$0xff] }
 0x5c3   :  { %v4224_v62 = vpop.permute.xlu2 %4223  ;;  %v4334_v39 = vsel %vm160_vm1, %v4078_v61, %v8263_v48 }
 0x5c4   :  { %v4344_v50 = vsel %vm4335_vm3, %v8199_v49, %v4224_v62  ;;  %v4359_v49 = vsel %vm4352_vm4, %v4342_v42, %v4284_v27  ;;  %v4351_v35 = vsel %vm4335_vm3, %v4334_v39, %v8259_v32  ;;  %v4302_v60 = vpop.permute.xlu0 %4301 }
 0x5c5   :  { %v4361_v26 = vsel %vm4352_vm4, %v4344_v50, %v4288_v34  ;;  %v8332_v22 = vadd.f32 %v4375_v57, %v4359_v49  ;;  %v4381_v34 = vld [vmem:[%s8754_s3 + $0x60] sm:$0xff]  ;;  %v4368_v48 = vsel %vm4352_vm4, %v4351_v35, %v4302_v60 }
 0x5c6   :  { %v8315_v54 = vadd.f32 %v4377_v51, %v4361_v26  ;;  %v4373_v51 = vld [vmem:[%s8754_s3 + $0x20] sm:$0xff] }
 0x5c7   :  { %v4420_v63 = vsel %vm4401_vm5, %v8332_v22, 0.0 }
 0x5c8   :  { %v4426_v55 = vsel %vm4401_vm5, %v8315_v54, 0.0 }
 0x5c9   :  { %4427 = vadd.xlane.f32.xlu0 %v4426_v55  ;;  %4412 = vadd.xlane.f32.xlu2 %v4411_v23  ;;  %v4376_v23 = vld [vmem:[%s8754_s3 + $0x38] sm:$0xff] }
 0x5cb   :  { %v4230_v40 = vpop.permute.xlu2 %4229 }
 0x5cc   :  { %v4347_v15 = vsel %vm4335_vm3, %v8204_v30, %v4230_v40  ;;  %v4362_v30 = vsel %vm4352_vm4, %v4345_v53, %v4290_v12 }
 0x5cd   :  { %v4364_v14 = vsel %vm4352_vm4, %v4347_v15, %v4294_v7  ;;  %v8355_v2 = vadd.f32 %v4378_v11, %v4362_v30  ;;  %v4379_v7 = vld [vmem:[%s8754_s3 + $0x50] sm:$0xff] }
 0x5ce   :  { %v8337_v38 = vadd.f32 %v4380_v24, %v4364_v14 }
 0x5cf   :  { %v4429_v28 = vsel %vm4401_vm5, %v8355_v2, 0.0 }
 0x5d0   :  { %v4435_v19 = vsel %vm4401_vm5, %v8337_v38, 0.0 }
 0x5d1   :  { %4436 = vadd.xlane.f32.xlu0 %v4435_v19  ;;  %4421 = vadd.xlane.f32.xlu2 %v4420_v63 }
 0x5d3   :  { %v4236_v41 = vpop.permute.xlu2 %4235 }
 0x5d4   :  { %v4350_v17 = vsel %vm4335_vm3, %v8211_v8, %v4236_v41  ;;  %v4365_v8 = vsel %vm4352_vm4, %v4348_v10, %v4296_v18 }
 0x5d5   :  { %v4367_v58 = vsel %vm4352_vm4, %v4350_v17, %v4300_v47  ;;  %v8378_v29 = vadd.f32 %v4381_v34, %v4365_v8 }
 0x5d6   :  { %v8360_v13 = vadd.f32 %v4383_v1, %v4367_v58 }
 0x5d7   :  { %v4438_v62 = vsel %vm4401_vm5, %v8378_v29, 0.0 }
 0x5d8   :  { %v4444_v36 = vsel %vm4401_vm5, %v8360_v13, 0.0 }
 0x5d9   :  { %4445 = vadd.xlane.f32.xlu0 %v4444_v36  ;;  %4430 = vadd.xlane.f32.xlu2 %v4429_v28 }
 0x5db   :  { %v4274_v6 = vpop.permute.xlu2 %4273 }
 0x5dc   :  { %v4354_v5 = vsel %vm4352_vm4, %v8217_v4, %v4274_v6  ;;  %v4384_v4 = vld [vmem:[%s8754_s3 + $0x78] sm:$0xff] }
 0x5dd   :  { %v8380_v9 = vadd.f32 %v4370_v3, %v4354_v5  ;;  %v8397_v26 = vadd.f32 %v4384_v4, %v4368_v48 }
 0x5df   :  { %v4405_v27 = vsel %vm4401_vm5, %v8380_v9, 0.0  ;;  %v4447_v55 = vsel %vm4401_vm5, %v8397_v26, 0.0 }
 0x5e0   :  { %4406 = vadd.xlane.f32.xlu1 %v4405_v27 }
 0x5e1   :  { %4439 = vadd.xlane.f32.xlu2 %v4438_v62 }
 0x5e3   :  { %v4280_v32 = vpop.permute.xlu2 %4279 }
 0x5e4   :  { %v4357_v50 = vsel %vm4352_vm4, %v8222_v21, %v4280_v32 }
 0x5e5   :  { %v8399_v42 = vadd.f32 %v4373_v51, %v4357_v50 }
 0x5e7   :  { %v4414_v46 = vsel %vm4401_vm5, %v8399_v42, 0.0 }
 0x5e8   :  { %4415 = vadd.xlane.f32.xlu1 %v4414_v46 }
 0x5e9   :  { %4448 = vadd.xlane.f32.xlu2 %v4447_v55 }
 0x5eb   :  { %v4286_v52 = vpop.permute.xlu2 %4285 }
 0x5ec   :  { %v4360_v21 = vsel %vm4352_vm4, %v8228_v45, %v4286_v52  ;;  %v4382_v45 = vld [vmem:[%s8754_s3 + $0x68] sm:$0xff] }
 0x5ed   :  { %v8410_v49 = vadd.f32 %v4376_v23, %v4360_v21 }
 0x5ef   :  { %v4423_v57 = vsel %vm4401_vm5, %v8410_v49, 0.0 }
 0x5f0   :  { %4424 = vadd.xlane.f32.xlu1 %v4423_v57 }
 0x5f3   :  { %v4292_v37 = vpop.permute.xlu2 %4291 }
 0x5f4   :  { %v4363_v40 = vsel %vm4352_vm4, %v8234_v25, %v4292_v37  ;;  %v5681_v25 = vmov 32.0  }
 0x5f5   :  { %v8419_v24 = vadd.f32 %v4379_v7, %v4363_v40  ;;  %5641 = vrcp.f32 %v5681_v25 }
 0x5f7   :  { %v4432_v12 = vsel %vm4401_vm5, %v8419_v24, 0.0 }
 0x5f8   :  { %4433 = vadd.xlane.f32.xlu1 %v4432_v12 }
 0x5fb   :  { %v4298_v15 = vpop.permute.xlu2 %4297  ;;  %v5642_v19 = vpop.eup %5641 }
 0x5fc   :  { %v4366_v14 = vsel %vm4352_vm4, %v8238_v56, %v4298_v15  ;;  %v4451_v63 = vmul.f32 32.0, %v5642_v19  ;;  %vm4455_vm6 = vweird.f32 %v5642_v19 }
 0x5fd   :  { %v8428_v53 = vadd.f32 %v4382_v45, %v4366_v14 }
 0x5fe   :  { %v4452_v20 = vsub.f32 1.0, %v4451_v63 }
 0x5ff   :  { %v4441_v59 = vsel %vm4401_vm5, %v8428_v53, 0.0 }
 0x600   :  { %4442 = vadd.xlane.f32.xlu1 %v4441_v59  ;;  %v4453_v30 = vmul.f32 %v5642_v19, %v4452_v20 }
 0x602   :  { %v4454_v11 = vadd.f32 %v5642_v19, %v4453_v30 }
 0x604   :  { %v8432_v31 = vsel %vm4455_vm6, %v5642_v19, %v4454_v11 }
 0x62c   :  { %v4410_v41 = vpop.xlane.xlu0 %4409 }
 0x62d   :  { %v4459_v1 = vmul.f32 %v8432_v31, %v4410_v41 }
 0x62f   :  { %v8436_v56 = vsub.f32 %v8274_v43, %v4459_v1 }
 0x631   :  { %v4491_v47 = vmul.f32 %v8436_v56, %v8436_v56 }
 0x633   :  { %v4511_v17 = vsel %vm4401_vm5, %v4491_v47, 0.0 }
 0x634   :  { %v4404_v58 = vpop.xlane.xlu2 %4403  ;;  %4512 = vadd.xlane.f32.xlu2 %v4511_v17  ;;  %v4419_v18 = vpop.xlane.xlu0 %4418 }
 0x635   :  { %v4457_v10 = vmul.f32 %v8432_v31, %v4404_v58  ;;  %v4462_v0 = vmul.f32 %v8432_v31, %v4419_v18 }
 0x637   :  { %v8444_v36 = vsub.f32 %v8289_v16, %v4457_v10  ;;  %v8447_v28 = vsub.f32 %v8293_v33, %v4462_v0 }
 0x639   :  { %v4489_v43 = vmul.f32 %v8444_v36, %v8444_v36  ;;  %v4494_v61 = vmul.f32 %v8447_v28, %v8447_v28 }
 0x63b   :  { %v4505_v8 = vsel %vm4401_vm5, %v4489_v43, 0.0  ;;  %v4520_v34 = vsel %vm4401_vm5, %v4494_v61, 0.0 }
 0x63c   :  { %4506 = vadd.xlane.f32.xlu1 %v4505_v8  ;;  %v4413_v3 = vpop.xlane.xlu2 %4412  ;;  %4521 = vadd.xlane.f32.xlu2 %v4520_v34  ;;  %v4428_v39 = vpop.xlane.xlu0 %4427 }
 0x63d   :  { %v4460_v16 = vmul.f32 %v8432_v31, %v4413_v3  ;;  %v4465_v6 = vmul.f32 %v8432_v31, %v4428_v39 }
 0x63f   :  { %v8458_v33 = vsub.f32 %v8310_v44, %v4460_v16  ;;  %v8461_v5 = vsub.f32 %v8315_v54, %v4465_v6 }
 0x641   :  { %v4492_v35 = vmul.f32 %v8458_v33, %v8458_v33  ;;  %v4497_v27 = vmul.f32 %v8461_v5, %v8461_v5 }
 0x643   :  { %v4514_v60 = vsel %vm4401_vm5, %v4492_v35, 0.0  ;;  %v4529_v62 = vsel %vm4401_vm5, %v4497_v27, 0.0 }
 0x644   :  { %4515 = vadd.xlane.f32.xlu1 %v4514_v60  ;;  %v4422_v48 = vpop.xlane.xlu2 %4421  ;;  %4530 = vadd.xlane.f32.xlu2 %v4529_v62  ;;  %v4437_v4 = vpop.xlane.xlu0 %4436 }
 0x645   :  { %v4463_v44 = vmul.f32 %v8432_v31, %v4422_v48  ;;  %v4468_v51 = vmul.f32 %v8432_v31, %v4437_v4 }
 0x647   :  { %v8472_v54 = vsub.f32 %v8332_v22, %v4463_v44  ;;  %v8475_v32 = vsub.f32 %v8337_v38, %v4468_v51 }
 0x649   :  { %v4495_v50 = vmul.f32 %v8472_v54, %v8472_v54  ;;  %v4500_v46 = vmul.f32 %v8475_v32, %v8475_v32 }
 0x64b   :  { %v4523_v55 = vsel %vm4401_vm5, %v4495_v50, 0.0  ;;  %v4538_v23 = vsel %vm4401_vm5, %v4500_v46, 0.0 }
 0x64c   :  { %4524 = vadd.xlane.f32.xlu1 %v4523_v55  ;;  %v4431_v52 = vpop.xlane.xlu2 %4430  ;;  %4539 = vadd.xlane.f32.xlu2 %v4538_v23  ;;  %v4446_v21 = vpop.xlane.xlu0 %4445 }
 0x64d   :  { %v4466_v22 = vmul.f32 %v8432_v31, %v4431_v52  ;;  %v4471_v57 = vmul.f32 %v8432_v31, %v4446_v21 }
 0x64f   :  { %v8486_v38 = vsub.f32 %v8355_v2, %v4466_v22  ;;  %v8489_v7 = vsub.f32 %v8360_v13, %v4471_v57 }
 0x651   :  { %v4498_v37 = vmul.f32 %v8486_v38, %v8486_v38  ;;  %v4503_v40 = vmul.f32 %v8489_v7, %v8489_v7 }
 0x653   :  { %v4407_v12 = vpop.xlane.xlu1 %4406  ;;  %v4532_v45 = vsel %vm4401_vm5, %v4498_v37, 0.0  ;;  %v4547_v15 = vsel %vm4401_vm5, %v4503_v40, 0.0 }
 0x654   :  { %v4458_v14 = vmul.f32 %v8432_v31, %v4407_v12  ;;  %4533 = vadd.xlane.f32.xlu1 %v4532_v45  ;;  %v4440_v59 = vpop.xlane.xlu2 %4439  ;;  %4548 = vadd.xlane.f32.xlu2 %v4547_v15 }
 0x655   :  { %v4469_v2 = vmul.f32 %v8432_v31, %v4440_v59 }
 0x656   :  { %v8500_v13 = vsub.f32 %v8380_v9, %v4458_v14 }
 0x657   :  { %v8503_v25 = vsub.f32 %v8378_v29, %v4469_v2 }
 0x658   :  { %v4490_v19 = vmul.f32 %v8500_v13, %v8500_v13 }
 0x659   :  { %v4501_v63 = vmul.f32 %v8503_v25, %v8503_v25 }
 0x65a   :  { %v4508_v20 = vsel %vm4401_vm5, %v4490_v19, 0.0 }
 0x65b   :  { %4509 = vadd.xlane.f32.xlu0 %v4508_v20  ;;  %v4416_v30 = vpop.xlane.xlu1 %4415  ;;  %v4541_v11 = vsel %vm4401_vm5, %v4501_v63, 0.0  ;;  %v8558_v63 = vld [vmem:[%s8755_s5] ss:$0 sm:$0xff] }
 0x65c   :  { %v4461_v41 = vmul.f32 %v8432_v31, %v4416_v30  ;;  %4542 = vadd.xlane.f32.xlu1 %v4541_v11  ;;  %v4449_v9 = vpop.xlane.xlu2 %4448 }
 0x65d   :  { %v4472_v1 = vmul.f32 %v8432_v31, %v4449_v9 }
 0x65e   :  { %v8514_v29 = vsub.f32 %v8399_v42, %v4461_v41  ;;  %v8565_v41 = vld [vmem:[%s8756_s6] ss:$0 sm:$0xff] }
 0x65f   :  { %v8517_v47 = vsub.f32 %v8397_v26, %v4472_v1 }
 0x660   :  { %v4493_v17 = vmul.f32 %v8514_v29, %v8514_v29 }
 0x661   :  { %v4504_v58 = vmul.f32 %v8517_v47, %v8517_v47 }
 0x662   :  { %v4517_v18 = vsel %vm4401_vm5, %v4493_v17, 0.0 }
 0x663   :  { %4518 = vadd.xlane.f32.xlu0 %v4517_v18  ;;  %v4425_v10 = vpop.xlane.xlu1 %4424  ;;  %v4550_v0 = vsel %vm4401_vm5, %v4504_v58, 0.0 }
 0x664   :  { %v4464_v43 = vmul.f32 %v8432_v31, %v4425_v10  ;;  %4551 = vadd.xlane.f32.xlu1 %v4550_v0 }
 0x666   :  { %v8527_v42 = vsub.f32 %v8410_v49, %v4464_v43 }
 0x668   :  { %v4496_v26 = vmul.f32 %v8527_v42, %v8527_v42 }
 0x66a   :  { %v4526_v61 = vsel %vm4401_vm5, %v4496_v26, 0.0 }
 0x66b   :  { %4527 = vadd.xlane.f32.xlu0 %v4526_v61  ;;  %v4434_v8 = vpop.xlane.xlu1 %4433 }
 0x66c   :  { %v4467_v34 = vmul.f32 %v8432_v31, %v4434_v8 }
 0x66e   :  { %v8534_v3 = vsub.f32 %v8419_v24, %v4467_v34 }
 0x670   :  { %v4499_v39 = vmul.f32 %v8534_v3, %v8534_v3 }
 0x672   :  { %v4535_v16 = vsel %vm4401_vm5, %v4499_v39, 0.0 }
 0x673   :  { %4536 = vadd.xlane.f32.xlu0 %v4535_v16  ;;  %v4443_v49 = vpop.xlane.xlu1 %4442 }
 0x674   :  { %v4470_v6 = vmul.f32 %v8432_v31, %v4443_v49 }
 0x676   :  { %v8541_v35 = vsub.f32 %v8428_v53, %v4470_v6 }
 0x678   :  { %v4502_v27 = vmul.f32 %v8541_v35, %v8541_v35 }
 0x67a   :  { %v4544_v60 = vsel %vm4401_vm5, %v4502_v27, 0.0 }
 0x67b   :  { %4545 = vadd.xlane.f32.xlu0 %v4544_v60 }
 0x6a7   :  { %v4513_v24 = vpop.xlane.xlu2 %4512 }
 0x6a8   :  { %v4555_v62 = vmul.f32 %v4513_v24, %v8432_v31 }
 0x6aa   :  { %v4571_v48 = vadd.f32 1e-05, %v4555_v62 }
 0x6ac   :  { %5643 = vrsqrt.f32 %v4571_v48  ;;  %vm4611_vm8 = vweird.f32 %v4571_v48 }
 0x6af   :  { %v4507_v4 = vpop.xlane.xlu1 %4506  ;;  %v4522_v51 = vpop.xlane.xlu2 %4521 }
 0x6b0   :  { %v4553_v44 = vmul.f32 %v4507_v4, %v8432_v31  ;;  %v4558_v50 = vmul.f32 %v4522_v51, %v8432_v31 }
 0x6b2   :  { %v5644_v46 = vpop.eup %5643  ;;  %v4569_v53 = vadd.f32 1e-05, %v4553_v44  ;;  %v4574_v23 = vadd.f32 1e-05, %v4558_v50 }
 0x6b3   :  { %v4606_v55 = vmul.f32 %v5644_v46, %v4571_v48  ;;  %vm4612_vm7 = vweird.f32 %v5644_v46 }
 0x6b4   :  { %5645 = vrsqrt.f32 %v4569_v53  ;;  %vm4613_vm9 = vmor %vm4611_vm8, %vm4612_vm7  ;;  %vm4591_vm12 = vweird.f32 %v4569_v53  ;;  %vm4641_vm14 = vweird.f32 %v4574_v23 }
 0x6b5   :  { %v4607_v52 = vmul.f32 %v5644_v46, %v4606_v55  ;;  %5647 = vrsqrt.f32 %v4574_v23 }
 0x6b7   :  { %v4608_v21 = vmul.f32 0.5, %v4607_v52  ;;  %v4516_v22 = vpop.xlane.xlu1 %4515  ;;  %v4531_v37 = vpop.xlane.xlu2 %4530 }
 0x6b8   :  { %v4556_v57 = vmul.f32 %v4516_v22, %v8432_v31  ;;  %v4561_v12 = vmul.f32 %v4531_v37, %v8432_v31 }
 0x6b9   :  { %v4609_v40 = vsub.f32 1.5, %v4608_v21 }
 0x6ba   :  { %v5646_v45 = vpop.eup %5645  ;;  %v8551_v15 = vadd.f32 1e-05, %v4556_v57  ;;  %v8553_v19 = vadd.f32 1e-05, %v4561_v12 }
 0x6bb   :  { %v5648_v14 = vpop.eup %5647  ;;  %v4610_v59 = vmul.f32 %v5644_v46, %v4609_v40  ;;  %v4586_v2 = vmul.f32 %v5646_v45, %v4569_v53  ;;  %vm4592_vm10 = vweird.f32 %v5646_v45 }
 0x6bc   :  { %v4636_v20 = vmul.f32 %v5648_v14, %v4574_v23  ;;  %5649 = vrsqrt.f32 %v8551_v15  ;;  %vm4642_vm11 = vweird.f32 %v5648_v14  ;;  %vm4593_vm13 = vmor %vm4591_vm12, %vm4592_vm10  ;;  %vm4621_vm3 = vweird.f32 %v8551_v15 }
 0x6bd   :  { %v4614_v30 = vsel %vm4613_vm9, %v5644_v46, %v4610_v59  ;;  %v4587_v11 = vmul.f32 %v5646_v45, %v4586_v2  ;;  %5651 = vrsqrt.f32 %v8553_v19  ;;  %vm4643_vm0 = vmor %vm4641_vm14, %vm4642_vm11  ;;  %vm4671_vm5 = vweird.f32 %v8553_v19 }
 0x6be   :  { %v4747_v9 = vmul.f32 %v4614_v30, %v8436_v56  ;;  %v4637_v1 = vmul.f32 %v5648_v14, %v4636_v20 }
 0x6bf   :  { %v4588_v17 = vmul.f32 0.5, %v4587_v11  ;;  %v4525_v58 = vpop.xlane.xlu1 %4524  ;;  %v4540_v26 = vpop.xlane.xlu2 %4539 }
 0x6c0   :  { %v4767_v18 = vmul.f32 %v8558_v63, %v4747_v9  ;;  %v4638_v10 = vmul.f32 0.5, %v4637_v1  ;;  %v4559_v0 = vmul.f32 %v4525_v58, %v8432_v31  ;;  %v4564_v6 = vmul.f32 %v4540_v26, %v8432_v31 }
 0x6c1   :  { %v4589_v43 = vsub.f32 1.5, %v4588_v17 }
 0x6c2   :  { %v5650_v61 = vpop.eup %5649  ;;  %v4787_v8 = vadd.f32 %v8565_v41, %v4767_v18  ;;  %v4639_v34 = vsub.f32 1.5, %v4638_v10  ;;  %v8571_v39 = vadd.f32 1e-05, %v4559_v0  ;;  %v8580_v55 = vadd.f32 1e-05, %v4564_v6 }
 0x6c3   :  { %v5652_v16 = vpop.eup %5651  ;;  %v4590_v56 = vmul.f32 %v5646_v45, %v4589_v43  ;;  %v4616_v49 = vmul.f32 %v5650_v61, %v8551_v15  ;;  %vm4622_vm1 = vweird.f32 %v5650_v61 }
 0x6c4   :  { %v4803_v27 = vmax.f32 %v4787_v8, 0.0  ;;  %v4640_v60 = vmul.f32 %v5648_v14, %v4639_v34  ;;  %v4666_v24 = vmul.f32 %v5652_v16, %v8553_v19  ;;  %5653 = vrsqrt.f32 %v8571_v39  ;;  %vm4623_vm4 = vmor %vm4621_vm3, %vm4622_vm1 }
 0x6c5   :  { %v4594_v62 = vsel %vm4593_vm13, %v5646_v45, %v4590_v56  ;;  %v4617_v48 = vmul.f32 %v5650_v61, %v4616_v49  ;;  %5655 = vrsqrt.f32 %v8580_v55  ;;  %vm4672_vm2 = vweird.f32 %v5652_v16 }
 0x6c6   :  { %v4819_v4 = vpack.c.bf16 %v4803_v27, %v4803_v27  ;;  %v4745_v44 = vmul.f32 %v4594_v62, %v8444_v36  ;;  %v4644_v51 = vsel %vm4643_vm0, %v5648_v14, %v4640_v60  ;;  %v4667_v50 = vmul.f32 %v5652_v16, %v4666_v24  ;;  %vm4673_vm6 = vmor %vm4671_vm5, %vm4672_vm2 }
 0x6c7   :  { %v4750_v46 = vmul.f32 %v4644_v51, %v8447_v28  ;;  %v4618_v53 = vmul.f32 0.5, %v4617_v48  ;;  %v4534_v23 = vpop.xlane.xlu1 %4533  ;;  %v4549_v28 = vpop.xlane.xlu2 %4548  ;;  %vm4651_vm8 = vweird.f32 %v8571_v39  ;;  %vm4701_vm11 = vweird.f32 %v8580_v55 }
 0x6c8   :  { %4836 = vst.msk [vmem:[%s8757_s7 + $0x8] sm:$0xf] %vm4833_vm15, %v4819_v4  ;;  %v4765_v52 = vmul.f32 %v8558_v63, %v4745_v44  ;;  %v4668_v21 = vmul.f32 0.5, %v4667_v50  ;;  %v4562_v22 = vmul.f32 %v4534_v23, %v8432_v31  ;;  %v4567_v2 = vmul.f32 %v4549_v28, %v8432_v31 }
 0x6c9   :  { %v4770_v36 = vmul.f32 %v8558_v63, %v4750_v46  ;;  %v4619_v57 = vsub.f32 1.5, %v4618_v53 }
 0x6ca   :  { %v4785_v37 = vadd.f32 %v8565_v41, %v4765_v52  ;;  %v4669_v40 = vsub.f32 1.5, %v4668_v21  ;;  %v8591_v12 = vadd.f32 1e-05, %v4562_v22  ;;  %v5654_v45 = vpop.eup %5653  ;;  %v8601_v8 = vadd.f32 1e-05, %v4567_v2 }
 0x6cb   :  { %v4790_v14 = vadd.f32 %v8565_v41, %v4770_v36  ;;  %v4620_v59 = vmul.f32 %v5650_v61, %v4619_v57  ;;  %v4646_v11 = vmul.f32 %v5654_v45, %v8571_v39  ;;  %v5656_v0 = vpop.eup %5655  ;;  %vm4652_vm7 = vweird.f32 %v5654_v45 }
 0x6cc   :  { %v4801_v20 = vmax.f32 %v4785_v37, 0.0  ;;  %v4670_v30 = vmul.f32 %v5652_v16, %v4669_v40  ;;  %5657 = vrsqrt.f32 %v8591_v12  ;;  %vm4653_vm9 = vmor %vm4651_vm8, %vm4652_vm7  ;;  %vm4702_vm10 = vweird.f32 %v5656_v0 }
 0x6cd   :  { %v4806_v9 = vmax.f32 %v4790_v14, 0.0  ;;  %v4624_v1 = vsel %vm4623_vm4, %v5650_v61, %v4620_v59  ;;  %v4647_v10 = vmul.f32 %v5654_v45, %v4646_v11  ;;  %5659 = vrsqrt.f32 %v8601_v8  ;;  %vm4703_vm12 = vmor %vm4701_vm11, %vm4702_vm10 }
 0x6ce   :  { %v4817_v17 = vpack.c.bf16 %v4801_v20, %v4801_v20  ;;  %v4748_v58 = vmul.f32 %v4624_v1, %v8458_v33  ;;  %v4674_v18 = vsel %vm4673_vm6, %v5652_v16, %v4670_v30  ;;  %v4510_v15 = vpop.xlane.xlu0 %4509  ;;  %v4696_v16 = vmul.f32 %v5656_v0, %v8580_v55 }
 0x6cf   :  { %v4822_v43 = vpack.c.bf16 %v4806_v9, %v4806_v9  ;;  %v4753_v26 = vmul.f32 %v4674_v18, %v8461_v5  ;;  %v4554_v19 = vmul.f32 %v4510_v15, %v8432_v31  ;;  %v4543_v34 = vpop.xlane.xlu1 %4542  ;;  %v4648_v33 = vmul.f32 0.5, %v4647_v10 }
 0x6d0   :  { %4834 = vst.msk [vmem:[%s8757_s7] sm:$0xf] %vm4833_vm15, %v4817_v17  ;;  %v4768_v61 = vmul.f32 %v8558_v63, %v4748_v58  ;;  %v4697_v27 = vmul.f32 %v5656_v0, %v4696_v16  ;;  %v4565_v60 = vmul.f32 %v4543_v34, %v8432_v31  ;;  %vm4681_vm13 = vweird.f32 %v8591_v12 }
 0x6d1   :  { %4839 = vst.msk [vmem:[%s8757_s7 + $0x14] sm:$0xf] %vm4833_vm15, %v4822_v43  ;;  %v4773_v5 = vmul.f32 %v8558_v63, %v4753_v26  ;;  %v8616_v56 = vadd.f32 1e-05, %v4554_v19  ;;  %v4649_v6 = vsub.f32 1.5, %v4648_v33  ;;  %vm4731_vm0 = vweird.f32 %v8601_v8 }
 0x6d2   :  { %v4788_v49 = vadd.f32 %v8565_v41, %v4768_v61  ;;  %v5658_v24 = vpop.eup %5657  ;;  %v4698_v44 = vmul.f32 0.5, %v4697_v27  ;;  %v8625_v46 = vadd.f32 1e-05, %v4565_v60 }
 0x6d3   :  { %v4793_v62 = vadd.f32 %v8565_v41, %v4773_v5  ;;  %5661 = vrsqrt.f32 %v8616_v56  ;;  %v4650_v4 = vmul.f32 %v5654_v45, %v4649_v6  ;;  %v4676_v51 = vmul.f32 %v5658_v24, %v8591_v12  ;;  %v5660_v36 = vpop.eup %5659 }
 0x6d4   :  { %v4804_v48 = vmax.f32 %v4788_v49, 0.0  ;;  %v4699_v52 = vsub.f32 1.5, %v4698_v44  ;;  %5663 = vrsqrt.f32 %v8625_v46  ;;  %v4726_v40 = vmul.f32 %v5660_v36, %v8601_v8 }
 0x6d5   :  { %v4809_v50 = vmax.f32 %v4793_v62, 0.0  ;;  %v4654_v23 = vsel %vm4653_vm9, %v5654_v45, %v4650_v4  ;;  %v4677_v21 = vmul.f32 %v5658_v24, %v4676_v51  ;;  %vm4682_vm14 = vweird.f32 %v5658_v24 }
 0x6d6   :  { %v4820_v53 = vpack.c.bf16 %v4804_v48, %v4804_v48  ;;  %v4519_v22 = vpop.xlane.xlu0 %4518  ;;  %v4751_v57 = vmul.f32 %v4654_v23, %v8472_v54  ;;  %v4700_v28 = vmul.f32 %v5656_v0, %v4699_v52  ;;  %v4727_v20 = vmul.f32 %v5660_v36, %v4726_v40  ;;  %vm4683_vm1 = vmor %vm4681_vm13, %vm4682_vm14 }
 0x6d7   :  { %v4825_v39 = vpack.c.bf16 %v4809_v50, %v4809_v50  ;;  %v4678_v37 = vmul.f32 0.5, %v4677_v21  ;;  %v4557_v14 = vmul.f32 %v4519_v22, %v8432_v31  ;;  %v4552_v59 = vpop.xlane.xlu1 %4551  ;;  %vm4732_vm2 = vweird.f32 %v5660_v36 }
 0x6d8   :  { %4837 = vst.msk [vmem:[%s8757_s7 + $0xc] sm:$0xf] %vm4833_vm15, %v4820_v53  ;;  %v4771_v54 = vmul.f32 %v8558_v63, %v4751_v57  ;;  %v4704_v55 = vsel %vm4703_vm12, %v5656_v0, %v4700_v28  ;;  %v4728_v58 = vmul.f32 0.5, %v4727_v20  ;;  %v4568_v10 = vmul.f32 %v4552_v59, %v8432_v31  ;;  %vm4733_vm4 = vmor %vm4731_vm0, %vm4732_vm2 }
 0x6d9   :  { %v5662_v45 = vpop.eup %5661  ;;  %4842 = vst.msk [vmem:[%s8757_s7 + $0x20] sm:$0xf] %vm4833_vm15, %v4825_v39  ;;  %v4679_v2 = vsub.f32 1.5, %v4678_v37  ;;  %v4756_v9 = vmul.f32 %v4704_v55, %v8475_v32  ;;  %v8647_v1 = vadd.f32 1e-05, %v4557_v14  ;;  %vm4601_vm5 = vweird.f32 %v8616_v56 }
 0x6da   :  { %v4596_v30 = vmul.f32 %v5662_v45, %v8616_v56  ;;  %v4791_v11 = vadd.f32 %v8565_v41, %v4771_v54  ;;  %v5664_v15 = vpop.eup %5663  ;;  %v4729_v26 = vsub.f32 1.5, %v4728_v58  ;;  %vm4602_vm3 = vweird.f32 %v5662_v45 }
 0x6db   :  { %v4680_v17 = vmul.f32 %v5658_v24, %v4679_v2  ;;  %v4776_v0 = vmul.f32 %v8558_v63, %v4756_v9  ;;  %5665 = vrsqrt.f32 %v8647_v1  ;;  %v4706_v34 = vmul.f32 %v5664_v15, %v8625_v46  ;;  %vm4603_vm6 = vmor %vm4601_vm5, %vm4602_vm3 }
 0x6dc   :  { %v4597_v18 = vmul.f32 %v5662_v45, %v4596_v30  ;;  %v4807_v43 = vmax.f32 %v4791_v11, 0.0  ;;  %v4730_v49 = vmul.f32 %v5660_v36, %v4729_v26  ;;  %v8658_v12 = vadd.f32 1e-05, %v4568_v10 }
 0x6dd   :  { %v4684_v32 = vsel %vm4683_vm1, %v5658_v24, %v4680_v17  ;;  %v4796_v16 = vadd.f32 %v8565_v41, %v4776_v0  ;;  %v4707_v27 = vmul.f32 %v5664_v15, %v4706_v34  ;;  %vm4712_vm7 = vweird.f32 %v5664_v15 }
 0x6de   :  { %v4598_v19 = vmul.f32 0.5, %v4597_v18  ;;  %v4528_v61 = vpop.xlane.xlu0 %4527  ;;  %v4823_v33 = vpack.c.bf16 %v4807_v43, %v4807_v43  ;;  %v4754_v5 = vmul.f32 %v4684_v32, %v8486_v38  ;;  %v4734_v62 = vsel %vm4733_vm4, %v5660_v36, %v4730_v49 }
 0x6df   :  { %v4812_v60 = vmax.f32 %v4796_v16, 0.0  ;;  %v4560_v38 = vmul.f32 %v4528_v61, %v8432_v31  ;;  %v4708_v4 = vmul.f32 0.5, %v4707_v27  ;;  %5667 = vrsqrt.f32 %v8658_v12 }
 0x6e0   :  { %v4599_v6 = vsub.f32 1.5, %v4598_v19  ;;  %4840 = vst.msk [vmem:[%s8757_s7 + $0x18] sm:$0xf] %vm4833_vm15, %v4823_v33  ;;  %v4774_v24 = vmul.f32 %v8558_v63, %v4754_v5  ;;  %v4759_v53 = vmul.f32 %v4734_v62, %v8489_v7  ;;  %vm4711_vm8 = vweird.f32 %v8625_v46 }
 0x6e1   :  { %v5666_v44 = vpop.eup %5665  ;;  %v4828_v51 = vpack.c.bf16 %v4812_v60, %v4812_v60  ;;  %v4709_v8 = vsub.f32 1.5, %v4708_v4  ;;  %v8681_v36 = vadd.f32 1e-05, %v4560_v38  ;;  %vm4713_vm9 = vmor %vm4711_vm8, %vm4712_vm7  ;;  %vm4631_vm11 = vweird.f32 %v8647_v1 }
 0x6e2   :  { %v4600_v48 = vmul.f32 %v5662_v45, %v4599_v6  ;;  %v4794_v50 = vadd.f32 %v8565_v41, %v4774_v24  ;;  %v4626_v56 = vmul.f32 %v5666_v44, %v8647_v1  ;;  %v4779_v21 = vmul.f32 %v8558_v63, %v4759_v53 }
 0x6e3   :  { %4845 = vst.msk [vmem:[%s8757_s7 + $0x2c] sm:$0xf] %vm4833_vm15, %v4828_v51  ;;  %v4710_v7 = vmul.f32 %v5664_v15, %v4709_v8  ;;  %5669 = vrsqrt.f32 %v8681_v36  ;;  %vm4632_vm10 = vweird.f32 %v5666_v44  ;;  %vm4741_vm14 = vweird.f32 %v8658_v12 }
 0x6e4   :  { %v4604_v23 = vsel %vm4603_vm6, %v5662_v45, %v4600_v48  ;;  %v4810_v52 = vmax.f32 %v4794_v50, 0.0  ;;  %v4627_v39 = vmul.f32 %v5666_v44, %v4626_v56  ;;  %v4799_v37 = vadd.f32 %v8565_v41, %v4779_v21  ;;  %vm4633_vm12 = vmor %vm4631_vm11, %vm4632_vm10 }
 0x6e5   :  { %v4746_v22 = vmul.f32 %v4604_v23, %v8500_v13  ;;  %v5668_v45 = vpop.eup %5667  ;;  %v4714_v54 = vsel %vm4713_vm9, %v5664_v15, %v4710_v7  ;;  %vm4661_vm2 = vweird.f32 %v8681_v36 }
 0x6e6   :  { %v4537_v57 = vpop.xlane.xlu0 %4536  ;;  %v4826_v28 = vpack.c.bf16 %v4810_v52, %v4810_v52  ;;  %v4628_v14 = vmul.f32 0.5, %v4627_v39  ;;  %v4815_v46 = vmax.f32 %v4799_v37, 0.0  ;;  %v4757_v55 = vmul.f32 %v4714_v54, %v8503_v25 }
 0x6e7   :  { %v4766_v40 = vmul.f32 %v8558_v63, %v4746_v22  ;;  %v4563_v13 = vmul.f32 %v4537_v57, %v8432_v31  ;;  %v4736_v2 = vmul.f32 %v5668_v45, %v8658_v12  ;;  %vm4742_vm13 = vweird.f32 %v5668_v45 }
 0x6e8   :  { %4843 = vst.msk [vmem:[%s8757_s7 + $0x24] sm:$0xf] %vm4833_vm15, %v4826_v28  ;;  %v4629_v20 = vsub.f32 1.5, %v4628_v14  ;;  %v4831_v11 = vpack.c.bf16 %v4815_v46, %v4815_v46  ;;  %v4777_v17 = vmul.f32 %v8558_v63, %v4757_v55  ;;  %vm4743_vm0 = vmor %vm4741_vm14, %vm4742_vm13 }
 0x6e9   :  { %v4786_v59 = vadd.f32 %v8565_v41, %v4766_v40  ;;  %v4579_v30 = vadd.f32 1e-05, %v4563_v13  ;;  %v4737_v58 = vmul.f32 %v5668_v45, %v4736_v2  ;;  %v5670_v10 = vpop.eup %5669 }
 0x6ea   :  { %v4630_v18 = vmul.f32 %v5666_v44, %v4629_v20  ;;  %4848 = vst.msk [vmem:[%s8757_s7 + $0x38] sm:$0xf] %vm4833_vm15, %v4831_v11  ;;  %v4797_v15 = vadd.f32 %v8565_v41, %v4777_v17  ;;  %v4656_v32 = vmul.f32 %v5670_v10, %v8681_v36  ;;  %vm4662_vm1 = vweird.f32 %v5670_v10 }
 0x6eb   :  { %v4802_v9 = vmax.f32 %v4786_v59, 0.0  ;;  %5671 = vrsqrt.f32 %v4579_v30  ;;  %v4738_v43 = vmul.f32 0.5, %v4737_v58  ;;  %vm4663_vm3 = vmor %vm4661_vm2, %vm4662_vm1  ;;  %vm4691_vm5 = vweird.f32 %v4579_v30 }
 0x6ec   :  { %v4634_v0 = vsel %vm4633_vm12, %v5666_v44, %v4630_v18  ;;  %v4813_v1 = vmax.f32 %v4797_v15, 0.0  ;;  %v4657_v33 = vmul.f32 %v5670_v10, %v4656_v32 }
 0x6ed   :  { %v4818_v25 = vpack.c.bf16 %v4802_v9, %v4802_v9  ;;  %v4749_v19 = vmul.f32 %v4634_v0, %v8514_v29  ;;  %v4739_v34 = vsub.f32 1.5, %v4738_v43 }
 0x6ee   :  { %v4546_v26 = vpop.xlane.xlu0 %4545  ;;  %v4829_v16 = vpack.c.bf16 %v4813_v1, %v4813_v1  ;;  %v4658_v60 = vmul.f32 0.5, %v4657_v33 }
 0x6ef   :  { %4835 = vst.msk [vmem:[%s8757_s7 + $0x4] sm:$0xf] %vm4833_vm15, %v4818_v25  ;;  %v4566_v61 = vmul.f32 %v4546_v26, %v8432_v31  ;;  %v4769_v5 = vmul.f32 %v8558_v63, %v4749_v19  ;;  %v4740_v49 = vmul.f32 %v5668_v45, %v4739_v34 }
 0x6f0   :  { %4846 = vst.msk [vmem:[%s8757_s7 + $0x30] sm:$0xf] %vm4833_vm15, %v4829_v16  ;;  %v4659_v38 = vsub.f32 1.5, %v4658_v60 }
 0x6f1   :  { %v4582_v6 = vadd.f32 1e-05, %v4566_v61  ;;  %v5672_v27 = vpop.eup %5671  ;;  %v4789_v29 = vadd.f32 %v8565_v41, %v4769_v5  ;;  %v4744_v31 = vsel %vm4743_vm0, %v5668_v45, %v4740_v49 }
 0x6f2   :  { %v4686_v24 = vmul.f32 %v5672_v27, %v4579_v30  ;;  %v4760_v12 = vmul.f32 %v4744_v31, %v8517_v47  ;;  %v4660_v44 = vmul.f32 %v5670_v10, %v4659_v38  ;;  %vm4692_vm4 = vweird.f32 %v5672_v27 }
 0x6f3   :  { %5673 = vrsqrt.f32 %v4582_v6  ;;  %v4805_v62 = vmax.f32 %v4789_v29, 0.0  ;;  %vm4693_vm6 = vmor %vm4691_vm5, %vm4692_vm4  ;;  %vm4721_vm8 = vweird.f32 %v4582_v6 }
 0x6f4   :  { %v4687_v48 = vmul.f32 %v5672_v27, %v4686_v24  ;;  %v4780_v4 = vmul.f32 %v8558_v63, %v4760_v12  ;;  %v4664_v23 = vsel %vm4663_vm3, %v5670_v10, %v4660_v44 }
 0x6f5   :  { %v4821_v51 = vpack.c.bf16 %v4805_v62, %v4805_v62  ;;  %v4752_v47 = vmul.f32 %v4664_v23, %v8527_v42 }
 0x6f6   :  { %v4688_v50 = vmul.f32 0.5, %v4687_v48  ;;  %v4800_v53 = vadd.f32 %v8565_v41, %v4780_v4 }
 0x6f7   :  { %4838 = vst.msk [vmem:[%s8757_s7 + $0x10] sm:$0xf] %vm4833_vm15, %v4821_v51  ;;  %v4772_v21 = vmul.f32 %v8558_v63, %v4752_v47 }
 0x6f8   :  { %v4689_v8 = vsub.f32 1.5, %v4688_v50  ;;  %v4816_v52 = vmax.f32 %v4800_v53, 0.0 }
 0x6f9   :  { %v5674_v56 = vpop.eup %5673  ;;  %v4792_v39 = vadd.f32 %v8565_v41, %v4772_v21 }
 0x6fa   :  { %v4690_v22 = vmul.f32 %v5672_v27, %v4689_v8  ;;  %v4716_v36 = vmul.f32 %v5674_v56, %v4582_v6  ;;  %v4832_v7 = vpack.c.bf16 %v4816_v52, %v4816_v52  ;;  %vm4722_vm7 = vweird.f32 %v5674_v56 }
 0x6fb   :  { %v4808_v37 = vmax.f32 %v4792_v39, 0.0  ;;  %vm4723_vm9 = vmor %vm4721_vm8, %vm4722_vm7 }
 0x6fc   :  { %v4694_v57 = vsel %vm4693_vm6, %v5672_v27, %v4690_v22  ;;  %v4717_v28 = vmul.f32 %v5674_v56, %v4716_v36  ;;  %4849 = vst.msk [vmem:[%s8757_s7 + $0x3c] sm:$0xf] %vm4833_vm15, %v4832_v7 }
 0x6fd   :  { %v4755_v42 = vmul.f32 %v4694_v57, %v8534_v3  ;;  %v4824_v54 = vpack.c.bf16 %v4808_v37, %v4808_v37 }
 0x6fe   :  { %v4718_v40 = vmul.f32 0.5, %v4717_v28 }
 0x6ff   :  { %v4775_v45 = vmul.f32 %v8558_v63, %v4755_v42  ;;  %4841 = vst.msk [vmem:[%s8757_s7 + $0x1c] sm:$0xf] %vm4833_vm15, %v4824_v54 }
 0x700   :  { %v4719_v14 = vsub.f32 1.5, %v4718_v40 }
 0x701   :  { %v4795_v13 = vadd.f32 %v8565_v41, %v4775_v45 }
 0x702   :  { %v4720_v46 = vmul.f32 %v5674_v56, %v4719_v14 }
 0x703   :  { %v4811_v59 = vmax.f32 %v4795_v13, 0.0 }
 0x704   :  { %v4724_v55 = vsel %vm4723_vm9, %v5674_v56, %v4720_v46 }
 0x705   :  { %v4827_v3 = vpack.c.bf16 %v4811_v59, %v4811_v59  ;;  %v4758_v2 = vmul.f32 %v4724_v55, %v8541_v35 }
 0x707   :  { %4844 = vst.msk [vmem:[%s8757_s7 + $0x28] sm:$0xf] %vm4833_vm15, %v4827_v3  ;;  %v4778_v20 = vmul.f32 %v8558_v63, %v4758_v2 }
 0x709   :  { %v4798_v30 = vadd.f32 %v8565_v41, %v4778_v20 }
 0x70b   :  { %v4814_v11 = vmax.f32 %v4798_v30, 0.0 }
 0x70d   :  { %v4830_v9 = vpack.c.bf16 %v4814_v11, %v4814_v11 }
 0x70f   :  { %4847 = vst.msk [vmem:[%s8757_s7 + $0x34] sm:$0xf] %vm4833_vm15, %v4830_v9 }

</bundles_post_ra>
